<compile_context>
chip_gen: v5e
topology: v5e:2x2
jax: 0.10.0
libtpu: 0.0.40
codegen_flags: <defaults>
</compile_context>

<pallas_src>
import functools

import jax
import jax.numpy as jnp
from jax.experimental import pallas as pl
from jax.experimental.pallas import tpu as pltpu

CP = 128       # channel padding: one full lane width
PAD_OFF = 8    # sublane-aligned column where the activation starts inside the halo buffer


def _resblk_kernel(x_ref, w1_ref, b1_ref, w2_ref, b2_ref, w3_ref, b3_ref,
                   we_ref, be_ref, o_ref, pad_ref, *, H, W):
    HW = H * W

    def conv3x3(src_ref, w_ref):
        # 3x3 conv (padding=1) as 9 shifted-window matmuls on the MXU, f32 accumulate.
        acc = jnp.zeros((HW, CP), jnp.float32)
        for t in range(9):
            dy, dx = t // 3, t % 3
            c0 = PAD_OFF - 1 + dx
            a = src_ref[0, dy:dy + H, c0:c0 + W, :]          # (H, W, CP) f32
            a = a.reshape(HW, CP).astype(jnp.bfloat16)
            acc = acc + jnp.dot(a, w_ref[t], preferred_element_type=jnp.float32)
        return acc

    # Fresh zero halo every grid step (safe under "parallel" megacore sharding).
    pad_ref[...] = jnp.zeros_like(pad_ref)

    # out = relu(bn1(conv1(x)))           (BN scale folded into w1, rest into b1)
    o1 = jnp.maximum(conv3x3(x_ref, w1_ref) + b1_ref[...], 0.0)
    pad_ref[0, 1:H + 1, PAD_OFF:PAD_OFF + W, :] = o1.reshape(H, W, CP)

    # out = relu(bn2(conv2(out)))
    o2 = jnp.maximum(conv3x3(pad_ref, w2_ref) + b2_ref[...], 0.0)

    # shortcut = bn_e(conv_e(x))          (out_channels != in_channels branch)
    sc = conv3x3(x_ref, we_ref) + be_ref[...]

    pad_ref[0, 1:H + 1, PAD_OFF:PAD_OFF + W, :] = o2.reshape(H, W, CP)

    # out = relu(bn3(conv3(out)) + shortcut)   -- fused epilogue
    out = jnp.maximum(conv3x3(pad_ref, w3_ref) + b3_ref[...] + sc, 0.0)
    o_ref[...] = out.reshape(1, H, W, CP).astype(o_ref.dtype)


@functools.partial(jax.jit, static_argnames=("out_channels",))
def resblk_forward(x_nchw, params, out_channels):
    N, Cin, H, W = x_nchw.shape
    assert W % 8 == 0 and H % 8 == 0, "spatial dims must be multiples of 8"
    WP = PAD_OFF + W + PAD_OFF  # halo-buffer width; activation at sublane-aligned offset 8

    # NCHW -> NHWC, pad channels to 128 lanes, place inside the spatial halo buffer.
    x = jnp.transpose(x_nchw, (0, 2, 3, 1))
    xp = jnp.zeros((N, H + 2, WP, CP), jnp.float32)
    xp = xp.at[:, 1:H + 1, PAD_OFF:PAD_OFF + W, :Cin].set(x)

    (w1, b1), (w2, b2), (w3, b3), (we, be) = params

    kernel = functools.partial(_resblk_kernel, H=H, W=W)
    wspec = pl.BlockSpec((9, CP, CP), lambda b: (0, 0, 0))
    bspec = pl.BlockSpec((1, CP), lambda b: (0, 0))

    out = pl.pallas_call(
        kernel,
        out_shape=jax.ShapeDtypeStruct((N, H, W, CP), jnp.float32),
        grid=(N,),
        in_specs=[
            pl.BlockSpec((1, H + 2, WP, CP), lambda b: (b, 0, 0, 0)),  # halo-padded input
            wspec, bspec,   # conv1 + bn1
            wspec, bspec,   # conv2 + bn2
            wspec, bspec,   # conv3 + bn3
            wspec, bspec,   # shortcut conv + bn
        ],
        out_specs=pl.BlockSpec((1, H, W, CP), lambda b: (b, 0, 0, 0)),
        scratch_shapes=[pltpu.VMEM((1, H + 2, WP, CP), jnp.float32)],
        compiler_params=pltpu.CompilerParams(
            dimension_semantics=("parallel",),
            vmem_limit_bytes=32 * 1024 * 1024,
        ),
    )(xp, w1, b1, w2, b2, w3, b3, we, be)

    out = out[:, :, :, :out_channels]            # drop channel padding
    return jnp.transpose(out, (0, 3, 1, 2))      # NHWC -> NCHW


def make_conv_bn_params(key, cin, cout):
    # Deterministic synthetic conv + inference-mode BatchNorm parameters, folded into
    # a (9, CP, CP) bf16 tap-weight tensor and a (1, CP) f32 bias.
    kw, kb, kg, kbeta, km, kv = jax.random.split(key, 6)
    w = 0.1 * jax.random.normal(kw, (3, 3, cin, cout), jnp.float32)
    b = 0.1 * jax.random.normal(kb, (cout,), jnp.float32)
    gamma = 1.0 + 0.1 * jax.random.normal(kg, (cout,), jnp.float32)
    beta = 0.1 * jax.random.normal(kbeta, (cout,), jnp.float32)
    run_mean = 0.1 * jax.random.normal(km, (cout,), jnp.float32)
    run_var = jax.random.uniform(kv, (cout,), jnp.float32, 0.5, 1.5)
    eps = 1e-5
    scale = gamma / jnp.sqrt(run_var + eps)
    bias = (b - run_mean) * scale + beta                 # folded conv-bias + BN shift
    w_folded = (w * scale).reshape(9, cin, cout)         # fold BN scale into weights
    w_pad = jnp.zeros((9, CP, CP), jnp.float32).at[:, :cin, :cout].set(w_folded)
    b_pad = jnp.zeros((1, CP), jnp.float32).at[:, :cout].set(bias)
    return w_pad.astype(jnp.bfloat16), b_pad


if __name__ == "__main__":
    key = jax.random.PRNGKey(0)
    kx, k1, k2, k3, ke = jax.random.split(key, 5)

    N, Cin, H, W = 2, 4, 16, 16
    mid, cout = 8, 16  # out_channels != in_channels -> conv+BN shortcut branch
    # TODO(synk): the out_channels == in_channels branch of the PyTorch module assigns the
    # nn.Sequential *class* to self.extra (not a valid identity); only the
    # out_channels != in_channels (conv3x3 + BN shortcut) branch is implemented.

    x = jax.random.uniform(kx, (N, Cin, H, W), jnp.float32)

    params = (
        make_conv_bn_params(k1, Cin, mid),
        make_conv_bn_params(k2, mid, mid),
        make_conv_bn_params(k3, mid, cout),
        make_conv_bn_params(ke, Cin, cout),
    )

    out = resblk_forward(x, params, cout)
    out = jax.block_until_ready(out)
    assert out.shape == (N, cout, H, W)
    assert bool(jnp.all(out >= 0.0))  # final ReLU
    print("KERNEL_OK")
</pallas_src>

<mosaic_0001>
module attributes {stable_mosaic.version = 11 : i64} {
  func.func @_resblk_kernel(%arg0: i32, %arg1: memref<1x18x32x128xf32, #tpu.memory_space<vmem>>, %arg2: memref<9x128x128xbf16, #tpu.memory_space<vmem>>, %arg3: memref<1x128xf32, #tpu.memory_space<vmem>>, %arg4: memref<9x128x128xbf16, #tpu.memory_space<vmem>>, %arg5: memref<1x128xf32, #tpu.memory_space<vmem>>, %arg6: memref<9x128x128xbf16, #tpu.memory_space<vmem>>, %arg7: memref<1x128xf32, #tpu.memory_space<vmem>>, %arg8: memref<9x128x128xbf16, #tpu.memory_space<vmem>>, %arg9: memref<1x128xf32, #tpu.memory_space<vmem>>, %arg10: memref<1x16x16x128xf32, #tpu.memory_space<vmem>>, %arg11: memref<1x18x32x128xf32, #tpu.memory_space<vmem>>) attributes {dimension_semantics = [#tpu.dimension_semantics<parallel>], iteration_bounds = array<i64: 2>, scalar_prefetch = 0 : i64, scratch_operands = 1 : i64, tpu.core_type = #tpu.core_type<tc>, window_params = [{transform_indices = @transform_0, window_bounds = array<i64: 1, 18, 32, 128>}, {pipeline_mode = #tpu.pipeline_mode<synchronous>, transform_indices = @transform_1, window_bounds = array<i64: 9, 128, 128>}, {pipeline_mode = #tpu.pipeline_mode<synchronous>, transform_indices = @transform_2, window_bounds = array<i64: 1, 128>}, {pipeline_mode = #tpu.pipeline_mode<synchronous>, transform_indices = @transform_3, window_bounds = array<i64: 9, 128, 128>}, {pipeline_mode = #tpu.pipeline_mode<synchronous>, transform_indices = @transform_4, window_bounds = array<i64: 1, 128>}, {pipeline_mode = #tpu.pipeline_mode<synchronous>, transform_indices = @transform_5, window_bounds = array<i64: 9, 128, 128>}, {pipeline_mode = #tpu.pipeline_mode<synchronous>, transform_indices = @transform_6, window_bounds = array<i64: 1, 128>}, {pipeline_mode = #tpu.pipeline_mode<synchronous>, transform_indices = @transform_7, window_bounds = array<i64: 9, 128, 128>}, {pipeline_mode = #tpu.pipeline_mode<synchronous>, transform_indices = @transform_8, window_bounds = array<i64: 1, 128>}, {transform_indices = @transform_9, window_bounds = array<i64: 1, 16, 16, 128>}]} {
    %cst = arith.constant 0.000000e+00 : f32
    %0 = vector.broadcast %cst : f32 to vector<1x18x32x128xf32>
    %c0 = arith.constant 0 : index
    %c0_0 = arith.constant 0 : index
    %c0_1 = arith.constant 0 : index
    %c0_2 = arith.constant 0 : index
    %1 = vector.load %arg11[%c0, %c0_0, %c0_1, %c0_2] : memref<1x18x32x128xf32, #tpu.memory_space<vmem>>, vector<1x18x32x128xf32>
    tpu.vector_store %arg11[%c0, %c0_0, %c0_1, %c0_2], %0 {strides = array<i32>} : memref<1x18x32x128xf32, #tpu.memory_space<vmem>>, vector<1x18x32x128xf32>,
    %cst_3 = arith.constant 0.000000e+00 : f32
    %2 = vector.broadcast %cst_3 : f32 to vector<256x128xf32>
    %c0_4 = arith.constant 0 : index
    %c0_5 = arith.constant 0 : index
    %c7 = arith.constant 7 : index
    %c0_6 = arith.constant 0 : index
    %3 = vector.load %arg1[%c0_4, %c0_5, %c7, %c0_6] : memref<1x18x32x128xf32, #tpu.memory_space<vmem>>, vector<1x16x16x128xf32>
    %4 = vector.shape_cast %3 : vector<1x16x16x128xf32> to vector<16x16x128xf32>
    %5 = vector.shape_cast %4 : vector<16x16x128xf32> to vector<256x128xf32>
    %6 = arith.truncf %5 : vector<256x128xf32> to vector<256x128xbf16>
    %c0_7 = arith.constant 0 : index
    %c0_8 = arith.constant 0 : index
    %c0_9 = arith.constant 0 : index
    %7 = vector.load %arg2[%c0_7, %c0_8, %c0_9] : memref<9x128x128xbf16, #tpu.memory_space<vmem>>, vector<1x128x128xbf16>
    %8 = vector.shape_cast %7 : vector<1x128x128xbf16> to vector<128x128xbf16>
    %cst_10 = arith.constant dense<0.000000e+00> : vector<256x128xf32>
    %9 = tpu.matmul %6, %8, %cst_10 {dimension_numbers = #tpu.dot_dimension_numbers<[1], [0], [0], [1], [0, 0, 1, 1], [], []>} : vector<256x128xbf16>, vector<128x128xbf16>, vector<256x128xf32> -> vector<256x128xf32>
    %10 = arith.addf %2, %9 : vector<256x128xf32>
    %c0_11 = arith.constant 0 : index
    %c0_12 = arith.constant 0 : index
    %c8 = arith.constant 8 : index
    %c0_13 = arith.constant 0 : index
    %11 = vector.load %arg1[%c0_11, %c0_12, %c8, %c0_13] : memref<1x18x32x128xf32, #tpu.memory_space<vmem>>, vector<1x16x16x128xf32>
    %12 = vector.shape_cast %11 : vector<1x16x16x128xf32> to vector<16x16x128xf32>
    %13 = vector.shape_cast %12 : vector<16x16x128xf32> to vector<256x128xf32>
    %14 = arith.truncf %13 : vector<256x128xf32> to vector<256x128xbf16>
    %c1 = arith.constant 1 : index
    %c0_14 = arith.constant 0 : index
    %c0_15 = arith.constant 0 : index
    %15 = vector.load %arg2[%c1, %c0_14, %c0_15] : memref<9x128x128xbf16, #tpu.memory_space<vmem>>, vector<1x128x128xbf16>
    %16 = vector.shape_cast %15 : vector<1x128x128xbf16> to vector<128x128xbf16>
    %cst_16 = arith.constant dense<0.000000e+00> : vector<256x128xf32>
    %17 = tpu.matmul %14, %16, %cst_16 {dimension_numbers = #tpu.dot_dimension_numbers<[1], [0], [0], [1], [0, 0, 1, 1], [], []>} : vector<256x128xbf16>, vector<128x128xbf16>, vector<256x128xf32> -> vector<256x128xf32>
    %18 = arith.addf %10, %17 : vector<256x128xf32>
    %c0_17 = arith.constant 0 : index
    %c0_18 = arith.constant 0 : index
    %c9 = arith.constant 9 : index
    %c0_19 = arith.constant 0 : index
    %19 = vector.load %arg1[%c0_17, %c0_18, %c9, %c0_19] : memref<1x18x32x128xf32, #tpu.memory_space<vmem>>, vector<1x16x16x128xf32>
    %20 = vector.shape_cast %19 : vector<1x16x16x128xf32> to vector<16x16x128xf32>
    %21 = vector.shape_cast %20 : vector<16x16x128xf32> to vector<256x128xf32>
    %22 = arith.truncf %21 : vector<256x128xf32> to vector<256x128xbf16>
    %c2 = arith.constant 2 : index
    %c0_20 = arith.constant 0 : index
    %c0_21 = arith.constant 0 : index
    %23 = vector.load %arg2[%c2, %c0_20, %c0_21] : memref<9x128x128xbf16, #tpu.memory_space<vmem>>, vector<1x128x128xbf16>
    %24 = vector.shape_cast %23 : vector<1x128x128xbf16> to vector<128x128xbf16>
    %cst_22 = arith.constant dense<0.000000e+00> : vector<256x128xf32>
    %25 = tpu.matmul %22, %24, %cst_22 {dimension_numbers = #tpu.dot_dimension_numbers<[1], [0], [0], [1], [0, 0, 1, 1], [], []>} : vector<256x128xbf16>, vector<128x128xbf16>, vector<256x128xf32> -> vector<256x128xf32>
    %26 = arith.addf %18, %25 : vector<256x128xf32>
    %c0_23 = arith.constant 0 : index
    %c1_24 = arith.constant 1 : index
    %c7_25 = arith.constant 7 : index
    %c0_26 = arith.constant 0 : index
    %27 = vector.load %arg1[%c0_23, %c1_24, %c7_25, %c0_26] : memref<1x18x32x128xf32, #tpu.memory_space<vmem>>, vector<1x16x16x128xf32>
    %28 = vector.shape_cast %27 : vector<1x16x16x128xf32> to vector<16x16x128xf32>
    %29 = vector.shape_cast %28 : vector<16x16x128xf32> to vector<256x128xf32>
    %30 = arith.truncf %29 : vector<256x128xf32> to vector<256x128xbf16>
    %c3 = arith.constant 3 : index
    %c0_27 = arith.constant 0 : index
    %c0_28 = arith.constant 0 : index
    %31 = vector.load %arg2[%c3, %c0_27, %c0_28] : memref<9x128x128xbf16, #tpu.memory_space<vmem>>, vector<1x128x128xbf16>
    %32 = vector.shape_cast %31 : vector<1x128x128xbf16> to vector<128x128xbf16>
    %cst_29 = arith.constant dense<0.000000e+00> : vector<256x128xf32>
    %33 = tpu.matmul %30, %32, %cst_29 {dimension_numbers = #tpu.dot_dimension_numbers<[1], [0], [0], [1], [0, 0, 1, 1], [], []>} : vector<256x128xbf16>, vector<128x128xbf16>, vector<256x128xf32> -> vector<256x128xf32>
    %34 = arith.addf %26, %33 : vector<256x128xf32>
    %c0_30 = arith.constant 0 : index
    %c1_31 = arith.constant 1 : index
    %c8_32 = arith.constant 8 : index
    %c0_33 = arith.constant 0 : index
    %35 = vector.load %arg1[%c0_30, %c1_31, %c8_32, %c0_33] : memref<1x18x32x128xf32, #tpu.memory_space<vmem>>, vector<1x16x16x128xf32>
    %36 = vector.shape_cast %35 : vector<1x16x16x128xf32> to vector<16x16x128xf32>
    %37 = vector.shape_cast %36 : vector<16x16x128xf32> to vector<256x128xf32>
    %38 = arith.truncf %37 : vector<256x128xf32> to vector<256x128xbf16>
    %c4 = arith.constant 4 : index
    %c0_34 = arith.constant 0 : index
    %c0_35 = arith.constant 0 : index
    %39 = vector.load %arg2[%c4, %c0_34, %c0_35] : memref<9x128x128xbf16, #tpu.memory_space<vmem>>, vector<1x128x128xbf16>
    %40 = vector.shape_cast %39 : vector<1x128x128xbf16> to vector<128x128xbf16>
    %cst_36 = arith.constant dense<0.000000e+00> : vector<256x128xf32>
    %41 = tpu.matmul %38, %40, %cst_36 {dimension_numbers = #tpu.dot_dimension_numbers<[1], [0], [0], [1], [0, 0, 1, 1], [], []>} : vector<256x128xbf16>, vector<128x128xbf16>, vector<256x128xf32> -> vector<256x128xf32>
    %42 = arith.addf %34, %41 : vector<256x128xf32>
    %c0_37 = arith.constant 0 : index
    %c1_38 = arith.constant 1 : index
    %c9_39 = arith.constant 9 : index
    %c0_40 = arith.constant 0 : index
    %43 = vector.load %arg1[%c0_37, %c1_38, %c9_39, %c0_40] : memref<1x18x32x128xf32, #tpu.memory_space<vmem>>, vector<1x16x16x128xf32>
    %44 = vector.shape_cast %43 : vector<1x16x16x128xf32> to vector<16x16x128xf32>
    %45 = vector.shape_cast %44 : vector<16x16x128xf32> to vector<256x128xf32>
    %46 = arith.truncf %45 : vector<256x128xf32> to vector<256x128xbf16>
    %c5 = arith.constant 5 : index
    %c0_41 = arith.constant 0 : index
    %c0_42 = arith.constant 0 : index
    %47 = vector.load %arg2[%c5, %c0_41, %c0_42] : memref<9x128x128xbf16, #tpu.memory_space<vmem>>, vector<1x128x128xbf16>
    %48 = vector.shape_cast %47 : vector<1x128x128xbf16> to vector<128x128xbf16>
    %cst_43 = arith.constant dense<0.000000e+00> : vector<256x128xf32>
    %49 = tpu.matmul %46, %48, %cst_43 {dimension_numbers = #tpu.dot_dimension_numbers<[1], [0], [0], [1], [0, 0, 1, 1], [], []>} : vector<256x128xbf16>, vector<128x128xbf16>, vector<256x128xf32> -> vector<256x128xf32>
    %50 = arith.addf %42, %49 : vector<256x128xf32>
    %c0_44 = arith.constant 0 : index
    %c2_45 = arith.constant 2 : index
    %c7_46 = arith.constant 7 : index
    %c0_47 = arith.constant 0 : index
    %51 = vector.load %arg1[%c0_44, %c2_45, %c7_46, %c0_47] : memref<1x18x32x128xf32, #tpu.memory_space<vmem>>, vector<1x16x16x128xf32>
    %52 = vector.shape_cast %51 : vector<1x16x16x128xf32> to vector<16x16x128xf32>
    %53 = vector.shape_cast %52 : vector<16x16x128xf32> to vector<256x128xf32>
    %54 = arith.truncf %53 : vector<256x128xf32> to vector<256x128xbf16>
    %c6 = arith.constant 6 : index
    %c0_48 = arith.constant 0 : index
    %c0_49 = arith.constant 0 : index
    %55 = vector.load %arg2[%c6, %c0_48, %c0_49] : memref<9x128x128xbf16, #tpu.memory_space<vmem>>, vector<1x128x128xbf16>
    %56 = vector.shape_cast %55 : vector<1x128x128xbf16> to vector<128x128xbf16>
    %cst_50 = arith.constant dense<0.000000e+00> : vector<256x128xf32>
    %57 = tpu.matmul %54, %56, %cst_50 {dimension_numbers = #tpu.dot_dimension_numbers<[1], [0], [0], [1], [0, 0, 1, 1], [], []>} : vector<256x128xbf16>, vector<128x128xbf16>, vector<256x128xf32> -> vector<256x128xf32>
    %58 = arith.addf %50, %57 : vector<256x128xf32>
    %c0_51 = arith.constant 0 : index
    %c2_52 = arith.constant 2 : index
    %c8_53 = arith.constant 8 : index
    %c0_54 = arith.constant 0 : index
    %59 = vector.load %arg1[%c0_51, %c2_52, %c8_53, %c0_54] : memref<1x18x32x128xf32, #tpu.memory_space<vmem>>, vector<1x16x16x128xf32>
    %60 = vector.shape_cast %59 : vector<1x16x16x128xf32> to vector<16x16x128xf32>
    %61 = vector.shape_cast %60 : vector<16x16x128xf32> to vector<256x128xf32>
    %62 = arith.truncf %61 : vector<256x128xf32> to vector<256x128xbf16>
    %c7_55 = arith.constant 7 : index
    %c0_56 = arith.constant 0 : index
    %c0_57 = arith.constant 0 : index
    %63 = vector.load %arg2[%c7_55, %c0_56, %c0_57] : memref<9x128x128xbf16, #tpu.memory_space<vmem>>, vector<1x128x128xbf16>
    %64 = vector.shape_cast %63 : vector<1x128x128xbf16> to vector<128x128xbf16>
    %cst_58 = arith.constant dense<0.000000e+00> : vector<256x128xf32>
    %65 = tpu.matmul %62, %64, %cst_58 {dimension_numbers = #tpu.dot_dimension_numbers<[1], [0], [0], [1], [0, 0, 1, 1], [], []>} : vector<256x128xbf16>, vector<128x128xbf16>, vector<256x128xf32> -> vector<256x128xf32>
    %66 = arith.addf %58, %65 : vector<256x128xf32>
    %c0_59 = arith.constant 0 : index
    %c2_60 = arith.constant 2 : index
    %c9_61 = arith.constant 9 : index
    %c0_62 = arith.constant 0 : index
    %67 = vector.load %arg1[%c0_59, %c2_60, %c9_61, %c0_62] : memref<1x18x32x128xf32, #tpu.memory_space<vmem>>, vector<1x16x16x128xf32>
    %68 = vector.shape_cast %67 : vector<1x16x16x128xf32> to vector<16x16x128xf32>
    %69 = vector.shape_cast %68 : vector<16x16x128xf32> to vector<256x128xf32>
    %70 = arith.truncf %69 : vector<256x128xf32> to vector<256x128xbf16>
    %c8_63 = arith.constant 8 : index
    %c0_64 = arith.constant 0 : index
    %c0_65 = arith.constant 0 : index
    %71 = vector.load %arg2[%c8_63, %c0_64, %c0_65] : memref<9x128x128xbf16, #tpu.memory_space<vmem>>, vector<1x128x128xbf16>
    %72 = vector.shape_cast %71 : vector<1x128x128xbf16> to vector<128x128xbf16>
    %cst_66 = arith.constant dense<0.000000e+00> : vector<256x128xf32>
    %73 = tpu.matmul %70, %72, %cst_66 {dimension_numbers = #tpu.dot_dimension_numbers<[1], [0], [0], [1], [0, 0, 1, 1], [], []>} : vector<256x128xbf16>, vector<128x128xbf16>, vector<256x128xf32> -> vector<256x128xf32>
    %74 = arith.addf %66, %73 : vector<256x128xf32>
    %c0_67 = arith.constant 0 : index
    %c0_68 = arith.constant 0 : index
    %75 = vector.load %arg3[%c0_67, %c0_68] : memref<1x128xf32, #tpu.memory_space<vmem>>, vector<1x128xf32>
    %76 = vector.broadcast %75 : vector<1x128xf32> to vector<256x128xf32>
    %77 = arith.addf %74, %76 : vector<256x128xf32>
    %cst_69 = arith.constant 0.000000e+00 : f32
    %78 = vector.broadcast %cst_69 : f32 to vector<256x128xf32>
    %79 = arith.maximumf %77, %78 : vector<256x128xf32>
    %80 = vector.shape_cast %79 : vector<256x128xf32> to vector<16x16x128xf32>
    %c0_70 = arith.constant 0 : index
    %c1_71 = arith.constant 1 : index
    %c8_72 = arith.constant 8 : index
    %c0_73 = arith.constant 0 : index
    %81 = vector.load %arg11[%c0_70, %c1_71, %c8_72, %c0_73] : memref<1x18x32x128xf32, #tpu.memory_space<vmem>>, vector<1x16x16x128xf32>
    %82 = vector.shape_cast %81 : vector<1x16x16x128xf32> to vector<16x16x128xf32>
    %83 = vector.shape_cast %80 : vector<16x16x128xf32> to vector<1x16x16x128xf32>
    tpu.vector_store %arg11[%c0_70, %c1_71, %c8_72, %c0_73], %83 {strides = array<i32>} : memref<1x18x32x128xf32, #tpu.memory_space<vmem>>, vector<1x16x16x128xf32>,
    %cst_74 = arith.constant 0.000000e+00 : f32
    %84 = vector.broadcast %cst_74 : f32 to vector<256x128xf32>
    %c0_75 = arith.constant 0 : index
    %c0_76 = arith.constant 0 : index
    %c7_77 = arith.constant 7 : index
    %c0_78 = arith.constant 0 : index
    %85 = vector.load %arg11[%c0_75, %c0_76, %c7_77, %c0_78] : memref<1x18x32x128xf32, #tpu.memory_space<vmem>>, vector<1x16x16x128xf32>
    %86 = vector.shape_cast %85 : vector<1x16x16x128xf32> to vector<16x16x128xf32>
    %87 = vector.shape_cast %86 : vector<16x16x128xf32> to vector<256x128xf32>
    %88 = arith.truncf %87 : vector<256x128xf32> to vector<256x128xbf16>
    %c0_79 = arith.constant 0 : index
    %c0_80 = arith.constant 0 : index
    %c0_81 = arith.constant 0 : index
    %89 = vector.load %arg4[%c0_79, %c0_80, %c0_81] : memref<9x128x128xbf16, #tpu.memory_space<vmem>>, vector<1x128x128xbf16>
    %90 = vector.shape_cast %89 : vector<1x128x128xbf16> to vector<128x128xbf16>
    %cst_82 = arith.constant dense<0.000000e+00> : vector<256x128xf32>
    %91 = tpu.matmul %88, %90, %cst_82 {dimension_numbers = #tpu.dot_dimension_numbers<[1], [0], [0], [1], [0, 0, 1, 1], [], []>} : vector<256x128xbf16>, vector<128x128xbf16>, vector<256x128xf32> -> vector<256x128xf32>
    %92 = arith.addf %84, %91 : vector<256x128xf32>
    %c0_83 = arith.constant 0 : index
    %c0_84 = arith.constant 0 : index
    %c8_85 = arith.constant 8 : index
    %c0_86 = arith.constant 0 : index
    %93 = vector.load %arg11[%c0_83, %c0_84, %c8_85, %c0_86] : memref<1x18x32x128xf32, #tpu.memory_space<vmem>>, vector<1x16x16x128xf32>
    %94 = vector.shape_cast %93 : vector<1x16x16x128xf32> to vector<16x16x128xf32>
    %95 = vector.shape_cast %94 : vector<16x16x128xf32> to vector<256x128xf32>
    %96 = arith.truncf %95 : vector<256x128xf32> to vector<256x128xbf16>
    %c1_87 = arith.constant 1 : index
    %c0_88 = arith.constant 0 : index
    %c0_89 = arith.constant 0 : index
    %97 = vector.load %arg4[%c1_87, %c0_88, %c0_89] : memref<9x128x128xbf16, #tpu.memory_space<vmem>>, vector<1x128x128xbf16>
    %98 = vector.shape_cast %97 : vector<1x128x128xbf16> to vector<128x128xbf16>
    %cst_90 = arith.constant dense<0.000000e+00> : vector<256x128xf32>
    %99 = tpu.matmul %96, %98, %cst_90 {dimension_numbers = #tpu.dot_dimension_numbers<[1], [0], [0], [1], [0, 0, 1, 1], [], []>} : vector<256x128xbf16>, vector<128x128xbf16>, vector<256x128xf32> -> vector<256x128xf32>
    %100 = arith.addf %92, %99 : vector<256x128xf32>
    %c0_91 = arith.constant 0 : index
    %c0_92 = arith.constant 0 : index
    %c9_93 = arith.constant 9 : index
    %c0_94 = arith.constant 0 : index
    %101 = vector.load %arg11[%c0_91, %c0_92, %c9_93, %c0_94] : memref<1x18x32x128xf32, #tpu.memory_space<vmem>>, vector<1x16x16x128xf32>
    %102 = vector.shape_cast %101 : vector<1x16x16x128xf32> to vector<16x16x128xf32>
    %103 = vector.shape_cast %102 : vector<16x16x128xf32> to vector<256x128xf32>
    %104 = arith.truncf %103 : vector<256x128xf32> to vector<256x128xbf16>
    %c2_95 = arith.constant 2 : index
    %c0_96 = arith.constant 0 : index
    %c0_97 = arith.constant 0 : index
    %105 = vector.load %arg4[%c2_95, %c0_96, %c0_97] : memref<9x128x128xbf16, #tpu.memory_space<vmem>>, vector<1x128x128xbf16>
    %106 = vector.shape_cast %105 : vector<1x128x128xbf16> to vector<128x128xbf16>
    %cst_98 = arith.constant dense<0.000000e+00> : vector<256x128xf32>
    %107 = tpu.matmul %104, %106, %cst_98 {dimension_numbers = #tpu.dot_dimension_numbers<[1], [0], [0], [1], [0, 0, 1, 1], [], []>} : vector<256x128xbf16>, vector<128x128xbf16>, vector<256x128xf32> -> vector<256x128xf32>
    %108 = arith.addf %100, %107 : vector<256x128xf32>
    %c0_99 = arith.constant 0 : index
    %c1_100 = arith.constant 1 : index
    %c7_101 = arith.constant 7 : index
    %c0_102 = arith.constant 0 : index
    %109 = vector.load %arg11[%c0_99, %c1_100, %c7_101, %c0_102] : memref<1x18x32x128xf32, #tpu.memory_space<vmem>>, vector<1x16x16x128xf32>
    %110 = vector.shape_cast %109 : vector<1x16x16x128xf32> to vector<16x16x128xf32>
    %111 = vector.shape_cast %110 : vector<16x16x128xf32> to vector<256x128xf32>
    %112 = arith.truncf %111 : vector<256x128xf32> to vector<256x128xbf16>
    %c3_103 = arith.constant 3 : index
    %c0_104 = arith.constant 0 : index
    %c0_105 = arith.constant 0 : index
    %113 = vector.load %arg4[%c3_103, %c0_104, %c0_105] : memref<9x128x128xbf16, #tpu.memory_space<vmem>>, vector<1x128x128xbf16>
    %114 = vector.shape_cast %113 : vector<1x128x128xbf16> to vector<128x128xbf16>
    %cst_106 = arith.constant dense<0.000000e+00> : vector<256x128xf32>
    %115 = tpu.matmul %112, %114, %cst_106 {dimension_numbers = #tpu.dot_dimension_numbers<[1], [0], [0], [1], [0, 0, 1, 1], [], []>} : vector<256x128xbf16>, vector<128x128xbf16>, vector<256x128xf32> -> vector<256x128xf32>
    %116 = arith.addf %108, %115 : vector<256x128xf32>
    %c0_107 = arith.constant 0 : index
    %c1_108 = arith.constant 1 : index
    %c8_109 = arith.constant 8 : index
    %c0_110 = arith.constant 0 : index
    %117 = vector.load %arg11[%c0_107, %c1_108, %c8_109, %c0_110] : memref<1x18x32x128xf32, #tpu.memory_space<vmem>>, vector<1x16x16x128xf32>
    %118 = vector.shape_cast %117 : vector<1x16x16x128xf32> to vector<16x16x128xf32>
    %119 = vector.shape_cast %118 : vector<16x16x128xf32> to vector<256x128xf32>
    %120 = arith.truncf %119 : vector<256x128xf32> to vector<256x128xbf16>
    %c4_111 = arith.constant 4 : index
    %c0_112 = arith.constant 0 : index
    %c0_113 = arith.constant 0 : index
    %121 = vector.load %arg4[%c4_111, %c0_112, %c0_113] : memref<9x128x128xbf16, #tpu.memory_space<vmem>>, vector<1x128x128xbf16>
    %122 = vector.shape_cast %121 : vector<1x128x128xbf16> to vector<128x128xbf16>
    %cst_114 = arith.constant dense<0.000000e+00> : vector<256x128xf32>
    %123 = tpu.matmul %120, %122, %cst_114 {dimension_numbers = #tpu.dot_dimension_numbers<[1], [0], [0], [1], [0, 0, 1, 1], [], []>} : vector<256x128xbf16>, vector<128x128xbf16>, vector<256x128xf32> -> vector<256x128xf32>
    %124 = arith.addf %116, %123 : vector<256x128xf32>
    %c0_115 = arith.constant 0 : index
    %c1_116 = arith.constant 1 : index
    %c9_117 = arith.constant 9 : index
    %c0_118 = arith.constant 0 : index
    %125 = vector.load %arg11[%c0_115, %c1_116, %c9_117, %c0_118] : memref<1x18x32x128xf32, #tpu.memory_space<vmem>>, vector<1x16x16x128xf32>
    %126 = vector.shape_cast %125 : vector<1x16x16x128xf32> to vector<16x16x128xf32>
    %127 = vector.shape_cast %126 : vector<16x16x128xf32> to vector<256x128xf32>
    %128 = arith.truncf %127 : vector<256x128xf32> to vector<256x128xbf16>
    %c5_119 = arith.constant 5 : index
    %c0_120 = arith.constant 0 : index
    %c0_121 = arith.constant 0 : index
    %129 = vector.load %arg4[%c5_119, %c0_120, %c0_121] : memref<9x128x128xbf16, #tpu.memory_space<vmem>>, vector<1x128x128xbf16>
    %130 = vector.shape_cast %129 : vector<1x128x128xbf16> to vector<128x128xbf16>
    %cst_122 = arith.constant dense<0.000000e+00> : vector<256x128xf32>
    %131 = tpu.matmul %128, %130, %cst_122 {dimension_numbers = #tpu.dot_dimension_numbers<[1], [0], [0], [1], [0, 0, 1, 1], [], []>} : vector<256x128xbf16>, vector<128x128xbf16>, vector<256x128xf32> -> vector<256x128xf32>
    %132 = arith.addf %124, %131 : vector<256x128xf32>
    %c0_123 = arith.constant 0 : index
    %c2_124 = arith.constant 2 : index
    %c7_125 = arith.constant 7 : index
    %c0_126 = arith.constant 0 : index
    %133 = vector.load %arg11[%c0_123, %c2_124, %c7_125, %c0_126] : memref<1x18x32x128xf32, #tpu.memory_space<vmem>>, vector<1x16x16x128xf32>
    %134 = vector.shape_cast %133 : vector<1x16x16x128xf32> to vector<16x16x128xf32>
    %135 = vector.shape_cast %134 : vector<16x16x128xf32> to vector<256x128xf32>
    %136 = arith.truncf %135 : vector<256x128xf32> to vector<256x128xbf16>
    %c6_127 = arith.constant 6 : index
    %c0_128 = arith.constant 0 : index
    %c0_129 = arith.constant 0 : index
    %137 = vector.load %arg4[%c6_127, %c0_128, %c0_129] : memref<9x128x128xbf16, #tpu.memory_space<vmem>>, vector<1x128x128xbf16>
    %138 = vector.shape_cast %137 : vector<1x128x128xbf16> to vector<128x128xbf16>
    %cst_130 = arith.constant dense<0.000000e+00> : vector<256x128xf32>
    %139 = tpu.matmul %136, %138, %cst_130 {dimension_numbers = #tpu.dot_dimension_numbers<[1], [0], [0], [1], [0, 0, 1, 1], [], []>} : vector<256x128xbf16>, vector<128x128xbf16>, vector<256x128xf32> -> vector<256x128xf32>
    %140 = arith.addf %132, %139 : vector<256x128xf32>
    %c0_131 = arith.constant 0 : index
    %c2_132 = arith.constant 2 : index
    %c8_133 = arith.constant 8 : index
    %c0_134 = arith.constant 0 : index
    %141 = vector.load %arg11[%c0_131, %c2_132, %c8_133, %c0_134] : memref<1x18x32x128xf32, #tpu.memory_space<vmem>>, vector<1x16x16x128xf32>
    %142 = vector.shape_cast %141 : vector<1x16x16x128xf32> to vector<16x16x128xf32>
    %143 = vector.shape_cast %142 : vector<16x16x128xf32> to vector<256x128xf32>
    %144 = arith.truncf %143 : vector<256x128xf32> to vector<256x128xbf16>
    %c7_135 = arith.constant 7 : index
    %c0_136 = arith.constant 0 : index
    %c0_137 = arith.constant 0 : index
    %145 = vector.load %arg4[%c7_135, %c0_136, %c0_137] : memref<9x128x128xbf16, #tpu.memory_space<vmem>>, vector<1x128x128xbf16>
    %146 = vector.shape_cast %145 : vector<1x128x128xbf16> to vector<128x128xbf16>
    %cst_138 = arith.constant dense<0.000000e+00> : vector<256x128xf32>
    %147 = tpu.matmul %144, %146, %cst_138 {dimension_numbers = #tpu.dot_dimension_numbers<[1], [0], [0], [1], [0, 0, 1, 1], [], []>} : vector<256x128xbf16>, vector<128x128xbf16>, vector<256x128xf32> -> vector<256x128xf32>
    %148 = arith.addf %140, %147 : vector<256x128xf32>
    %c0_139 = arith.constant 0 : index
    %c2_140 = arith.constant 2 : index
    %c9_141 = arith.constant 9 : index
    %c0_142 = arith.constant 0 : index
    %149 = vector.load %arg11[%c0_139, %c2_140, %c9_141, %c0_142] : memref<1x18x32x128xf32, #tpu.memory_space<vmem>>, vector<1x16x16x128xf32>
    %150 = vector.shape_cast %149 : vector<1x16x16x128xf32> to vector<16x16x128xf32>
    %151 = vector.shape_cast %150 : vector<16x16x128xf32> to vector<256x128xf32>
    %152 = arith.truncf %151 : vector<256x128xf32> to vector<256x128xbf16>
    %c8_143 = arith.constant 8 : index
    %c0_144 = arith.constant 0 : index
    %c0_145 = arith.constant 0 : index
    %153 = vector.load %arg4[%c8_143, %c0_144, %c0_145] : memref<9x128x128xbf16, #tpu.memory_space<vmem>>, vector<1x128x128xbf16>
    %154 = vector.shape_cast %153 : vector<1x128x128xbf16> to vector<128x128xbf16>
    %cst_146 = arith.constant dense<0.000000e+00> : vector<256x128xf32>
    %155 = tpu.matmul %152, %154, %cst_146 {dimension_numbers = #tpu.dot_dimension_numbers<[1], [0], [0], [1], [0, 0, 1, 1], [], []>} : vector<256x128xbf16>, vector<128x128xbf16>, vector<256x128xf32> -> vector<256x128xf32>
    %156 = arith.addf %148, %155 : vector<256x128xf32>
    %c0_147 = arith.constant 0 : index
    %c0_148 = arith.constant 0 : index
    %157 = vector.load %arg5[%c0_147, %c0_148] : memref<1x128xf32, #tpu.memory_space<vmem>>, vector<1x128xf32>
    %158 = vector.broadcast %157 : vector<1x128xf32> to vector<256x128xf32>
    %159 = arith.addf %156, %158 : vector<256x128xf32>
    %cst_149 = arith.constant 0.000000e+00 : f32
    %160 = vector.broadcast %cst_149 : f32 to vector<256x128xf32>
    %161 = arith.maximumf %159, %160 : vector<256x128xf32>
    %cst_150 = arith.constant 0.000000e+00 : f32
    %162 = vector.broadcast %cst_150 : f32 to vector<256x128xf32>
    %c0_151 = arith.constant 0 : index
    %c0_152 = arith.constant 0 : index
    %c7_153 = arith.constant 7 : index
    %c0_154 = arith.constant 0 : index
    %163 = vector.load %arg1[%c0_151, %c0_152, %c7_153, %c0_154] : memref<1x18x32x128xf32, #tpu.memory_space<vmem>>, vector<1x16x16x128xf32>
    %164 = vector.shape_cast %163 : vector<1x16x16x128xf32> to vector<16x16x128xf32>
    %165 = vector.shape_cast %164 : vector<16x16x128xf32> to vector<256x128xf32>
    %166 = arith.truncf %165 : vector<256x128xf32> to vector<256x128xbf16>
    %c0_155 = arith.constant 0 : index
    %c0_156 = arith.constant 0 : index
    %c0_157 = arith.constant 0 : index
    %167 = vector.load %arg8[%c0_155, %c0_156, %c0_157] : memref<9x128x128xbf16, #tpu.memory_space<vmem>>, vector<1x128x128xbf16>
    %168 = vector.shape_cast %167 : vector<1x128x128xbf16> to vector<128x128xbf16>
    %cst_158 = arith.constant dense<0.000000e+00> : vector<256x128xf32>
    %169 = tpu.matmul %166, %168, %cst_158 {dimension_numbers = #tpu.dot_dimension_numbers<[1], [0], [0], [1], [0, 0, 1, 1], [], []>} : vector<256x128xbf16>, vector<128x128xbf16>, vector<256x128xf32> -> vector<256x128xf32>
    %170 = arith.addf %162, %169 : vector<256x128xf32>
    %c0_159 = arith.constant 0 : index
    %c0_160 = arith.constant 0 : index
    %c8_161 = arith.constant 8 : index
    %c0_162 = arith.constant 0 : index
    %171 = vector.load %arg1[%c0_159, %c0_160, %c8_161, %c0_162] : memref<1x18x32x128xf32, #tpu.memory_space<vmem>>, vector<1x16x16x128xf32>
    %172 = vector.shape_cast %171 : vector<1x16x16x128xf32> to vector<16x16x128xf32>
    %173 = vector.shape_cast %172 : vector<16x16x128xf32> to vector<256x128xf32>
    %174 = arith.truncf %173 : vector<256x128xf32> to vector<256x128xbf16>
    %c1_163 = arith.constant 1 : index
    %c0_164 = arith.constant 0 : index
    %c0_165 = arith.constant 0 : index
    %175 = vector.load %arg8[%c1_163, %c0_164, %c0_165] : memref<9x128x128xbf16, #tpu.memory_space<vmem>>, vector<1x128x128xbf16>
    %176 = vector.shape_cast %175 : vector<1x128x128xbf16> to vector<128x128xbf16>
    %cst_166 = arith.constant dense<0.000000e+00> : vector<256x128xf32>
    %177 = tpu.matmul %174, %176, %cst_166 {dimension_numbers = #tpu.dot_dimension_numbers<[1], [0], [0], [1], [0, 0, 1, 1], [], []>} : vector<256x128xbf16>, vector<128x128xbf16>, vector<256x128xf32> -> vector<256x128xf32>
    %178 = arith.addf %170, %177 : vector<256x128xf32>
    %c0_167 = arith.constant 0 : index
    %c0_168 = arith.constant 0 : index
    %c9_169 = arith.constant 9 : index
    %c0_170 = arith.constant 0 : index
    %179 = vector.load %arg1[%c0_167, %c0_168, %c9_169, %c0_170] : memref<1x18x32x128xf32, #tpu.memory_space<vmem>>, vector<1x16x16x128xf32>
    %180 = vector.shape_cast %179 : vector<1x16x16x128xf32> to vector<16x16x128xf32>
    %181 = vector.shape_cast %180 : vector<16x16x128xf32> to vector<256x128xf32>
    %182 = arith.truncf %181 : vector<256x128xf32> to vector<256x128xbf16>
    %c2_171 = arith.constant 2 : index
    %c0_172 = arith.constant 0 : index
    %c0_173 = arith.constant 0 : index
    %183 = vector.load %arg8[%c2_171, %c0_172, %c0_173] : memref<9x128x128xbf16, #tpu.memory_space<vmem>>, vector<1x128x128xbf16>
    %184 = vector.shape_cast %183 : vector<1x128x128xbf16> to vector<128x128xbf16>
    %cst_174 = arith.constant dense<0.000000e+00> : vector<256x128xf32>
    %185 = tpu.matmul %182, %184, %cst_174 {dimension_numbers = #tpu.dot_dimension_numbers<[1], [0], [0], [1], [0, 0, 1, 1], [], []>} : vector<256x128xbf16>, vector<128x128xbf16>, vector<256x128xf32> -> vector<256x128xf32>
    %186 = arith.addf %178, %185 : vector<256x128xf32>
    %c0_175 = arith.constant 0 : index
    %c1_176 = arith.constant 1 : index
    %c7_177 = arith.constant 7 : index
    %c0_178 = arith.constant 0 : index
    %187 = vector.load %arg1[%c0_175, %c1_176, %c7_177, %c0_178] : memref<1x18x32x128xf32, #tpu.memory_space<vmem>>, vector<1x16x16x128xf32>
    %188 = vector.shape_cast %187 : vector<1x16x16x128xf32> to vector<16x16x128xf32>
    %189 = vector.shape_cast %188 : vector<16x16x128xf32> to vector<256x128xf32>
    %190 = arith.truncf %189 : vector<256x128xf32> to vector<256x128xbf16>
    %c3_179 = arith.constant 3 : index
    %c0_180 = arith.constant 0 : index
    %c0_181 = arith.constant 0 : index
    %191 = vector.load %arg8[%c3_179, %c0_180, %c0_181] : memref<9x128x128xbf16, #tpu.memory_space<vmem>>, vector<1x128x128xbf16>
    %192 = vector.shape_cast %191 : vector<1x128x128xbf16> to vector<128x128xbf16>
    %cst_182 = arith.constant dense<0.000000e+00> : vector<256x128xf32>
    %193 = tpu.matmul %190, %192, %cst_182 {dimension_numbers = #tpu.dot_dimension_numbers<[1], [0], [0], [1], [0, 0, 1, 1], [], []>} : vector<256x128xbf16>, vector<128x128xbf16>, vector<256x128xf32> -> vector<256x128xf32>
    %194 = arith.addf %186, %193 : vector<256x128xf32>
    %c0_183 = arith.constant 0 : index
    %c1_184 = arith.constant 1 : index
    %c8_185 = arith.constant 8 : index
    %c0_186 = arith.constant 0 : index
    %195 = vector.load %arg1[%c0_183, %c1_184, %c8_185, %c0_186] : memref<1x18x32x128xf32, #tpu.memory_space<vmem>>, vector<1x16x16x128xf32>
    %196 = vector.shape_cast %195 : vector<1x16x16x128xf32> to vector<16x16x128xf32>
    %197 = vector.shape_cast %196 : vector<16x16x128xf32> to vector<256x128xf32>
    %198 = arith.truncf %197 : vector<256x128xf32> to vector<256x128xbf16>
    %c4_187 = arith.constant 4 : index
    %c0_188 = arith.constant 0 : index
    %c0_189 = arith.constant 0 : index
    %199 = vector.load %arg8[%c4_187, %c0_188, %c0_189] : memref<9x128x128xbf16, #tpu.memory_space<vmem>>, vector<1x128x128xbf16>
    %200 = vector.shape_cast %199 : vector<1x128x128xbf16> to vector<128x128xbf16>
    %cst_190 = arith.constant dense<0.000000e+00> : vector<256x128xf32>
    %201 = tpu.matmul %198, %200, %cst_190 {dimension_numbers = #tpu.dot_dimension_numbers<[1], [0], [0], [1], [0, 0, 1, 1], [], []>} : vector<256x128xbf16>, vector<128x128xbf16>, vector<256x128xf32> -> vector<256x128xf32>
    %202 = arith.addf %194, %201 : vector<256x128xf32>
    %c0_191 = arith.constant 0 : index
    %c1_192 = arith.constant 1 : index
    %c9_193 = arith.constant 9 : index
    %c0_194 = arith.constant 0 : index
    %203 = vector.load %arg1[%c0_191, %c1_192, %c9_193, %c0_194] : memref<1x18x32x128xf32, #tpu.memory_space<vmem>>, vector<1x16x16x128xf32>
    %204 = vector.shape_cast %203 : vector<1x16x16x128xf32> to vector<16x16x128xf32>
    %205 = vector.shape_cast %204 : vector<16x16x128xf32> to vector<256x128xf32>
    %206 = arith.truncf %205 : vector<256x128xf32> to vector<256x128xbf16>
    %c5_195 = arith.constant 5 : index
    %c0_196 = arith.constant 0 : index
    %c0_197 = arith.constant 0 : index
    %207 = vector.load %arg8[%c5_195, %c0_196, %c0_197] : memref<9x128x128xbf16, #tpu.memory_space<vmem>>, vector<1x128x128xbf16>
    %208 = vector.shape_cast %207 : vector<1x128x128xbf16> to vector<128x128xbf16>
    %cst_198 = arith.constant dense<0.000000e+00> : vector<256x128xf32>
    %209 = tpu.matmul %206, %208, %cst_198 {dimension_numbers = #tpu.dot_dimension_numbers<[1], [0], [0], [1], [0, 0, 1, 1], [], []>} : vector<256x128xbf16>, vector<128x128xbf16>, vector<256x128xf32> -> vector<256x128xf32>
    %210 = arith.addf %202, %209 : vector<256x128xf32>
    %c0_199 = arith.constant 0 : index
    %c2_200 = arith.constant 2 : index
    %c7_201 = arith.constant 7 : index
    %c0_202 = arith.constant 0 : index
    %211 = vector.load %arg1[%c0_199, %c2_200, %c7_201, %c0_202] : memref<1x18x32x128xf32, #tpu.memory_space<vmem>>, vector<1x16x16x128xf32>
    %212 = vector.shape_cast %211 : vector<1x16x16x128xf32> to vector<16x16x128xf32>
    %213 = vector.shape_cast %212 : vector<16x16x128xf32> to vector<256x128xf32>
    %214 = arith.truncf %213 : vector<256x128xf32> to vector<256x128xbf16>
    %c6_203 = arith.constant 6 : index
    %c0_204 = arith.constant 0 : index
    %c0_205 = arith.constant 0 : index
    %215 = vector.load %arg8[%c6_203, %c0_204, %c0_205] : memref<9x128x128xbf16, #tpu.memory_space<vmem>>, vector<1x128x128xbf16>
    %216 = vector.shape_cast %215 : vector<1x128x128xbf16> to vector<128x128xbf16>
    %cst_206 = arith.constant dense<0.000000e+00> : vector<256x128xf32>
    %217 = tpu.matmul %214, %216, %cst_206 {dimension_numbers = #tpu.dot_dimension_numbers<[1], [0], [0], [1], [0, 0, 1, 1], [], []>} : vector<256x128xbf16>, vector<128x128xbf16>, vector<256x128xf32> -> vector<256x128xf32>
    %218 = arith.addf %210, %217 : vector<256x128xf32>
    %c0_207 = arith.constant 0 : index
    %c2_208 = arith.constant 2 : index
    %c8_209 = arith.constant 8 : index
    %c0_210 = arith.constant 0 : index
    %219 = vector.load %arg1[%c0_207, %c2_208, %c8_209, %c0_210] : memref<1x18x32x128xf32, #tpu.memory_space<vmem>>, vector<1x16x16x128xf32>
    %220 = vector.shape_cast %219 : vector<1x16x16x128xf32> to vector<16x16x128xf32>
    %221 = vector.shape_cast %220 : vector<16x16x128xf32> to vector<256x128xf32>
    %222 = arith.truncf %221 : vector<256x128xf32> to vector<256x128xbf16>
    %c7_211 = arith.constant 7 : index
    %c0_212 = arith.constant 0 : index
    %c0_213 = arith.constant 0 : index
    %223 = vector.load %arg8[%c7_211, %c0_212, %c0_213] : memref<9x128x128xbf16, #tpu.memory_space<vmem>>, vector<1x128x128xbf16>
    %224 = vector.shape_cast %223 : vector<1x128x128xbf16> to vector<128x128xbf16>
    %cst_214 = arith.constant dense<0.000000e+00> : vector<256x128xf32>
    %225 = tpu.matmul %222, %224, %cst_214 {dimension_numbers = #tpu.dot_dimension_numbers<[1], [0], [0], [1], [0, 0, 1, 1], [], []>} : vector<256x128xbf16>, vector<128x128xbf16>, vector<256x128xf32> -> vector<256x128xf32>
    %226 = arith.addf %218, %225 : vector<256x128xf32>
    %c0_215 = arith.constant 0 : index
    %c2_216 = arith.constant 2 : index
    %c9_217 = arith.constant 9 : index
    %c0_218 = arith.constant 0 : index
    %227 = vector.load %arg1[%c0_215, %c2_216, %c9_217, %c0_218] : memref<1x18x32x128xf32, #tpu.memory_space<vmem>>, vector<1x16x16x128xf32>
    %228 = vector.shape_cast %227 : vector<1x16x16x128xf32> to vector<16x16x128xf32>
    %229 = vector.shape_cast %228 : vector<16x16x128xf32> to vector<256x128xf32>
    %230 = arith.truncf %229 : vector<256x128xf32> to vector<256x128xbf16>
    %c8_219 = arith.constant 8 : index
    %c0_220 = arith.constant 0 : index
    %c0_221 = arith.constant 0 : index
    %231 = vector.load %arg8[%c8_219, %c0_220, %c0_221] : memref<9x128x128xbf16, #tpu.memory_space<vmem>>, vector<1x128x128xbf16>
    %232 = vector.shape_cast %231 : vector<1x128x128xbf16> to vector<128x128xbf16>
    %cst_222 = arith.constant dense<0.000000e+00> : vector<256x128xf32>
    %233 = tpu.matmul %230, %232, %cst_222 {dimension_numbers = #tpu.dot_dimension_numbers<[1], [0], [0], [1], [0, 0, 1, 1], [], []>} : vector<256x128xbf16>, vector<128x128xbf16>, vector<256x128xf32> -> vector<256x128xf32>
    %234 = arith.addf %226, %233 : vector<256x128xf32>
    %c0_223 = arith.constant 0 : index
    %c0_224 = arith.constant 0 : index
    %235 = vector.load %arg9[%c0_223, %c0_224] : memref<1x128xf32, #tpu.memory_space<vmem>>, vector<1x128xf32>
    %236 = vector.broadcast %235 : vector<1x128xf32> to vector<256x128xf32>
    %237 = arith.addf %234, %236 : vector<256x128xf32>
    %238 = vector.shape_cast %161 : vector<256x128xf32> to vector<16x16x128xf32>
    %c0_225 = arith.constant 0 : index
    %c1_226 = arith.constant 1 : index
    %c8_227 = arith.constant 8 : index
    %c0_228 = arith.constant 0 : index
    %239 = vector.load %arg11[%c0_225, %c1_226, %c8_227, %c0_228] : memref<1x18x32x128xf32, #tpu.memory_space<vmem>>, vector<1x16x16x128xf32>
    %240 = vector.shape_cast %239 : vector<1x16x16x128xf32> to vector<16x16x128xf32>
    %241 = vector.shape_cast %238 : vector<16x16x128xf32> to vector<1x16x16x128xf32>
    tpu.vector_store %arg11[%c0_225, %c1_226, %c8_227, %c0_228], %241 {strides = array<i32>} : memref<1x18x32x128xf32, #tpu.memory_space<vmem>>, vector<1x16x16x128xf32>,
    %cst_229 = arith.constant 0.000000e+00 : f32
    %242 = vector.broadcast %cst_229 : f32 to vector<256x128xf32>
    %c0_230 = arith.constant 0 : index
    %c0_231 = arith.constant 0 : index
    %c7_232 = arith.constant 7 : index
    %c0_233 = arith.constant 0 : index
    %243 = vector.load %arg11[%c0_230, %c0_231, %c7_232, %c0_233] : memref<1x18x32x128xf32, #tpu.memory_space<vmem>>, vector<1x16x16x128xf32>
    %244 = vector.shape_cast %243 : vector<1x16x16x128xf32> to vector<16x16x128xf32>
    %245 = vector.shape_cast %244 : vector<16x16x128xf32> to vector<256x128xf32>
    %246 = arith.truncf %245 : vector<256x128xf32> to vector<256x128xbf16>
    %c0_234 = arith.constant 0 : index
    %c0_235 = arith.constant 0 : index
    %c0_236 = arith.constant 0 : index
    %247 = vector.load %arg6[%c0_234, %c0_235, %c0_236] : memref<9x128x128xbf16, #tpu.memory_space<vmem>>, vector<1x128x128xbf16>
    %248 = vector.shape_cast %247 : vector<1x128x128xbf16> to vector<128x128xbf16>
    %cst_237 = arith.constant dense<0.000000e+00> : vector<256x128xf32>
    %249 = tpu.matmul %246, %248, %cst_237 {dimension_numbers = #tpu.dot_dimension_numbers<[1], [0], [0], [1], [0, 0, 1, 1], [], []>} : vector<256x128xbf16>, vector<128x128xbf16>, vector<256x128xf32> -> vector<256x128xf32>
    %250 = arith.addf %242, %249 : vector<256x128xf32>
    %c0_238 = arith.constant 0 : index
    %c0_239 = arith.constant 0 : index
    %c8_240 = arith.constant 8 : index
    %c0_241 = arith.constant 0 : index
    %251 = vector.load %arg11[%c0_238, %c0_239, %c8_240, %c0_241] : memref<1x18x32x128xf32, #tpu.memory_space<vmem>>, vector<1x16x16x128xf32>
    %252 = vector.shape_cast %251 : vector<1x16x16x128xf32> to vector<16x16x128xf32>
    %253 = vector.shape_cast %252 : vector<16x16x128xf32> to vector<256x128xf32>
    %254 = arith.truncf %253 : vector<256x128xf32> to vector<256x128xbf16>
    %c1_242 = arith.constant 1 : index
    %c0_243 = arith.constant 0 : index
    %c0_244 = arith.constant 0 : index
    %255 = vector.load %arg6[%c1_242, %c0_243, %c0_244] : memref<9x128x128xbf16, #tpu.memory_space<vmem>>, vector<1x128x128xbf16>
    %256 = vector.shape_cast %255 : vector<1x128x128xbf16> to vector<128x128xbf16>
    %cst_245 = arith.constant dense<0.000000e+00> : vector<256x128xf32>
    %257 = tpu.matmul %254, %256, %cst_245 {dimension_numbers = #tpu.dot_dimension_numbers<[1], [0], [0], [1], [0, 0, 1, 1], [], []>} : vector<256x128xbf16>, vector<128x128xbf16>, vector<256x128xf32> -> vector<256x128xf32>
    %258 = arith.addf %250, %257 : vector<256x128xf32>
    %c0_246 = arith.constant 0 : index
    %c0_247 = arith.constant 0 : index
    %c9_248 = arith.constant 9 : index
    %c0_249 = arith.constant 0 : index
    %259 = vector.load %arg11[%c0_246, %c0_247, %c9_248, %c0_249] : memref<1x18x32x128xf32, #tpu.memory_space<vmem>>, vector<1x16x16x128xf32>
    %260 = vector.shape_cast %259 : vector<1x16x16x128xf32> to vector<16x16x128xf32>
    %261 = vector.shape_cast %260 : vector<16x16x128xf32> to vector<256x128xf32>
    %262 = arith.truncf %261 : vector<256x128xf32> to vector<256x128xbf16>
    %c2_250 = arith.constant 2 : index
    %c0_251 = arith.constant 0 : index
    %c0_252 = arith.constant 0 : index
    %263 = vector.load %arg6[%c2_250, %c0_251, %c0_252] : memref<9x128x128xbf16, #tpu.memory_space<vmem>>, vector<1x128x128xbf16>
    %264 = vector.shape_cast %263 : vector<1x128x128xbf16> to vector<128x128xbf16>
    %cst_253 = arith.constant dense<0.000000e+00> : vector<256x128xf32>
    %265 = tpu.matmul %262, %264, %cst_253 {dimension_numbers = #tpu.dot_dimension_numbers<[1], [0], [0], [1], [0, 0, 1, 1], [], []>} : vector<256x128xbf16>, vector<128x128xbf16>, vector<256x128xf32> -> vector<256x128xf32>
    %266 = arith.addf %258, %265 : vector<256x128xf32>
    %c0_254 = arith.constant 0 : index
    %c1_255 = arith.constant 1 : index
    %c7_256 = arith.constant 7 : index
    %c0_257 = arith.constant 0 : index
    %267 = vector.load %arg11[%c0_254, %c1_255, %c7_256, %c0_257] : memref<1x18x32x128xf32, #tpu.memory_space<vmem>>, vector<1x16x16x128xf32>
    %268 = vector.shape_cast %267 : vector<1x16x16x128xf32> to vector<16x16x128xf32>
    %269 = vector.shape_cast %268 : vector<16x16x128xf32> to vector<256x128xf32>
    %270 = arith.truncf %269 : vector<256x128xf32> to vector<256x128xbf16>
    %c3_258 = arith.constant 3 : index
    %c0_259 = arith.constant 0 : index
    %c0_260 = arith.constant 0 : index
    %271 = vector.load %arg6[%c3_258, %c0_259, %c0_260] : memref<9x128x128xbf16, #tpu.memory_space<vmem>>, vector<1x128x128xbf16>
    %272 = vector.shape_cast %271 : vector<1x128x128xbf16> to vector<128x128xbf16>
    %cst_261 = arith.constant dense<0.000000e+00> : vector<256x128xf32>
    %273 = tpu.matmul %270, %272, %cst_261 {dimension_numbers = #tpu.dot_dimension_numbers<[1], [0], [0], [1], [0, 0, 1, 1], [], []>} : vector<256x128xbf16>, vector<128x128xbf16>, vector<256x128xf32> -> vector<256x128xf32>
    %274 = arith.addf %266, %273 : vector<256x128xf32>
    %c0_262 = arith.constant 0 : index
    %c1_263 = arith.constant 1 : index
    %c8_264 = arith.constant 8 : index
    %c0_265 = arith.constant 0 : index
    %275 = vector.load %arg11[%c0_262, %c1_263, %c8_264, %c0_265] : memref<1x18x32x128xf32, #tpu.memory_space<vmem>>, vector<1x16x16x128xf32>
    %276 = vector.shape_cast %275 : vector<1x16x16x128xf32> to vector<16x16x128xf32>
    %277 = vector.shape_cast %276 : vector<16x16x128xf32> to vector<256x128xf32>
    %278 = arith.truncf %277 : vector<256x128xf32> to vector<256x128xbf16>
    %c4_266 = arith.constant 4 : index
    %c0_267 = arith.constant 0 : index
    %c0_268 = arith.constant 0 : index
    %279 = vector.load %arg6[%c4_266, %c0_267, %c0_268] : memref<9x128x128xbf16, #tpu.memory_space<vmem>>, vector<1x128x128xbf16>
    %280 = vector.shape_cast %279 : vector<1x128x128xbf16> to vector<128x128xbf16>
    %cst_269 = arith.constant dense<0.000000e+00> : vector<256x128xf32>
    %281 = tpu.matmul %278, %280, %cst_269 {dimension_numbers = #tpu.dot_dimension_numbers<[1], [0], [0], [1], [0, 0, 1, 1], [], []>} : vector<256x128xbf16>, vector<128x128xbf16>, vector<256x128xf32> -> vector<256x128xf32>
    %282 = arith.addf %274, %281 : vector<256x128xf32>
    %c0_270 = arith.constant 0 : index
    %c1_271 = arith.constant 1 : index
    %c9_272 = arith.constant 9 : index
    %c0_273 = arith.constant 0 : index
    %283 = vector.load %arg11[%c0_270, %c1_271, %c9_272, %c0_273] : memref<1x18x32x128xf32, #tpu.memory_space<vmem>>, vector<1x16x16x128xf32>
    %284 = vector.shape_cast %283 : vector<1x16x16x128xf32> to vector<16x16x128xf32>
    %285 = vector.shape_cast %284 : vector<16x16x128xf32> to vector<256x128xf32>
    %286 = arith.truncf %285 : vector<256x128xf32> to vector<256x128xbf16>
    %c5_274 = arith.constant 5 : index
    %c0_275 = arith.constant 0 : index
    %c0_276 = arith.constant 0 : index
    %287 = vector.load %arg6[%c5_274, %c0_275, %c0_276] : memref<9x128x128xbf16, #tpu.memory_space<vmem>>, vector<1x128x128xbf16>
    %288 = vector.shape_cast %287 : vector<1x128x128xbf16> to vector<128x128xbf16>
    %cst_277 = arith.constant dense<0.000000e+00> : vector<256x128xf32>
    %289 = tpu.matmul %286, %288, %cst_277 {dimension_numbers = #tpu.dot_dimension_numbers<[1], [0], [0], [1], [0, 0, 1, 1], [], []>} : vector<256x128xbf16>, vector<128x128xbf16>, vector<256x128xf32> -> vector<256x128xf32>
    %290 = arith.addf %282, %289 : vector<256x128xf32>
    %c0_278 = arith.constant 0 : index
    %c2_279 = arith.constant 2 : index
    %c7_280 = arith.constant 7 : index
    %c0_281 = arith.constant 0 : index
    %291 = vector.load %arg11[%c0_278, %c2_279, %c7_280, %c0_281] : memref<1x18x32x128xf32, #tpu.memory_space<vmem>>, vector<1x16x16x128xf32>
    %292 = vector.shape_cast %291 : vector<1x16x16x128xf32> to vector<16x16x128xf32>
    %293 = vector.shape_cast %292 : vector<16x16x128xf32> to vector<256x128xf32>
    %294 = arith.truncf %293 : vector<256x128xf32> to vector<256x128xbf16>
    %c6_282 = arith.constant 6 : index
    %c0_283 = arith.constant 0 : index
    %c0_284 = arith.constant 0 : index
    %295 = vector.load %arg6[%c6_282, %c0_283, %c0_284] : memref<9x128x128xbf16, #tpu.memory_space<vmem>>, vector<1x128x128xbf16>
    %296 = vector.shape_cast %295 : vector<1x128x128xbf16> to vector<128x128xbf16>
    %cst_285 = arith.constant dense<0.000000e+00> : vector<256x128xf32>
    %297 = tpu.matmul %294, %296, %cst_285 {dimension_numbers = #tpu.dot_dimension_numbers<[1], [0], [0], [1], [0, 0, 1, 1], [], []>} : vector<256x128xbf16>, vector<128x128xbf16>, vector<256x128xf32> -> vector<256x128xf32>
    %298 = arith.addf %290, %297 : vector<256x128xf32>
    %c0_286 = arith.constant 0 : index
    %c2_287 = arith.constant 2 : index
    %c8_288 = arith.constant 8 : index
    %c0_289 = arith.constant 0 : index
    %299 = vector.load %arg11[%c0_286, %c2_287, %c8_288, %c0_289] : memref<1x18x32x128xf32, #tpu.memory_space<vmem>>, vector<1x16x16x128xf32>
    %300 = vector.shape_cast %299 : vector<1x16x16x128xf32> to vector<16x16x128xf32>
    %301 = vector.shape_cast %300 : vector<16x16x128xf32> to vector<256x128xf32>
    %302 = arith.truncf %301 : vector<256x128xf32> to vector<256x128xbf16>
    %c7_290 = arith.constant 7 : index
    %c0_291 = arith.constant 0 : index
    %c0_292 = arith.constant 0 : index
    %303 = vector.load %arg6[%c7_290, %c0_291, %c0_292] : memref<9x128x128xbf16, #tpu.memory_space<vmem>>, vector<1x128x128xbf16>
    %304 = vector.shape_cast %303 : vector<1x128x128xbf16> to vector<128x128xbf16>
    %cst_293 = arith.constant dense<0.000000e+00> : vector<256x128xf32>
    %305 = tpu.matmul %302, %304, %cst_293 {dimension_numbers = #tpu.dot_dimension_numbers<[1], [0], [0], [1], [0, 0, 1, 1], [], []>} : vector<256x128xbf16>, vector<128x128xbf16>, vector<256x128xf32> -> vector<256x128xf32>
    %306 = arith.addf %298, %305 : vector<256x128xf32>
    %c0_294 = arith.constant 0 : index
    %c2_295 = arith.constant 2 : index
    %c9_296 = arith.constant 9 : index
    %c0_297 = arith.constant 0 : index
    %307 = vector.load %arg11[%c0_294, %c2_295, %c9_296, %c0_297] : memref<1x18x32x128xf32, #tpu.memory_space<vmem>>, vector<1x16x16x128xf32>
    %308 = vector.shape_cast %307 : vector<1x16x16x128xf32> to vector<16x16x128xf32>
    %309 = vector.shape_cast %308 : vector<16x16x128xf32> to vector<256x128xf32>
    %310 = arith.truncf %309 : vector<256x128xf32> to vector<256x128xbf16>
    %c8_298 = arith.constant 8 : index
    %c0_299 = arith.constant 0 : index
    %c0_300 = arith.constant 0 : index
    %311 = vector.load %arg6[%c8_298, %c0_299, %c0_300] : memref<9x128x128xbf16, #tpu.memory_space<vmem>>, vector<1x128x128xbf16>
    %312 = vector.shape_cast %311 : vector<1x128x128xbf16> to vector<128x128xbf16>
    %cst_301 = arith.constant dense<0.000000e+00> : vector<256x128xf32>
    %313 = tpu.matmul %310, %312, %cst_301 {dimension_numbers = #tpu.dot_dimension_numbers<[1], [0], [0], [1], [0, 0, 1, 1], [], []>} : vector<256x128xbf16>, vector<128x128xbf16>, vector<256x128xf32> -> vector<256x128xf32>
    %314 = arith.addf %306, %313 : vector<256x128xf32>
    %c0_302 = arith.constant 0 : index
    %c0_303 = arith.constant 0 : index
    %315 = vector.load %arg7[%c0_302, %c0_303] : memref<1x128xf32, #tpu.memory_space<vmem>>, vector<1x128xf32>
    %316 = vector.broadcast %315 : vector<1x128xf32> to vector<256x128xf32>
    %317 = arith.addf %314, %316 : vector<256x128xf32>
    %318 = arith.addf %317, %237 : vector<256x128xf32>
    %cst_304 = arith.constant 0.000000e+00 : f32
    %319 = vector.broadcast %cst_304 : f32 to vector<256x128xf32>
    %320 = arith.maximumf %318, %319 : vector<256x128xf32>
    %321 = vector.shape_cast %320 : vector<256x128xf32> to vector<1x16x16x128xf32>
    %c0_305 = arith.constant 0 : index
    %c0_306 = arith.constant 0 : index
    %c0_307 = arith.constant 0 : index
    %c0_308 = arith.constant 0 : index
    %322 = vector.load %arg10[%c0_305, %c0_306, %c0_307, %c0_308] : memref<1x16x16x128xf32, #tpu.memory_space<vmem>>, vector<1x16x16x128xf32>
    tpu.vector_store %arg10[%c0_305, %c0_306, %c0_307, %c0_308], %321 {strides = array<i32>} : memref<1x16x16x128xf32, #tpu.memory_space<vmem>>, vector<1x16x16x128xf32>,
    return
  }
  func.func @transform_0(%arg0: i32) -> (i32, i32, i32, i32) {
    %c0_i32 = arith.constant 0 : i32
    %c0_i32_0 = arith.constant 0 : i32
    %c0_i32_1 = arith.constant 0 : i32
    %c0_i32_2 = arith.constant 0 : i32
    return %arg0, %c0_i32, %c0_i32_0, %c0_i32_1 : i32, i32, i32, i32
  }
  func.func @transform_1(%arg0: i32) -> (i32, i32, i32) {
    %c0_i32 = arith.constant 0 : i32
    %c0_i32_0 = arith.constant 0 : i32
    %c0_i32_1 = arith.constant 0 : i32
    %c0_i32_2 = arith.constant 0 : i32
    return %c0_i32, %c0_i32_0, %c0_i32_1 : i32, i32, i32
  }
  func.func @transform_2(%arg0: i32) -> (i32, i32) {
    %c0_i32 = arith.constant 0 : i32
    %c0_i32_0 = arith.constant 0 : i32
    %c0_i32_1 = arith.constant 0 : i32
    return %c0_i32, %c0_i32_0 : i32, i32
  }
  func.func @transform_3(%arg0: i32) -> (i32, i32, i32) {
    %c0_i32 = arith.constant 0 : i32
    %c0_i32_0 = arith.constant 0 : i32
    %c0_i32_1 = arith.constant 0 : i32
    %c0_i32_2 = arith.constant 0 : i32
    return %c0_i32, %c0_i32_0, %c0_i32_1 : i32, i32, i32
  }
  func.func @transform_4(%arg0: i32) -> (i32, i32) {
    %c0_i32 = arith.constant 0 : i32
    %c0_i32_0 = arith.constant 0 : i32
    %c0_i32_1 = arith.constant 0 : i32
    return %c0_i32, %c0_i32_0 : i32, i32
  }
  func.func @transform_5(%arg0: i32) -> (i32, i32, i32) {
    %c0_i32 = arith.constant 0 : i32
    %c0_i32_0 = arith.constant 0 : i32
    %c0_i32_1 = arith.constant 0 : i32
    %c0_i32_2 = arith.constant 0 : i32
    return %c0_i32, %c0_i32_0, %c0_i32_1 : i32, i32, i32
  }
  func.func @transform_6(%arg0: i32) -> (i32, i32) {
    %c0_i32 = arith.constant 0 : i32
    %c0_i32_0 = arith.constant 0 : i32
    %c0_i32_1 = arith.constant 0 : i32
    return %c0_i32, %c0_i32_0 : i32, i32
  }
  func.func @transform_7(%arg0: i32) -> (i32, i32, i32) {
    %c0_i32 = arith.constant 0 : i32
    %c0_i32_0 = arith.constant 0 : i32
    %c0_i32_1 = arith.constant 0 : i32
    %c0_i32_2 = arith.constant 0 : i32
    return %c0_i32, %c0_i32_0, %c0_i32_1 : i32, i32, i32
  }
  func.func @transform_8(%arg0: i32) -> (i32, i32) {
    %c0_i32 = arith.constant 0 : i32
    %c0_i32_0 = arith.constant 0 : i32
    %c0_i32_1 = arith.constant 0 : i32
    return %c0_i32, %c0_i32_0 : i32, i32
  }
  func.func @transform_9(%arg0: i32) -> (i32, i32, i32, i32) {
    %c0_i32 = arith.constant 0 : i32
    %c0_i32_0 = arith.constant 0 : i32
    %c0_i32_1 = arith.constant 0 : i32
    %c0_i32_2 = arith.constant 0 : i32
    return %arg0, %c0_i32, %c0_i32_0, %c0_i32_1 : i32, i32, i32, i32
  }
}

</mosaic_0001>

<bundles_post_ra>
// kernel: resblk_forward.1
= control target key start
LH: loop header
LB: loop body
LE: loop exit
PB: predicated region body
PF: predicated region fallthrough
CT: control target
= control target key end

     0   :  { %14 = vsyncpa [#allocation4], 0  ;;  %s15178_s0 = inlined_call_operand.vmem [shape: f32[2,18,32,128], index: 0, kind: input, shape index: {}]   ;;  %s15179_s1 = inlined_call_operand.vmem [shape: bf16[9,128,128], index: 1, kind: input, shape index: {}]   ;;  %s15180_s2 = inlined_call_operand.vmem [shape: f32[1,128], index: 2, kind: input, shape index: {}]   ;;  %s15181_s3 = inlined_call_operand.vmem [shape: bf16[9,128,128], index: 3, kind: input, shape index: {}]   ;;  %s15182_s4 = inlined_call_operand.hbm [shape: f32[1,128], index: 4, kind: input, shape index: {}]   ;;  %s15183_s5 = inlined_call_operand.vmem [shape: bf16[9,128,128], index: 5, kind: input, shape index: {}]   ;;  %s15184_s6 = inlined_call_operand.hbm [shape: f32[1,128], index: 6, kind: input, shape index: {}]   ;;  %s15185_s7 = inlined_call_operand.vmem [shape: bf16[9,128,128], index: 7, kind: input, shape index: {}]   ;;  %s15186_s8 = inlined_call_operand.hbm [shape: f32[1,128], index: 8, kind: input, shape index: {}]   ;;  %s15187_s9 = inlined_call_operand.vmem [shape: f32[2,16,16,128], index: 9, kind: output, shape index: {}]  }
   0x1   :  { %15 = vsyncpa [#allocation6], 0  ;;  %s11635_s30 = smov 0  }
   0x2 LB: > { %s282_s12 = sshll.u32 %s15184_s6, 4  ;;  %s11644_s13 = sadd.s32 4294967295, %s11578_s30   ;;  %s11578_s30 = sphi %s11635_s30, %s21_s30   ;;  %s283_s12 = int_to_ptr.hbm [resolvable:$true] %s282_s12 }
   0x3   : > { %p9073_p0 = scmp.ge.s32.totalorder %s11578_s30, 1  ;;  %p246_p1 = scmp.lt.s32.totalorder %s11578_s30, 3 }
   0x4   : > { %p11447_p2 = scmp.eq.s32.totalorder %s11644_s13, 0  ;;  %s11580_s15 = smov [#allocation5]  }
   0x5   : > { %p11649_p3 = pnand %p9073_p0, %p246_p1  ;;  %s284_s16 = sshll.u32 %s11580_s15, 4  ;;  %s285_s16 = int_to_ptr.vmem [resolvable:$true] %s284_s16 }
   0x6   : > { %s267_s19 = sshll.u32 %s15182_s4, 4  ;;  %s297_s22 = sshll.u32 %s15186_s8, 4  ;;  %s268_s19 = int_to_ptr.hbm [resolvable:$true] %s267_s19  ;;  %s298_s22 = int_to_ptr.hbm [resolvable:$true] %s297_s22 }
   0x7   : > { %p11437_p4 = pneg %p11649_p3  ;;  %s11581_s23 = smov [#allocation3]  }
   0x8   : > { %s269_s24 = sshll.u32 %s11581_s23, 4  ;;  %s11582_s25 = smov [#allocation7]   ;;  %s270_s24 = int_to_ptr.vmem [resolvable:$true] %s269_s24 }
   0x9   : > { %p11438_p5 = pnand %p11447_p2, %p11437_p4  ;;  %s299_s26 = sshll.u32 %s11582_s25, 4  ;;  %s300_s26 = int_to_ptr.vmem [resolvable:$true] %s299_s26 }
   0xa   : > { %320 = sbr.rel (%p11649_p3) target bundleno = 2623 (0xa3f), region = 56 }
   0xb   : > { %11443 = dma.hbm_to_vmem [thread:$0]  (!%p11438_p5), %s283_s12, 16, %s285_s16, [#allocation6]  }
   0xc   : > { %11440 = dma.hbm_to_vmem [thread:$0]  (!%p11438_p5), %s268_s19, 16, %s270_s24, [#allocation4]  }
   0xd   : > { %11446 = dma.hbm_to_vmem [thread:$0]  (!%p11438_p5), %s298_s22, 16, %s300_s26, [#allocation6]  }
   0xf   : > { %11569 = dma.done.wait (%p11447_p2), [#allocation4], 16  }
  0x10   : > { %11571 = vsyncadd (%p11447_p2), [#allocation4], 4294967280 }
  0x11   : > { %11573 = dma.done.wait (%p11447_p2), [#allocation6], 32  }
  0x12   : > { %11575 = vsyncadd (%p11447_p2), [#allocation6], 4294967264  ;;  %v11151_v0 = vld [vmem:[%s15179_s1 + $0x78] sm:$0xff]  ;;  %v11150_v4 = vld [vmem:[%s15179_s1 + $0x70] sm:$0xff]  ;;  %p367_p6 = scmp.lt.s32.totalorder %s11644_s13, 1 }
  0x13   : > { %v11143_v1 = vld [vmem:[%s15179_s1 + $0x38] sm:$0xff]  ;;  %626 = vmatpush.bf16.msra.mxu0 %v11151_v0  ;;  %v11142_v5 = vld [vmem:[%s15179_s1 + $0x30] sm:$0xff]  ;;  %v11149_v8 = vld [vmem:[%s15179_s1 + $0x68] sm:$0xff] }
  0x14   : > { %v11159_v2 = vld [vmem:[%s15179_s1 + $0xb8] sm:$0xff]  ;;  %763 = vmatpush.bf16.msra.mxu1 %v11143_v1  ;;  %v11158_v6 = vld [vmem:[%s15179_s1 + $0xb0] sm:$0xff]  ;;  %v11141_v9 = vld [vmem:[%s15179_s1 + $0x28] sm:$0xff]  ;;  %s15332_s13 = smov (!%p367_p6, %s11644_s13), 1 }
  0x15   : > { %v11167_v3 = vld [vmem:[%s15179_s1 + $0xf8] sm:$0xff]  ;;  %965 = vmatpush.bf16.msra.mxu2 %v11159_v2  ;;  %v11166_v7 = vld [vmem:[%s15179_s1 + $0xf0] sm:$0xff]  ;;  %v11157_v10 = vld [vmem:[%s15179_s1 + $0xa8] sm:$0xff]  ;;  %s11424_s14 = smul.u32 576, %s15332_s13  ;;  %s11135_s29 = sshll.u32 %s15332_s13, 8 }
  0x16   : > { %1200 = vmatpush.bf16.msra.mxu3 %v11167_v3  ;;  %v11165_v11 = vld [vmem:[%s15179_s1 + $0xe8] sm:$0xff]  ;;  %v11148_v12 = vld [vmem:[%s15179_s1 + $0x60] sm:$0xff]  ;;  %v11147_v16 = vld [vmem:[%s15179_s1 + $0x58] sm:$0xff]  ;;  %s14979_s11 = scalar_lea.vmem %s15187_s9, %s11135_s29 }
  0x17   : > { %627 = vmatpush.bf16.msra.mxu0 %v11150_v4  ;;  %v11140_v13 = vld [vmem:[%s15179_s1 + $0x20] sm:$0xff]  ;;  %v11139_v17 = vld [vmem:[%s15179_s1 + $0x18] sm:$0xff]  ;;  %v11146_v20 = vld [vmem:[%s15179_s1 + $0x50] sm:$0xff]  ;;  %s11759_s25 = scalar_lea.vmem %s15178_s0, %s11424_s14 }
  0x18   : > { %764 = vmatpush.bf16.msra.mxu1 %v11142_v5  ;;  %v11156_v14 = vld [vmem:[%s15179_s1 + $0xa0] sm:$0xff]  ;;  %v11155_v18 = vld [vmem:[%s15179_s1 + $0x98] sm:$0xff]  ;;  %v11138_v21 = vld [vmem:[%s15179_s1 + $0x10] sm:$0xff] }
  0x19   : > { %966 = vmatpush.bf16.msra.mxu2 %v11158_v6  ;;  %v11164_v15 = vld [vmem:[%s15179_s1 + $0xe0] sm:$0xff]  ;;  %v11163_v19 = vld [vmem:[%s15179_s1 + $0xd8] sm:$0xff]  ;;  %v11154_v22 = vld [vmem:[%s15179_s1 + $0x90] sm:$0xff] }
  0x1a   : > { %1201 = vmatpush.bf16.msra.mxu3 %v11166_v7  ;;  %v11162_v23 = vld [vmem:[%s15179_s1 + $0xd0] sm:$0xff]  ;;  %v11145_v24 = vld [vmem:[%s15179_s1 + $0x48] sm:$0xff]  ;;  %v11144_v28 = vld [vmem:[%s15179_s1 + $0x40] sm:$0xff] }
  0x1b   : > { %628 = vmatpush.bf16.msra.mxu0 %v11149_v8  ;;  %v11137_v25 = vld [vmem:[%s15179_s1 + $0x8] sm:$0xff]  ;;  %v11136_v29 = vld [vmem:[%s15179_s1] sm:$0xff]  ;;  %v514_v33 = vld [vmem:[%s11759_s25 + $0x10] sm:$0xff] }
  0x1c   : > { %765 = vmatpush.bf16.msra.mxu1 %v11141_v9  ;;  %v11153_v26 = vld [vmem:[%s15179_s1 + $0x88] sm:$0xff]  ;;  %v11152_v30 = vld [vmem:[%s15179_s1 + $0x80] sm:$0xff]  ;;  %v853_v37 = vld [vmem:[%s11759_s25 + $0x11] sm:$0xff] }
  0x1d   : > { %967 = vmatpush.bf16.msra.mxu2 %v11157_v10  ;;  %v11161_v27 = vld [vmem:[%s15179_s1 + $0xc8] sm:$0xff]  ;;  %v11160_v31 = vld [vmem:[%s15179_s1 + $0xc0] sm:$0xff]  ;;  %v11175_v40 = vld [vmem:[%s15179_s1 + $0x138] sm:$0xff] }
  0x1e   : > { %1202 = vmatpush.bf16.msra.mxu3 %v11165_v11  ;;  %v513_v32 = vld [vmem:[%s11759_s25 + $0x8] sm:$0xff]  ;;  %v11174_v45 = vld [vmem:[%s15179_s1 + $0x130] sm:$0xff] }
  0x1f   : > { %629 = vmatpush.bf16.msra.mxu0 %v11148_v12  ;;  %v449_v34 = vld [vmem:[%s11759_s25 + $0x7] sm:$0xff]  ;;  %v450_v35 = vld [vmem:[%s11759_s25 + $0xf] sm:$0xff]  ;;  %v545_v41 = vpack.c.bf16 %v514_v33, %v513_v32 }
  0x20   : > { %766 = vmatpush.bf16.msra.mxu1 %v11140_v13  ;;  %v852_v36 = vld [vmem:[%s11759_s25 + $0x9] sm:$0xff]  ;;  %v481_v42 = vpack.c.bf16 %v450_v35, %v449_v34  ;;  %v855_v49 = vld [vmem:[%s11759_s25 + $0x31] sm:$0xff] }
  0x21   : > { %968 = vmatpush.bf16.msra.mxu2 %v11156_v14  ;;  %v9213_v38 = vld [vmem:[%s11759_s25 + $0x27] sm:$0xff]  ;;  %v9214_v39 = vld [vmem:[%s11759_s25 + $0x2f] sm:$0xff]  ;;  %v884_v43 = vpack.c.bf16 %v853_v37, %v852_v36 }
  0x22   : > { %1203 = vmatpush.bf16.msra.mxu3 %v11164_v15  ;;  %v1119_v44 = vpack.c.bf16 %v9214_v39, %v9213_v38  ;;  %v515_v46 = vld [vmem:[%s11759_s25 + $0x28] sm:$0xff]  ;;  %v516_v47 = vld [vmem:[%s11759_s25 + $0x30] sm:$0xff]  ;;  %v11171_v38 = vld [vmem:[%s15179_s1 + $0x118] sm:$0xff] }
  0x23   : > { %630 = vmatpush.bf16.msra.mxu0 %v11147_v16  ;;  %v854_v48 = vld [vmem:[%s11759_s25 + $0x29] sm:$0xff]  ;;  %v11799_v52 = vpack.c.bf16 %v516_v47, %v515_v46  ;;  %v857_v58 = vld [vmem:[%s11759_s25 + $0x51] sm:$0xff] }
  0x24   : > { %767 = vmatpush.bf16.msra.mxu1 %v11139_v17  ;;  %v9215_v50 = vld [vmem:[%s11759_s25 + $0x47] sm:$0xff]  ;;  %v9216_v51 = vld [vmem:[%s11759_s25 + $0x4f] sm:$0xff]  ;;  %v11801_v53 = vpack.c.bf16 %v855_v49, %v854_v48  ;;  %v11191_v39 = vld [vmem:[%s15179_s1 + $0x1b8] sm:$0xff] }
  0x25   : > { %969 = vmatpush.bf16.msra.mxu2 %v11155_v18  ;;  %v11803_v54 = vpack.c.bf16 %v9216_v51, %v9215_v50  ;;  %v517_v55 = vld [vmem:[%s11759_s25 + $0x48] sm:$0xff]  ;;  %v518_v56 = vld [vmem:[%s11759_s25 + $0x50] sm:$0xff] }
  0x26   : > { %1204 = vmatpush.bf16.msra.mxu3 %v11163_v19  ;;  %v856_v57 = vld [vmem:[%s11759_s25 + $0x49] sm:$0xff]  ;;  %v11814_v61 = vpack.c.bf16 %v518_v56, %v517_v55  ;;  %v859_v4 = vld [vmem:[%s11759_s25 + $0x71] sm:$0xff]  ;;  %v11172_v19 = vld [vmem:[%s15179_s1 + $0x120] sm:$0xff] }
  0x27   : > { %631 = vmatpush.bf16.msra.mxu0 %v11146_v20  ;;  %v9217_v59 = vld [vmem:[%s11759_s25 + $0x67] sm:$0xff]  ;;  %v9218_v60 = vld [vmem:[%s11759_s25 + $0x6f] sm:$0xff]  ;;  %v11816_v62 = vpack.c.bf16 %v857_v58, %v856_v57 }
  0x28   : > { %768 = vmatpush.bf16.msra.mxu1 %v11138_v21  ;;  %v11818_v63 = vpack.c.bf16 %v9218_v60, %v9217_v59  ;;  %v11173_v0 = vld [vmem:[%s15179_s1 + $0x128] sm:$0xff]  ;;  %v520_v2 = vld [vmem:[%s11759_s25 + $0x70] sm:$0xff] }
  0x29   : > { %970 = vmatpush.bf16.msra.mxu2 %v11154_v22  ;;  %v519_v1 = vld [vmem:[%s11759_s25 + $0x68] sm:$0xff]  ;;  %v522_v11 = vld [vmem:[%s11759_s25 + $0x90] sm:$0xff] }
  0x2a   : > { %1205 = vmatpush.bf16.msra.mxu3 %v11162_v23  ;;  %v858_v3 = vld [vmem:[%s11759_s25 + $0x69] sm:$0xff]  ;;  %v11833_v7 = vpack.c.bf16 %v520_v2, %v519_v1  ;;  %v861_v13 = vld [vmem:[%s11759_s25 + $0x91] sm:$0xff] }
  0x2b   : > { %632 = vmatpush.bf16.msra.mxu0 %v11145_v24  ;;  %v9219_v5 = vld [vmem:[%s11759_s25 + $0x87] sm:$0xff]  ;;  %v9220_v6 = vld [vmem:[%s11759_s25 + $0x8f] sm:$0xff]  ;;  %v11835_v8 = vpack.c.bf16 %v859_v4, %v858_v3 }
  0x2c   : > { %769 = vmatpush.bf16.msra.mxu1 %v11137_v25  ;;  %v11837_v9 = vpack.c.bf16 %v9220_v6, %v9219_v5  ;;  %v521_v10 = vld [vmem:[%s11759_s25 + $0x88] sm:$0xff]  ;;  %v524_v21 = vld [vmem:[%s11759_s25 + $0xb0] sm:$0xff] }
  0x2d   : > { %971 = vmatpush.bf16.msra.mxu2 %v11153_v26  ;;  %v860_v12 = vld [vmem:[%s11759_s25 + $0x89] sm:$0xff]  ;;  %v11849_v16 = vpack.c.bf16 %v522_v11, %v521_v10  ;;  %v863_v23 = vld [vmem:[%s11759_s25 + $0xb1] sm:$0xff] }
  0x2e   : > { %1206 = vmatpush.bf16.msra.mxu3 %v11161_v27  ;;  %v9221_v14 = vld [vmem:[%s11759_s25 + $0xa7] sm:$0xff]  ;;  %v9222_v15 = vld [vmem:[%s11759_s25 + $0xaf] sm:$0xff]  ;;  %v888_v17 = vpack.c.bf16 %v861_v13, %v860_v12 }
  0x2f   : > { %633 = vmatpush.bf16.msra.mxu0 %v11144_v28  ;;  %v1123_v18 = vpack.c.bf16 %v9222_v15, %v9221_v14  ;;  %v523_v20 = vld [vmem:[%s11759_s25 + $0xa8] sm:$0xff]  ;;  %v865_v32 = vld [vmem:[%s11759_s25 + $0xd1] sm:$0xff] }
  0x30   : > { %770 = vmatpush.bf16.msra.mxu1 %v11136_v29  ;;  %v862_v22 = vld [vmem:[%s11759_s25 + $0xa9] sm:$0xff]  ;;  %v550_v26 = vpack.c.bf16 %v524_v21, %v523_v20  ;;  %v869_v57 = vld [vmem:[%s11759_s25 + $0x111] sm:$0xff] }
  0x31   : > { %972 = vmatpush.bf16.msra.mxu2 %v11152_v30  ;;  %v9223_v24 = vld [vmem:[%s11759_s25 + $0xc7] sm:$0xff]  ;;  %v9224_v25 = vld [vmem:[%s11759_s25 + $0xcf] sm:$0xff]  ;;  %v889_v27 = vpack.c.bf16 %v863_v23, %v862_v22 }
  0x32   : > { %1207 = vmatpush.bf16.msra.mxu3 %v11160_v31  ;;  %634 = vmatmul.bf16.vlgmr.msra.gmra.mxu0 %v545_v41  ;;  %v1124_v28 = vpack.c.bf16 %v9224_v25, %v9223_v24  ;;  %v525_v29 = vld [vmem:[%s11759_s25 + $0xc8] sm:$0xff]  ;;  %v526_v30 = vld [vmem:[%s11759_s25 + $0xd0] sm:$0xff]  ;;  %v11183_v41 = vld [vmem:[%s15179_s1 + $0x178] sm:$0xff] }
  0x33   : > { %1434 = vmatpush.bf16.msrb.mxu0 %v11175_v40  ;;  %771 = vmatmul.bf16.vlgmr.msra.gmra.mxu1 %v481_v42  ;;  %v864_v31 = vld [vmem:[%s11759_s25 + $0xc9] sm:$0xff]  ;;  %v551_v35 = vpack.c.bf16 %v526_v30, %v525_v29  ;;  %v11199_v40 = vld [vmem:[%s15179_s1 + $0x1f8] sm:$0xff] }
  0x34   : > { %973 = vmatmul.bf16.vlgmr.msra.gmra.mxu2 %v884_v43  ;;  %v9225_v33 = vld [vmem:[%s11759_s25 + $0xe7] sm:$0xff]  ;;  %v9226_v34 = vld [vmem:[%s11759_s25 + $0xef] sm:$0xff]  ;;  %v890_v36 = vpack.c.bf16 %v865_v32, %v864_v31  ;;  %1668 = vmatpush.bf16.msrb.mxu1 %v11183_v41 }
  0x35   : > { %1208 = vmatmul.bf16.vlgmr.msra.gmra.mxu3 %v1119_v44  ;;  %v1125_v37 = vpack.c.bf16 %v9226_v34, %v9225_v33  ;;  %v527_v42 = vld [vmem:[%s11759_s25 + $0xe8] sm:$0xff]  ;;  %v528_v43 = vld [vmem:[%s11759_s25 + $0xf0] sm:$0xff]  ;;  %1903 = vmatpush.bf16.msrb.mxu2 %v11191_v39 }
  0x36   : > { %2137 = vmatpush.bf16.msrb.mxu3 %v11199_v40  ;;  %v9227_v46 = vld [vmem:[%s11759_s25 + $0x107] sm:$0xff]  ;;  %v9228_v47 = vld [vmem:[%s11759_s25 + $0x10f] sm:$0xff]  ;;  %v552_v48 = vpack.c.bf16 %v528_v43, %v527_v42 }
  0x37   : > { %1435 = vmatpush.bf16.msrb.mxu0 %v11174_v45  ;;  %v867_v45 = vld [vmem:[%s11759_s25 + $0xf1] sm:$0xff]  ;;  %v1126_v50 = vpack.c.bf16 %v9228_v47, %v9227_v46  ;;  %v529_v51 = vld [vmem:[%s11759_s25 + $0x108] sm:$0xff] }
  0x38   : > { %v530_v55 = vld [vmem:[%s11759_s25 + $0x110] sm:$0xff]  ;;  %v9229_v58 = vld [vmem:[%s11759_s25 + $0x127] sm:$0xff] }
  0x39   : > { %v868_v56 = vld [vmem:[%s11759_s25 + $0x109] sm:$0xff]  ;;  %v553_v60 = vpack.c.bf16 %v530_v55, %v529_v51  ;;  %v871_v23 = vld [vmem:[%s11759_s25 + $0x131] sm:$0xff] }
  0x3a   : > { %v9230_v59 = vld [vmem:[%s11759_s25 + $0x12f] sm:$0xff]  ;;  %v892_v2 = vpack.c.bf16 %v869_v57, %v868_v56  ;;  %v9231_v24 = vld [vmem:[%s11759_s25 + $0x147] sm:$0xff] }
  0x3b   : > { %1436 = vmatpush.bf16.msrb.mxu0 %v11173_v0  ;;  %v1127_v3 = vpack.c.bf16 %v9230_v59, %v9229_v58  ;;  %v11170_v5 = vld [vmem:[%s15179_s1 + $0x110] sm:$0xff]  ;;  %v531_v20 = vld [vmem:[%s11759_s25 + $0x128] sm:$0xff] }
  0x3c   : > { %v532_v21 = vld [vmem:[%s11759_s25 + $0x130] sm:$0xff]  ;;  %v533_v43 = vld [vmem:[%s11759_s25 + $0x148] sm:$0xff] }
  0x3d   : > { %v870_v22 = vld [vmem:[%s11759_s25 + $0x129] sm:$0xff]  ;;  %v873_v46 = vld [vmem:[%s11759_s25 + $0x151] sm:$0xff] }
  0x3e   : > { %v9232_v25 = vld [vmem:[%s11759_s25 + $0x14f] sm:$0xff]  ;;  %v893_v32 = vpack.c.bf16 %v871_v23, %v870_v22  ;;  %v9233_v47 = vld [vmem:[%s11759_s25 + $0x167] sm:$0xff] }
  0x3f   : > { %1437 = vmatpush.bf16.msrb.mxu0 %v11172_v19  ;;  %v11182_v19 = vld [vmem:[%s15179_s1 + $0x170] sm:$0xff]  ;;  %v1128_v33 = vpack.c.bf16 %v9232_v25, %v9231_v24 }
  0x40   : > { %1669 = vmatpush.bf16.msrb.mxu1 %v11182_v19  ;;  %v874_v19 = vld [vmem:[%s11759_s25 + $0x169] sm:$0xff] }
  0x41   : > { %v9236_v22 = vld [vmem:[%s11759_s25 + $0x18f] sm:$0xff] }
  0x42   : > { %639 = vmatmul.bf16.gmra.mxu0 %v11799_v52 }
  0x43   : > { %776 = vmatmul.bf16.gmra.mxu1 %v1119_v44  ;;  %1438 = vmatpush.bf16.msrb.mxu0 %v11171_v38  ;;  %v866_v44 = vld [vmem:[%s11759_s25 + $0xe9] sm:$0xff] }
  0x44   : > { %978 = vmatmul.bf16.gmra.mxu2 %v11801_v53  ;;  %v891_v49 = vpack.c.bf16 %v867_v45, %v866_v44  ;;  %v534_v44 = vld [vmem:[%s11759_s25 + $0x150] sm:$0xff] }
  0x45   : > { %1213 = vmatmul.bf16.gmra.mxu3 %v11803_v54  ;;  %v872_v45 = vld [vmem:[%s11759_s25 + $0x149] sm:$0xff]  ;;  %v555_v51 = vpack.c.bf16 %v534_v44, %v533_v43 }
  0x46   : > { %v894_v58 = vpack.c.bf16 %v873_v46, %v872_v45  ;;  %v538_v43 = vld [vmem:[%s11759_s25 + $0x190] sm:$0xff]  ;;  %v9237_v46 = vld [vmem:[%s11759_s25 + $0x1a7] sm:$0xff] }
  0x47   : > { %1439 = vmatpush.bf16.msrb.mxu0 %v11170_v5  ;;  %v876_v44 = vld [vmem:[%s11759_s25 + $0x189] sm:$0xff]  ;;  %v877_v45 = vld [vmem:[%s11759_s25 + $0x191] sm:$0xff] }
  0x52   : > { %644 = vmatmul.bf16.gmra.mxu0 %v11814_v61 }
  0x53   : > { %781 = vmatmul.bf16.gmra.mxu1 %v11803_v54 }
  0x54   : > { %983 = vmatmul.bf16.gmra.mxu2 %v11816_v62 }
  0x55   : > { %1218 = vmatmul.bf16.gmra.mxu3 %v11818_v63 }
  0x62   : > { %649 = vmatmul.bf16.gmra.mxu0 %v11833_v7 }
  0x63   : > { %786 = vmatmul.bf16.gmra.mxu1 %v11818_v63 }
  0x64   : > { %988 = vmatmul.bf16.gmra.mxu2 %v11835_v8 }
  0x65   : > { %1223 = vmatmul.bf16.gmra.mxu3 %v11837_v9 }
  0x72   : > { %654 = vmatmul.bf16.gmra.mxu0 %v11849_v16 }
  0x73   : > { %791 = vmatmul.bf16.gmra.mxu1 %v11837_v9 }
  0x74   : > { %993 = vmatmul.bf16.gmra.mxu2 %v888_v17  ;;  %v11190_v17 = vld [vmem:[%s15179_s1 + $0x1b0] sm:$0xff] }
  0x75   : > { %1228 = vmatmul.bf16.gmra.mxu3 %v1123_v18  ;;  %1904 = vmatpush.bf16.msrb.mxu2 %v11190_v17  ;;  %v535_v17 = vld [vmem:[%s11759_s25 + $0x168] sm:$0xff] }
  0x82   : > { %659 = vmatmul.bf16.gmra.mxu0 %v550_v26 }
  0x83   : > { %796 = vmatmul.bf16.gmra.mxu1 %v1123_v18  ;;  %v11198_v18 = vld [vmem:[%s15179_s1 + $0x1f0] sm:$0xff] }
  0x84   : > { %998 = vmatmul.bf16.gmra.mxu2 %v889_v27  ;;  %2138 = vmatpush.bf16.msrb.mxu3 %v11198_v18  ;;  %v536_v18 = vld [vmem:[%s11759_s25 + $0x170] sm:$0xff] }
  0x85   : > { %1233 = vmatmul.bf16.gmra.mxu3 %v1124_v28  ;;  %v556_v25 = vpack.c.bf16 %v536_v18, %v535_v17  ;;  %v11180_v17 = vld [vmem:[%s15179_s1 + $0x160] sm:$0xff]  ;;  %v539_v18 = vld [vmem:[%s11759_s25 + $0x1a8] sm:$0xff] }
  0x92   : > { %664 = vmatmul.bf16.gmra.mxu0 %v551_v35 }
  0x93   : > { %801 = vmatmul.bf16.gmra.mxu1 %v1124_v28  ;;  %v554_v28 = vpack.c.bf16 %v532_v21, %v531_v20  ;;  %v875_v20 = vld [vmem:[%s11759_s25 + $0x171] sm:$0xff]  ;;  %v9235_v21 = vld [vmem:[%s11759_s25 + $0x187] sm:$0xff] }
  0x94   : > { %1003 = vmatmul.bf16.gmra.mxu2 %v890_v36 }
  0x95   : > { %1238 = vmatmul.bf16.gmra.mxu3 %v1125_v37 }
  0xa2   : > { %669 = vmatmul.bf16.gmra.mxu0 %v552_v48  ;;  %v9234_v48 = vld [vmem:[%s11759_s25 + $0x16f] sm:$0xff] }
  0xa3   : > { %806 = vmatmul.bf16.gmra.mxu1 %v1125_v37  ;;  %v1129_v59 = vpack.c.bf16 %v9234_v48, %v9233_v47  ;;  %v9238_v47 = vld [vmem:[%s11759_s25 + $0x1af] sm:$0xff] }
  0xa4   : > { %1008 = vmatmul.bf16.gmra.mxu2 %v891_v49 }
  0xa5   : > { %1243 = vmatmul.bf16.gmra.mxu3 %v1126_v50 }
  0xaf   : > { %v635_v0 = vpop.f32.mrf.mxu0 }
  0xb0   : > { %v772_v1 = vpop.f32.mrf.mxu1 }
  0xb1   : > { %v773_v4 = vadd.f32 %v772_v1, %v635_v0  ;;  %v11169_v1 = vld [vmem:[%s15179_s1 + $0x108] sm:$0xff] }
  0xb2   : > { %674 = vmatmul.bf16.gmra.mxu0 %v553_v60 }
  0xb3   : > { %811 = vmatmul.bf16.gmra.mxu1 %v1126_v50  ;;  %1440 = vmatpush.bf16.msrb.mxu0 %v11169_v1  ;;  %v11168_v1 = vld [vmem:[%s15179_s1 + $0x100] sm:$0xff] }
  0xb4   : > { %1013 = vmatmul.bf16.gmra.mxu2 %v892_v2 }
  0xb5   : > { %1248 = vmatmul.bf16.gmra.mxu3 %v1127_v3 }
  0xb7   : > { %v974_v6 = vpop.f32.mrf.mxu2  ;;  %v637_v12 = vpop.f32.mrf.mxu0  ;;  %1441 = vmatpush.bf16.msrb.mxu0 %v11168_v1  ;;  %v9242_v1 = vld [vmem:[%s11759_s25 + $0x1ef] sm:$0xff] }
  0xb8   : > { %v1209_v10 = vpop.f32.mrf.mxu3  ;;  %v1054_v11 = vadd.f32 %v974_v6, %v773_v4  ;;  %v774_v13 = vpop.f32.mrf.mxu1 }
  0xb9   : > { %v775_v14 = vadd.f32 %v774_v13, %v637_v12  ;;  %v11189_v12 = vld [vmem:[%s15179_s1 + $0x1a8] sm:$0xff] }
  0xba   : > { %v11895_v15 = vadd.f32 %v1209_v10, %v1054_v11  ;;  %v11197_v13 = vld [vmem:[%s15179_s1 + $0x1e8] sm:$0xff]  ;;  %1905 = vmatpush.bf16.msrb.mxu2 %v11189_v12 }
  0xbb   : > { %2139 = vmatpush.bf16.msrb.mxu3 %v11197_v13  ;;  %v11188_v13 = vld [vmem:[%s15179_s1 + $0x1a0] sm:$0xff] }
  0xbe   : > { %1906 = vmatpush.bf16.msrb.mxu2 %v11188_v13 }
  0xbf   : > { %v976_v26 = vpop.f32.mrf.mxu2  ;;  %v640_v30 = vpop.f32.mrf.mxu0 }
  0xc0   : > { %v1211_v27 = vpop.f32.mrf.mxu3  ;;  %v1055_v29 = vadd.f32 %v976_v26, %v775_v14  ;;  %v777_v31 = vpop.f32.mrf.mxu1  ;;  %v11181_v14 = vld [vmem:[%s15179_s1 + $0x168] sm:$0xff] }
  0xc1   : > { %v778_v34 = vadd.f32 %v777_v31, %v640_v30  ;;  %1670 = vmatpush.bf16.msrb.mxu1 %v11181_v14  ;;  %v1130_v30 = vpack.c.bf16 %v9236_v22, %v9235_v21  ;;  %v11196_v14 = vld [vmem:[%s15179_s1 + $0x1e0] sm:$0xff]  ;;  %v879_v21 = vld [vmem:[%s11759_s25 + $0x1b1] sm:$0xff] }
  0xc2   : > { %v11912_v35 = vadd.f32 %v1211_v27, %v1055_v29  ;;  %679 = vmatmul.bf16.gmra.mxu0 %v554_v28  ;;  %v895_v29 = vpack.c.bf16 %v875_v20, %v874_v19  ;;  %v540_v19 = vld [vmem:[%s11759_s25 + $0x1b0] sm:$0xff]  ;;  %2140 = vmatpush.bf16.msrb.mxu3 %v11196_v14  ;;  %v9239_v22 = vld [vmem:[%s11759_s25 + $0x1c7] sm:$0xff] }
  0xc3   : > { %816 = vmatmul.bf16.gmra.mxu1 %v1127_v3  ;;  %v878_v20 = vld [vmem:[%s11759_s25 + $0x1a9] sm:$0xff] }
  0xc4   : > { %1018 = vmatmul.bf16.gmra.mxu2 %v893_v32 }
  0xc5   : > { %1253 = vmatmul.bf16.gmra.mxu3 %v1128_v33  ;;  %1671 = vmatpush.bf16.msrb.mxu1 %v11180_v17 }
  0xc7   : > { %v979_v36 = vpop.f32.mrf.mxu2  ;;  %v642_v39 = vpop.f32.mrf.mxu0 }
  0xc8   : > { %v1214_v37 = vpop.f32.mrf.mxu3  ;;  %v1056_v38 = vadd.f32 %v979_v36, %v778_v34  ;;  %v779_v40 = vpop.f32.mrf.mxu1 }
  0xc9   : > { %v780_v41 = vadd.f32 %v779_v40, %v642_v39 }
  0xca   : > { %v11914_v42 = vadd.f32 %v1214_v37, %v1056_v38 }
  0xcf   : > { %v981_v49 = vpop.f32.mrf.mxu2  ;;  %v645_v56 = vpop.f32.mrf.mxu0 }
  0xd0   : > { %v1216_v50 = vpop.f32.mrf.mxu3  ;;  %v1057_v55 = vadd.f32 %v981_v49, %v780_v41  ;;  %v782_v57 = vpop.f32.mrf.mxu1  ;;  %v537_v41 = vld [vmem:[%s11759_s25 + $0x188] sm:$0xff] }
  0xd1   : > { %v783_v60 = vadd.f32 %v782_v57, %v645_v56  ;;  %v896_v57 = vpack.c.bf16 %v877_v45, %v876_v44 }
  0xd2   : > { %v11922_v0 = vadd.f32 %v1216_v50, %v1057_v55  ;;  %684 = vmatmul.bf16.gmra.mxu0 %v555_v51  ;;  %v557_v50 = vpack.c.bf16 %v538_v43, %v537_v41  ;;  %v11186_v43 = vld [vmem:[%s15179_s1 + $0x190] sm:$0xff] }
  0xd3   : > { %821 = vmatmul.bf16.gmra.mxu1 %v1128_v33 }
  0xd4   : > { %1023 = vmatmul.bf16.gmra.mxu2 %v894_v58  ;;  %v1131_v58 = vpack.c.bf16 %v9238_v47, %v9237_v46 }
  0xd5   : > { %1258 = vmatmul.bf16.gmra.mxu3 %v1129_v59 }
  0xd7   : > { %v984_v2 = vpop.f32.mrf.mxu2  ;;  %v647_v5 = vpop.f32.mrf.mxu0 }
  0xd8   : > { %v1219_v3 = vpop.f32.mrf.mxu3  ;;  %v1058_v4 = vadd.f32 %v984_v2, %v783_v60  ;;  %v784_v6 = vpop.f32.mrf.mxu1 }
  0xd9   : > { %v785_v10 = vadd.f32 %v784_v6, %v647_v5 }
  0xda   : > { %v11927_v11 = vadd.f32 %v1219_v3, %v1058_v4 }
  0xdf   : > { %v986_v23 = vpop.f32.mrf.mxu2  ;;  %v650_v27 = vpop.f32.mrf.mxu0 }
  0xe0   : > { %v1221_v24 = vpop.f32.mrf.mxu3  ;;  %v1059_v26 = vadd.f32 %v986_v23, %v785_v10  ;;  %v787_v28 = vpop.f32.mrf.mxu1  ;;  %v9240_v23 = vld [vmem:[%s11759_s25 + $0x1cf] sm:$0xff] }
  0xe1   : > { %v788_v31 = vadd.f32 %v787_v28, %v650_v27 }
  0xe2   : > { %v11944_v32 = vadd.f32 %v1221_v24, %v1059_v26  ;;  %689 = vmatmul.bf16.gmra.mxu0 %v556_v25  ;;  %v558_v26 = vpack.c.bf16 %v540_v19, %v539_v18 }
  0xe3   : > { %826 = vmatmul.bf16.gmra.mxu1 %v1129_v59 }
  0xe4   : > { %1028 = vmatmul.bf16.gmra.mxu2 %v895_v29 }
  0xe5   : > { %1263 = vmatmul.bf16.gmra.mxu3 %v1130_v30 }
  0xe7   : > { %v989_v33 = vpop.f32.mrf.mxu2  ;;  %v652_v37 = vpop.f32.mrf.mxu0 }
  0xe8   : > { %v1224_v34 = vpop.f32.mrf.mxu3  ;;  %v1060_v36 = vadd.f32 %v989_v33, %v788_v31  ;;  %v789_v38 = vpop.f32.mrf.mxu1  ;;  %v1132_v31 = vpack.c.bf16 %v9240_v23, %v9239_v22  ;;  %v11192_v22 = vld [vmem:[%s15179_s1 + $0x1c0] sm:$0xff] }
  0xe9   : > { %v790_v39 = vadd.f32 %v789_v38, %v652_v37  ;;  %v11179_v37 = vld [vmem:[%s15179_s1 + $0x158] sm:$0xff] }
  0xea   : > { %v11946_v40 = vadd.f32 %v1224_v34, %v1060_v36  ;;  %v11187_v36 = vld [vmem:[%s15179_s1 + $0x198] sm:$0xff]  ;;  %1672 = vmatpush.bf16.msrb.mxu1 %v11179_v37  ;;  %v882_v37 = vld [vmem:[%s11759_s25 + $0x1e9] sm:$0xff] }
  0xeb   : > { %1907 = vmatpush.bf16.msrb.mxu2 %v11187_v36  ;;  %v11195_v38 = vld [vmem:[%s15179_s1 + $0x1d8] sm:$0xff]  ;;  %v544_v36 = vld [vmem:[%s11759_s25 + $0x1f0] sm:$0xff] }
  0xec   : > { %2141 = vmatpush.bf16.msrb.mxu3 %v11195_v38  ;;  %v883_v38 = vld [vmem:[%s11759_s25 + $0x1f1] sm:$0xff] }
  0xef   : > { %v991_v48 = vpop.f32.mrf.mxu2  ;;  %v655_v55 = vpop.f32.mrf.mxu0  ;;  %1908 = vmatpush.bf16.msrb.mxu2 %v11186_v43 }
  0xf0   : > { %v1226_v49 = vpop.f32.mrf.mxu3  ;;  %v1061_v51 = vadd.f32 %v991_v48, %v790_v39  ;;  %v792_v56 = vpop.f32.mrf.mxu1  ;;  %v11178_v48 = vld [vmem:[%s15179_s1 + $0x150] sm:$0xff] }
  0xf1   : > { %v793_v59 = vadd.f32 %v792_v56, %v655_v55  ;;  %v541_v55 = vld [vmem:[%s11759_s25 + $0x1c8] sm:$0xff]  ;;  %v542_v56 = vld [vmem:[%s11759_s25 + $0x1d0] sm:$0xff]  ;;  %1673 = vmatpush.bf16.msrb.mxu1 %v11178_v48 }
  0xf2   : > { %v11954_v60 = vadd.f32 %v1226_v49, %v1061_v51  ;;  %694 = vmatmul.bf16.gmra.mxu0 %v557_v50  ;;  %v11194_v49 = vld [vmem:[%s15179_s1 + $0x1d0] sm:$0xff]  ;;  %v11185_v51 = vld [vmem:[%s15179_s1 + $0x188] sm:$0xff] }
  0xf3   : > { %831 = vmatmul.bf16.gmra.mxu1 %v1130_v30  ;;  %v897_v30 = vpack.c.bf16 %v879_v21, %v878_v20  ;;  %2142 = vmatpush.bf16.msrb.mxu3 %v11194_v49  ;;  %v11176_v21 = vld [vmem:[%s15179_s1 + $0x140] sm:$0xff]  ;;  %v899_v49 = vpack.c.bf16 %v883_v38, %v882_v37 }
  0xf4   : > { %1033 = vmatmul.bf16.gmra.mxu2 %v896_v57  ;;  %v880_v57 = vld [vmem:[%s11759_s25 + $0x1c9] sm:$0xff] }
  0xf5   : > { %1268 = vmatmul.bf16.gmra.mxu3 %v1131_v58  ;;  %1909 = vmatpush.bf16.msrb.mxu2 %v11185_v51 }
  0xf7   : > { %v994_v2 = vpop.f32.mrf.mxu2  ;;  %v657_v5 = vpop.f32.mrf.mxu0 }
  0xf8   : > { %v1229_v3 = vpop.f32.mrf.mxu3  ;;  %v1062_v4 = vadd.f32 %v994_v2, %v793_v59  ;;  %v794_v6 = vpop.f32.mrf.mxu1  ;;  %v9241_v59 = vld [vmem:[%s11759_s25 + $0x1e7] sm:$0xff] }
  0xf9   : > { %v795_v10 = vadd.f32 %v794_v6, %v657_v5  ;;  %v11177_v2 = vld [vmem:[%s15179_s1 + $0x148] sm:$0xff]  ;;  %v559_v6 = vpack.c.bf16 %v542_v56, %v541_v55  ;;  %v1133_v19 = vpack.c.bf16 %v9242_v1, %v9241_v59 }
  0xfa   : > { %v11959_v12 = vadd.f32 %v1229_v3, %v1062_v4  ;;  %v11193_v3 = vld [vmem:[%s15179_s1 + $0x1c8] sm:$0xff]  ;;  %1674 = vmatpush.bf16.msrb.mxu1 %v11177_v2 }
  0xfb   : > { %2143 = vmatpush.bf16.msrb.mxu3 %v11193_v3 }
  0xfe   : > { %1675 = vmatpush.bf16.msrb.mxu1 %v11176_v21 }
  0xff   : > { %v996_v24 = vpop.f32.mrf.mxu2  ;;  %v660_v28 = vpop.f32.mrf.mxu0  ;;  %2144 = vmatpush.bf16.msrb.mxu3 %v11192_v22 }
 0x100   : > { %v1231_v25 = vpop.f32.mrf.mxu3  ;;  %v1063_v27 = vadd.f32 %v996_v24, %v795_v10  ;;  %v797_v29 = vpop.f32.mrf.mxu1  ;;  %v11184_v10 = vld [vmem:[%s15179_s1 + $0x180] sm:$0xff]  ;;  %v11207_v24 = vld [vmem:[%s15179_s1 + $0x238] sm:$0xff] }
 0x101   : > { %v798_v33 = vadd.f32 %v797_v29, %v660_v28  ;;  %1910 = vmatpush.bf16.msrb.mxu2 %v11184_v10  ;;  %2371 = vmatpush.bf16.msra.mxu0 %v11207_v24 }
 0x102   : > { %v11976_v34 = vadd.f32 %v1231_v25, %v1063_v27  ;;  %699 = vmatmul.bf16.gmra.mxu0 %v558_v26 }
 0x103   : > { %836 = vmatmul.bf16.gmra.mxu1 %v1131_v58  ;;  %v881_v58 = vld [vmem:[%s11759_s25 + $0x1d1] sm:$0xff] }
 0x104   : > { %1038 = vmatmul.bf16.gmra.mxu2 %v897_v30  ;;  %v898_v18 = vpack.c.bf16 %v881_v58, %v880_v57 }
 0x105   : > { %1273 = vmatmul.bf16.gmra.mxu3 %v1132_v31 }
 0x107   : > { %v999_v39 = vpop.f32.mrf.mxu2  ;;  %v662_v45 = vpop.f32.mrf.mxu0 }
 0x108   : > { %v1234_v41 = vpop.f32.mrf.mxu3  ;;  %v1064_v44 = vadd.f32 %v999_v39, %v798_v33  ;;  %v799_v46 = vpop.f32.mrf.mxu1  ;;  %v543_v33 = vld [vmem:[%s11759_s25 + $0x1e8] sm:$0xff] }
 0x109   : > { %v800_v47 = vadd.f32 %v799_v46, %v662_v45  ;;  %v9243_v39 = vld [vmem:[%s11759_s25 + $0x207] sm:$0xff]  ;;  %v560_v45 = vpack.c.bf16 %v544_v36, %v543_v33 }
 0x10a   : > { %v11996_v50 = vadd.f32 %v1234_v41, %v1064_v44  ;;  %v9244_v41 = vld [vmem:[%s11759_s25 + $0x20f] sm:$0xff] }
 0x10b   : > { %v1134_v51 = vpack.c.bf16 %v9244_v41, %v9243_v39 }
 0x10f   : > { %v1001_v4 = vpop.f32.mrf.mxu2  ;;  %v665_v14 = vpop.f32.mrf.mxu0 }
 0x110   : > { %v1236_v5 = vpop.f32.mrf.mxu3  ;;  %v1065_v13 = vadd.f32 %v1001_v4, %v800_v47  ;;  %v802_v17 = vpop.f32.mrf.mxu1 }
 0x111   : > { %v803_v20 = vadd.f32 %v802_v17, %v665_v14 }
 0x112   : > { %v12022_v23 = vadd.f32 %v1236_v5, %v1065_v13  ;;  %704 = vmatmul.bf16.gmra.mxu0 %v559_v6 }
 0x113   : > { %841 = vmatmul.bf16.gmra.mxu1 %v1132_v31 }
 0x114   : > { %1043 = vmatmul.bf16.gmra.mxu2 %v898_v18 }
 0x115   : > { %1278 = vmatmul.bf16.gmra.mxu3 %v1133_v19 }
 0x117   : > { %v1004_v25 = vpop.f32.mrf.mxu2  ;;  %v667_v28 = vpop.f32.mrf.mxu0 }
 0x118   : > { %v1239_v26 = vpop.f32.mrf.mxu3  ;;  %v1066_v27 = vadd.f32 %v1004_v25, %v803_v20  ;;  %v804_v29 = vpop.f32.mrf.mxu1 }
 0x119   : > { %v805_v30 = vadd.f32 %v804_v29, %v667_v28 }
 0x11a   : > { %v12027_v31 = vadd.f32 %v1239_v26, %v1066_v27 }
 0x11f   : > { %v1006_v43 = vpop.f32.mrf.mxu2  ;;  %v670_v47 = vpop.f32.mrf.mxu0 }
 0x120   : > { %v1241_v44 = vpop.f32.mrf.mxu3  ;;  %v1067_v46 = vadd.f32 %v1006_v43, %v805_v30  ;;  %v807_v48 = vpop.f32.mrf.mxu1 }
 0x121   : > { %v808_v55 = vadd.f32 %v807_v48, %v670_v47 }
 0x122   : > { %v12035_v56 = vadd.f32 %v1241_v44, %v1067_v46  ;;  %709 = vmatmul.bf16.gmra.mxu0 %v560_v45 }
 0x123   : > { %846 = vmatmul.bf16.gmra.mxu1 %v1133_v19  ;;  %v11206_v19 = vld [vmem:[%s15179_s1 + $0x230] sm:$0xff] }
 0x124   : > { %1048 = vmatmul.bf16.gmra.mxu2 %v899_v49  ;;  %2372 = vmatpush.bf16.msra.mxu0 %v11206_v19 }
 0x125   : > { %1283 = vmatmul.bf16.gmra.mxu3 %v1134_v51 }
 0x127   : > { %v1009_v57 = vpop.f32.mrf.mxu2  ;;  %v672_v1 = vpop.f32.mrf.mxu0 }
 0x128   : > { %v1244_v58 = vpop.f32.mrf.mxu3  ;;  %v1068_v59 = vadd.f32 %v1009_v57, %v808_v55  ;;  %v809_v2 = vpop.f32.mrf.mxu1 }
 0x129   : > { %v810_v3 = vadd.f32 %v809_v2, %v672_v1  ;;  %v9299_v1 = vld [vmem:[%s11759_s25 + $0x88] sm:$0xff] }
 0x12a   : > { %v12037_v4 = vadd.f32 %v1244_v58, %v1068_v59  ;;  %v9459_v2 = vld [vmem:[%s11759_s25 + $0xa7] sm:$0xff] }
 0x12f   : > { %v1011_v5 = vpop.f32.mrf.mxu2  ;;  %v675_v13 = vpop.f32.mrf.mxu0 }
 0x130   : > { %v1246_v6 = vpop.f32.mrf.mxu3  ;;  %v1069_v10 = vadd.f32 %v1011_v5, %v810_v3  ;;  %v812_v14 = vpop.f32.mrf.mxu1  ;;  %v9379_v3 = vld [vmem:[%s11759_s25 + $0x89] sm:$0xff] }
 0x131   : > { %v813_v17 = vadd.f32 %v812_v14, %v675_v13  ;;  %v9460_v5 = vld [vmem:[%s11759_s25 + $0xaf] sm:$0xff] }
 0x132   : > { %v12039_v18 = vadd.f32 %v1246_v6, %v1069_v10  ;;  %1442 = vmatmul.bf16.vlgmr.msrb.gmra.mxu0 %v11799_v52  ;;  %v9539_v6 = vld [vmem:[%s11759_s25 + $0xa8] sm:$0xff]  ;;  %v9540_v10 = vld [vmem:[%s11759_s25 + $0xb0] sm:$0xff] }
 0x133   : > { %1676 = vmatmul.bf16.vlgmr.msrb.gmra.mxu1 %v11801_v53 }
 0x134   : > { %1911 = vmatmul.bf16.vlgmr.msrb.gmra.mxu2 %v11803_v54 }
 0x135   : > { %2145 = vmatmul.bf16.vlgmr.msrb.gmra.mxu3 %v11814_v61 }
 0x137   : > { %v1014_v20 = vpop.f32.mrf.mxu2  ;;  %v677_v24 = vpop.f32.mrf.mxu0 }
 0x138   : > { %v1249_v21 = vpop.f32.mrf.mxu3  ;;  %v1070_v22 = vadd.f32 %v1014_v20, %v813_v17  ;;  %v814_v25 = vpop.f32.mrf.mxu1 }
 0x139   : > { %v815_v26 = vadd.f32 %v814_v25, %v677_v24  ;;  %v1825_v24 = vpack.c.bf16 %v9460_v5, %v9459_v2  ;;  %v2059_v25 = vpack.c.bf16 %v9540_v10, %v9539_v6  ;;  %v9463_v10 = vld [vmem:[%s11759_s25 + $0xe7] sm:$0xff] }
 0x13a   : > { %v12048_v27 = vadd.f32 %v1249_v21, %v1070_v22 }
 0x13f   : > { %v1016_v52 = vpop.f32.mrf.mxu2  ;;  %v680_v29 = vpop.f32.mrf.mxu0 }
 0x140   : > { %v1251_v28 = vpop.f32.mrf.mxu3  ;;  %v1071_v53 = vadd.f32 %v1016_v52, %v815_v26  ;;  %v817_v54 = vpop.f32.mrf.mxu1 }
 0x141   : > { %v818_v30 = vadd.f32 %v817_v54, %v680_v29 }
 0x142   : > { %v12050_v33 = vadd.f32 %v1251_v28, %v1071_v53  ;;  %1447 = vmatmul.bf16.gmra.mxu0 %v11814_v61 }
 0x143   : > { %1681 = vmatmul.bf16.gmra.mxu1 %v11816_v62 }
 0x144   : > { %1916 = vmatmul.bf16.gmra.mxu2 %v11818_v63  ;;  %v11205_v63 = vld [vmem:[%s15179_s1 + $0x228] sm:$0xff] }
 0x145   : > { %2150 = vmatmul.bf16.gmra.mxu3 %v11833_v7  ;;  %2373 = vmatpush.bf16.msra.mxu0 %v11205_v63 }
 0x147   : > { %v1019_v36 = vpop.f32.mrf.mxu2  ;;  %v682_v39 = vpop.f32.mrf.mxu0 }
 0x148   : > { %v1254_v37 = vpop.f32.mrf.mxu3  ;;  %v1072_v38 = vadd.f32 %v1019_v36, %v818_v30  ;;  %v819_v41 = vpop.f32.mrf.mxu1 }
 0x149   : > { %v820_v43 = vadd.f32 %v819_v41, %v682_v39  ;;  %v9381_v39 = vld [vmem:[%s11759_s25 + $0xa9] sm:$0xff]  ;;  %v9382_v41 = vld [vmem:[%s11759_s25 + $0xb1] sm:$0xff] }
 0x14a   : > { %v12056_v44 = vadd.f32 %v1254_v37, %v1072_v38  ;;  %v9461_v38 = vld [vmem:[%s11759_s25 + $0xc7] sm:$0xff] }
 0x14f   : > { %v1021_v45 = vpop.f32.mrf.mxu2  ;;  %v685_v48 = vpop.f32.mrf.mxu0 }
 0x150   : > { %v1256_v46 = vpop.f32.mrf.mxu3  ;;  %v1073_v47 = vadd.f32 %v1021_v45, %v820_v43  ;;  %v822_v49 = vpop.f32.mrf.mxu1  ;;  %v9462_v43 = vld [vmem:[%s11759_s25 + $0xcf] sm:$0xff] }
 0x151   : > { %v823_v61 = vadd.f32 %v822_v49, %v685_v48  ;;  %v9541_v45 = vld [vmem:[%s11759_s25 + $0xc8] sm:$0xff]  ;;  %v1591_v49 = vpack.c.bf16 %v9382_v41, %v9381_v39 }
 0x152   : > { %v12058_v62 = vadd.f32 %v1256_v46, %v1073_v47  ;;  %1452 = vmatmul.bf16.gmra.mxu0 %v11833_v7  ;;  %v9542_v46 = vld [vmem:[%s11759_s25 + $0xd0] sm:$0xff] }
 0x153   : > { %1686 = vmatmul.bf16.gmra.mxu1 %v11835_v8 }
 0x154   : > { %1921 = vmatmul.bf16.gmra.mxu2 %v11837_v9  ;;  %v9300_v9 = vld [vmem:[%s11759_s25 + $0x90] sm:$0xff] }
 0x155   : > { %2155 = vmatmul.bf16.gmra.mxu3 %v11849_v16  ;;  %v9380_v16 = vld [vmem:[%s11759_s25 + $0x91] sm:$0xff]  ;;  %v1356_v17 = vpack.c.bf16 %v9300_v9, %v9299_v1 }
 0x156   : > { %v1590_v19 = vpack.c.bf16 %v9380_v16, %v9379_v3 }
 0x157   : > { %v1024_v51 = vpop.f32.mrf.mxu2  ;;  %v687_v7 = vpop.f32.mrf.mxu0 }
 0x158   : > { %v1259_v55 = vpop.f32.mrf.mxu3  ;;  %v1074_v57 = vadd.f32 %v1024_v51, %v823_v61  ;;  %v824_v58 = vpop.f32.mrf.mxu1 }
 0x159   : > { %v825_v59 = vadd.f32 %v824_v58, %v687_v7 }
 0x15a   : > { %v12067_v8 = vadd.f32 %v1259_v55, %v1074_v57  ;;  %v1826_v55 = vpack.c.bf16 %v9462_v43, %v9461_v38  ;;  %v2060_v57 = vpack.c.bf16 %v9542_v46, %v9541_v45 }
 0x15f   : > { %v1026_v13 = vpop.f32.mrf.mxu2  ;;  %v690_v21 = vpop.f32.mrf.mxu0 }
 0x160   : > { %v1261_v14 = vpop.f32.mrf.mxu3  ;;  %v1075_v20 = vadd.f32 %v1026_v13, %v825_v59  ;;  %v827_v22 = vpop.f32.mrf.mxu1  ;;  %v11204_v59 = vld [vmem:[%s15179_s1 + $0x220] sm:$0xff]  ;;  %v9383_v13 = vld [vmem:[%s11759_s25 + $0xc9] sm:$0xff] }
 0x161   : > { %v828_v26 = vadd.f32 %v827_v22, %v690_v21  ;;  %2374 = vmatpush.bf16.msra.mxu0 %v11204_v59 }
 0x162   : > { %v12077_v52 = vadd.f32 %v1261_v14, %v1075_v20  ;;  %1457 = vmatmul.bf16.gmra.mxu0 %v1356_v17  ;;  %v9384_v14 = vld [vmem:[%s11759_s25 + $0xd1] sm:$0xff] }
 0x163   : > { %1691 = vmatmul.bf16.gmra.mxu1 %v1590_v19  ;;  %v9464_v17 = vld [vmem:[%s11759_s25 + $0xef] sm:$0xff] }
 0x164   : > { %1926 = vmatmul.bf16.gmra.mxu2 %v1825_v24  ;;  %v9543_v19 = vld [vmem:[%s11759_s25 + $0xe8] sm:$0xff]  ;;  %v9544_v20 = vld [vmem:[%s11759_s25 + $0xf0] sm:$0xff]  ;;  %v12100_v24 = vpack.c.bf16 %v9384_v14, %v9383_v13 }
 0x165   : > { %2160 = vmatmul.bf16.gmra.mxu3 %v2059_v25 }
 0x167   : > { %v1029_v28 = vpop.f32.mrf.mxu2  ;;  %v692_v54 = vpop.f32.mrf.mxu0 }
 0x168   : > { %v1264_v53 = vpop.f32.mrf.mxu3  ;;  %v1076_v29 = vadd.f32 %v1029_v28, %v828_v26  ;;  %v829_v30 = vpop.f32.mrf.mxu1 }
 0x169   : > { %v830_v36 = vadd.f32 %v829_v30, %v692_v54 }
 0x16a   : > { %v12079_v37 = vadd.f32 %v1264_v53, %v1076_v29  ;;  %v1827_v53 = vpack.c.bf16 %v9464_v17, %v9463_v10  ;;  %v2061_v29 = vpack.c.bf16 %v9544_v20, %v9543_v19  ;;  %v11203_v10 = vld [vmem:[%s15179_s1 + $0x218] sm:$0xff] }
 0x16b   : > { %2375 = vmatpush.bf16.msra.mxu0 %v11203_v10 }
 0x16f   : > { %v1031_v47 = vpop.f32.mrf.mxu2  ;;  %v695_v63 = vpop.f32.mrf.mxu0 }
 0x170   : > { %v1266_v48 = vpop.f32.mrf.mxu3  ;;  %v1077_v61 = vadd.f32 %v1031_v47, %v830_v36  ;;  %v832_v51 = vpop.f32.mrf.mxu1  ;;  %v9465_v47 = vld [vmem:[%s11759_s25 + $0x107] sm:$0xff] }
 0x171   : > { %v833_v7 = vadd.f32 %v832_v51, %v695_v63  ;;  %v9545_v63 = vld [vmem:[%s11759_s25 + $0x108] sm:$0xff]  ;;  %v9546_v51 = vld [vmem:[%s11759_s25 + $0x110] sm:$0xff] }
 0x172   : > { %v12087_v58 = vadd.f32 %v1266_v48, %v1077_v61  ;;  %1462 = vmatmul.bf16.gmra.mxu0 %v2059_v25  ;;  %v9385_v48 = vld [vmem:[%s11759_s25 + $0xe9] sm:$0xff] }
 0x173   : > { %1696 = vmatmul.bf16.gmra.mxu1 %v1591_v49  ;;  %v9386_v49 = vld [vmem:[%s11759_s25 + $0xf1] sm:$0xff] }
 0x174   : > { %1931 = vmatmul.bf16.gmra.mxu2 %v1826_v55  ;;  %v9466_v61 = vld [vmem:[%s11759_s25 + $0x10f] sm:$0xff] }
 0x175   : > { %2165 = vmatmul.bf16.gmra.mxu3 %v2060_v57 }
 0x177   : > { %v1034_v1 = vpop.f32.mrf.mxu2  ;;  %v697_v3 = vpop.f32.mrf.mxu0 }
 0x178   : > { %v1269_v9 = vpop.f32.mrf.mxu3  ;;  %v1078_v2 = vadd.f32 %v1034_v1, %v833_v7  ;;  %v834_v16 = vpop.f32.mrf.mxu1  ;;  %v12113_v7 = vpack.c.bf16 %v9386_v49, %v9385_v48 }
 0x179   : > { %v835_v5 = vadd.f32 %v834_v16, %v697_v3  ;;  %v2062_v3 = vpack.c.bf16 %v9546_v51, %v9545_v63 }
 0x17a   : > { %v12092_v6 = vadd.f32 %v1269_v9, %v1078_v2  ;;  %v1828_v2 = vpack.c.bf16 %v9466_v61, %v9465_v47 }
 0x17f   : > { %v1036_v21 = vpop.f32.mrf.mxu2  ;;  %v700_v26 = vpop.f32.mrf.mxu0 }
 0x180   : > { %v1271_v22 = vpop.f32.mrf.mxu3  ;;  %v1079_v25 = vadd.f32 %v1036_v21, %v835_v5  ;;  %v837_v28 = vpop.f32.mrf.mxu1 }
 0x181   : > { %v838_v54 = vadd.f32 %v837_v28, %v700_v26  ;;  %v11231_v26 = vld [vmem:[%s15181_s3 + $0xb8] sm:$0xff] }
 0x182   : > { %v12102_v30 = vadd.f32 %v1271_v22, %v1079_v25  ;;  %1467 = vmatmul.bf16.gmra.mxu0 %v2060_v57  ;;  %v11215_v25 = vld [vmem:[%s15181_s3 + $0x38] sm:$0xff]  ;;  %3109 = vmatpush.bf16.msra.mxu3 %v11231_v26 }
 0x183   : > { %1701 = vmatmul.bf16.gmra.mxu1 %v12100_v24  ;;  %v11223_v28 = vld [vmem:[%s15181_s3 + $0x78] sm:$0xff]  ;;  %2907 = vmatpush.bf16.msra.mxu2 %v11215_v25 }
 0x184   : > { %1936 = vmatmul.bf16.gmra.mxu2 %v1827_v53  ;;  %v9467_v53 = vld [vmem:[%s11759_s25 + $0x127] sm:$0xff]  ;;  %2770 = vmatpush.bf16.msra.mxu1 %v11223_v28 }
 0x185   : > { %2170 = vmatmul.bf16.gmra.mxu3 %v2061_v29 }
 0x187   : > { %v1039_v36 = vpop.f32.mrf.mxu2  ;;  %v702_v41 = vpop.f32.mrf.mxu0 }
 0x188   : > { %v1274_v38 = vpop.f32.mrf.mxu3  ;;  %v1080_v39 = vadd.f32 %v1039_v36, %v838_v54  ;;  %v839_v43 = vpop.f32.mrf.mxu1  ;;  %v9388_v54 = vld [vmem:[%s11759_s25 + $0x111] sm:$0xff] }
 0x189   : > { %v840_v45 = vadd.f32 %v839_v43, %v702_v41  ;;  %v9468_v36 = vld [vmem:[%s11759_s25 + $0x12f] sm:$0xff] }
 0x18a   : > { %v12105_v46 = vadd.f32 %v1274_v38, %v1080_v39  ;;  %v9547_v38 = vld [vmem:[%s11759_s25 + $0x128] sm:$0xff]  ;;  %v9548_v39 = vld [vmem:[%s11759_s25 + $0x130] sm:$0xff]  ;;  %v1829_v61 = vpack.c.bf16 %v9468_v36, %v9467_v53 }
 0x18b   : > { %v2063_v63 = vpack.c.bf16 %v9548_v39, %v9547_v38 }
 0x18f   : > { %v1041_v55 = vpop.f32.mrf.mxu2  ;;  %v705_v1 = vpop.f32.mrf.mxu0 }
 0x190   : > { %v1276_v57 = vpop.f32.mrf.mxu3  ;;  %v1081_v59 = vadd.f32 %v1041_v55, %v840_v45  ;;  %v842_v9 = vpop.f32.mrf.mxu1 }
 0x191   : > { %v843_v16 = vadd.f32 %v842_v9, %v705_v1 }
 0x192   : > { %v12115_v5 = vadd.f32 %v1276_v57, %v1081_v59  ;;  %1472 = vmatmul.bf16.gmra.mxu0 %v2061_v29  ;;  %v9387_v29 = vld [vmem:[%s11759_s25 + $0x109] sm:$0xff] }
 0x193   : > { %1706 = vmatmul.bf16.gmra.mxu1 %v12113_v7  ;;  %v12138_v45 = vpack.c.bf16 %v9388_v54, %v9387_v29 }
 0x194   : > { %1941 = vmatmul.bf16.gmra.mxu2 %v1828_v2 }
 0x195   : > { %2175 = vmatmul.bf16.gmra.mxu3 %v2062_v3 }
 0x197   : > { %v1044_v13 = vpop.f32.mrf.mxu2  ;;  %v707_v19 = vpop.f32.mrf.mxu0 }
 0x198   : > { %v1279_v14 = vpop.f32.mrf.mxu3  ;;  %v1082_v17 = vadd.f32 %v1044_v13, %v843_v16  ;;  %v844_v20 = vpop.f32.mrf.mxu1  ;;  %v9469_v13 = vld [vmem:[%s11759_s25 + $0x147] sm:$0xff] }
 0x199   : > { %v845_v21 = vadd.f32 %v844_v20, %v707_v19  ;;  %v9470_v19 = vld [vmem:[%s11759_s25 + $0x14f] sm:$0xff] }
 0x19a   : > { %v12121_v22 = vadd.f32 %v1279_v14, %v1082_v17  ;;  %v9389_v14 = vld [vmem:[%s11759_s25 + $0x129] sm:$0xff]  ;;  %v9390_v17 = vld [vmem:[%s11759_s25 + $0x131] sm:$0xff]  ;;  %v1830_v54 = vpack.c.bf16 %v9470_v19, %v9469_v13 }
 0x19b   : > { %v9549_v20 = vld [vmem:[%s11759_s25 + $0x148] sm:$0xff]  ;;  %v12151_v26 = vpack.c.bf16 %v9390_v17, %v9389_v14  ;;  %v9392_v13 = vld [vmem:[%s11759_s25 + $0x151] sm:$0xff] }
 0x19c   : > { %v9551_v14 = vld [vmem:[%s11759_s25 + $0x168] sm:$0xff]  ;;  %v9552_v17 = vld [vmem:[%s11759_s25 + $0x170] sm:$0xff] }
 0x19f   : > { %v1046_v41 = vpop.f32.mrf.mxu2  ;;  %v710_v48 = vpop.f32.mrf.mxu0 }
 0x1a0   : > { %v1281_v43 = vpop.f32.mrf.mxu3  ;;  %v1083_v47 = vadd.f32 %v1046_v41, %v845_v21  ;;  %v847_v49 = vpop.f32.mrf.mxu1  ;;  %v9550_v21 = vld [vmem:[%s11759_s25 + $0x150] sm:$0xff] }
 0x1a1   : > { %v848_v51 = vadd.f32 %v847_v49, %v710_v48  ;;  %v2064_v36 = vpack.c.bf16 %v9550_v21, %v9549_v20 }
 0x1a2   : > { %v12140_v55 = vadd.f32 %v1281_v43, %v1083_v47  ;;  %1477 = vmatmul.bf16.gmra.mxu0 %v2062_v3  ;;  %v11202_v43 = vld [vmem:[%s15179_s1 + $0x210] sm:$0xff] }
 0x1a3   : > { %1711 = vmatmul.bf16.gmra.mxu1 %v12138_v45  ;;  %2376 = vmatpush.bf16.msra.mxu0 %v11202_v43 }
 0x1a4   : > { %1946 = vmatmul.bf16.gmra.mxu2 %v1829_v61 }
 0x1a5   : > { %2180 = vmatmul.bf16.gmra.mxu3 %v2063_v63 }
 0x1a7   : > { %v1049_v57 = vpop.f32.mrf.mxu2  ;;  %v712_v9 = vpop.f32.mrf.mxu0 }
 0x1a8   : > { %v1284_v59 = vpop.f32.mrf.mxu3  ;;  %v1084_v1 = vadd.f32 %v1049_v57, %v848_v51  ;;  %v849_v2 = vpop.f32.mrf.mxu1  ;;  %v11214_v57 = vld [vmem:[%s15181_s3 + $0x30] sm:$0xff] }
 0x1a9   : > { %v850_v16 = vadd.f32 %v849_v2, %v712_v9  ;;  %v11222_v9 = vld [vmem:[%s15181_s3 + $0x70] sm:$0xff]  ;;  %v9471_v2 = vld [vmem:[%s11759_s25 + $0x167] sm:$0xff]  ;;  %2908 = vmatpush.bf16.msra.mxu2 %v11214_v57 }
 0x1aa   : > { %v12143_v10 = vadd.f32 %v1284_v59, %v1084_v1  ;;  %v11230_v1 = vld [vmem:[%s15181_s3 + $0xb0] sm:$0xff]  ;;  %2771 = vmatpush.bf16.msra.mxu1 %v11222_v9  ;;  %v9473_v57 = vld [vmem:[%s11759_s25 + $0x187] sm:$0xff] }
 0x1ab   : > { %3110 = vmatpush.bf16.msra.mxu3 %v11230_v1  ;;  %v9394_v1 = vld [vmem:[%s11759_s25 + $0x171] sm:$0xff] }
 0x1ac   : > { %v9474_v9 = vld [vmem:[%s11759_s25 + $0x18f] sm:$0xff] }
 0x1af   : > { %v1051_v3 = vpop.f32.mrf.mxu2  ;;  %v1443_v53 = vpop.f32.mrf.mxu0 }
 0x1b0   : > { %v1286_v25 = vpop.f32.mrf.mxu3  ;;  %v1085_v28 = vadd.f32 %v1051_v3, %v850_v16  ;;  %v1677_v29 = vpop.f32.mrf.mxu1  ;;  %v1523_v38 = vadd.f32 %v1443_v53, %v11895_v15  ;;  %v9391_v16 = vld [vmem:[%s11759_s25 + $0x149] sm:$0xff] }
 0x1b1   : > { %v1596_v21 = vpack.c.bf16 %v9392_v13, %v9391_v16 }
 0x1b2   : > { %v12154_v39 = vadd.f32 %v1286_v25, %v1085_v28  ;;  %v1757_v41 = vadd.f32 %v1677_v29, %v1523_v38  ;;  %1482 = vmatmul.bf16.gmra.mxu0 %v2063_v63  ;;  %v2065_v29 = vpack.c.bf16 %v9552_v17, %v9551_v14 }
 0x1b3   : > { %1716 = vmatmul.bf16.gmra.mxu1 %v12151_v26 }
 0x1b4   : > { %1951 = vmatmul.bf16.gmra.mxu2 %v1830_v54 }
 0x1b5   : > { %2185 = vmatmul.bf16.gmra.mxu3 %v2064_v36 }
 0x1b7   : > { %v1912_v47 = vpop.f32.mrf.mxu2  ;;  %v1445_v49 = vpop.f32.mrf.mxu0 }
 0x1b8   : > { %v2146_v15 = vpop.f32.mrf.mxu3  ;;  %v1992_v48 = vadd.f32 %v1912_v47, %v1757_v41  ;;  %v1679_v61 = vpop.f32.mrf.mxu1  ;;  %v1524_v63 = vadd.f32 %v1445_v49, %v11912_v35  ;;  %v9472_v35 = vld [vmem:[%s11759_s25 + $0x16f] sm:$0xff] }
 0x1b9   : > { %v1831_v53 = vpack.c.bf16 %v9472_v35, %v9471_v2  ;;  %v9554_v2 = vld [vmem:[%s11759_s25 + $0x190] sm:$0xff] }
 0x1ba   : > { %v12161_v51 = vadd.f32 %v2146_v15, %v1992_v48  ;;  %v1758_v59 = vadd.f32 %v1679_v61, %v1524_v63 }
 0x1bf   : > { %v1914_v19 = vpop.f32.mrf.mxu2  ;;  %v1448_v25 = vpop.f32.mrf.mxu0 }
 0x1c0   : > { %v2148_v20 = vpop.f32.mrf.mxu3  ;;  %v1993_v3 = vadd.f32 %v1914_v19, %v1758_v59  ;;  %v1682_v28 = vpop.f32.mrf.mxu1  ;;  %v1525_v54 = vadd.f32 %v1448_v25, %v11914_v42  ;;  %v9393_v59 = vld [vmem:[%s11759_s25 + $0x169] sm:$0xff] }
 0x1c1   : > { %v1597_v35 = vpack.c.bf16 %v9394_v1, %v9393_v59  ;;  %v9396_v59 = vld [vmem:[%s11759_s25 + $0x191] sm:$0xff]  ;;  %v9555_v1 = vld [vmem:[%s11759_s25 + $0x1a8] sm:$0xff] }
 0x1c2   : > { %v12179_v38 = vadd.f32 %v2148_v20, %v1993_v3  ;;  %v1759_v41 = vadd.f32 %v1682_v28, %v1525_v54  ;;  %1487 = vmatmul.bf16.gmra.mxu0 %v2064_v36  ;;  %v9553_v36 = vld [vmem:[%s11759_s25 + $0x188] sm:$0xff]  ;;  %v1832_v20 = vpack.c.bf16 %v9474_v9, %v9473_v57  ;;  %v9556_v9 = vld [vmem:[%s11759_s25 + $0x1b0] sm:$0xff] }
 0x1c3   : > { %1721 = vmatmul.bf16.gmra.mxu1 %v1596_v21  ;;  %v2066_v21 = vpack.c.bf16 %v9554_v2, %v9553_v36  ;;  %v11201_v28 = vld [vmem:[%s15179_s1 + $0x208] sm:$0xff] }
 0x1c4   : > { %1956 = vmatmul.bf16.gmra.mxu2 %v1831_v53  ;;  %2377 = vmatpush.bf16.msra.mxu0 %v11201_v28  ;;  %v9395_v57 = vld [vmem:[%s11759_s25 + $0x189] sm:$0xff] }
 0x1c5   : > { %2190 = vmatmul.bf16.gmra.mxu3 %v2065_v29 }
 0x1c7   : > { %v1917_v43 = vpop.f32.mrf.mxu2  ;;  %v1450_v48 = vpop.f32.mrf.mxu0 }
 0x1c8   : > { %v2151_v47 = vpop.f32.mrf.mxu3  ;;  %v1994_v15 = vadd.f32 %v1917_v43, %v1759_v41  ;;  %v1684_v49 = vpop.f32.mrf.mxu1  ;;  %v1526_v61 = vadd.f32 %v1450_v48, %v11922_v0 }
 0x1ca   : > { %v12182_v42 = vadd.f32 %v2151_v47, %v1994_v15  ;;  %v1760_v63 = vadd.f32 %v1684_v49, %v1526_v61  ;;  %v11213_v15 = vld [vmem:[%s15181_s3 + $0x28] sm:$0xff] }
 0x1cb   : > { %v11229_v49 = vld [vmem:[%s15181_s3 + $0xa8] sm:$0xff]  ;;  %2909 = vmatpush.bf16.msra.mxu2 %v11213_v15 }
 0x1cc   : > { %v11221_v61 = vld [vmem:[%s15181_s3 + $0x68] sm:$0xff]  ;;  %3111 = vmatpush.bf16.msra.mxu3 %v11229_v49  ;;  %v9398_v49 = vld [vmem:[%s11759_s25 + $0x1b1] sm:$0xff] }
 0x1cd   : > { %2772 = vmatpush.bf16.msra.mxu1 %v11221_v61  ;;  %v9477_v15 = vld [vmem:[%s11759_s25 + $0x1c7] sm:$0xff]  ;;  %v9478_v61 = vld [vmem:[%s11759_s25 + $0x1cf] sm:$0xff] }
 0x1cf   : > { %v1919_v16 = vpop.f32.mrf.mxu2  ;;  %v1453_v17 = vpop.f32.mrf.mxu0 }
 0x1d0   : > { %v2153_v13 = vpop.f32.mrf.mxu3  ;;  %v1995_v14 = vadd.f32 %v1919_v16, %v1760_v63  ;;  %v1687_v19 = vpop.f32.mrf.mxu1  ;;  %v1527_v3 = vadd.f32 %v1453_v17, %v11927_v11  ;;  %v9475_v63 = vld [vmem:[%s11759_s25 + $0x1a7] sm:$0xff]  ;;  %v1598_v16 = vpack.c.bf16 %v9396_v59, %v9395_v57 }
 0x1d2   : > { %v12191_v0 = vadd.f32 %v2153_v13, %v1995_v14  ;;  %v1761_v25 = vadd.f32 %v1687_v19, %v1527_v3  ;;  %1492 = vmatmul.bf16.gmra.mxu0 %v2065_v29  ;;  %v2067_v19 = vpack.c.bf16 %v9556_v9, %v9555_v1 }
 0x1d3   : > { %1726 = vmatmul.bf16.gmra.mxu1 %v1597_v35 }
 0x1d4   : > { %1961 = vmatmul.bf16.gmra.mxu2 %v1832_v20 }
 0x1d5   : > { %2195 = vmatmul.bf16.gmra.mxu3 %v2066_v21 }
 0x1d7   : > { %v1922_v53 = vpop.f32.mrf.mxu2  ;;  %v1455_v41 = vpop.f32.mrf.mxu0 }
 0x1d8   : > { %v2156_v54 = vpop.f32.mrf.mxu3  ;;  %v1996_v11 = vadd.f32 %v1922_v53, %v1761_v25  ;;  %v1689_v43 = vpop.f32.mrf.mxu1  ;;  %v1528_v29 = vadd.f32 %v1455_v41, %v11944_v32  ;;  %v9476_v32 = vld [vmem:[%s11759_s25 + $0x1af] sm:$0xff] }
 0x1d9   : > { %v1833_v17 = vpack.c.bf16 %v9476_v32, %v9475_v63  ;;  %v9558_v63 = vld [vmem:[%s11759_s25 + $0x1d0] sm:$0xff] }
 0x1da   : > { %v12197_v47 = vadd.f32 %v2156_v54, %v1996_v11  ;;  %v1762_v48 = vadd.f32 %v1689_v43, %v1528_v29 }
 0x1df   : > { %v1924_v36 = vpop.f32.mrf.mxu2  ;;  %v1458_v35 = vpop.f32.mrf.mxu0 }
 0x1e0   : > { %v2158_v2 = vpop.f32.mrf.mxu3  ;;  %v1997_v13 = vadd.f32 %v1924_v36, %v1762_v48  ;;  %v1692_v14 = vpop.f32.mrf.mxu1  ;;  %v1529_v20 = vadd.f32 %v1458_v35, %v11946_v40  ;;  %v9397_v48 = vld [vmem:[%s11759_s25 + $0x1a9] sm:$0xff] }
 0x1e1   : > { %v1599_v32 = vpack.c.bf16 %v9398_v49, %v9397_v48  ;;  %v9559_v48 = vld [vmem:[%s11759_s25 + $0x1e8] sm:$0xff]  ;;  %v9560_v49 = vld [vmem:[%s11759_s25 + $0x1f0] sm:$0xff] }
 0x1e2   : > { %v12215_v3 = vadd.f32 %v2158_v2, %v1997_v13  ;;  %v1763_v25 = vadd.f32 %v1692_v14, %v1529_v20  ;;  %1497 = vmatmul.bf16.gmra.mxu0 %v2066_v21  ;;  %v9557_v21 = vld [vmem:[%s11759_s25 + $0x1c8] sm:$0xff]  ;;  %v1834_v2 = vpack.c.bf16 %v9478_v61, %v9477_v15  ;;  %v11200_v14 = vld [vmem:[%s15179_s1 + $0x200] sm:$0xff]  ;;  %v9400_v15 = vld [vmem:[%s11759_s25 + $0x1d1] sm:$0xff] }
 0x1e3   : > { %1731 = vmatmul.bf16.gmra.mxu1 %v1598_v16  ;;  %v2068_v16 = vpack.c.bf16 %v9558_v63, %v9557_v21  ;;  %2378 = vmatpush.bf16.msra.mxu0 %v11200_v14 }
 0x1e4   : > { %1966 = vmatmul.bf16.gmra.mxu2 %v1833_v17 }
 0x1e5   : > { %2200 = vmatmul.bf16.gmra.mxu3 %v2067_v19 }
 0x1e7   : > { %v1927_v28 = vpop.f32.mrf.mxu2  ;;  %v1460_v11 = vpop.f32.mrf.mxu0 }
 0x1e8   : > { %v2161_v53 = vpop.f32.mrf.mxu3  ;;  %v1998_v54 = vadd.f32 %v1927_v28, %v1763_v25  ;;  %v1694_v41 = vpop.f32.mrf.mxu1  ;;  %v1530_v43 = vadd.f32 %v1460_v11, %v11954_v60  ;;  %v11228_v11 = vld [vmem:[%s15181_s3 + $0xa0] sm:$0xff] }
 0x1e9   : > { %3112 = vmatpush.bf16.msra.mxu3 %v11228_v11  ;;  %v9482_v11 = vld [vmem:[%s11759_s25 + $0x20f] sm:$0xff] }
 0x1ea   : > { %v12218_v40 = vadd.f32 %v2161_v53, %v1998_v54  ;;  %v1764_v29 = vadd.f32 %v1694_v41, %v1530_v43  ;;  %v11212_v54 = vld [vmem:[%s15181_s3 + $0x20] sm:$0xff] }
 0x1eb   : > { %v11220_v41 = vld [vmem:[%s15181_s3 + $0x60] sm:$0xff]  ;;  %2910 = vmatpush.bf16.msra.mxu2 %v11212_v54  ;;  %v9402_v54 = vld [vmem:[%s11759_s25 + $0x1f1] sm:$0xff] }
 0x1ec   : > { %v9479_v43 = vld [vmem:[%s11759_s25 + $0x1e7] sm:$0xff]  ;;  %2773 = vmatpush.bf16.msra.mxu1 %v11220_v41  ;;  %v9562_v41 = vld [vmem:[%s11759_s25 + $0x210] sm:$0xff] }
 0x1ef   : > { %v1929_v57 = vpop.f32.mrf.mxu2  ;;  %v1463_v9 = vpop.f32.mrf.mxu0 }
 0x1f0   : > { %v2163_v59 = vpop.f32.mrf.mxu3  ;;  %v1999_v1 = vadd.f32 %v1929_v57, %v1764_v29  ;;  %v1697_v36 = vpop.f32.mrf.mxu1  ;;  %v1531_v13 = vadd.f32 %v1463_v9, %v11959_v12  ;;  %v9399_v29 = vld [vmem:[%s11759_s25 + $0x1c9] sm:$0xff] }
 0x1f1   : > { %v1600_v63 = vpack.c.bf16 %v9400_v15, %v9399_v29 }
 0x1f2   : > { %v12227_v60 = vadd.f32 %v2163_v59, %v1999_v1  ;;  %v1765_v35 = vadd.f32 %v1697_v36, %v1531_v13  ;;  %1502 = vmatmul.bf16.gmra.mxu0 %v2067_v19  ;;  %v2069_v1 = vpack.c.bf16 %v9560_v49, %v9559_v48 }
 0x1f3   : > { %1736 = vmatmul.bf16.gmra.mxu1 %v1599_v32 }
 0x1f4   : > { %1971 = vmatmul.bf16.gmra.mxu2 %v1834_v2 }
 0x1f5   : > { %2205 = vmatmul.bf16.gmra.mxu3 %v2068_v16 }
 0x1f7   : > { %v1932_v17 = vpop.f32.mrf.mxu2  ;;  %v1465_v25 = vpop.f32.mrf.mxu0 }
 0x1f8   : > { %v2166_v12 = vpop.f32.mrf.mxu3  ;;  %v2000_v20 = vadd.f32 %v1932_v17, %v1765_v35  ;;  %v12232_v28 = vpop.f32.mrf.mxu1  ;;  %v12235_v19 = vadd.f32 %v1465_v25, %v11976_v34  ;;  %v9480_v34 = vld [vmem:[%s11759_s25 + $0x1ef] sm:$0xff] }
 0x1f9   : > { %v1835_v32 = vpack.c.bf16 %v9480_v34, %v9479_v43  ;;  %v9401_v25 = vld [vmem:[%s11759_s25 + $0x1e9] sm:$0xff] }
 0x1fa   : > { %v12237_v53 = vadd.f32 %v2166_v12, %v2000_v20  ;;  %v1601_v15 = vpack.c.bf16 %v9402_v54, %v9401_v25  ;;  %v9403_v25 = vld [vmem:[%s11759_s25 + $0x209] sm:$0xff]  ;;  %v9404_v54 = vld [vmem:[%s11759_s25 + $0x211] sm:$0xff] }
 0x1ff   : > { %v12254_v61 = vpop.f32.mrf.mxu2  ;;  %v1468_v57 = vpop.f32.mrf.mxu0 }
 0x200   : > { %v12256_v21 = vpop.f32.mrf.mxu3  ;;  %v1702_v59 = vpop.f32.mrf.mxu1  ;;  %v1533_v9 = vadd.f32 %v1468_v57, %v11996_v50  ;;  %v9481_v50 = vld [vmem:[%s11759_s25 + $0x207] sm:$0xff] }
 0x201   : > { %v1836_v49 = vpack.c.bf16 %v9482_v11, %v9481_v50  ;;  %v9483_v50 = vld [vmem:[%s11759_s25 + $0x227] sm:$0xff] }
 0x202   : > { %v1767_v36 = vadd.f32 %v1702_v59, %v1533_v9  ;;  %1507 = vmatmul.bf16.gmra.mxu0 %v2068_v16  ;;  %v9561_v16 = vld [vmem:[%s11759_s25 + $0x208] sm:$0xff] }
 0x203   : > { %1741 = vmatmul.bf16.gmra.mxu1 %v1600_v63  ;;  %v2070_v63 = vpack.c.bf16 %v9562_v41, %v9561_v16  ;;  %v9563_v11 = vld [vmem:[%s11759_s25 + $0x228] sm:$0xff]  ;;  %v9564_v16 = vld [vmem:[%s11759_s25 + $0x230] sm:$0xff] }
 0x204   : > { %1976 = vmatmul.bf16.gmra.mxu2 %v1835_v32 }
 0x205   : > { %2210 = vmatmul.bf16.gmra.mxu3 %v2069_v1 }
 0x207   : > { %v1937_v2 = vpop.f32.mrf.mxu2  ;;  %v1470_v14 = vpop.f32.mrf.mxu0 }
 0x208   : > { %v2171_v13 = vpop.f32.mrf.mxu3  ;;  %v2002_v35 = vadd.f32 %v1937_v2, %v1767_v36  ;;  %v12259_v17 = vpop.f32.mrf.mxu1  ;;  %v12262_v12 = vadd.f32 %v1470_v14, %v12022_v23  ;;  %v11219_v14 = vld [vmem:[%s15181_s3 + $0x58] sm:$0xff] }
 0x209   : > { %2774 = vmatpush.bf16.msra.mxu1 %v11219_v14 }
 0x20a   : > { %v12264_v20 = vadd.f32 %v2171_v13, %v2002_v35  ;;  %v11227_v35 = vld [vmem:[%s15181_s3 + $0x98] sm:$0xff] }
 0x20b   : > { %3113 = vmatpush.bf16.msra.mxu3 %v11227_v35 }
 0x20f   : > { %v12272_v43 = vpop.f32.mrf.mxu2  ;;  %v1473_v34 = vpop.f32.mrf.mxu0 }
 0x210   : > { %v12274_v29 = vpop.f32.mrf.mxu3  ;;  %v1707_v48 = vpop.f32.mrf.mxu1  ;;  %v1535_v23 = vadd.f32 %v1473_v34, %v12027_v31  ;;  %v12303_v34 = vpack.c.bf16 %v9404_v54, %v9403_v25  ;;  %v9613_v54 = vld [vmem:[%s11759_s25 + $0x49] sm:$0xff] }
 0x212   : > { %v1769_v57 = vadd.f32 %v1707_v48, %v1535_v23  ;;  %1512 = vmatmul.bf16.gmra.mxu0 %v2069_v1  ;;  %v11211_v1 = vld [vmem:[%s15181_s3 + $0x18] sm:$0xff] }
 0x213   : > { %1746 = vmatmul.bf16.gmra.mxu1 %v1601_v15  ;;  %2911 = vmatpush.bf16.msra.mxu2 %v11211_v1 }
 0x214   : > { %1981 = vmatmul.bf16.gmra.mxu2 %v1836_v49 }
 0x215   : > { %2215 = vmatmul.bf16.gmra.mxu3 %v2070_v63 }
 0x217   : > { %v1942_v59 = vpop.f32.mrf.mxu2  ;;  %v1475_v36 = vpop.f32.mrf.mxu0 }
 0x218   : > { %v2176_v32 = vpop.f32.mrf.mxu3  ;;  %v2004_v9 = vadd.f32 %v1942_v59, %v1769_v57  ;;  %v12277_v2 = vpop.f32.mrf.mxu1  ;;  %v12280_v13 = vadd.f32 %v1475_v36, %v12035_v56  ;;  %v9484_v56 = vld [vmem:[%s11759_s25 + $0x22f] sm:$0xff]  ;;  %v2071_v57 = vpack.c.bf16 %v9564_v16, %v9563_v11 }
 0x219   : > { %v1837_v23 = vpack.c.bf16 %v9484_v56, %v9483_v50  ;;  %v9614_v56 = vld [vmem:[%s11759_s25 + $0x51] sm:$0xff] }
 0x21a   : > { %v12282_v31 = vadd.f32 %v2176_v32, %v2004_v9  ;;  %v2290_v11 = vpack.c.bf16 %v9614_v56, %v9613_v54  ;;  %v11218_v54 = vld [vmem:[%s15181_s3 + $0x50] sm:$0xff] }
 0x21b   : > { %v9615_v56 = vld [vmem:[%s11759_s25 + $0x69] sm:$0xff]  ;;  %2775 = vmatpush.bf16.msra.mxu1 %v11218_v54 }
 0x21f   : > { %v12299_v41 = vpop.f32.mrf.mxu2  ;;  %v1478_v48 = vpop.f32.mrf.mxu0 }
 0x220   : > { %v12301_v15 = vpop.f32.mrf.mxu3  ;;  %v1712_v49 = vpop.f32.mrf.mxu1  ;;  %v1537_v59 = vadd.f32 %v1478_v48, %v12037_v4 }
 0x222   : > { %v1771_v32 = vadd.f32 %v1712_v49, %v1537_v59  ;;  %1517 = vmatmul.bf16.gmra.mxu0 %v2070_v63 }
 0x223   : > { %1751 = vmatmul.bf16.gmra.mxu1 %v12303_v34 }
 0x224   : > { %1986 = vmatmul.bf16.gmra.mxu2 %v1837_v23 }
 0x225   : > { %2220 = vmatmul.bf16.gmra.mxu3 %v2071_v57 }
 0x227   : > { %v1947_v9 = vpop.f32.mrf.mxu2  ;;  %v1480_v35 = vpop.f32.mrf.mxu0 }
 0x228   : > { %v2181_v36 = vpop.f32.mrf.mxu3  ;;  %v2006_v1 = vadd.f32 %v1947_v9, %v1771_v32  ;;  %v12307_v14 = vpop.f32.mrf.mxu1  ;;  %v12310_v25 = vadd.f32 %v1480_v35, %v12039_v18  ;;  %v11210_v35 = vld [vmem:[%s15181_s3 + $0x10] sm:$0xff] }
 0x229   : > { %2912 = vmatpush.bf16.msra.mxu2 %v11210_v35 }
 0x22a   : > { %v12312_v50 = vadd.f32 %v2181_v36, %v2006_v1 }
 0x22f   : > { %v12316_v4 = vpop.f32.mrf.mxu2  ;;  %v1483_v16 = vpop.f32.mrf.mxu0 }
 0x230   : > { %v12318_v63 = vpop.f32.mrf.mxu3  ;;  %v1717_v48 = vpop.f32.mrf.mxu1  ;;  %v1539_v49 = vadd.f32 %v1483_v16, %v12048_v27  ;;  %v11226_v27 = vld [vmem:[%s15181_s3 + $0x90] sm:$0xff] }
 0x231   : > { %3114 = vmatpush.bf16.msra.mxu3 %v11226_v27 }
 0x232   : > { %v1773_v23 = vadd.f32 %v1717_v48, %v1539_v49  ;;  %2379 = vmatmul.bf16.vlgmr.msra.gmra.mxu0 %v2290_v11  ;;  %v9616_v11 = vld [vmem:[%s11759_s25 + $0x71] sm:$0xff] }
 0x233   : > { %v2291_v48 = vpack.c.bf16 %v9616_v11, %v9615_v56 }
 0x237   : > { %v1952_v57 = vpop.f32.mrf.mxu2  ;;  %v1485_v32 = vpop.f32.mrf.mxu0 }
 0x238   : > { %v2186_v18 = vpop.f32.mrf.mxu3  ;;  %v2008_v59 = vadd.f32 %v1952_v57, %v1773_v23  ;;  %v12321_v9 = vpop.f32.mrf.mxu1  ;;  %v12324_v36 = vadd.f32 %v1485_v32, %v12050_v33 }
 0x239   : > { %15191 = vst [vmem:[#allocation10_spill] sm:$0xff] %v12321_v9 }
 0x23a   : > { %v12326_v1 = vadd.f32 %v2186_v18, %v2008_v59 }
 0x23c   : > { %15192 = vst [vmem:[#allocation11_spill] sm:$0xff] %v12326_v1 }
 0x23f   : > { %v12339_v33 = vpop.f32.mrf.mxu2  ;;  %v1488_v49 = vpop.f32.mrf.mxu0 }
 0x240   : > { %15193 = vst [vmem:[#allocation12_spill] sm:$0xff] %v12339_v33  ;;  %v12341_v16 = vpop.f32.mrf.mxu3  ;;  %v1722_v23 = vpop.f32.mrf.mxu1  ;;  %v1541_v57 = vadd.f32 %v1488_v49, %v12056_v44  ;;  %v9617_v33 = vld [vmem:[%s11759_s25 + $0x89] sm:$0xff] }
 0x241   : > { %15194 = vst [vmem:[#allocation13_spill] sm:$0xff] %v12341_v16  ;;  %v9618_v16 = vld [vmem:[%s11759_s25 + $0x91] sm:$0xff] }
 0x242   : > { %v1775_v18 = vadd.f32 %v1722_v23, %v1541_v57  ;;  %2384 = vmatmul.bf16.gmra.mxu0 %v2291_v48  ;;  %v2292_v44 = vpack.c.bf16 %v9618_v16, %v9617_v33  ;;  %v11209_v33 = vld [vmem:[%s15181_s3 + $0x8] sm:$0xff] }
 0x243   : > { %v11217_v16 = vld [vmem:[%s15181_s3 + $0x48] sm:$0xff]  ;;  %2913 = vmatpush.bf16.msra.mxu2 %v11209_v33 }
 0x244   : > { %2776 = vmatpush.bf16.msra.mxu1 %v11217_v16 }
 0x247   : > { %v1957_v59 = vpop.f32.mrf.mxu2  ;;  %v1490_v9 = vpop.f32.mrf.mxu0 }
 0x248   : > { %v2191_v32 = vpop.f32.mrf.mxu3  ;;  %v2010_v1 = vadd.f32 %v1957_v59, %v1775_v18  ;;  %v12344_v35 = vpop.f32.mrf.mxu1  ;;  %v12347_v27 = vadd.f32 %v1490_v9, %v12058_v62 }
 0x24a   : > { %v12349_v54 = vadd.f32 %v2191_v32, %v2010_v1 }
 0x24f   : > { %v12353_v56 = vpop.f32.mrf.mxu2  ;;  %v1493_v48 = vpop.f32.mrf.mxu0 }
 0x250   : > { %15195 = vst [vmem:[#allocation14_spill] sm:$0xff] %v12353_v56  ;;  %v12355_v11 = vpop.f32.mrf.mxu3  ;;  %v1727_v49 = vpop.f32.mrf.mxu1  ;;  %v1543_v23 = vadd.f32 %v1493_v48, %v12067_v8  ;;  %v11225_v8 = vld [vmem:[%s15181_s3 + $0x88] sm:$0xff]  ;;  %v9620_v48 = vld [vmem:[%s11759_s25 + $0xb1] sm:$0xff] }
 0x251   : > { %15196 = vst [vmem:[#allocation15_spill] sm:$0xff] %v12355_v11  ;;  %3115 = vmatpush.bf16.msra.mxu3 %v11225_v8 }
 0x252   : > { %v1777_v57 = vadd.f32 %v1727_v49, %v1543_v23  ;;  %2389 = vmatmul.bf16.gmra.mxu0 %v2292_v44  ;;  %v9619_v44 = vld [vmem:[%s11759_s25 + $0xa9] sm:$0xff] }
 0x253   : > { %v2293_v23 = vpack.c.bf16 %v9620_v48, %v9619_v44 }
 0x257   : > { %v1962_v18 = vpop.f32.mrf.mxu2  ;;  %v1495_v1 = vpop.f32.mrf.mxu0 }
 0x258   : > { %v2196_v62 = vpop.f32.mrf.mxu3  ;;  %v2012_v9 = vadd.f32 %v1962_v18, %v1777_v57  ;;  %v12358_v59 = vpop.f32.mrf.mxu1  ;;  %v12361_v32 = vadd.f32 %v1495_v1, %v12077_v52 }
 0x259   : > { %15197 = vst [vmem:[#allocation16_spill] sm:$0xff] %v12358_v59 }
 0x25a   : > { %15198 = vst [vmem:[#allocation17_spill] sm:$0xff] %v12361_v32  ;;  %v12363_v56 = vadd.f32 %v2196_v62, %v2012_v9 }
 0x25c   : > { %15199 = vst [vmem:[#allocation18_spill] sm:$0xff] %v12363_v56 }
 0x25f   : > { %v12376_v52 = vpop.f32.mrf.mxu2  ;;  %v1498_v57 = vpop.f32.mrf.mxu0 }
 0x260   : > { %v12378_v49 = vpop.f32.mrf.mxu3  ;;  %v1732_v18 = vpop.f32.mrf.mxu1  ;;  %v1545_v62 = vadd.f32 %v1498_v57, %v12079_v37 }
 0x261   : > { %15200 = vst [vmem:[#allocation19_spill] sm:$0xff] %v12378_v49 }
 0x262   : > { %v1779_v9 = vadd.f32 %v1732_v18, %v1545_v62  ;;  %2394 = vmatmul.bf16.gmra.mxu0 %v2293_v23 }
 0x267   : > { %v1967_v1 = vpop.f32.mrf.mxu2  ;;  %v1500_v32 = vpop.f32.mrf.mxu0 }
 0x268   : > { %v2201_v56 = vpop.f32.mrf.mxu3  ;;  %v2014_v59 = vadd.f32 %v1967_v1, %v1779_v9  ;;  %v12381_v11 = vpop.f32.mrf.mxu1  ;;  %v12384_v33 = vadd.f32 %v1500_v32, %v12087_v58 }
 0x26a   : > { %v12386_v8 = vadd.f32 %v2201_v56, %v2014_v59  ;;  %v11208_v59 = vld [vmem:[%s15181_s3] sm:$0xff] }
 0x26b   : > { %2914 = vmatpush.bf16.msra.mxu2 %v11208_v59 }
 0x26f   : > { %v12388_v16 = vpop.f32.mrf.mxu2  ;;  %v1503_v48 = vpop.f32.mrf.mxu0 }
 0x270   : > { %v12390_v44 = vpop.f32.mrf.mxu3  ;;  %v1737_v49 = vpop.f32.mrf.mxu1  ;;  %v1547_v37 = vadd.f32 %v1503_v48, %v12092_v6  ;;  %v11224_v6 = vld [vmem:[%s15181_s3 + $0x80] sm:$0xff] }
 0x271   : > { %3116 = vmatpush.bf16.msra.mxu3 %v11224_v6 }
 0x272   : > { %v1781_v23 = vadd.f32 %v1737_v49, %v1547_v37  ;;  %2399 = vmatmul.bf16.gmra.mxu0 %v12100_v24  ;;  %v11216_v24 = vld [vmem:[%s15181_s3 + $0x40] sm:$0xff] }
 0x273   : > { %2777 = vmatpush.bf16.msra.mxu1 %v11216_v24 }
 0x277   : > { %v1972_v57 = vpop.f32.mrf.mxu2  ;;  %v1505_v9 = vpop.f32.mrf.mxu0 }
 0x278   : > { %v2206_v18 = vpop.f32.mrf.mxu3  ;;  %v2016_v62 = vadd.f32 %v1972_v57, %v1781_v23  ;;  %v12394_v1 = vpop.f32.mrf.mxu1  ;;  %v12397_v58 = vadd.f32 %v1505_v9, %v12102_v30  ;;  %v11583_v57 = vmov 0.0  }
 0x279   : > { %377 = vst [vmem:[#allocation2] sm:$0xff] %v11583_v57 }
 0x27a   : > { %v12399_v56 = vadd.f32 %v2206_v18, %v2016_v62  ;;  %378 = vst [vmem:[#allocation2 + $0x8] sm:$0xff] %v11583_v57 }
 0x27b   : > { %379 = vst [vmem:[#allocation2 + $0x10] sm:$0xff] %v11583_v57 }
 0x27c   : > { %380 = vst [vmem:[#allocation2 + $0x18] sm:$0xff] %v11583_v57 }
 0x27d   : > { %381 = vst [vmem:[#allocation2 + $0x20] sm:$0xff] %v11583_v57 }
 0x27e   : > { %384 = vst [vmem:[#allocation2 + $0x38] sm:$0xff] %v11583_v57 }
 0x27f   : > { %v12410_v32 = vpop.f32.mrf.mxu2  ;;  %v1508_v49 = vpop.f32.mrf.mxu0  ;;  %385 = vst [vmem:[#allocation2 + $0x40] sm:$0xff] %v11583_v57 }
 0x280   : > { %v12412_v30 = vpop.f32.mrf.mxu3  ;;  %v1742_v48 = vpop.f32.mrf.mxu1  ;;  %v1549_v37 = vadd.f32 %v1508_v49, %v12105_v46  ;;  %388 = vst [vmem:[#allocation2 + $0x58] sm:$0xff] %v11583_v57 }
 0x281   : > { %389 = vst [vmem:[#allocation2 + $0x60] sm:$0xff] %v11583_v57 }
 0x282   : > { %v1783_v23 = vadd.f32 %v1742_v48, %v1549_v37  ;;  %2404 = vmatmul.bf16.gmra.mxu0 %v12113_v7  ;;  %v2593_v7 = vld [vmem:[#allocation2 + $0x7] sm:$0xff]  ;;  %392 = vst [vmem:[#allocation2 + $0x78] sm:$0xff] %v11583_v57 }
 0x283   : > { %v2996_v37 = vld [vmem:[#allocation2 + $0x9] sm:$0xff]  ;;  %393 = vst [vmem:[#allocation2 + $0x80] sm:$0xff] %v11583_v57 }
 0x284   : > { %396 = vst [vmem:[#allocation2 + $0x98] sm:$0xff] %v11583_v57 }
 0x285   : > { %397 = vst [vmem:[#allocation2 + $0xa0] sm:$0xff] %v11583_v57 }
 0x286   : > { %400 = vst [vmem:[#allocation2 + $0xb8] sm:$0xff] %v11583_v57 }
 0x287   : > { %v1977_v18 = vpop.f32.mrf.mxu2  ;;  %v1510_v59 = vpop.f32.mrf.mxu0  ;;  %401 = vst [vmem:[#allocation2 + $0xc0] sm:$0xff] %v11583_v57 }
 0x288   : > { %v2211_v62 = vpop.f32.mrf.mxu3  ;;  %v2018_v9 = vadd.f32 %v1977_v18, %v1783_v23  ;;  %v12418_v6 = vpop.f32.mrf.mxu1  ;;  %v12422_v24 = vadd.f32 %v1510_v59, %v12115_v5  ;;  %v2594_v5 = vld [vmem:[#allocation2 + $0xf] sm:$0xff]  ;;  %404 = vst [vmem:[#allocation2 + $0xd8] sm:$0xff] %v11583_v57 }
 0x289   : > { %405 = vst [vmem:[#allocation2 + $0xe0] sm:$0xff] %v11583_v57 }
 0x28a   : > { %v12425_v46 = vadd.f32 %v2211_v62, %v2018_v9  ;;  %v2625_v62 = vpack.c.bf16 %v2594_v5, %v2593_v7  ;;  %v2997_v9 = vld [vmem:[#allocation2 + $0x11] sm:$0xff]  ;;  %408 = vst [vmem:[#allocation2 + $0xf8] sm:$0xff] %v11583_v57 }
 0x28b   : > { %409 = vst [vmem:[#allocation2 + $0x100] sm:$0xff] %v11583_v57 }
 0x28c   : > { %15201 = vst [vmem:[#allocation20_spill] sm:$0xff] %v12425_v46  ;;  %v3028_v46 = vpack.c.bf16 %v2997_v9, %v2996_v37  ;;  %2915 = vmatmul.bf16.vlgmr.msra.gmra.mxu2 %v2625_v62  ;;  %v11263_v62 = vld [vmem:[%s15181_s3 + $0x1b8] sm:$0xff] }
 0x28d   : > { %412 = vst [vmem:[#allocation2 + $0x118] sm:$0xff] %v11583_v57  ;;  %4046 = vmatpush.bf16.msrb.mxu3 %v11263_v62 }
 0x28e   : > { %3117 = vmatmul.bf16.vlgmr.msra.gmra.mxu3 %v3028_v46  ;;  %413 = vst [vmem:[#allocation2 + $0x120] sm:$0xff] %v11583_v57 }
 0x28f   : > { %v12432_v49 = vpop.f32.mrf.mxu2  ;;  %v1513_v23 = vpop.f32.mrf.mxu0  ;;  %416 = vst [vmem:[#allocation2 + $0x138] sm:$0xff] %v11583_v57 }
 0x290   : > { %15202 = vst [vmem:[#allocation21_spill] sm:$0xff] %v12432_v49  ;;  %v12434_v48 = vpop.f32.mrf.mxu3  ;;  %v1747_v18 = vpop.f32.mrf.mxu1  ;;  %v1551_v59 = vadd.f32 %v1513_v23, %v12121_v22  ;;  %v11584_v49 = vmov 0.0|0.0  }
 0x291   : > { %15203 = vst [vmem:[#allocation22_spill] sm:$0xff] %v12434_v48  ;;  %2778 = vmatmul.bf16.vlgmr.msra.gmra.mxu1 %v11584_v49 }
 0x292   : > { %v1785_v48 = vadd.f32 %v1747_v18, %v1551_v59  ;;  %2409 = vmatmul.bf16.gmra.mxu0 %v12138_v45  ;;  %417 = vst [vmem:[#allocation2 + $0x140] sm:$0xff] %v11583_v57  ;;  %v11239_v18 = vld [vmem:[%s15181_s3 + $0xf8] sm:$0xff] }
 0x293   : > { %420 = vst [vmem:[#allocation2 + $0x158] sm:$0xff] %v11583_v57  ;;  %3343 = vmatpush.bf16.msrb.mxu0 %v11239_v18 }
 0x294   : > { %421 = vst [vmem:[#allocation2 + $0x160] sm:$0xff] %v11583_v57 }
 0x295   : > { %424 = vst [vmem:[#allocation2 + $0x178] sm:$0xff] %v11583_v57 }
 0x296   : > { %425 = vst [vmem:[#allocation2 + $0x180] sm:$0xff] %v11583_v57 }
 0x297   : > { %v1982_v22 = vpop.f32.mrf.mxu2  ;;  %v1515_v37 = vpop.f32.mrf.mxu0  ;;  %428 = vst [vmem:[#allocation2 + $0x198] sm:$0xff] %v11583_v57 }
 0x298   : > { %v2216_v7 = vpop.f32.mrf.mxu3  ;;  %v2020_v5 = vadd.f32 %v1982_v22, %v1785_v48  ;;  %v12447_v23 = vpop.f32.mrf.mxu1  ;;  %v12451_v45 = vadd.f32 %v1515_v37, %v12140_v55  ;;  %v11255_v55 = vld [vmem:[%s15181_s3 + $0x178] sm:$0xff]  ;;  %429 = vst [vmem:[#allocation2 + $0x1a0] sm:$0xff] %v11583_v57 }
 0x299   : > { %v11247_v22 = vld [vmem:[%s15181_s3 + $0x138] sm:$0xff]  ;;  %3811 = vmatpush.bf16.msrb.mxu2 %v11255_v55  ;;  %432 = vst [vmem:[#allocation2 + $0x1b8] sm:$0xff] %v11583_v57 }
 0x29a   : > { %v12454_v46 = vadd.f32 %v2216_v7, %v2020_v5  ;;  %3577 = vmatpush.bf16.msrb.mxu1 %v11247_v22  ;;  %433 = vst [vmem:[#allocation2 + $0x1c0] sm:$0xff] %v11583_v57 }
 0x29b   : > { %436 = vst [vmem:[#allocation2 + $0x1d8] sm:$0xff] %v11583_v57 }
 0x29c   : > { %15204 = vst [vmem:[#allocation23_spill] sm:$0xff] %v12454_v46 }
 0x29d   : > { %437 = vst [vmem:[#allocation2 + $0x1e0] sm:$0xff] %v11583_v57 }
 0x29e   : > { %440 = vst [vmem:[#allocation2 + $0x1f8] sm:$0xff] %v11583_v57 }
 0x29f   : > { %v12461_v49 = vpop.f32.mrf.mxu2  ;;  %v1518_v9 = vpop.f32.mrf.mxu0  ;;  %441 = vst [vmem:[#allocation2 + $0x200] sm:$0xff] %v11583_v57 }
 0x2a0   : > { %15205 = vst [vmem:[#allocation24_spill] sm:$0xff] %v12461_v49  ;;  %v12463_v48 = vpop.f32.mrf.mxu3  ;;  %v1752_v59 = vpop.f32.mrf.mxu1  ;;  %v1553_v7 = vadd.f32 %v1518_v9, %v12143_v10  ;;  %v9629_v9 = vld [vmem:[%s11759_s25 + $0x149] sm:$0xff] }
 0x2a1   : > { %15206 = vst [vmem:[#allocation25_spill] sm:$0xff] %v12463_v48 }
 0x2a2   : > { %v1787_v5 = vadd.f32 %v1752_v59, %v1553_v7  ;;  %2414 = vmatmul.bf16.gmra.mxu0 %v12151_v26  ;;  %444 = vst [vmem:[#allocation2 + $0x218] sm:$0xff] %v11583_v57  ;;  %v9630_v59 = vld [vmem:[%s11759_s25 + $0x151] sm:$0xff] }
 0x2a3   : > { %445 = vst [vmem:[#allocation2 + $0x220] sm:$0xff] %v11583_v57  ;;  %v2298_v22 = vpack.c.bf16 %v9630_v59, %v9629_v9  ;;  %v11238_v9 = vld [vmem:[%s15181_s3 + $0xf0] sm:$0xff] }
 0x2a4   : > { %446 = vst [vmem:[#allocation2 + $0x228] sm:$0xff] %v11583_v57  ;;  %3344 = vmatpush.bf16.msrb.mxu0 %v11238_v9 }
 0x2a5   : > { %447 = vst [vmem:[#allocation2 + $0x230] sm:$0xff] %v11583_v57 }
 0x2a6   : > { %448 = vst [vmem:[#allocation2 + $0x238] sm:$0xff] %v11583_v57  ;;  %v9631_v57 = vld [vmem:[%s11759_s25 + $0x169] sm:$0xff] }
 0x2a7   : > { %v1987_v10 = vpop.f32.mrf.mxu2  ;;  %v1520_v18 = vpop.f32.mrf.mxu0 }
 0x2a8   : > { %v2221_v37 = vpop.f32.mrf.mxu3  ;;  %v2022_v55 = vadd.f32 %v1987_v10, %v1787_v5  ;;  %v12490_v26 = vadd.f32 %v1520_v18, %v12154_v39  ;;  %v12504_v39 = vld [vmem:[%s15180_s2] ss:$0 sm:$0xff] }
 0x2aa   : > { %15207 = vst [vmem:[#allocation26_spill] sm:$0xff] %v12490_v26  ;;  %v12493_v62 = vadd.f32 %v2221_v37, %v2022_v55  ;;  %v9632_v26 = vld [vmem:[%s11759_s25 + $0x171] sm:$0xff] }
 0x2ab   : > { %v2299_v49 = vpack.c.bf16 %v9632_v26, %v9631_v57 }
 0x2ac   : > { %15208 = vst [vmem:[#allocation27_spill] sm:$0xff] %v12493_v62 }
 0x2af   : > { %v2380_v7 = vpop.f32.mrf.mxu0 }
 0x2b0   : > { %v2460_v5 = vadd.f32 %v2380_v7, %v12161_v51  ;;  %v11254_v51 = vld [vmem:[%s15181_s3 + $0x170] sm:$0xff] }
 0x2b1   : > { %3812 = vmatpush.bf16.msrb.mxu2 %v11254_v51  ;;  %v9634_v51 = vld [vmem:[%s11759_s25 + $0x191] sm:$0xff] }
 0x2b2   : > { %v2496_v10 = vadd.f32 %v12504_v39, %v2460_v5  ;;  %2419 = vmatmul.bf16.gmra.mxu0 %v2298_v22 }
 0x2b4   : > { %v2528_v37 = vmax.f32 %v2496_v10, 0.0 }
 0x2b6   : > { %2561 = vst [vmem:[#allocation2 + $0x28] sm:$0xff] %v2528_v37 }
 0x2b7   : > { %v2382_v55 = vpop.f32.mrf.mxu0 }
 0x2b8   : > { %v2461_v18 = vadd.f32 %v2382_v55, %v12179_v38  ;;  %v11262_v38 = vld [vmem:[%s15181_s3 + $0x1b0] sm:$0xff] }
 0x2b9   : > { %4047 = vmatpush.bf16.msrb.mxu3 %v11262_v38 }
 0x2ba   : > { %v2497_v62 = vadd.f32 %v12504_v39, %v2461_v18 }
 0x2bc   : > { %v2529_v48 = vmax.f32 %v2497_v62, 0.0  ;;  %v11246_v62 = vld [vmem:[%s15181_s3 + $0x130] sm:$0xff] }
 0x2bd   : > { %3578 = vmatpush.bf16.msrb.mxu1 %v11246_v62  ;;  %v2595_v7 = vld [vmem:[#allocation2 + $0x27] sm:$0xff] }
 0x2be   : > { %2562 = vst [vmem:[#allocation2 + $0x30] sm:$0xff] %v2529_v48  ;;  %v2690_v46 = vpack.c.bf16 %v2529_v48, %v2528_v37 }
 0x2bf   : > { %v2385_v59 = vpop.f32.mrf.mxu0 }
 0x2c0   : > { %v2462_v26 = vadd.f32 %v2385_v59, %v12182_v42  ;;  %2783 = vmatmul.bf16.gmra.mxu1 %v2690_v46 }
 0x2c2   : > { %v2498_v48 = vadd.f32 %v12504_v39, %v2462_v26  ;;  %2424 = vmatmul.bf16.gmra.mxu0 %v2299_v49  ;;  %v9633_v49 = vld [vmem:[%s11759_s25 + $0x189] sm:$0xff] }
 0x2c3   : > { %v2300_v38 = vpack.c.bf16 %v9634_v51, %v9633_v49  ;;  %v9636_v49 = vld [vmem:[%s11759_s25 + $0x1b1] sm:$0xff] }
 0x2c4   : > { %v2530_v22 = vmax.f32 %v2498_v48, 0.0 }
 0x2c5   : > { %v2596_v5 = vld [vmem:[#allocation2 + $0x2f] sm:$0xff] }
 0x2c6   : > { %v2998_v10 = vld [vmem:[#allocation2 + $0x29] sm:$0xff]  ;;  %v2999_v37 = vld [vmem:[#allocation2 + $0x31] sm:$0xff]  ;;  %2563 = vst [vmem:[#allocation2 + $0x48] sm:$0xff] %v2530_v22  ;;  %v12526_v55 = vpack.c.bf16 %v2596_v5, %v2595_v7 }
 0x2c7   : > { %v3029_v18 = vpack.c.bf16 %v2999_v37, %v2998_v10  ;;  %v2387_v42 = vpop.f32.mrf.mxu0 }
 0x2c8   : > { %v2463_v46 = vadd.f32 %v2387_v42, %v12191_v0  ;;  %2920 = vmatmul.bf16.gmra.mxu2 %v12526_v55 }
 0x2c9   : > { %3122 = vmatmul.bf16.gmra.mxu3 %v3029_v18 }
 0x2ca   : > { %v2499_v57 = vadd.f32 %v12504_v39, %v2463_v46 }
 0x2cc   : > { %v2531_v9 = vmax.f32 %v2499_v57, 0.0  ;;  %v9635_v57 = vld [vmem:[%s11759_s25 + $0x1a9] sm:$0xff] }
 0x2cd   : > { %v2597_v7 = vld [vmem:[#allocation2 + $0x47] sm:$0xff] }
 0x2ce   : > { %2564 = vst [vmem:[#allocation2 + $0x50] sm:$0xff] %v2531_v9  ;;  %v2691_v59 = vpack.c.bf16 %v2531_v9, %v2530_v22  ;;  %v2301_v9 = vpack.c.bf16 %v9636_v49, %v9635_v57 }
 0x2cf   : > { %v2390_v62 = vpop.f32.mrf.mxu0 }
 0x2d0   : > { %v2464_v26 = vadd.f32 %v2390_v62, %v12197_v47  ;;  %2788 = vmatmul.bf16.gmra.mxu1 %v2691_v59  ;;  %v11253_v59 = vld [vmem:[%s15181_s3 + $0x168] sm:$0xff] }
 0x2d1   : > { %v11237_v62 = vld [vmem:[%s15181_s3 + $0xe8] sm:$0xff]  ;;  %3813 = vmatpush.bf16.msrb.mxu2 %v11253_v59 }
 0x2d2   : > { %v2500_v48 = vadd.f32 %v12504_v39, %v2464_v26  ;;  %2429 = vmatmul.bf16.gmra.mxu0 %v2300_v38 }
 0x2d3   : > { %3345 = vmatpush.bf16.msrb.mxu0 %v11237_v62 }
 0x2d4   : > { %v2532_v0 = vmax.f32 %v2500_v48, 0.0  ;;  %v11245_v48 = vld [vmem:[%s15181_s3 + $0x128] sm:$0xff] }
 0x2d5   : > { %v2598_v5 = vld [vmem:[#allocation2 + $0x4f] sm:$0xff]  ;;  %3579 = vmatpush.bf16.msrb.mxu1 %v11245_v48 }
 0x2d6   : > { %v3000_v10 = vld [vmem:[#allocation2 + $0x49] sm:$0xff]  ;;  %v3001_v37 = vld [vmem:[#allocation2 + $0x51] sm:$0xff]  ;;  %2565 = vst [vmem:[#allocation2 + $0x68] sm:$0xff] %v2532_v0  ;;  %v12535_v18 = vpack.c.bf16 %v2598_v5, %v2597_v7 }
 0x2d7   : > { %v3030_v42 = vpack.c.bf16 %v3001_v37, %v3000_v10  ;;  %v2392_v46 = vpop.f32.mrf.mxu0 }
 0x2d8   : > { %v2465_v22 = vadd.f32 %v2392_v46, %v12215_v3  ;;  %2925 = vmatmul.bf16.gmra.mxu2 %v12535_v18  ;;  %v11261_v3 = vld [vmem:[%s15181_s3 + $0x1a8] sm:$0xff] }
 0x2d9   : > { %3127 = vmatmul.bf16.gmra.mxu3 %v3030_v42 }
 0x2da   : > { %v2501_v47 = vadd.f32 %v12504_v39, %v2465_v22  ;;  %4048 = vmatpush.bf16.msrb.mxu3 %v11261_v3 }
 0x2dc   : > { %v2533_v51 = vmax.f32 %v2501_v47, 0.0 }
 0x2dd   : > { %v2599_v10 = vld [vmem:[#allocation2 + $0x67] sm:$0xff] }
 0x2de   : > { %2566 = vst [vmem:[#allocation2 + $0x70] sm:$0xff] %v2533_v51  ;;  %v2692_v38 = vpack.c.bf16 %v2533_v51, %v2532_v0  ;;  %v9637_v51 = vld [vmem:[%s11759_s25 + $0x1c9] sm:$0xff] }
 0x2df   : > { %v2395_v26 = vpop.f32.mrf.mxu0 }
 0x2e0   : > { %v2466_v7 = vadd.f32 %v2395_v26, %v12218_v40  ;;  %2793 = vmatmul.bf16.gmra.mxu1 %v2692_v38  ;;  %v1766_v26 = vadd.f32 %v12232_v28, %v12235_v19 }
 0x2e2   : > { %v2502_v0 = vadd.f32 %v12504_v39, %v2466_v7  ;;  %2434 = vmatmul.bf16.gmra.mxu0 %v2301_v9  ;;  %v9638_v9 = vld [vmem:[%s11759_s25 + $0x1d1] sm:$0xff] }
 0x2e3   : > { %v2302_v59 = vpack.c.bf16 %v9638_v9, %v9637_v51 }
 0x2e4   : > { %v2534_v5 = vmax.f32 %v2502_v0, 0.0 }
 0x2e5   : > { %v2600_v37 = vld [vmem:[#allocation2 + $0x6f] sm:$0xff] }
 0x2e6   : > { %v3002_v42 = vld [vmem:[#allocation2 + $0x69] sm:$0xff]  ;;  %v3003_v46 = vld [vmem:[#allocation2 + $0x71] sm:$0xff]  ;;  %2567 = vst [vmem:[#allocation2 + $0x88] sm:$0xff] %v2534_v5  ;;  %v12556_v22 = vpack.c.bf16 %v2600_v37, %v2599_v10 }
 0x2e7   : > { %v3031_v47 = vpack.c.bf16 %v3003_v46, %v3002_v42  ;;  %v2397_v40 = vpop.f32.mrf.mxu0 }
 0x2e8   : > { %v2467_v57 = vadd.f32 %v2397_v40, %v12227_v60  ;;  %2930 = vmatmul.bf16.gmra.mxu2 %v12556_v22  ;;  %v2001_v60 = vadd.f32 %v12254_v61, %v1766_v26  ;;  %v9639_v40 = vld [vmem:[%s11759_s25 + $0x1e9] sm:$0xff]  ;;  %v1768_v26 = vadd.f32 %v12259_v17, %v12262_v12 }
 0x2e9   : > { %3132 = vmatmul.bf16.gmra.mxu3 %v3031_v47 }
 0x2ea   : > { %v2503_v49 = vadd.f32 %v12504_v39, %v2467_v57  ;;  %v9640_v57 = vld [vmem:[%s11759_s25 + $0x1f1] sm:$0xff] }
 0x2eb   : > { %v2303_v51 = vpack.c.bf16 %v9640_v57, %v9639_v40  ;;  %v12606_v40 = vpop.f32.mrf.mxu1  ;;  %v12608_v57 = vpop.f32.mrf.mxu2 }
 0x2ec   : > { %v2535_v38 = vmax.f32 %v2503_v49, 0.0 }
 0x2ed   : > { %v2601_v10 = vld [vmem:[#allocation2 + $0x87] sm:$0xff] }
 0x2ee   : > { %2568 = vst [vmem:[#allocation2 + $0x90] sm:$0xff] %v2535_v38  ;;  %v2693_v62 = vpack.c.bf16 %v2535_v38, %v2534_v5  ;;  %v2235_v5 = vadd.f32 %v12256_v21, %v2001_v60  ;;  %v11252_v21 = vld [vmem:[%s15181_s3 + $0x160] sm:$0xff]  ;;  %v2003_v60 = vadd.f32 %v12272_v43, %v1768_v26 }
 0x2ef   : > { %v2400_v3 = vpop.f32.mrf.mxu0  ;;  %v11236_v38 = vld [vmem:[%s15181_s3 + $0xe0] sm:$0xff]  ;;  %3814 = vmatpush.bf16.msrb.mxu2 %v11252_v21 }
 0x2f0   : > { %v2468_v48 = vadd.f32 %v2400_v3, %v12237_v53  ;;  %2798 = vmatmul.bf16.gmra.mxu1 %v2693_v62  ;;  %v11244_v3 = vld [vmem:[%s15181_s3 + $0x120] sm:$0xff]  ;;  %3346 = vmatpush.bf16.msrb.mxu0 %v11236_v38  ;;  %v1770_v38 = vadd.f32 %v12277_v2, %v12280_v13 }
 0x2f1   : > { %3580 = vmatpush.bf16.msrb.mxu1 %v11244_v3 }
 0x2f2   : > { %v2504_v7 = vadd.f32 %v12504_v39, %v2468_v48  ;;  %2439 = vmatmul.bf16.gmra.mxu0 %v2302_v59  ;;  %v11260_v59 = vld [vmem:[%s15181_s3 + $0x1a0] sm:$0xff] }
 0x2f3   : > { %4049 = vmatpush.bf16.msrb.mxu3 %v11260_v59 }
 0x2f4   : > { %v2536_v0 = vmax.f32 %v2504_v7, 0.0 }
 0x2f5   : > { %v2602_v37 = vld [vmem:[#allocation2 + $0x8f] sm:$0xff] }
 0x2f6   : > { %v3004_v42 = vld [vmem:[#allocation2 + $0x89] sm:$0xff]  ;;  %v3005_v46 = vld [vmem:[#allocation2 + $0x91] sm:$0xff]  ;;  %2569 = vst [vmem:[#allocation2 + $0xa8] sm:$0xff] %v2536_v0  ;;  %v12569_v47 = vpack.c.bf16 %v2602_v37, %v2601_v10 }
 0x2f7   : > { %v3032_v28 = vpack.c.bf16 %v3005_v46, %v3004_v42  ;;  %v2402_v19 = vpop.f32.mrf.mxu0 }
 0x2f8   : > { %v2469_v53 = vadd.f32 %v2402_v19, %v2235_v5  ;;  %2935 = vmatmul.bf16.gmra.mxu2 %v12569_v47  ;;  %v11234_v5 = vld [vmem:[%s15181_s3 + $0xd0] sm:$0xff] }
 0x2f9   : > { %3137 = vmatmul.bf16.gmra.mxu3 %v3032_v28 }
 0x2fa   : > { %v2505_v61 = vadd.f32 %v12504_v39, %v2469_v53 }
 0x2fc   : > { %v2537_v49 = vmax.f32 %v2505_v61, 0.0 }
 0x2fd   : > { %v2603_v37 = vld [vmem:[#allocation2 + $0xa7] sm:$0xff] }
 0x2fe   : > { %2570 = vst [vmem:[#allocation2 + $0xb0] sm:$0xff] %v2537_v49  ;;  %v2694_v9 = vpack.c.bf16 %v2537_v49, %v2536_v0  ;;  %v11235_v0 = vld [vmem:[%s15181_s3 + $0xd8] sm:$0xff] }
 0x2ff   : > { %v2405_v62 = vpop.f32.mrf.mxu0  ;;  %3347 = vmatpush.bf16.msrb.mxu0 %v11235_v0 }
 0x300   : > { %v2470_v48 = vadd.f32 %v2405_v62, %v12264_v20  ;;  %2803 = vmatmul.bf16.gmra.mxu1 %v2694_v9  ;;  %v2237_v20 = vadd.f32 %v12274_v29, %v2003_v60  ;;  %v11233_v29 = vld [vmem:[%s15181_s3 + $0xc8] sm:$0xff]  ;;  %v12613_v9 = vpop.f32.mrf.mxu3  ;;  %v2005_v62 = vadd.f32 %v12299_v41, %v1770_v38 }
 0x302   : > { %v2506_v7 = vadd.f32 %v12504_v39, %v2470_v48  ;;  %2444 = vmatmul.bf16.gmra.mxu0 %v2303_v51  ;;  %v11232_v51 = vld [vmem:[%s15181_s3 + $0xc0] sm:$0xff]  ;;  %v2239_v2 = vadd.f32 %v12301_v15, %v2005_v62 }
 0x303   : > { %3348 = vmatpush.bf16.msrb.mxu0 %v11234_v5  ;;  %v9644_v5 = vld [vmem:[%s11759_s25 + $0x231] sm:$0xff] }
 0x304   : > { %v2538_v10 = vmax.f32 %v2506_v7, 0.0 }
 0x305   : > { %v2604_v42 = vld [vmem:[#allocation2 + $0xaf] sm:$0xff] }
 0x306   : > { %v3006_v17 = vld [vmem:[#allocation2 + $0xa9] sm:$0xff]  ;;  %v3007_v12 = vld [vmem:[#allocation2 + $0xb1] sm:$0xff]  ;;  %2571 = vst [vmem:[#allocation2 + $0xc8] sm:$0xff] %v2538_v10  ;;  %v12596_v46 = vpack.c.bf16 %v2604_v42, %v2603_v37 }
 0x307   : > { %v3033_v43 = vpack.c.bf16 %v3007_v12, %v3006_v17  ;;  %v2407_v28 = vpop.f32.mrf.mxu0  ;;  %3349 = vmatpush.bf16.msrb.mxu0 %v11233_v29  ;;  %v11259_v29 = vld [vmem:[%s15181_s3 + $0x198] sm:$0xff] }
 0x308   : > { %v2471_v19 = vadd.f32 %v2407_v28, %v2237_v20  ;;  %2940 = vmatmul.bf16.gmra.mxu2 %v12596_v46  ;;  %4050 = vmatpush.bf16.msrb.mxu3 %v11259_v29  ;;  %v15212_v29 = vld [vmem:[#allocation13_spill] sm:$0xff] }
 0x309   : > { %3142 = vmatmul.bf16.gmra.mxu3 %v3033_v43  ;;  %v9643_v43 = vld [vmem:[%s11759_s25 + $0x229] sm:$0xff] }
 0x30a   : > { %v2507_v53 = vadd.f32 %v12504_v39, %v2471_v19  ;;  %v2305_v15 = vpack.c.bf16 %v9644_v5, %v9643_v43 }
 0x30b   : > { %3350 = vmatpush.bf16.msrb.mxu0 %v11232_v51  ;;  %v1772_v51 = vadd.f32 %v12307_v14, %v12310_v25 }
 0x30c   : > { %v2539_v61 = vmax.f32 %v2507_v53, 0.0  ;;  %v11251_v53 = vld [vmem:[%s15181_s3 + $0x158] sm:$0xff] }
 0x30d   : > { %v2605_v48 = vld [vmem:[#allocation2 + $0xc7] sm:$0xff]  ;;  %3815 = vmatpush.bf16.msrb.mxu2 %v11251_v53  ;;  %v2007_v38 = vadd.f32 %v12316_v4, %v1772_v51 }
 0x30e   : > { %2572 = vst [vmem:[#allocation2 + $0xd0] sm:$0xff] %v2539_v61  ;;  %v2695_v49 = vpack.c.bf16 %v2539_v61, %v2538_v10  ;;  %v2779_v10 = vpop.f32.mrf.mxu1  ;;  %v11243_v61 = vld [vmem:[%s15181_s3 + $0x118] sm:$0xff] }
 0x30f   : > { %v2410_v21 = vpop.f32.mrf.mxu0  ;;  %v2916_v37 = vpop.f32.mrf.mxu2  ;;  %3581 = vmatpush.bf16.msrb.mxu1 %v11243_v61 }
 0x310   : > { %v2472_v59 = vadd.f32 %v2410_v21, %v12282_v31  ;;  %2808 = vmatmul.bf16.gmra.mxu1 %v2695_v49  ;;  %v2917_v41 = vadd.f32 %v2916_v37, %v2779_v10 }
 0x311   : > { %v3118_v17 = vpop.f32.mrf.mxu3 }
 0x312   : > { %v2508_v3 = vadd.f32 %v12504_v39, %v2472_v59  ;;  %2449 = vmatmul.bf16.gmra.mxu0 %v12303_v34  ;;  %v12625_v34 = vadd.f32 %v3118_v17, %v2917_v41  ;;  %v15211_v17 = vld [vmem:[#allocation12_spill] sm:$0xff] }
 0x314   : > { %v2540_v26 = vmax.f32 %v2508_v3, 0.0 }
 0x315   : > { %v2606_v60 = vld [vmem:[#allocation2 + $0xcf] sm:$0xff] }
 0x316   : > { %v3008_v7 = vld [vmem:[#allocation2 + $0xc9] sm:$0xff]  ;;  %v3009_v0 = vld [vmem:[#allocation2 + $0xd1] sm:$0xff]  ;;  %2573 = vst [vmem:[#allocation2 + $0xe8] sm:$0xff] %v2540_v26  ;;  %v12622_v13 = vpack.c.bf16 %v2606_v60, %v2605_v48  ;;  %v12655_v43 = vpop.f32.mrf.mxu1 }
 0x317   : > { %v3034_v31 = vpack.c.bf16 %v3009_v0, %v3008_v7  ;;  %v2412_v42 = vpop.f32.mrf.mxu0  ;;  %v2241_v7 = vadd.f32 %v12318_v63, %v2007_v38 }
 0x318   : > { %v2473_v12 = vadd.f32 %v2412_v42, %v2239_v2  ;;  %2945 = vmatmul.bf16.gmra.mxu2 %v12622_v13  ;;  %v15210_v42 = vld [vmem:[#allocation11_spill] sm:$0xff] }
 0x319   : > { %3147 = vmatmul.bf16.gmra.mxu3 %v3034_v31  ;;  %v15209_v31 = vld [vmem:[#allocation10_spill] sm:$0xff] }
 0x31a   : > { %v2509_v20 = vadd.f32 %v12504_v39, %v2473_v12  ;;  %v1774_v41 = vadd.f32 %v15209_v31, %v12324_v36 }
 0x31c   : > { %v2541_v28 = vmax.f32 %v2509_v20, 0.0  ;;  %v2009_v12 = vadd.f32 %v15211_v17, %v1774_v41 }
 0x31d   : > { %v2607_v3 = vld [vmem:[#allocation2 + $0xe7] sm:$0xff] }
 0x31e   : > { %2574 = vst [vmem:[#allocation2 + $0xf0] sm:$0xff] %v2541_v28  ;;  %v2696_v19 = vpack.c.bf16 %v2541_v28, %v2540_v26  ;;  %v2243_v61 = vadd.f32 %v15212_v29, %v2009_v12 }
 0x31f   : > { %v2415_v49 = vpop.f32.mrf.mxu0 }
 0x320   : > { %v2474_v21 = vadd.f32 %v2415_v49, %v12312_v50  ;;  %2813 = vmatmul.bf16.gmra.mxu1 %v2696_v19 }
 0x322   : > { %v2510_v59 = vadd.f32 %v12504_v39, %v2474_v21  ;;  %2454 = vmatmul.bf16.gmra.mxu0 %v2305_v15 }
 0x324   : > { %v2542_v62 = vmax.f32 %v2510_v59, 0.0 }
 0x325   : > { %v2608_v26 = vld [vmem:[#allocation2 + $0xef] sm:$0xff] }
 0x326   : > { %v3010_v48 = vld [vmem:[#allocation2 + $0xe9] sm:$0xff]  ;;  %v3011_v60 = vld [vmem:[#allocation2 + $0xf1] sm:$0xff]  ;;  %2575 = vst [vmem:[#allocation2 + $0x108] sm:$0xff] %v2542_v62  ;;  %v12645_v14 = vpack.c.bf16 %v2608_v26, %v2607_v3 }
 0x327   : > { %v3035_v25 = vpack.c.bf16 %v3011_v60, %v3010_v48  ;;  %v2417_v50 = vpop.f32.mrf.mxu0  ;;  %v11250_v3 = vld [vmem:[%s15181_s3 + $0x150] sm:$0xff] }
 0x328   : > { %v2475_v0 = vadd.f32 %v2417_v50, %v2241_v7  ;;  %2950 = vmatmul.bf16.gmra.mxu2 %v12645_v14  ;;  %v11258_v26 = vld [vmem:[%s15181_s3 + $0x190] sm:$0xff]  ;;  %v1776_v7 = vadd.f32 %v12344_v35, %v12347_v27  ;;  %v15213_v50 = vld [vmem:[#allocation14_spill] sm:$0xff] }
 0x329   : > { %3152 = vmatmul.bf16.gmra.mxu3 %v3035_v25  ;;  %v11242_v48 = vld [vmem:[%s15181_s3 + $0x110] sm:$0xff]  ;;  %3816 = vmatpush.bf16.msrb.mxu2 %v11250_v3 }
 0x32a   : > { %v2511_v4 = vadd.f32 %v12504_v39, %v2475_v0  ;;  %4051 = vmatpush.bf16.msrb.mxu3 %v11258_v26  ;;  %3582 = vmatpush.bf16.msrb.mxu1 %v11242_v48  ;;  %v2011_v0 = vadd.f32 %v15213_v50, %v1776_v7 }
 0x32c   : > { %v2543_v10 = vmax.f32 %v2511_v4, 0.0 }
 0x32d   : > { %v2609_v28 = vld [vmem:[#allocation2 + $0x107] sm:$0xff] }
 0x32e   : > { %2576 = vst [vmem:[#allocation2 + $0x110] sm:$0xff] %v2543_v10  ;;  %v2697_v37 = vpack.c.bf16 %v2543_v10, %v2542_v62  ;;  %v12677_v10 = vpop.f32.mrf.mxu2 }
 0x32f   : > { %v2420_v2 = vpop.f32.mrf.mxu0 }
 0x330   : > { %v2476_v63 = vadd.f32 %v2420_v2, %v15210_v42  ;;  %2818 = vmatmul.bf16.gmra.mxu1 %v2697_v37  ;;  %v12679_v37 = vpop.f32.mrf.mxu3  ;;  %v15214_v42 = vld [vmem:[#allocation15_spill] sm:$0xff] }
 0x332   : > { %v2512_v20 = vadd.f32 %v12504_v39, %v2476_v63  ;;  %3351 = vmatmul.bf16.vlgmr.msrb.gmra.mxu0 %v12526_v55  ;;  %v2245_v63 = vadd.f32 %v15214_v42, %v2011_v0 }
 0x334   : > { %v2544_v5 = vmax.f32 %v2512_v20, 0.0 }
 0x335   : > { %v2610_v15 = vld [vmem:[#allocation2 + $0x10f] sm:$0xff] }
 0x336   : > { %v3012_v19 = vld [vmem:[#allocation2 + $0x109] sm:$0xff]  ;;  %v3013_v53 = vld [vmem:[#allocation2 + $0x111] sm:$0xff]  ;;  %2577 = vst [vmem:[#allocation2 + $0x128] sm:$0xff] %v2544_v5  ;;  %v12658_v36 = vpack.c.bf16 %v2610_v15, %v2609_v28 }
 0x337   : > { %v3036_v49 = vpack.c.bf16 %v3013_v53, %v3012_v19  ;;  %v2422_v51 = vpop.f32.mrf.mxu0 }
 0x338   : > { %v2477_v21 = vadd.f32 %v2422_v51, %v2243_v61  ;;  %2955 = vmatmul.bf16.gmra.mxu2 %v12658_v36 }
 0x339   : > { %3157 = vmatmul.bf16.gmra.mxu3 %v3036_v49 }
 0x33a   : > { %v2513_v55 = vadd.f32 %v12504_v39, %v2477_v21  ;;  %v15215_v21 = vld [vmem:[#allocation17_spill] sm:$0xff] }
 0x33c   : > { %v2545_v38 = vmax.f32 %v2513_v55, 0.0  ;;  %v15216_v55 = vld [vmem:[#allocation16_spill] sm:$0xff] }
 0x33d   : > { %v2784_v59 = vpop.f32.mrf.mxu1  ;;  %v2611_v31 = vld [vmem:[#allocation2 + $0x127] sm:$0xff] }
 0x33e   : > { %2578 = vst [vmem:[#allocation2 + $0x130] sm:$0xff] %v2545_v38  ;;  %v2698_v62 = vpack.c.bf16 %v2545_v38, %v2544_v5  ;;  %v1778_v38 = vadd.f32 %v15216_v55, %v15215_v21 }
 0x33f   : > { %v2425_v60 = vpop.f32.mrf.mxu0 }
 0x340   : > { %v2478_v25 = vadd.f32 %v2425_v60, %v12349_v54  ;;  %2823 = vmatmul.bf16.gmra.mxu1 %v2698_v62  ;;  %v15217_v62 = vld [vmem:[#allocation18_spill] sm:$0xff]  ;;  %v2013_v26 = vadd.f32 %v12376_v52, %v1778_v38 }
 0x342   : > { %v2514_v4 = vadd.f32 %v12504_v39, %v2478_v25  ;;  %3356 = vmatmul.bf16.gmra.mxu0 %v12535_v18 }
 0x344   : > { %v2546_v2 = vmax.f32 %v2514_v4, 0.0 }
 0x345   : > { %v2612_v41 = vld [vmem:[#allocation2 + $0x12f] sm:$0xff]  ;;  %v2786_v54 = vpop.f32.mrf.mxu1 }
 0x346   : > { %v3014_v35 = vld [vmem:[#allocation2 + $0x129] sm:$0xff]  ;;  %v3015_v27 = vld [vmem:[#allocation2 + $0x131] sm:$0xff]  ;;  %2579 = vst [vmem:[#allocation2 + $0x148] sm:$0xff] %v2546_v2  ;;  %v12682_v17 = vpack.c.bf16 %v2612_v41, %v2611_v31 }
 0x347   : > { %v3037_v12 = vpack.c.bf16 %v3015_v27, %v3014_v35  ;;  %v2427_v20 = vpop.f32.mrf.mxu0  ;;  %v15218_v41 = vld [vmem:[#allocation19_spill] sm:$0xff] }
 0x348   : > { %v2479_v5 = vadd.f32 %v2427_v20, %v2245_v63  ;;  %2960 = vmatmul.bf16.gmra.mxu2 %v12682_v17  ;;  %v2247_v35 = vadd.f32 %v15218_v41, %v2013_v26 }
 0x349   : > { %3162 = vmatmul.bf16.gmra.mxu3 %v3037_v12 }
 0x34a   : > { %v2515_v18 = vadd.f32 %v12504_v39, %v2479_v5 }
 0x34b   : > { %v2921_v28 = vpop.f32.mrf.mxu2 }
 0x34c   : > { %v3123_v15 = vpop.f32.mrf.mxu3  ;;  %v2547_v19 = vmax.f32 %v2515_v18, 0.0  ;;  %v2922_v53 = vadd.f32 %v2921_v28, %v2784_v59 }
 0x34d   : > { %v2789_v29 = vpop.f32.mrf.mxu1  ;;  %v2613_v50 = vld [vmem:[#allocation2 + $0x147] sm:$0xff] }
 0x34e   : > { %2580 = vst [vmem:[#allocation2 + $0x150] sm:$0xff] %v2547_v19  ;;  %v12686_v61 = vadd.f32 %v3123_v15, %v2922_v53  ;;  %v2699_v49 = vpack.c.bf16 %v2547_v19, %v2546_v2  ;;  %v11249_v53 = vld [vmem:[%s15181_s3 + $0x148] sm:$0xff] }
 0x34f   : > { %v2430_v51 = vpop.f32.mrf.mxu0  ;;  %3817 = vmatpush.bf16.msrb.mxu2 %v11249_v53 }
 0x350   : > { %v2480_v3 = vadd.f32 %v2430_v51, %v15217_v62  ;;  %2828 = vmatmul.bf16.gmra.mxu1 %v2699_v49  ;;  %v11257_v49 = vld [vmem:[%s15181_s3 + $0x188] sm:$0xff] }
 0x351   : > { %v11241_v51 = vld [vmem:[%s15181_s3 + $0x108] sm:$0xff]  ;;  %4052 = vmatpush.bf16.msrb.mxu3 %v11257_v49 }
 0x352   : > { %v2516_v48 = vadd.f32 %v12504_v39, %v2480_v3  ;;  %3361 = vmatmul.bf16.gmra.mxu0 %v12556_v22  ;;  %3583 = vmatpush.bf16.msrb.mxu1 %v11241_v51 }
 0x353   : > { %v2923_v60 = vpop.f32.mrf.mxu2 }
 0x354   : > { %v3125_v59 = vpop.f32.mrf.mxu3  ;;  %v2548_v7 = vmax.f32 %v2516_v48, 0.0  ;;  %v2924_v25 = vadd.f32 %v2923_v60, %v2786_v54 }
 0x355   : > { %v2614_v0 = vld [vmem:[#allocation2 + $0x14f] sm:$0xff]  ;;  %v2791_v31 = vpop.f32.mrf.mxu1 }
 0x356   : > { %v3016_v4 = vld [vmem:[#allocation2 + $0x149] sm:$0xff]  ;;  %v3017_v2 = vld [vmem:[#allocation2 + $0x151] sm:$0xff]  ;;  %2581 = vst [vmem:[#allocation2 + $0x168] sm:$0xff] %v2548_v7  ;;  %v12695_v27 = vadd.f32 %v3125_v59, %v2924_v25  ;;  %v12697_v42 = vpack.c.bf16 %v2614_v0, %v2613_v50 }
 0x357   : > { %v3038_v52 = vpack.c.bf16 %v3017_v2, %v3016_v4  ;;  %v2432_v63 = vpop.f32.mrf.mxu0 }
 0x358   : > { %v2481_v12 = vadd.f32 %v2432_v63, %v2247_v35  ;;  %2965 = vmatmul.bf16.gmra.mxu2 %v12697_v42 }
 0x359   : > { %3167 = vmatmul.bf16.gmra.mxu3 %v3038_v52 }
 0x35a   : > { %v2517_v22 = vadd.f32 %v12504_v39, %v2481_v12 }
 0x35b   : > { %v2926_v54 = vpop.f32.mrf.mxu2 }
 0x35c   : > { %v3128_v20 = vpop.f32.mrf.mxu3  ;;  %v2549_v5 = vmax.f32 %v2517_v22, 0.0  ;;  %v2927_v18 = vadd.f32 %v2926_v54, %v2789_v29  ;;  %v1780_v29 = vadd.f32 %v12381_v11, %v12384_v33  ;;  %v1782_v54 = vadd.f32 %v12394_v1, %v12397_v58 }
 0x35d   : > { %v2794_v28 = vpop.f32.mrf.mxu1  ;;  %v2615_v59 = vld [vmem:[#allocation2 + $0x167] sm:$0xff] }
 0x35e   : > { %2582 = vst [vmem:[#allocation2 + $0x170] sm:$0xff] %v2549_v5  ;;  %v12701_v15 = vadd.f32 %v3128_v20, %v2927_v18  ;;  %v2700_v19 = vpack.c.bf16 %v2549_v5, %v2548_v7  ;;  %v2015_v38 = vadd.f32 %v12388_v16, %v1780_v29  ;;  %v2017_v5 = vadd.f32 %v12410_v32, %v1782_v54 }
 0x35f   : > { %v2435_v21 = vpop.f32.mrf.mxu0 }
 0x360   : > { %v2482_v55 = vadd.f32 %v2435_v21, %v12386_v8  ;;  %2833 = vmatmul.bf16.gmra.mxu1 %v2700_v19  ;;  %v2249_v8 = vadd.f32 %v12390_v44, %v2015_v38  ;;  %v2251_v1 = vadd.f32 %v12412_v30, %v2017_v5 }
 0x362   : > { %v2518_v62 = vadd.f32 %v12504_v39, %v2482_v55  ;;  %3366 = vmatmul.bf16.gmra.mxu0 %v12569_v47 }
 0x363   : > { %v2928_v3 = vpop.f32.mrf.mxu2 }
 0x364   : > { %v3130_v26 = vpop.f32.mrf.mxu3  ;;  %v2550_v48 = vmax.f32 %v2518_v62, 0.0  ;;  %v2929_v60 = vadd.f32 %v2928_v3, %v2791_v31 }
 0x365   : > { %v2616_v7 = vld [vmem:[#allocation2 + $0x16f] sm:$0xff]  ;;  %v2796_v33 = vpop.f32.mrf.mxu1 }
 0x366   : > { %v3018_v25 = vld [vmem:[#allocation2 + $0x169] sm:$0xff]  ;;  %v3019_v11 = vld [vmem:[#allocation2 + $0x171] sm:$0xff]  ;;  %2583 = vst [vmem:[#allocation2 + $0x188] sm:$0xff] %v2550_v48  ;;  %v12719_v50 = vadd.f32 %v3130_v26, %v2929_v60  ;;  %v12721_v0 = vpack.c.bf16 %v2616_v7, %v2615_v59 }
 0x367   : > { %v3039_v16 = vpack.c.bf16 %v3019_v11, %v3018_v25  ;;  %v2437_v4 = vpop.f32.mrf.mxu0  ;;  %v11248_v11 = vld [vmem:[%s15181_s3 + $0x140] sm:$0xff] }
 0x368   : > { %v2483_v2 = vadd.f32 %v2437_v4, %v2249_v8  ;;  %2970 = vmatmul.bf16.gmra.mxu2 %v12721_v0  ;;  %v11240_v8 = vld [vmem:[%s15181_s3 + $0x100] sm:$0xff]  ;;  %v1784_v4 = vadd.f32 %v12418_v6, %v12422_v24 }
 0x369   : > { %3172 = vmatmul.bf16.gmra.mxu3 %v3039_v16  ;;  %3818 = vmatpush.bf16.msrb.mxu2 %v11248_v11 }
 0x36a   : > { %v2519_v47 = vadd.f32 %v12504_v39, %v2483_v2  ;;  %v15219_v2 = vld [vmem:[#allocation20_spill] sm:$0xff]  ;;  %3584 = vmatpush.bf16.msrb.mxu1 %v11240_v8 }
 0x36b   : > { %v2931_v31 = vpop.f32.mrf.mxu2 }
 0x36c   : > { %v3133_v41 = vpop.f32.mrf.mxu3  ;;  %v2551_v35 = vmax.f32 %v2519_v47, 0.0  ;;  %v2932_v52 = vadd.f32 %v2931_v31, %v2794_v28  ;;  %v15220_v31 = vld [vmem:[#allocation21_spill] sm:$0xff] }
 0x36d   : > { %v2799_v63 = vpop.f32.mrf.mxu1  ;;  %v2617_v51 = vld [vmem:[#allocation2 + $0x187] sm:$0xff] }
 0x36e   : > { %2584 = vst [vmem:[#allocation2 + $0x190] sm:$0xff] %v2551_v35  ;;  %v12725_v44 = vadd.f32 %v3133_v41, %v2932_v52  ;;  %v2701_v12 = vpack.c.bf16 %v2551_v35, %v2550_v48  ;;  %v2019_v41 = vadd.f32 %v15220_v31, %v1784_v4 }
 0x36f   : > { %v2440_v22 = vpop.f32.mrf.mxu0 }
 0x370   : > { %v2484_v20 = vadd.f32 %v2440_v22, %v12399_v56  ;;  %2838 = vmatmul.bf16.gmra.mxu1 %v2701_v12 }
 0x372   : > { %v2520_v18 = vadd.f32 %v12504_v39, %v2484_v20  ;;  %3371 = vmatmul.bf16.gmra.mxu0 %v12596_v46 }
 0x373   : > { %v2933_v19 = vpop.f32.mrf.mxu2 }
 0x374   : > { %v3135_v28 = vpop.f32.mrf.mxu3  ;;  %v2552_v53 = vmax.f32 %v2520_v18, 0.0  ;;  %v2934_v49 = vadd.f32 %v2933_v19, %v2796_v33  ;;  %v11256_v33 = vld [vmem:[%s15181_s3 + $0x180] sm:$0xff] }
 0x375   : > { %v2618_v21 = vld [vmem:[#allocation2 + $0x18f] sm:$0xff]  ;;  %v2801_v38 = vpop.f32.mrf.mxu1  ;;  %4053 = vmatpush.bf16.msrb.mxu3 %v11256_v33  ;;  %v15221_v18 = vld [vmem:[#allocation22_spill] sm:$0xff] }
 0x376   : > { %v3020_v29 = vld [vmem:[#allocation2 + $0x189] sm:$0xff]  ;;  %v3021_v55 = vld [vmem:[#allocation2 + $0x191] sm:$0xff]  ;;  %2585 = vst [vmem:[#allocation2 + $0x1a8] sm:$0xff] %v2552_v53  ;;  %v12734_v58 = vadd.f32 %v3135_v28, %v2934_v49  ;;  %v12736_v56 = vpack.c.bf16 %v2618_v21, %v2617_v51  ;;  %v2253_v19 = vadd.f32 %v15221_v18, %v2019_v41 }
 0x377   : > { %v3040_v32 = vpack.c.bf16 %v3021_v55, %v3020_v29  ;;  %v2442_v62 = vpop.f32.mrf.mxu0 }
 0x378   : > { %v2485_v3 = vadd.f32 %v2442_v62, %v2251_v1  ;;  %2975 = vmatmul.bf16.gmra.mxu2 %v12736_v56 }
 0x379   : > { %3177 = vmatmul.bf16.gmra.mxu3 %v3040_v32 }
 0x37a   : > { %v2521_v46 = vadd.f32 %v12504_v39, %v2485_v3 }
 0x37b   : > { %v2936_v26 = vpop.f32.mrf.mxu2 }
 0x37c   : > { %v3138_v48 = vpop.f32.mrf.mxu3  ;;  %v2553_v60 = vmax.f32 %v2521_v46, 0.0  ;;  %v2937_v59 = vadd.f32 %v2936_v26, %v2799_v63  ;;  %v1786_v26 = vadd.f32 %v12447_v23, %v12451_v45 }
 0x37d   : > { %v2804_v7 = vpop.f32.mrf.mxu1  ;;  %v2619_v54 = vld [vmem:[#allocation2 + $0x1a7] sm:$0xff] }
 0x37e   : > { %2586 = vst [vmem:[#allocation2 + $0x1b0] sm:$0xff] %v2553_v60  ;;  %v12740_v30 = vadd.f32 %v3138_v48, %v2937_v59  ;;  %v2702_v25 = vpack.c.bf16 %v2553_v60, %v2552_v53  ;;  %v15222_v48 = vld [vmem:[#allocation23_spill] sm:$0xff]  ;;  %v15223_v59 = vld [vmem:[#allocation24_spill] sm:$0xff] }
 0x37f   : > { %v2445_v16 = vpop.f32.mrf.mxu0 }
 0x380   : > { %v2486_v47 = vadd.f32 %v2445_v16, %v15219_v2  ;;  %2843 = vmatmul.bf16.gmra.mxu1 %v2702_v25  ;;  %v2021_v25 = vadd.f32 %v15223_v59, %v1786_v26 }
 0x382   : > { %v2522_v35 = vadd.f32 %v12504_v39, %v2486_v47  ;;  %3376 = vmatmul.bf16.gmra.mxu0 %v12622_v13 }
 0x383   : > { %v2938_v52 = vpop.f32.mrf.mxu2 }
 0x384   : > { %v3140_v63 = vpop.f32.mrf.mxu3  ;;  %v2554_v12 = vmax.f32 %v2522_v35, 0.0  ;;  %v2939_v22 = vadd.f32 %v2938_v52, %v2801_v38  ;;  %v15224_v35 = vld [vmem:[#allocation25_spill] sm:$0xff] }
 0x385   : > { %v2620_v20 = vld [vmem:[#allocation2 + $0x1af] sm:$0xff]  ;;  %v2806_v24 = vpop.f32.mrf.mxu1  ;;  %v2255_v23 = vadd.f32 %v15224_v35, %v2021_v25 }
 0x386   : > { %v3022_v5 = vld [vmem:[#allocation2 + $0x1a9] sm:$0xff]  ;;  %v3023_v6 = vld [vmem:[#allocation2 + $0x1b1] sm:$0xff]  ;;  %2587 = vst [vmem:[#allocation2 + $0x1c8] sm:$0xff] %v2554_v12  ;;  %v12758_v28 = vadd.f32 %v3140_v63, %v2939_v22  ;;  %v12760_v53 = vpack.c.bf16 %v2620_v20, %v2619_v54 }
 0x387   : > { %v3041_v49 = vpack.c.bf16 %v3023_v6, %v3022_v5  ;;  %v2447_v51 = vpop.f32.mrf.mxu0  ;;  %v11271_v54 = vld [vmem:[%s15181_s3 + $0x1f8] sm:$0xff]  ;;  %v3465_v35 = vld [vmem:[#allocation2 + $0x30] sm:$0xff] }
 0x388   : > { %v2487_v21 = vadd.f32 %v2447_v51, %v2253_v19  ;;  %2980 = vmatmul.bf16.gmra.mxu2 %v12760_v53  ;;  %v11287_v20 = vld [vmem:[%s15185_s7 + $0x38] sm:$0xff]  ;;  %4280 = vmatpush.bf16.msra.mxu0 %v11271_v54 }
 0x389   : > { %3182 = vmatmul.bf16.gmra.mxu3 %v3041_v49 }
 0x38a   : > { %v2523_v13 = vadd.f32 %v12504_v39, %v2487_v21  ;;  %5017 = vmatpush.bf16.msra.mxu3 %v11287_v20 }
 0x38b   : > { %v2941_v29 = vpop.f32.mrf.mxu2 }
 0x38c   : > { %v3143_v55 = vpop.f32.mrf.mxu3  ;;  %v2555_v38 = vmax.f32 %v2523_v13, 0.0  ;;  %v2942_v1 = vadd.f32 %v2941_v29, %v2804_v7  ;;  %v11279_v13 = vld [vmem:[%s15181_s3 + $0x238] sm:$0xff] }
 0x38d   : > { %v2809_v32 = vpop.f32.mrf.mxu1  ;;  %v2621_v4 = vld [vmem:[#allocation2 + $0x1c7] sm:$0xff]  ;;  %4514 = vmatpush.bf16.msra.mxu1 %v11279_v13 }
 0x38e   : > { %2588 = vst [vmem:[#allocation2 + $0x1d0] sm:$0xff] %v2555_v38  ;;  %v12764_v62 = vadd.f32 %v3143_v55, %v2942_v1  ;;  %v2703_v3 = vpack.c.bf16 %v2555_v38, %v2554_v12  ;;  %v15225_v55 = vld [vmem:[#allocation26_spill] sm:$0xff]  ;;  %v15226_v1 = vld [vmem:[#allocation27_spill] sm:$0xff] }
 0x38f   : > { %v2450_v46 = vpop.f32.mrf.mxu0  ;;  %v1788_v38 = vadd.f32 %v12606_v40, %v15225_v55 }
 0x390   : > { %v2488_v60 = vadd.f32 %v2450_v46, %v15222_v48  ;;  %2848 = vmatmul.bf16.gmra.mxu1 %v2703_v3 }
 0x391   : > { %v2023_v46 = vadd.f32 %v12608_v57, %v1788_v38 }
 0x392   : > { %v2524_v11 = vadd.f32 %v12504_v39, %v2488_v60  ;;  %3381 = vmatmul.bf16.gmra.mxu0 %v12645_v14  ;;  %v11295_v14 = vld [vmem:[%s15185_s7 + $0x78] sm:$0xff] }
 0x393   : > { %v2943_v33 = vpop.f32.mrf.mxu2  ;;  %4880 = vmatpush.bf16.msra.mxu2 %v11295_v14  ;;  %v2257_v40 = vadd.f32 %v12613_v9, %v2023_v46 }
 0x394   : > { %v3145_v7 = vpop.f32.mrf.mxu3  ;;  %v2556_v8 = vmax.f32 %v2524_v11, 0.0  ;;  %v2944_v16 = vadd.f32 %v2943_v33, %v2806_v24 }
 0x395   : > { %v2622_v2 = vld [vmem:[#allocation2 + $0x1cf] sm:$0xff]  ;;  %v2811_v41 = vpop.f32.mrf.mxu1 }
 0x396   : > { %v3024_v47 = vld [vmem:[#allocation2 + $0x1c9] sm:$0xff]  ;;  %v3025_v31 = vld [vmem:[#allocation2 + $0x1d1] sm:$0xff]  ;;  %2589 = vst [vmem:[#allocation2 + $0x1e8] sm:$0xff] %v2556_v8  ;;  %v12773_v45 = vadd.f32 %v3145_v7, %v2944_v16  ;;  %v12775_v52 = vpack.c.bf16 %v2622_v2, %v2621_v4 }
 0x397   : > { %v3042_v63 = vpack.c.bf16 %v3025_v31, %v3024_v47  ;;  %v2452_v12 = vpop.f32.mrf.mxu0 }
 0x398   : > { %v2489_v22 = vadd.f32 %v2452_v12, %v2255_v23  ;;  %2985 = vmatmul.bf16.gmra.mxu2 %v12775_v52  ;;  %v3464_v12 = vld [vmem:[#allocation2 + $0x28] sm:$0xff] }
 0x399   : > { %3187 = vmatmul.bf16.gmra.mxu3 %v3042_v63  ;;  %v3496_v14 = vpack.c.bf16 %v3465_v35, %v3464_v12 }
 0x39a   : > { %v2525_v5 = vadd.f32 %v12504_v39, %v2489_v22 }
 0x39b   : > { %v2946_v6 = vpop.f32.mrf.mxu2 }
 0x39c   : > { %v3148_v24 = vpop.f32.mrf.mxu3  ;;  %v2557_v18 = vmax.f32 %v2525_v5, 0.0  ;;  %v2947_v19 = vadd.f32 %v2946_v6, %v2809_v32 }
 0x39d   : > { %v2814_v49 = vpop.f32.mrf.mxu1  ;;  %v2623_v25 = vld [vmem:[#allocation2 + $0x1e7] sm:$0xff] }
 0x39e   : > { %2590 = vst [vmem:[#allocation2 + $0x1f0] sm:$0xff] %v2557_v18  ;;  %v12788_v51 = vadd.f32 %v3148_v24, %v2947_v19  ;;  %v2704_v21 = vpack.c.bf16 %v2557_v18, %v2556_v8  ;;  %v3698_v24 = vld [vmem:[#allocation2 + $0x29] sm:$0xff]  ;;  %v3699_v18 = vld [vmem:[#allocation2 + $0x31] sm:$0xff] }
 0x39f   : > { %v2455_v29 = vpop.f32.mrf.mxu0  ;;  %v3934_v19 = vld [vmem:[#allocation2 + $0x4f] sm:$0xff]  ;;  %v3730_v55 = vpack.c.bf16 %v3699_v18, %v3698_v24 }
 0x3a0   : > { %v2490_v3 = vadd.f32 %v2455_v29, %v15226_v1  ;;  %2853 = vmatmul.bf16.gmra.mxu1 %v2704_v21 }
 0x3a2   : > { %v2526_v32 = vadd.f32 %v12504_v39, %v2490_v3  ;;  %3386 = vmatmul.bf16.gmra.mxu0 %v12658_v36  ;;  %v11469_v36 = vld [vmem:[%s15180_s2] ss:$0 sm:$0xff]  ;;  %v11286_v3 = vld [vmem:[%s15185_s7 + $0x30] sm:$0xff] }
 0x3a3   : > { %v2948_v26 = vpop.f32.mrf.mxu2  ;;  %5018 = vmatpush.bf16.msra.mxu3 %v11286_v3 }
 0x3a4   : > { %v3150_v48 = vpop.f32.mrf.mxu3  ;;  %v2558_v60 = vmax.f32 %v2526_v32, 0.0  ;;  %v2949_v59 = vadd.f32 %v2948_v26, %v2811_v41  ;;  %v3467_v26 = vld [vmem:[#allocation2 + $0x50] sm:$0xff] }
 0x3a5   : > { %v2624_v11 = vld [vmem:[#allocation2 + $0x1ef] sm:$0xff]  ;;  %v2816_v8 = vpop.f32.mrf.mxu1 }
 0x3a6   : > { %v3026_v33 = vld [vmem:[#allocation2 + $0x1e9] sm:$0xff]  ;;  %v3027_v7 = vld [vmem:[#allocation2 + $0x1f1] sm:$0xff]  ;;  %2591 = vst [vmem:[#allocation2 + $0x208] sm:$0xff] %v2558_v60  ;;  %v12800_v16 = vadd.f32 %v3150_v48, %v2949_v59  ;;  %v12802_v4 = vpack.c.bf16 %v2624_v11, %v2623_v25 }
 0x3a7   : > { %v3043_v57 = vpack.c.bf16 %v3027_v7, %v3026_v33  ;;  %v2457_v39 = vpop.f32.mrf.mxu0  ;;  %v3466_v59 = vld [vmem:[#allocation2 + $0x48] sm:$0xff]  ;;  %v11278_v33 = vld [vmem:[%s15181_s3 + $0x230] sm:$0xff] }
 0x3a8   : > { %v2491_v2 = vadd.f32 %v2457_v39, %v2257_v40  ;;  %2990 = vmatmul.bf16.gmra.mxu2 %v12802_v4  ;;  %v12829_v11 = vpack.c.bf16 %v3467_v26, %v3466_v59  ;;  %4515 = vmatpush.bf16.msra.mxu1 %v11278_v33  ;;  %v3700_v39 = vld [vmem:[#allocation2 + $0x49] sm:$0xff] }
 0x3a9   : > { %3192 = vmatmul.bf16.gmra.mxu3 %v3043_v57  ;;  %v11285_v59 = vld [vmem:[%s15185_s7 + $0x28] sm:$0xff] }
 0x3aa   : > { %v2527_v47 = vadd.f32 %v11469_v36, %v2491_v2  ;;  %v3701_v2 = vld [vmem:[#allocation2 + $0x51] sm:$0xff]  ;;  %5019 = vmatpush.bf16.msra.mxu3 %v11285_v59 }
 0x3ab   : > { %v2951_v31 = vpop.f32.mrf.mxu2  ;;  %v3936_v36 = vld [vmem:[#allocation2 + $0x6f] sm:$0xff] }
 0x3ac   : > { %v3153_v41 = vpop.f32.mrf.mxu3  ;;  %v2559_v9 = vmax.f32 %v2527_v47, 0.0  ;;  %v2952_v23 = vadd.f32 %v2951_v31, %v2814_v49  ;;  %v3933_v49 = vld [vmem:[#allocation2 + $0x47] sm:$0xff]  ;;  %v3707_v59 = vld [vmem:[#allocation2 + $0xb1] sm:$0xff] }
 0x3ad   : > { %v2819_v63 = vpop.f32.mrf.mxu1  ;;  %v3965_v38 = vpack.c.bf16 %v3934_v19, %v3933_v49  ;;  %v3935_v31 = vld [vmem:[#allocation2 + $0x67] sm:$0xff] }
 0x3ae   : > { %2592 = vst [vmem:[#allocation2 + $0x210] sm:$0xff] %v2559_v9  ;;  %v12808_v22 = vadd.f32 %v3153_v41, %v2952_v23  ;;  %v3731_v9 = vpack.c.bf16 %v3701_v2, %v3700_v39  ;;  %v3966_v23 = vpack.c.bf16 %v3936_v36, %v3935_v31  ;;  %v3470_v39 = vld [vmem:[#allocation2 + $0x88] sm:$0xff] }
 0x3af   : > { %v3352_v54 = vpop.f32.mrf.mxu0 }
 0x3b0   : > { %v12811_v20 = vadd.f32 %v3352_v54, %v12625_v34  ;;  %3585 = vmatmul.bf16.vlgmr.msrb.gmra.mxu1 %v3496_v14  ;;  %v11294_v34 = vld [vmem:[%s15185_s7 + $0x70] sm:$0xff] }
 0x3b1   : > { %4881 = vmatpush.bf16.msra.mxu2 %v11294_v34  ;;  %v3469_v14 = vld [vmem:[#allocation2 + $0x70] sm:$0xff] }
 0x3b2   : > { %3391 = vmatmul.bf16.gmra.mxu0 %v12682_v17  ;;  %v11270_v17 = vld [vmem:[%s15181_s3 + $0x1f0] sm:$0xff] }
 0x3b3   : > { %v2953_v5 = vpop.f32.mrf.mxu2  ;;  %4281 = vmatpush.bf16.msra.mxu0 %v11270_v17  ;;  %v3937_v17 = vld [vmem:[#allocation2 + $0x87] sm:$0xff] }
 0x3b4   : > { %v3155_v6 = vpop.f32.mrf.mxu3  ;;  %v2954_v21 = vadd.f32 %v2953_v5, %v2816_v8 }
 0x3b5   : > { %v2821_v13 = vpop.f32.mrf.mxu1 }
 0x3b6   : > { %v12814_v29 = vadd.f32 %v3155_v6, %v2954_v21  ;;  %v3468_v6 = vld [vmem:[#allocation2 + $0x68] sm:$0xff] }
 0x3b7   : > { %v12816_v1 = vpop.f32.mrf.mxu0  ;;  %v12846_v18 = vpack.c.bf16 %v3469_v14, %v3468_v6 }
 0x3b8   : > { %3819 = vmatmul.bf16.vlgmr.msrb.gmra.mxu2 %v3730_v55  ;;  %v3703_v55 = vld [vmem:[#allocation2 + $0x71] sm:$0xff] }
 0x3b9   : > { %4054 = vmatmul.bf16.vlgmr.msrb.gmra.mxu3 %v3965_v38  ;;  %v3938_v38 = vld [vmem:[#allocation2 + $0x8f] sm:$0xff] }
 0x3ba   : > { %v3967_v26 = vpack.c.bf16 %v3938_v38, %v3937_v17  ;;  %v3472_v17 = vld [vmem:[#allocation2 + $0xa8] sm:$0xff] }
 0x3bb   : > { %v2956_v46 = vpop.f32.mrf.mxu2 }
 0x3bc   : > { %v3158_v32 = vpop.f32.mrf.mxu3  ;;  %v2957_v48 = vadd.f32 %v2956_v46, %v2819_v63 }
 0x3bd   : > { %v2824_v60 = vpop.f32.mrf.mxu1 }
 0x3be   : > { %v12827_v25 = vadd.f32 %v3158_v32, %v2957_v48 }
 0x3bf   : > { %v3357_v7 = vpop.f32.mrf.mxu0 }
 0x3c0   : > { %v12835_v8 = vadd.f32 %v3357_v7, %v12686_v61  ;;  %3590 = vmatmul.bf16.gmra.mxu1 %v12829_v11 }
 0x3c2   : > { %3396 = vmatmul.bf16.gmra.mxu0 %v12697_v42 }
 0x3c3   : > { %v2958_v40 = vpop.f32.mrf.mxu2 }
 0x3c4   : > { %v3160_v57 = vpop.f32.mrf.mxu3  ;;  %v2959_v47 = vadd.f32 %v2958_v40, %v2821_v13  ;;  %v3702_v13 = vld [vmem:[#allocation2 + $0x69] sm:$0xff] }
 0x3c5   : > { %v2826_v41 = vpop.f32.mrf.mxu1  ;;  %v3732_v32 = vpack.c.bf16 %v3703_v55, %v3702_v13  ;;  %v3473_v55 = vld [vmem:[#allocation2 + $0xb0] sm:$0xff] }
 0x3c6   : > { %v12839_v35 = vadd.f32 %v3160_v57, %v2959_v47  ;;  %v11277_v47 = vld [vmem:[%s15181_s3 + $0x228] sm:$0xff] }
 0x3c7   : > { %v3359_v63 = vpop.f32.mrf.mxu0  ;;  %4516 = vmatpush.bf16.msra.mxu1 %v11277_v47 }
 0x3c8   : > { %v12842_v61 = vadd.f32 %v3359_v63, %v12695_v27  ;;  %3824 = vmatmul.bf16.gmra.mxu2 %v3731_v9  ;;  %v3704_v63 = vld [vmem:[#allocation2 + $0x89] sm:$0xff] }
 0x3c9   : > { %4059 = vmatmul.bf16.gmra.mxu3 %v3966_v23 }
 0x3cb   : > { %v2961_v12 = vpop.f32.mrf.mxu2 }
 0x3cc   : > { %v3163_v42 = vpop.f32.mrf.mxu3  ;;  %v2962_v54 = vadd.f32 %v2961_v12, %v2824_v60  ;;  %v11269_v60 = vld [vmem:[%s15181_s3 + $0x1e8] sm:$0xff]  ;;  %v3705_v12 = vld [vmem:[#allocation2 + $0x91] sm:$0xff] }
 0x3cd   : > { %v2829_v5 = vpop.f32.mrf.mxu1  ;;  %4282 = vmatpush.bf16.msra.mxu0 %v11269_v60  ;;  %v3706_v60 = vld [vmem:[#allocation2 + $0xa9] sm:$0xff] }
 0x3ce   : > { %v12844_v24 = vadd.f32 %v3163_v42, %v2962_v54  ;;  %v3940_v42 = vld [vmem:[#allocation2 + $0xaf] sm:$0xff]  ;;  %v3939_v54 = vld [vmem:[#allocation2 + $0xa7] sm:$0xff] }
 0x3cf   : > { %v3362_v19 = vpop.f32.mrf.mxu0 }
 0x3d0   : > { %v12849_v21 = vadd.f32 %v3362_v19, %v12701_v15  ;;  %3595 = vmatmul.bf16.gmra.mxu1 %v12846_v18  ;;  %v3733_v19 = vpack.c.bf16 %v3705_v12, %v3704_v63 }
 0x3d2   : > { %3401 = vmatmul.bf16.gmra.mxu0 %v12721_v0  ;;  %v11293_v0 = vld [vmem:[%s15185_s7 + $0x68] sm:$0xff] }
 0x3d3   : > { %v2963_v27 = vpop.f32.mrf.mxu2  ;;  %4882 = vmatpush.bf16.msra.mxu2 %v11293_v0 }
 0x3d4   : > { %v3165_v49 = vpop.f32.mrf.mxu3  ;;  %v2964_v34 = vadd.f32 %v2963_v27, %v2826_v41  ;;  %v3968_v27 = vpack.c.bf16 %v3940_v42, %v3939_v54  ;;  %v3474_v54 = vld [vmem:[#allocation2 + $0xc8] sm:$0xff] }
 0x3d5   : > { %v2831_v3 = vpop.f32.mrf.mxu1 }
 0x3d6   : > { %v12853_v46 = vadd.f32 %v3165_v49, %v2964_v34 }
 0x3d7   : > { %v3364_v48 = vpop.f32.mrf.mxu0 }
 0x3d8   : > { %v12856_v15 = vadd.f32 %v3364_v48, %v12719_v50  ;;  %3829 = vmatmul.bf16.gmra.mxu2 %v3732_v32  ;;  %v3471_v50 = vld [vmem:[#allocation2 + $0x90] sm:$0xff] }
 0x3d9   : > { %4064 = vmatmul.bf16.gmra.mxu3 %v3967_v26  ;;  %v12869_v36 = vpack.c.bf16 %v3471_v50, %v3470_v39  ;;  %v3941_v50 = vld [vmem:[#allocation2 + $0xc7] sm:$0xff]  ;;  %v3734_v39 = vpack.c.bf16 %v3707_v59, %v3706_v60 }
 0x3db   : > { %v2966_v33 = vpop.f32.mrf.mxu2 }
 0x3dc   : > { %v3168_v7 = vpop.f32.mrf.mxu3  ;;  %v2967_v40 = vadd.f32 %v2966_v33, %v2829_v5  ;;  %v3942_v33 = vld [vmem:[#allocation2 + $0xcf] sm:$0xff] }
 0x3dd   : > { %v2834_v57 = vpop.f32.mrf.mxu1  ;;  %v3969_v47 = vpack.c.bf16 %v3942_v33, %v3941_v50 }
 0x3de   : > { %v12867_v2 = vadd.f32 %v3168_v7, %v2967_v40 }
 0x3df   : > { %v3367_v31 = vpop.f32.mrf.mxu0 }
 0x3e0   : > { %v12875_v41 = vadd.f32 %v3367_v31, %v12725_v44  ;;  %3600 = vmatmul.bf16.gmra.mxu1 %v12869_v36 }
 0x3e2   : > { %3406 = vmatmul.bf16.gmra.mxu0 %v12736_v56 }
 0x3e3   : > { %v2968_v9 = vpop.f32.mrf.mxu2 }
 0x3e4   : > { %v3170_v23 = vpop.f32.mrf.mxu3  ;;  %v2969_v14 = vadd.f32 %v2968_v9, %v2831_v3  ;;  %v12886_v3 = vpack.c.bf16 %v3473_v55, %v3472_v17  ;;  %v11268_v9 = vld [vmem:[%s15181_s3 + $0x1e0] sm:$0xff]  ;;  %v3944_v17 = vld [vmem:[#allocation2 + $0xef] sm:$0xff] }
 0x3e5   : > { %v2836_v5 = vpop.f32.mrf.mxu1  ;;  %4283 = vmatpush.bf16.msra.mxu0 %v11268_v9 }
 0x3e6   : > { %v12879_v6 = vadd.f32 %v3170_v23, %v2969_v14  ;;  %v11284_v23 = vld [vmem:[%s15185_s7 + $0x20] sm:$0xff] }
 0x3e7   : > { %v3369_v49 = vpop.f32.mrf.mxu0  ;;  %5020 = vmatpush.bf16.msra.mxu3 %v11284_v23  ;;  %v3476_v23 = vld [vmem:[#allocation2 + $0xe8] sm:$0xff] }
 0x3e8   : > { %v12882_v44 = vadd.f32 %v3369_v49, %v12734_v58  ;;  %3834 = vmatmul.bf16.gmra.mxu2 %v3733_v19 }
 0x3e9   : > { %4069 = vmatmul.bf16.gmra.mxu3 %v3968_v27  ;;  %v11276_v27 = vld [vmem:[%s15181_s3 + $0x220] sm:$0xff] }
 0x3ea   : > { %4517 = vmatpush.bf16.msra.mxu1 %v11276_v27  ;;  %v3710_v27 = vld [vmem:[#allocation2 + $0xe9] sm:$0xff] }
 0x3eb   : > { %v2971_v13 = vpop.f32.mrf.mxu2 }
 0x3ec   : > { %v3173_v56 = vpop.f32.mrf.mxu3  ;;  %v2972_v38 = vadd.f32 %v2971_v13, %v2834_v57 }
 0x3ed   : > { %v2839_v34 = vpop.f32.mrf.mxu1 }
 0x3ee   : > { %v12884_v32 = vadd.f32 %v3173_v56, %v2972_v38  ;;  %v3708_v56 = vld [vmem:[#allocation2 + $0xc9] sm:$0xff] }
 0x3ef   : > { %v3372_v26 = vpop.f32.mrf.mxu0 }
 0x3f0   : > { %v12889_v48 = vadd.f32 %v3372_v26, %v12740_v30  ;;  %3605 = vmatmul.bf16.gmra.mxu1 %v12886_v3  ;;  %v11267_v26 = vld [vmem:[%s15181_s3 + $0x1d8] sm:$0xff] }
 0x3f1   : > { %4284 = vmatpush.bf16.msra.mxu0 %v11267_v26 }
 0x3f2   : > { %3411 = vmatmul.bf16.gmra.mxu0 %v12760_v53  ;;  %v11292_v53 = vld [vmem:[%s15185_s7 + $0x60] sm:$0xff] }
 0x3f3   : > { %v2973_v58 = vpop.f32.mrf.mxu2  ;;  %4883 = vmatpush.bf16.msra.mxu2 %v11292_v53 }
 0x3f4   : > { %v3175_v0 = vpop.f32.mrf.mxu3  ;;  %v2974_v7 = vadd.f32 %v2973_v58, %v2836_v5 }
 0x3f5   : > { %v2841_v40 = vpop.f32.mrf.mxu1 }
 0x3f6   : > { %v12893_v57 = vadd.f32 %v3175_v0, %v2974_v7  ;;  %v3943_v0 = vld [vmem:[#allocation2 + $0xe7] sm:$0xff] }
 0x3f7   : > { %v3374_v31 = vpop.f32.mrf.mxu0  ;;  %v3970_v33 = vpack.c.bf16 %v3944_v17, %v3943_v0 }
 0x3f8   : > { %v12896_v30 = vadd.f32 %v3374_v31, %v12758_v28  ;;  %3839 = vmatmul.bf16.gmra.mxu2 %v3734_v39  ;;  %v3475_v28 = vld [vmem:[#allocation2 + $0xd0] sm:$0xff]  ;;  %v11265_v31 = vld [vmem:[%s15181_s3 + $0x1c8] sm:$0xff] }
 0x3f9   : > { %4074 = vmatmul.bf16.gmra.mxu3 %v3969_v47  ;;  %v12909_v19 = vpack.c.bf16 %v3475_v28, %v3474_v54  ;;  %v3477_v47 = vld [vmem:[#allocation2 + $0xf0] sm:$0xff]  ;;  %v11264_v28 = vld [vmem:[%s15181_s3 + $0x1c0] sm:$0xff] }
 0x3fb   : > { %v2976_v63 = vpop.f32.mrf.mxu2 }
 0x3fc   : > { %v3178_v12 = vpop.f32.mrf.mxu3  ;;  %v2977_v42 = vadd.f32 %v2976_v63, %v2839_v34  ;;  %v3709_v34 = vld [vmem:[#allocation2 + $0xd1] sm:$0xff] }
 0x3fd   : > { %v2844_v14 = vpop.f32.mrf.mxu1  ;;  %v3735_v59 = vpack.c.bf16 %v3709_v34, %v3708_v56  ;;  %v3946_v56 = vld [vmem:[#allocation2 + $0x10f] sm:$0xff] }
 0x3fe   : > { %v12907_v5 = vadd.f32 %v3178_v12, %v2977_v42  ;;  %v12935_v12 = vpack.c.bf16 %v3477_v47, %v3476_v23 }
 0x3ff   : > { %v3377_v49 = vpop.f32.mrf.mxu0 }
 0x400   : > { %v12915_v13 = vadd.f32 %v3377_v49, %v12764_v62  ;;  %3610 = vmatmul.bf16.gmra.mxu1 %v12909_v19  ;;  %v3711_v49 = vld [vmem:[#allocation2 + $0xf1] sm:$0xff] }
 0x401   : > { %v3736_v26 = vpack.c.bf16 %v3711_v49, %v3710_v27  ;;  %v3712_v27 = vld [vmem:[#allocation2 + $0x109] sm:$0xff]  ;;  %v3713_v49 = vld [vmem:[#allocation2 + $0x111] sm:$0xff] }
 0x402   : > { %3416 = vmatmul.bf16.gmra.mxu0 %v12775_v52  ;;  %v11266_v52 = vld [vmem:[%s15181_s3 + $0x1d0] sm:$0xff] }
 0x403   : > { %v2978_v55 = vpop.f32.mrf.mxu2  ;;  %4285 = vmatpush.bf16.msra.mxu0 %v11266_v52 }
 0x404   : > { %v3180_v38 = vpop.f32.mrf.mxu3  ;;  %v2979_v58 = vadd.f32 %v2978_v55, %v2841_v40 }
 0x405   : > { %v2846_v60 = vpop.f32.mrf.mxu1 }
 0x406   : > { %v12922_v62 = vadd.f32 %v3180_v38, %v2979_v58  ;;  %v3945_v38 = vld [vmem:[#allocation2 + $0x107] sm:$0xff] }
 0x407   : > { %v3379_v7 = vpop.f32.mrf.mxu0  ;;  %4286 = vmatpush.bf16.msra.mxu0 %v11265_v31  ;;  %v3971_v58 = vpack.c.bf16 %v3946_v56, %v3945_v38  ;;  %v3948_v56 = vld [vmem:[#allocation2 + $0x12f] sm:$0xff]  ;;  %v3947_v38 = vld [vmem:[#allocation2 + $0x127] sm:$0xff] }
 0x408   : > { %v12928_v50 = vadd.f32 %v3379_v7, %v12773_v45  ;;  %3844 = vmatmul.bf16.gmra.mxu2 %v3735_v59  ;;  %v3479_v7 = vld [vmem:[#allocation2 + $0x110] sm:$0xff] }
 0x409   : > { %4079 = vmatmul.bf16.gmra.mxu3 %v3970_v33 }
 0x40b   : > { %v2981_v39 = vpop.f32.mrf.mxu2  ;;  %4287 = vmatpush.bf16.msra.mxu0 %v11264_v28 }
 0x40c   : > { %v3183_v40 = vpop.f32.mrf.mxu3  ;;  %v2982_v53 = vadd.f32 %v2981_v39, %v2844_v14  ;;  %v3261_v39 = vld [vmem:[#allocation2 + $0x20f] sm:$0xff] }
 0x40d   : > { %v2849_v9 = vpop.f32.mrf.mxu1 }
 0x40e   : > { %v12933_v63 = vadd.f32 %v3183_v40, %v2982_v53  ;;  %v11275_v53 = vld [vmem:[%s15181_s3 + $0x218] sm:$0xff] }
 0x40f   : > { %v3382_v45 = vpop.f32.mrf.mxu0  ;;  %4518 = vmatpush.bf16.msra.mxu1 %v11275_v53 }
 0x410   : > { %v12941_v42 = vadd.f32 %v3382_v45, %v12788_v51  ;;  %3615 = vmatmul.bf16.gmra.mxu1 %v12935_v12  ;;  %v3260_v45 = vld [vmem:[#allocation2 + $0x207] sm:$0xff] }
 0x412   : > { %3421 = vmatmul.bf16.gmra.mxu0 %v12802_v4  ;;  %v11291_v4 = vld [vmem:[%s15185_s7 + $0x58] sm:$0xff] }
 0x413   : > { %v2983_v14 = vpop.f32.mrf.mxu2  ;;  %4884 = vmatpush.bf16.msra.mxu2 %v11291_v4 }
 0x414   : > { %v3185_v54 = vpop.f32.mrf.mxu3  ;;  %v2984_v55 = vadd.f32 %v2983_v14, %v2846_v60  ;;  %v11283_v60 = vld [vmem:[%s15185_s7 + $0x18] sm:$0xff]  ;;  %v12966_v14 = vpack.c.bf16 %v3261_v39, %v3260_v45 }
 0x415   : > { %v2851_v34 = vpop.f32.mrf.mxu1  ;;  %5021 = vmatpush.bf16.msra.mxu3 %v11283_v60 }
 0x416   : > { %v12945_v17 = vadd.f32 %v3185_v54, %v2984_v55 }
 0x417   : > { %v3384_v0 = vpop.f32.mrf.mxu0 }
 0x418   : > { %v12948_v51 = vadd.f32 %v3384_v0, %v12800_v16  ;;  %3849 = vmatmul.bf16.gmra.mxu2 %v3736_v26  ;;  %v3478_v16 = vld [vmem:[#allocation2 + $0x108] sm:$0xff]  ;;  %v3737_v0 = vpack.c.bf16 %v3713_v49, %v3712_v27 }
 0x419   : > { %4084 = vmatmul.bf16.gmra.mxu3 %v3971_v58  ;;  %v12958_v31 = vpack.c.bf16 %v3479_v7, %v3478_v16  ;;  %v3481_v7 = vld [vmem:[#allocation2 + $0x130] sm:$0xff]  ;;  %v3480_v16 = vld [vmem:[#allocation2 + $0x128] sm:$0xff] }
 0x41a   : > { %v12980_v45 = vpack.c.bf16 %v3481_v7, %v3480_v16  ;;  %v3714_v49 = vld [vmem:[#allocation2 + $0x129] sm:$0xff] }
 0x41b   : > { %v2986_v59 = vpop.f32.mrf.mxu2  ;;  %v3483_v7 = vld [vmem:[#allocation2 + $0x150] sm:$0xff]  ;;  %v3482_v16 = vld [vmem:[#allocation2 + $0x148] sm:$0xff] }
 0x41c   : > { %v3188_v33 = vpop.f32.mrf.mxu3  ;;  %v2987_v52 = vadd.f32 %v2986_v59, %v2849_v9 }
 0x41d   : > { %v2854_v40 = vpop.f32.mrf.mxu1 }
 0x41e   : > { %v12956_v47 = vadd.f32 %v3188_v33, %v2987_v52 }
 0x41f   : > { %v3387_v23 = vpop.f32.mrf.mxu0 }
 0x420   : > { %v12964_v28 = vadd.f32 %v3387_v23, %v12808_v22  ;;  %3620 = vmatmul.bf16.gmra.mxu1 %v12958_v31  ;;  %v3972_v22 = vpack.c.bf16 %v3948_v56, %v3947_v38 }
 0x422   : > { %3426 = vmatmul.bf16.gmra.mxu0 %v12966_v14 }
 0x423   : > { %v2988_v9 = vpop.f32.mrf.mxu2 }
 0x424   : > { %v3190_v54 = vpop.f32.mrf.mxu3  ;;  %v2989_v55 = vadd.f32 %v2988_v9, %v2851_v34  ;;  %v2919_v34 = vadd.f32 %v12677_v10, %v12655_v43  ;;  %v3715_v43 = vld [vmem:[#allocation2 + $0x131] sm:$0xff] }
 0x425   : > { %v2856_v26 = vpop.f32.mrf.mxu1  ;;  %v3950_v10 = vld [vmem:[#allocation2 + $0x14f] sm:$0xff] }
 0x426   : > { %v12970_v58 = vadd.f32 %v3190_v54, %v2989_v55  ;;  %v3199_v54 = vadd.f32 %v12679_v37, %v2919_v34  ;;  %v3949_v55 = vld [vmem:[#allocation2 + $0x147] sm:$0xff] }
 0x427   : > { %v3389_v4 = vpop.f32.mrf.mxu0 }
 0x428   : > { %v12973_v60 = vadd.f32 %v3389_v4, %v12814_v29  ;;  %3854 = vmatmul.bf16.gmra.mxu2 %v3737_v0  ;;  %v3433_v56 = vadd.f32 %v12816_v1, %v3199_v54  ;;  %v11282_v1 = vld [vmem:[%s15185_s7 + $0x10] sm:$0xff] }
 0x429   : > { %4089 = vmatmul.bf16.gmra.mxu3 %v3972_v22  ;;  %v3973_v22 = vpack.c.bf16 %v3950_v10, %v3949_v55  ;;  %v11274_v54 = vld [vmem:[%s15181_s3 + $0x210] sm:$0xff] }
 0x42a   : > { %5022 = vmatpush.bf16.msra.mxu3 %v11282_v1  ;;  %4519 = vmatpush.bf16.msra.mxu1 %v11274_v54  ;;  %v3717_v10 = vld [vmem:[#allocation2 + $0x151] sm:$0xff] }
 0x42b   : > { %v2991_v59 = vpop.f32.mrf.mxu2 }
 0x42c   : > { %v3193_v33 = vpop.f32.mrf.mxu3  ;;  %v2992_v52 = vadd.f32 %v2991_v59, %v2854_v40 }
 0x42d   : > { %v3586_v39 = vpop.f32.mrf.mxu1 }
 0x42e   : > { %v12977_v53 = vadd.f32 %v3193_v33, %v2992_v52  ;;  %v3666_v23 = vadd.f32 %v3586_v39, %v12811_v20 }
 0x42f   : > { %v3392_v9 = vpop.f32.mrf.mxu0 }
 0x430   : > { %v12983_v29 = vadd.f32 %v3392_v9, %v12827_v25  ;;  %3625 = vmatmul.bf16.gmra.mxu1 %v12980_v45  ;;  %v3738_v25 = vpack.c.bf16 %v3715_v43, %v3714_v49  ;;  %v13003_v9 = vpack.c.bf16 %v3483_v7, %v3482_v16  ;;  %v3716_v43 = vld [vmem:[#allocation2 + $0x149] sm:$0xff] }
 0x432   : > { %4288 = vmatmul.bf16.vlgmr.msra.gmra.mxu0 %v12829_v11  ;;  %v11290_v11 = vld [vmem:[%s15185_s7 + $0x50] sm:$0xff] }
 0x433   : > { %v2993_v40 = vpop.f32.mrf.mxu2  ;;  %4885 = vmatpush.bf16.msra.mxu2 %v11290_v11 }
 0x434   : > { %v3195_v27 = vpop.f32.mrf.mxu3  ;;  %v2994_v20 = vadd.f32 %v2993_v40, %v2856_v26 }
 0x435   : > { %v3588_v38 = vpop.f32.mrf.mxu1 }
 0x436   : > { %v12989_v0 = vadd.f32 %v3195_v27, %v2994_v20  ;;  %v3667_v4 = vadd.f32 %v3588_v38, %v3433_v56  ;;  %v3951_v20 = vld [vmem:[#allocation2 + $0x167] sm:$0xff] }
 0x437   : > { %v3394_v59 = vpop.f32.mrf.mxu0 }
 0x438   : > { %v12992_v37 = vadd.f32 %v3394_v59, %v12839_v35  ;;  %3859 = vmatmul.bf16.gmra.mxu2 %v3738_v25  ;;  %v3739_v25 = vpack.c.bf16 %v3717_v10, %v3716_v43  ;;  %v3953_v10 = vld [vmem:[#allocation2 + $0x187] sm:$0xff] }
 0x439   : > { %4094 = vmatmul.bf16.gmra.mxu3 %v3973_v22 }
 0x43b   : > { %v3820_v26 = vpop.f32.mrf.mxu2 }
 0x43c   : > { %v4055_v33 = vpop.f32.mrf.mxu3  ;;  %v3900_v52 = vadd.f32 %v3820_v26, %v3666_v23  ;;  %v3485_v26 = vld [vmem:[#allocation2 + $0x170] sm:$0xff] }
 0x43d   : > { %v3591_v39 = vpop.f32.mrf.mxu1 }
 0x43e   : > { %v13000_v35 = vadd.f32 %v4055_v33, %v3900_v52  ;;  %v3668_v34 = vadd.f32 %v3591_v39, %v12835_v8  ;;  %v3952_v8 = vld [vmem:[#allocation2 + $0x16f] sm:$0xff] }
 0x43f   : > { %v3397_v40 = vpop.f32.mrf.mxu0  ;;  %v3974_v22 = vpack.c.bf16 %v3952_v8, %v3951_v20 }
 0x440   : > { %v13009_v27 = vadd.f32 %v3397_v40, %v12844_v24  ;;  %3630 = vmatmul.bf16.gmra.mxu1 %v13003_v9 }
 0x442   : > { %4293 = vmatmul.bf16.gmra.mxu0 %v12846_v18 }
 0x443   : > { %v3822_v23 = vpop.f32.mrf.mxu2 }
 0x444   : > { %v4057_v49 = vpop.f32.mrf.mxu3  ;;  %v3901_v56 = vadd.f32 %v3822_v23, %v3667_v4  ;;  %v3484_v4 = vld [vmem:[#allocation2 + $0x168] sm:$0xff] }
 0x445   : > { %v3593_v55 = vpop.f32.mrf.mxu1  ;;  %v13022_v16 = vpack.c.bf16 %v3485_v26, %v3484_v4  ;;  %v3718_v23 = vld [vmem:[#allocation2 + $0x169] sm:$0xff] }
 0x446   : > { %v13013_v38 = vadd.f32 %v4057_v49, %v3901_v56  ;;  %v3669_v24 = vadd.f32 %v3593_v55, %v12842_v61  ;;  %v3954_v49 = vld [vmem:[#allocation2 + $0x18f] sm:$0xff] }
 0x447   : > { %v3399_v59 = vpop.f32.mrf.mxu0  ;;  %v3975_v20 = vpack.c.bf16 %v3954_v49, %v3953_v10  ;;  %v3486_v26 = vld [vmem:[#allocation2 + $0x188] sm:$0xff] }
 0x448   : > { %v13017_v11 = vadd.f32 %v3399_v59, %v12853_v46  ;;  %3864 = vmatmul.bf16.gmra.mxu2 %v3739_v25  ;;  %v11273_v4 = vld [vmem:[%s15181_s3 + $0x208] sm:$0xff] }
 0x449   : > { %4099 = vmatmul.bf16.gmra.mxu3 %v3974_v22  ;;  %v11281_v22 = vld [vmem:[%s15185_s7 + $0x8] sm:$0xff]  ;;  %4520 = vmatpush.bf16.msra.mxu1 %v11273_v4 }
 0x44a   : > { %5023 = vmatpush.bf16.msra.mxu3 %v11281_v22 }
 0x44b   : > { %v3825_v18 = vpop.f32.mrf.mxu2 }
 0x44c   : > { %v4060_v1 = vpop.f32.mrf.mxu3  ;;  %v3902_v33 = vadd.f32 %v3825_v18, %v3668_v34  ;;  %v3719_v34 = vld [vmem:[#allocation2 + $0x171] sm:$0xff] }
 0x44d   : > { %v3596_v7 = vpop.f32.mrf.mxu1  ;;  %v3487_v18 = vld [vmem:[#allocation2 + $0x190] sm:$0xff] }
 0x44e   : > { %v13019_v52 = vadd.f32 %v4060_v1, %v3902_v33  ;;  %v3670_v39 = vadd.f32 %v3596_v7, %v12849_v21  ;;  %v3740_v21 = vpack.c.bf16 %v3719_v34, %v3718_v23  ;;  %v13044_v7 = vpack.c.bf16 %v3487_v18, %v3486_v26  ;;  %v3720_v23 = vld [vmem:[#allocation2 + $0x189] sm:$0xff]  ;;  %v3721_v34 = vld [vmem:[#allocation2 + $0x191] sm:$0xff] }
 0x44f   : > { %v3402_v54 = vpop.f32.mrf.mxu0 }
 0x450   : > { %v13025_v61 = vadd.f32 %v3402_v54, %v12867_v2  ;;  %3635 = vmatmul.bf16.gmra.mxu1 %v13022_v16 }
 0x452   : > { %4298 = vmatmul.bf16.gmra.mxu0 %v12869_v36  ;;  %v11289_v36 = vld [vmem:[%s15185_s7 + $0x48] sm:$0xff] }
 0x453   : > { %v3827_v46 = vpop.f32.mrf.mxu2  ;;  %4886 = vmatpush.bf16.msra.mxu2 %v11289_v36 }
 0x454   : > { %v4062_v40 = vpop.f32.mrf.mxu3  ;;  %v3903_v43 = vadd.f32 %v3827_v46, %v3669_v24 }
 0x455   : > { %v3598_v8 = vpop.f32.mrf.mxu1 }
 0x456   : > { %v13029_v56 = vadd.f32 %v4062_v40, %v3903_v43  ;;  %v3671_v55 = vadd.f32 %v3598_v8, %v12856_v15  ;;  %v3955_v43 = vld [vmem:[#allocation2 + $0x1a7] sm:$0xff] }
 0x457   : > { %v3404_v2 = vpop.f32.mrf.mxu0 }
 0x458   : > { %v13033_v25 = vadd.f32 %v3404_v2, %v12879_v6  ;;  %3869 = vmatmul.bf16.gmra.mxu2 %v3740_v21  ;;  %v3741_v21 = vpack.c.bf16 %v3721_v34, %v3720_v23  ;;  %v3957_v34 = vld [vmem:[#allocation2 + $0x1c7] sm:$0xff] }
 0x459   : > { %4104 = vmatmul.bf16.gmra.mxu3 %v3975_v20 }
 0x45b   : > { %v3830_v24 = vpop.f32.mrf.mxu2 }
 0x45c   : > { %v4065_v59 = vpop.f32.mrf.mxu3  ;;  %v3904_v15 = vadd.f32 %v3830_v24, %v3670_v39  ;;  %v3489_v24 = vld [vmem:[#allocation2 + $0x1b0] sm:$0xff] }
 0x45d   : > { %v3601_v1 = vpop.f32.mrf.mxu1 }
 0x45e   : > { %v13041_v6 = vadd.f32 %v4065_v59, %v3904_v15  ;;  %v3672_v33 = vadd.f32 %v3601_v1, %v12875_v41  ;;  %v3956_v41 = vld [vmem:[#allocation2 + $0x1af] sm:$0xff] }
 0x45f   : > { %v3407_v54 = vpop.f32.mrf.mxu0  ;;  %v3976_v20 = vpack.c.bf16 %v3956_v41, %v3955_v43 }
 0x460   : > { %v13050_v46 = vadd.f32 %v3407_v54, %v12884_v32  ;;  %3640 = vmatmul.bf16.gmra.mxu1 %v13044_v7 }
 0x462   : > { %4303 = vmatmul.bf16.gmra.mxu0 %v12886_v3 }
 0x463   : > { %v3832_v39 = vpop.f32.mrf.mxu2 }
 0x464   : > { %v4067_v40 = vpop.f32.mrf.mxu3  ;;  %v3905_v49 = vadd.f32 %v3832_v39, %v3671_v55  ;;  %v3488_v55 = vld [vmem:[#allocation2 + $0x1a8] sm:$0xff] }
 0x465   : > { %v3603_v10 = vpop.f32.mrf.mxu1  ;;  %v13063_v26 = vpack.c.bf16 %v3489_v24, %v3488_v55  ;;  %v3722_v39 = vld [vmem:[#allocation2 + $0x1a9] sm:$0xff]  ;;  %v11272_v55 = vld [vmem:[%s15181_s3 + $0x200] sm:$0xff] }
 0x466   : > { %v13054_v8 = vadd.f32 %v4067_v40, %v3905_v49  ;;  %v3673_v32 = vadd.f32 %v3603_v10, %v12882_v44  ;;  %v3958_v40 = vld [vmem:[#allocation2 + $0x1cf] sm:$0xff]  ;;  %4521 = vmatpush.bf16.msra.mxu1 %v11272_v55 }
 0x467   : > { %v3409_v2 = vpop.f32.mrf.mxu0  ;;  %v3977_v43 = vpack.c.bf16 %v3958_v40, %v3957_v34  ;;  %v3490_v24 = vld [vmem:[#allocation2 + $0x1c8] sm:$0xff] }
 0x468   : > { %v13058_v36 = vadd.f32 %v3409_v2, %v12893_v57  ;;  %3874 = vmatmul.bf16.gmra.mxu2 %v3741_v21 }
 0x469   : > { %4109 = vmatmul.bf16.gmra.mxu3 %v3976_v20  ;;  %v11280_v20 = vld [vmem:[%s15185_s7] sm:$0xff] }
 0x46a   : > { %5024 = vmatpush.bf16.msra.mxu3 %v11280_v20 }
 0x46b   : > { %v3835_v3 = vpop.f32.mrf.mxu2 }
 0x46c   : > { %v4070_v22 = vpop.f32.mrf.mxu3  ;;  %v3906_v59 = vadd.f32 %v3835_v3, %v3672_v33  ;;  %v3723_v33 = vld [vmem:[#allocation2 + $0x1b1] sm:$0xff] }
 0x46d   : > { %v3606_v18 = vpop.f32.mrf.mxu1  ;;  %v3491_v3 = vld [vmem:[#allocation2 + $0x1d0] sm:$0xff] }
 0x46e   : > { %v13060_v15 = vadd.f32 %v4070_v22, %v3906_v59  ;;  %v3674_v1 = vadd.f32 %v3606_v18, %v12889_v48  ;;  %v3742_v48 = vpack.c.bf16 %v3723_v33, %v3722_v39  ;;  %v13085_v18 = vpack.c.bf16 %v3491_v3, %v3490_v24  ;;  %v3724_v39 = vld [vmem:[#allocation2 + $0x1c9] sm:$0xff]  ;;  %v3725_v33 = vld [vmem:[#allocation2 + $0x1d1] sm:$0xff] }
 0x46f   : > { %v3412_v4 = vpop.f32.mrf.mxu0 }
 0x470   : > { %v13066_v44 = vadd.f32 %v3412_v4, %v12907_v5  ;;  %3645 = vmatmul.bf16.gmra.mxu1 %v13063_v26 }
 0x472   : > { %4308 = vmatmul.bf16.gmra.mxu0 %v12909_v19  ;;  %v11288_v19 = vld [vmem:[%s15185_s7 + $0x40] sm:$0xff] }
 0x473   : > { %v3837_v57 = vpop.f32.mrf.mxu2  ;;  %4887 = vmatpush.bf16.msra.mxu2 %v11288_v19 }
 0x474   : > { %v4072_v54 = vpop.f32.mrf.mxu3  ;;  %v3907_v23 = vadd.f32 %v3837_v57, %v3673_v32 }
 0x475   : > { %v3608_v41 = vpop.f32.mrf.mxu1 }
 0x476   : > { %v13070_v49 = vadd.f32 %v4072_v54, %v3907_v23  ;;  %v3675_v10 = vadd.f32 %v3608_v41, %v12896_v30  ;;  %v3959_v23 = vld [vmem:[#allocation2 + $0x1e7] sm:$0xff] }
 0x477   : > { %v3414_v5 = vpop.f32.mrf.mxu0 }
 0x478   : > { %v13074_v21 = vadd.f32 %v3414_v5, %v12922_v62  ;;  %3879 = vmatmul.bf16.gmra.mxu2 %v3742_v48  ;;  %v3743_v48 = vpack.c.bf16 %v3725_v33, %v3724_v39 }
 0x479   : > { %4114 = vmatmul.bf16.gmra.mxu3 %v3977_v43 }
 0x47b   : > { %v3840_v32 = vpop.f32.mrf.mxu2 }
 0x47c   : > { %v4075_v2 = vpop.f32.mrf.mxu3  ;;  %v3908_v30 = vadd.f32 %v3840_v32, %v3674_v1  ;;  %v3493_v32 = vld [vmem:[#allocation2 + $0x1f0] sm:$0xff] }
 0x47d   : > { %v3611_v22 = vpop.f32.mrf.mxu1 }
 0x47e   : > { %v13082_v62 = vadd.f32 %v4075_v2, %v3908_v30  ;;  %v3676_v59 = vadd.f32 %v3611_v22, %v12915_v13  ;;  %v3960_v13 = vld [vmem:[#allocation2 + $0x1ef] sm:$0xff] }
 0x47f   : > { %v3417_v4 = vpop.f32.mrf.mxu0  ;;  %v3978_v43 = vpack.c.bf16 %v3960_v13, %v3959_v23 }
 0x480   : > { %v13091_v57 = vadd.f32 %v3417_v4, %v12933_v63  ;;  %3650 = vmatmul.bf16.gmra.mxu1 %v13085_v18 }
 0x482   : > { %4313 = vmatmul.bf16.gmra.mxu0 %v12935_v12 }
 0x483   : > { %v3842_v1 = vpop.f32.mrf.mxu2 }
 0x484   : > { %v4077_v54 = vpop.f32.mrf.mxu3  ;;  %v3909_v40 = vadd.f32 %v3842_v1, %v3675_v10  ;;  %v3492_v10 = vld [vmem:[#allocation2 + $0x1e8] sm:$0xff] }
 0x485   : > { %v3613_v34 = vpop.f32.mrf.mxu1  ;;  %v13104_v24 = vpack.c.bf16 %v3493_v32, %v3492_v10  ;;  %v3726_v1 = vld [vmem:[#allocation2 + $0x1e9] sm:$0xff]  ;;  %v11311_v32 = vld [vmem:[%s15185_s7 + $0xf8] sm:$0xff] }
 0x486   : > { %v13095_v41 = vadd.f32 %v4077_v54, %v3909_v40  ;;  %v3677_v63 = vadd.f32 %v3613_v34, %v12928_v50  ;;  %v11327_v34 = vld [vmem:[%s15185_s7 + $0x178] sm:$0xff]  ;;  %v3963_v10 = vld [vmem:[#allocation2 + $0x227] sm:$0xff]  ;;  %5453 = vmatpush.bf16.msrb.mxu1 %v11311_v32  ;;  %v4768_v32 = vld [vmem:[%s11759_s25 + $0x10] sm:$0xff] }
 0x487   : > { %v3419_v5 = vpop.f32.mrf.mxu0  ;;  %5921 = vmatpush.bf16.msrb.mxu3 %v11327_v34  ;;  %v4402_v34 = vld [vmem:[#allocation2 + $0x51] sm:$0xff] }
 0x488   : > { %v13099_v19 = vadd.f32 %v3419_v5, %v12945_v17  ;;  %3884 = vmatmul.bf16.gmra.mxu2 %v3743_v48  ;;  %v3495_v48 = vld [vmem:[#allocation2 + $0x210] sm:$0xff] }
 0x489   : > { %4119 = vmatmul.bf16.gmra.mxu3 %v3978_v43 }
 0x48b   : > { %v3845_v12 = vpop.f32.mrf.mxu2 }
 0x48c   : > { %v4080_v20 = vpop.f32.mrf.mxu3  ;;  %v3910_v2 = vadd.f32 %v3845_v12, %v3676_v59  ;;  %v3727_v59 = vld [vmem:[#allocation2 + $0x1f1] sm:$0xff] }
 0x48d   : > { %v3616_v3 = vpop.f32.mrf.mxu1  ;;  %v3744_v13 = vpack.c.bf16 %v3727_v59, %v3726_v1 }
 0x48e   : > { %v13101_v30 = vadd.f32 %v4080_v20, %v3910_v2  ;;  %v3678_v22 = vadd.f32 %v3616_v3, %v12941_v42 }
 0x48f   : > { %v3422_v55 = vpop.f32.mrf.mxu0 }
 0x490   : > { %v13107_v50 = vadd.f32 %v3422_v55, %v12956_v47  ;;  %3655 = vmatmul.bf16.gmra.mxu1 %v13104_v24  ;;  %v11319_v47 = vld [vmem:[%s15185_s7 + $0x138] sm:$0xff] }
 0x491   : > { %5687 = vmatpush.bf16.msrb.mxu2 %v11319_v47 }
 0x492   : > { %4318 = vmatmul.bf16.gmra.mxu0 %v12958_v31  ;;  %v11303_v31 = vld [vmem:[%s15185_s7 + $0xb8] sm:$0xff] }
 0x493   : > { %v3847_v17 = vpop.f32.mrf.mxu2  ;;  %5219 = vmatpush.bf16.msrb.mxu0 %v11303_v31 }
 0x494   : > { %v4082_v4 = vpop.f32.mrf.mxu3  ;;  %v3911_v54 = vadd.f32 %v3847_v17, %v3677_v63  ;;  %v3494_v63 = vld [vmem:[#allocation2 + $0x208] sm:$0xff] }
 0x495   : > { %v3618_v39 = vpop.f32.mrf.mxu1  ;;  %v13130_v20 = vpack.c.bf16 %v3495_v48, %v3494_v63  ;;  %v4767_v63 = vld [vmem:[%s11759_s25 + $0x8] sm:$0xff] }
 0x496   : > { %v13111_v33 = vadd.f32 %v4082_v4, %v3911_v54  ;;  %v3679_v42 = vadd.f32 %v3618_v39, %v12948_v51  ;;  %v3729_v4 = vld [vmem:[#allocation2 + $0x211] sm:$0xff] }
 0x497   : > { %v3424_v40 = vpop.f32.mrf.mxu0 }
 0x498   : > { %v13115_v23 = vadd.f32 %v3424_v40, %v12970_v58  ;;  %3889 = vmatmul.bf16.gmra.mxu2 %v3744_v13 }
 0x499   : > { %4124 = vmatmul.bf16.gmra.mxu3 %v12966_v14 }
 0x49b   : > { %v3850_v51 = vpop.f32.mrf.mxu2 }
 0x49c   : > { %v4085_v58 = vpop.f32.mrf.mxu3  ;;  %v3912_v43 = vadd.f32 %v3850_v51, %v3678_v22  ;;  %v3964_v22 = vld [vmem:[#allocation2 + $0x22f] sm:$0xff] }
 0x49d   : > { %v3621_v14 = vpop.f32.mrf.mxu1  ;;  %v3980_v59 = vpack.c.bf16 %v3964_v22, %v3963_v10  ;;  %v4704_v10 = vld [vmem:[%s11759_s25 + $0xf] sm:$0xff] }
 0x49e   : > { %v13127_v5 = vadd.f32 %v4085_v58, %v3912_v43  ;;  %v3680_v12 = vadd.f32 %v3621_v14, %v12964_v28  ;;  %v3728_v28 = vld [vmem:[#allocation2 + $0x209] sm:$0xff] }
 0x49f   : > { %v3427_v2 = vpop.f32.mrf.mxu0  ;;  %v3745_v13 = vpack.c.bf16 %v3729_v4, %v3728_v28 }
 0x4a0   : > { %v13136_v3 = vadd.f32 %v3427_v2, %v12977_v53  ;;  %3660 = vmatmul.bf16.gmra.mxu1 %v13130_v20  ;;  %v4703_v2 = vld [vmem:[%s11759_s25 + $0x7] sm:$0xff] }
 0x4a1   : > { %v4735_v28 = vpack.c.bf16 %v4704_v10, %v4703_v2  ;;  %v4705_v2 = vld [vmem:[%s11759_s25 + $0x27] sm:$0xff]  ;;  %v4706_v10 = vld [vmem:[%s11759_s25 + $0x2f] sm:$0xff] }
 0x4a2   : > { %4323 = vmatmul.bf16.gmra.mxu0 %v12980_v45 }
 0x4a3   : > { %v3852_v55 = vpop.f32.mrf.mxu2 }
 0x4a4   : > { %v4087_v17 = vpop.f32.mrf.mxu3  ;;  %v3913_v1 = vadd.f32 %v3852_v55, %v3679_v42  ;;  %v4401_v42 = vld [vmem:[#allocation2 + $0x49] sm:$0xff] }
 0x4a5   : > { %v3623_v54 = vpop.f32.mrf.mxu1  ;;  %v4433_v43 = vpack.c.bf16 %v4402_v34, %v4401_v42 }
 0x4a6   : > { %v13140_v39 = vadd.f32 %v4087_v17, %v3913_v1  ;;  %v3681_v53 = vadd.f32 %v3623_v54, %v12973_v60  ;;  %v4799_v17 = vpack.c.bf16 %v4768_v32, %v4767_v63  ;;  %v11302_v54 = vld [vmem:[%s15185_s7 + $0xb0] sm:$0xff]  ;;  %v4769_v63 = vld [vmem:[%s11759_s25 + $0x28] sm:$0xff] }
 0x4a7   : > { %v3429_v40 = vpop.f32.mrf.mxu0  ;;  %5220 = vmatpush.bf16.msrb.mxu0 %v11302_v54  ;;  %v4770_v32 = vld [vmem:[%s11759_s25 + $0x30] sm:$0xff] }
 0x4a8   : > { %v13144_v47 = vadd.f32 %v3429_v40, %v12989_v0  ;;  %3894 = vmatmul.bf16.gmra.mxu2 %v3745_v13  ;;  %v11326_v13 = vld [vmem:[%s15185_s7 + $0x170] sm:$0xff] }
 0x4a9   : > { %4129 = vmatmul.bf16.gmra.mxu3 %v3980_v59  ;;  %v4404_v40 = vld [vmem:[#allocation2 + $0x71] sm:$0xff] }
 0x4aa   : > { %5922 = vmatpush.bf16.msrb.mxu3 %v11326_v13  ;;  %v4406_v54 = vld [vmem:[#allocation2 + $0x91] sm:$0xff] }
 0x4ab   : > { %v3855_v45 = vpop.f32.mrf.mxu2 }
 0x4ac   : > { %v4090_v31 = vpop.f32.mrf.mxu3  ;;  %v3914_v51 = vadd.f32 %v3855_v45, %v3680_v12 }
 0x4ad   : > { %v3626_v58 = vpop.f32.mrf.mxu1 }
 0x4ae   : > { %v13146_v48 = vadd.f32 %v4090_v31, %v3914_v51  ;;  %v3682_v60 = vadd.f32 %v3626_v58, %v12983_v29  ;;  %v11310_v58 = vld [vmem:[%s15185_s7 + $0xf0] sm:$0xff] }
 0x4af   : > { %v4289_v14 = vpop.f32.mrf.mxu0  ;;  %5454 = vmatpush.bf16.msrb.mxu1 %v11310_v58  ;;  %v4708_v58 = vld [vmem:[%s11759_s25 + $0x4f] sm:$0xff] }
 0x4b0   : > { %v13150_v0 = vadd.f32 %v4289_v14, %v13000_v35  ;;  %4522 = vmatmul.bf16.vlgmr.msra.gmra.mxu1 %v4433_v43 }
 0x4b2   : > { %4328 = vmatmul.bf16.gmra.mxu0 %v13003_v9  ;;  %v11318_v9 = vld [vmem:[%s15185_s7 + $0x130] sm:$0xff] }
 0x4b3   : > { %v3857_v22 = vpop.f32.mrf.mxu2  ;;  %5688 = vmatpush.bf16.msrb.mxu2 %v11318_v9 }
 0x4b4   : > { %v4092_v55 = vpop.f32.mrf.mxu3  ;;  %v3915_v12 = vadd.f32 %v3857_v22, %v3681_v53  ;;  %v4403_v53 = vld [vmem:[#allocation2 + $0x69] sm:$0xff] }
 0x4b5   : > { %v3628_v4 = vpop.f32.mrf.mxu1  ;;  %v4434_v51 = vpack.c.bf16 %v4404_v40, %v4403_v53 }
 0x4b6   : > { %v13157_v1 = vadd.f32 %v4092_v55, %v3915_v12  ;;  %v3683_v29 = vadd.f32 %v3628_v4, %v12992_v37  ;;  %v4800_v55 = vpack.c.bf16 %v4770_v32, %v4769_v63  ;;  %v4736_v12 = vpack.c.bf16 %v4706_v10, %v4705_v2 }
 0x4b7   : > { %v4291_v59 = vpop.f32.mrf.mxu0 }
 0x4b8   : > { %v13161_v35 = vadd.f32 %v4291_v59, %v13013_v38  ;;  %4888 = vmatmul.bf16.vlgmr.msra.gmra.mxu2 %v4799_v17 }
 0x4b9   : > { %5025 = vmatmul.bf16.vlgmr.msra.gmra.mxu3 %v4735_v28 }
 0x4bb   : > { %v3860_v37 = vpop.f32.mrf.mxu2 }
 0x4bc   : > { %v4095_v38 = vpop.f32.mrf.mxu3  ;;  %v3916_v45 = vadd.f32 %v3860_v37, %v3682_v60 }
 0x4bd   : > { %v3631_v31 = vpop.f32.mrf.mxu1 }
 0x4be   : > { %v13172_v42 = vadd.f32 %v4095_v38, %v3916_v45  ;;  %v3684_v34 = vadd.f32 %v3631_v31, %v13009_v27  ;;  %v4771_v45 = vld [vmem:[%s11759_s25 + $0x48] sm:$0xff]  ;;  %v4772_v31 = vld [vmem:[%s11759_s25 + $0x50] sm:$0xff] }
 0x4bf   : > { %v4294_v43 = vpop.f32.mrf.mxu0  ;;  %v4801_v32 = vpack.c.bf16 %v4772_v31, %v4771_v45  ;;  %v4709_v45 = vld [vmem:[%s11759_s25 + $0x67] sm:$0xff] }
 0x4c0   : > { %v13179_v14 = vadd.f32 %v4294_v43, %v13019_v52  ;;  %4527 = vmatmul.bf16.gmra.mxu1 %v4434_v51  ;;  %v4707_v51 = vld [vmem:[%s11759_s25 + $0x47] sm:$0xff] }
 0x4c1   : > { %v4737_v2 = vpack.c.bf16 %v4708_v58, %v4707_v51 }
 0x4c2   : > { %4333 = vmatmul.bf16.gmra.mxu0 %v13022_v16 }
 0x4c3   : > { %v3862_v60 = vpop.f32.mrf.mxu2 }
 0x4c4   : > { %v4097_v22 = vpop.f32.mrf.mxu3  ;;  %v3917_v27 = vadd.f32 %v3862_v60, %v3683_v29  ;;  %v4405_v29 = vld [vmem:[#allocation2 + $0x89] sm:$0xff] }
 0x4c5   : > { %v3633_v17 = vpop.f32.mrf.mxu1  ;;  %v4435_v53 = vpack.c.bf16 %v4406_v54, %v4405_v29  ;;  %v11309_v54 = vld [vmem:[%s15185_s7 + $0xe8] sm:$0xff] }
 0x4c6   : > { %v13186_v28 = vadd.f32 %v4097_v22, %v3917_v27  ;;  %v3685_v4 = vadd.f32 %v3633_v17, %v13017_v11  ;;  %v11301_v27 = vld [vmem:[%s15185_s7 + $0xa8] sm:$0xff]  ;;  %v4408_v17 = vld [vmem:[#allocation2 + $0xb1] sm:$0xff]  ;;  %5455 = vmatpush.bf16.msrb.mxu1 %v11309_v54 }
 0x4c7   : > { %v4296_v52 = vpop.f32.mrf.mxu0  ;;  %5221 = vmatpush.bf16.msrb.mxu0 %v11301_v27 }
 0x4c8   : > { %v13190_v59 = vadd.f32 %v4296_v52, %v13029_v56  ;;  %4893 = vmatmul.bf16.gmra.mxu2 %v4800_v55  ;;  %v11325_v55 = vld [vmem:[%s15185_s7 + $0x168] sm:$0xff] }
 0x4c9   : > { %5030 = vmatmul.bf16.gmra.mxu3 %v4736_v12 }
 0x4ca   : > { %5923 = vmatpush.bf16.msrb.mxu3 %v11325_v55 }
 0x4cb   : > { %v3865_v16 = vpop.f32.mrf.mxu2 }
 0x4cc   : > { %v4100_v9 = vpop.f32.mrf.mxu3  ;;  %v3918_v13 = vadd.f32 %v3865_v16, %v3684_v34 }
 0x4cd   : > { %v3636_v37 = vpop.f32.mrf.mxu1 }
 0x4ce   : > { %v13192_v38 = vadd.f32 %v4100_v9, %v3918_v13  ;;  %v3686_v11 = vadd.f32 %v3636_v37, %v13025_v61 }
 0x4cf   : > { %v4299_v40 = vpop.f32.mrf.mxu0 }
 0x4d0   : > { %v13196_v56 = vadd.f32 %v4299_v40, %v13041_v6  ;;  %4532 = vmatmul.bf16.gmra.mxu1 %v4435_v53  ;;  %v4773_v53 = vld [vmem:[%s11759_s25 + $0x68] sm:$0xff]  ;;  %v4774_v40 = vld [vmem:[%s11759_s25 + $0x70] sm:$0xff] }
 0x4d1   : > { %v4802_v58 = vpack.c.bf16 %v4774_v40, %v4773_v53 }
 0x4d2   : > { %4338 = vmatmul.bf16.gmra.mxu0 %v13044_v7  ;;  %v11317_v7 = vld [vmem:[%s15185_s7 + $0x128] sm:$0xff] }
 0x4d3   : > { %v3867_v43 = vpop.f32.mrf.mxu2  ;;  %5689 = vmatpush.bf16.msrb.mxu2 %v11317_v7 }
 0x4d4   : > { %v4102_v63 = vpop.f32.mrf.mxu3  ;;  %v3919_v34 = vadd.f32 %v3867_v43, %v3685_v4 }
 0x4d5   : > { %v3638_v10 = vpop.f32.mrf.mxu1 }
 0x4d6   : > { %v13203_v60 = vadd.f32 %v4102_v63, %v3919_v34  ;;  %v3687_v61 = vadd.f32 %v3638_v10, %v13033_v25 }
 0x4d7   : > { %v4301_v22 = vpop.f32.mrf.mxu0 }
 0x4d8   : > { %v13207_v6 = vadd.f32 %v4301_v22, %v13054_v8  ;;  %4898 = vmatmul.bf16.gmra.mxu2 %v4801_v32  ;;  %v4407_v8 = vld [vmem:[#allocation2 + $0xa9] sm:$0xff]  ;;  %v4410_v22 = vld [vmem:[#allocation2 + $0xd1] sm:$0xff] }
 0x4d9   : > { %5035 = vmatmul.bf16.gmra.mxu3 %v4737_v2  ;;  %v4436_v29 = vpack.c.bf16 %v4408_v17, %v4407_v8  ;;  %v4775_v8 = vld [vmem:[%s11759_s25 + $0x88] sm:$0xff]  ;;  %v4776_v17 = vld [vmem:[%s11759_s25 + $0x90] sm:$0xff] }
 0x4db   : > { %v3870_v12 = vpop.f32.mrf.mxu2 }
 0x4dc   : > { %v4105_v25 = vpop.f32.mrf.mxu3  ;;  %v3920_v4 = vadd.f32 %v3870_v12, %v3686_v11  ;;  %v4710_v11 = vld [vmem:[%s11759_s25 + $0x6f] sm:$0xff] }
 0x4dd   : > { %v3641_v52 = vpop.f32.mrf.mxu1  ;;  %v4738_v43 = vpack.c.bf16 %v4710_v11, %v4709_v45 }
 0x4de   : > { %v13218_v16 = vadd.f32 %v4105_v25, %v3920_v4  ;;  %v3688_v9 = vadd.f32 %v3641_v52, %v13050_v46  ;;  %v4711_v4 = vld [vmem:[%s11759_s25 + $0x87] sm:$0xff]  ;;  %v4712_v52 = vld [vmem:[%s11759_s25 + $0x8f] sm:$0xff] }
 0x4df   : > { %v4304_v13 = vpop.f32.mrf.mxu0  ;;  %v4739_v53 = vpack.c.bf16 %v4712_v52, %v4711_v4  ;;  %v11299_v52 = vld [vmem:[%s15185_s7 + $0x98] sm:$0xff] }
 0x4e0   : > { %v13225_v37 = vadd.f32 %v4304_v13, %v13060_v15  ;;  %4537 = vmatmul.bf16.gmra.mxu1 %v4436_v29  ;;  %v4803_v13 = vpack.c.bf16 %v4776_v17, %v4775_v8 }
 0x4e2   : > { %4343 = vmatmul.bf16.gmra.mxu0 %v13063_v26 }
 0x4e3   : > { %v3872_v31 = vpop.f32.mrf.mxu2 }
 0x4e4   : > { %v4107_v51 = vpop.f32.mrf.mxu3  ;;  %v3921_v46 = vadd.f32 %v3872_v31, %v3687_v61  ;;  %v4409_v61 = vld [vmem:[#allocation2 + $0xc9] sm:$0xff]  ;;  %v11300_v31 = vld [vmem:[%s15185_s7 + $0xa0] sm:$0xff] }
 0x4e5   : > { %v3643_v63 = vpop.f32.mrf.mxu1  ;;  %v4437_v12 = vpack.c.bf16 %v4410_v22, %v4409_v61  ;;  %5222 = vmatpush.bf16.msrb.mxu0 %v11300_v31 }
 0x4e6   : > { %v13232_v34 = vadd.f32 %v4107_v51, %v3921_v46  ;;  %v3689_v32 = vadd.f32 %v3643_v63, %v13058_v36  ;;  %v11324_v51 = vld [vmem:[%s15185_s7 + $0x160] sm:$0xff] }
 0x4e7   : > { %v4306_v15 = vpop.f32.mrf.mxu0  ;;  %5924 = vmatpush.bf16.msrb.mxu3 %v11324_v51 }
 0x4e8   : > { %v13236_v2 = vadd.f32 %v4306_v15, %v13070_v49  ;;  %4903 = vmatmul.bf16.gmra.mxu2 %v4802_v58  ;;  %v4412_v58 = vld [vmem:[#allocation2 + $0xf1] sm:$0xff] }
 0x4e9   : > { %5040 = vmatmul.bf16.gmra.mxu3 %v4738_v43  ;;  %5223 = vmatpush.bf16.msrb.mxu0 %v11299_v52  ;;  %v4415_v52 = vld [vmem:[#allocation2 + $0x129] sm:$0xff] }
 0x4eb   : > { %v3875_v26 = vpop.f32.mrf.mxu2 }
 0x4ec   : > { %v4110_v10 = vpop.f32.mrf.mxu3  ;;  %v3922_v7 = vadd.f32 %v3875_v26, %v3688_v9 }
 0x4ed   : > { %v3646_v27 = vpop.f32.mrf.mxu1 }
 0x4ee   : > { %v13238_v55 = vadd.f32 %v4110_v10, %v3922_v7  ;;  %v3690_v36 = vadd.f32 %v3646_v27, %v13066_v44  ;;  %v11308_v10 = vld [vmem:[%s15185_s7 + $0xe0] sm:$0xff]  ;;  %v4777_v7 = vld [vmem:[%s11759_s25 + $0xa8] sm:$0xff]  ;;  %v4778_v27 = vld [vmem:[%s11759_s25 + $0xb0] sm:$0xff] }
 0x4ef   : > { %v4309_v25 = vpop.f32.mrf.mxu0  ;;  %5456 = vmatpush.bf16.msrb.mxu1 %v11308_v10  ;;  %v4804_v17 = vpack.c.bf16 %v4778_v27, %v4777_v7 }
 0x4f0   : > { %v13242_v49 = vadd.f32 %v4309_v25, %v13082_v62  ;;  %4542 = vmatmul.bf16.gmra.mxu1 %v4437_v12  ;;  %v4713_v12 = vld [vmem:[%s11759_s25 + $0xa7] sm:$0xff] }
 0x4f2   : > { %4348 = vmatmul.bf16.gmra.mxu0 %v13085_v18  ;;  %v11316_v18 = vld [vmem:[%s15185_s7 + $0x120] sm:$0xff] }
 0x4f3   : > { %v3877_v29 = vpop.f32.mrf.mxu2  ;;  %5690 = vmatpush.bf16.msrb.mxu2 %v11316_v18 }
 0x4f4   : > { %v4112_v54 = vpop.f32.mrf.mxu3  ;;  %v3923_v9 = vadd.f32 %v3877_v29, %v3689_v32 }
 0x4f5   : > { %v3648_v40 = vpop.f32.mrf.mxu1 }
 0x4f6   : > { %v13249_v45 = vadd.f32 %v4112_v54, %v3923_v9  ;;  %v3691_v44 = vadd.f32 %v3648_v40, %v13074_v21 }
 0x4f7   : > { %v4311_v11 = vpop.f32.mrf.mxu0 }
 0x4f8   : > { %v13253_v62 = vadd.f32 %v4311_v11, %v13095_v41  ;;  %4908 = vmatmul.bf16.gmra.mxu2 %v4803_v13  ;;  %v4411_v41 = vld [vmem:[#allocation2 + $0xe9] sm:$0xff] }
 0x4f9   : > { %5045 = vmatmul.bf16.gmra.mxu3 %v4739_v53  ;;  %v4438_v26 = vpack.c.bf16 %v4412_v58, %v4411_v41  ;;  %v4779_v58 = vld [vmem:[%s11759_s25 + $0xc8] sm:$0xff] }
 0x4fb   : > { %v3880_v46 = vpop.f32.mrf.mxu2 }
 0x4fc   : > { %v4115_v21 = vpop.f32.mrf.mxu3  ;;  %v3924_v43 = vadd.f32 %v3880_v46, %v3690_v36  ;;  %v4714_v36 = vld [vmem:[%s11759_s25 + $0xaf] sm:$0xff] }
 0x4fd   : > { %v3651_v63 = vpop.f32.mrf.mxu1  ;;  %v4740_v4 = vpack.c.bf16 %v4714_v36, %v4713_v12 }
 0x4fe   : > { %v13264_v32 = vadd.f32 %v4115_v21, %v3924_v43  ;;  %v3692_v15 = vadd.f32 %v3651_v63, %v13091_v57  ;;  %v11296_v43 = vld [vmem:[%s15185_s7 + $0x80] sm:$0xff]  ;;  %v4780_v63 = vld [vmem:[%s11759_s25 + $0xd0] sm:$0xff] }
 0x4ff   : > { %v4314_v61 = vpop.f32.mrf.mxu0  ;;  %v4805_v7 = vpack.c.bf16 %v4780_v63, %v4779_v58 }
 0x500   : > { %v13271_v22 = vadd.f32 %v4314_v61, %v13101_v30  ;;  %4547 = vmatmul.bf16.gmra.mxu1 %v4438_v26  ;;  %v4716_v26 = vld [vmem:[%s11759_s25 + $0xcf] sm:$0xff] }
 0x502   : > { %4353 = vmatmul.bf16.gmra.mxu0 %v13104_v24  ;;  %v11298_v24 = vld [vmem:[%s15185_s7 + $0x90] sm:$0xff] }
 0x503   : > { %v3882_v25 = vpop.f32.mrf.mxu2  ;;  %5224 = vmatpush.bf16.msrb.mxu0 %v11298_v24  ;;  %v11470_v24 = vld [vmem:[#allocation2] sm:$0xff] }
 0x504   : > { %v4117_v8 = vpop.f32.mrf.mxu3  ;;  %v3925_v57 = vadd.f32 %v3882_v25, %v3691_v44  ;;  %v4413_v44 = vld [vmem:[#allocation2 + $0x109] sm:$0xff] }
 0x505   : > { %v3653_v29 = vpop.f32.mrf.mxu1 }
 0x506   : > { %v13281_v30 = vadd.f32 %v4117_v8, %v3925_v57  ;;  %v3693_v54 = vadd.f32 %v3653_v29, %v13099_v19  ;;  %v4414_v19 = vld [vmem:[#allocation2 + $0x111] sm:$0xff] }
 0x507   : > { %v4316_v9 = vpop.f32.mrf.mxu0  ;;  %v4439_v46 = vpack.c.bf16 %v4414_v19, %v4413_v44  ;;  %v11323_v57 = vld [vmem:[%s15185_s7 + $0x158] sm:$0xff] }
 0x508   : > { %v13285_v13 = vadd.f32 %v4316_v9, %v13111_v33  ;;  %4913 = vmatmul.bf16.gmra.mxu2 %v4804_v17  ;;  %v11297_v33 = vld [vmem:[%s15185_s7 + $0x88] sm:$0xff]  ;;  %v4416_v29 = vld [vmem:[#allocation2 + $0x131] sm:$0xff]  ;;  %5925 = vmatpush.bf16.msrb.mxu3 %v11323_v57  ;;  %v13340_v57 = vld [vmem:[#allocation3] ss:$0 sm:$0xff] }
 0x509   : > { %5050 = vmatmul.bf16.gmra.mxu3 %v4740_v4  ;;  %5225 = vmatpush.bf16.msrb.mxu0 %v11297_v33  ;;  %v4440_v44 = vpack.c.bf16 %v4416_v29, %v4415_v52  ;;  %v4781_v33 = vld [vmem:[%s11759_s25 + $0xe8] sm:$0xff] }
 0x50b   : > { %v3885_v53 = vpop.f32.mrf.mxu2 }
 0x50c   : > { %v4120_v40 = vpop.f32.mrf.mxu3  ;;  %v3926_v11 = vadd.f32 %v3885_v53, %v3692_v15  ;;  %v4715_v15 = vld [vmem:[%s11759_s25 + $0xc7] sm:$0xff]  ;;  %v4214_v53 = vpack.c.bf16 %v11470_v24, %v11470_v24  ;;  %v4784_v24 = vld [vmem:[%s11759_s25 + $0x110] sm:$0xff] }
 0x50d   : > { %v3656_v18 = vpop.f32.mrf.mxu1  ;;  %5226 = vmatpush.bf16.msrb.mxu0 %v11296_v43  ;;  %v4741_v27 = vpack.c.bf16 %v4716_v26, %v4715_v15 }
 0x50e   : > { %v13293_v31 = vadd.f32 %v4120_v40, %v3926_v11  ;;  %v3694_v51 = vadd.f32 %v3656_v18, %v13107_v50  ;;  %v4782_v18 = vld [vmem:[%s11759_s25 + $0xf0] sm:$0xff] }
 0x50f   : > { %v4319_v21 = vpop.f32.mrf.mxu0  ;;  %v4806_v63 = vpack.c.bf16 %v4782_v18, %v4781_v33 }
 0x510   : > { %v13297_v41 = vadd.f32 %v4319_v21, %v13127_v5  ;;  %4552 = vmatmul.bf16.gmra.mxu1 %v4439_v46  ;;  %v4718_v46 = vld [vmem:[%s11759_s25 + $0xef] sm:$0xff] }
 0x512   : > { %4358 = vmatmul.bf16.gmra.mxu0 %v13130_v20  ;;  %v11315_v20 = vld [vmem:[%s15185_s7 + $0x118] sm:$0xff] }
 0x513   : > { %v3887_v10 = vpop.f32.mrf.mxu2  ;;  %5691 = vmatpush.bf16.msrb.mxu2 %v11315_v20 }
 0x514   : > { %v4122_v61 = vpop.f32.mrf.mxu3  ;;  %v3927_v50 = vadd.f32 %v3887_v10, %v3693_v54 }
 0x515   : > { %v3658_v12 = vpop.f32.mrf.mxu1 }
 0x516   : > { %v13307_v5 = vadd.f32 %v4122_v61, %v3927_v50  ;;  %v3695_v36 = vadd.f32 %v3658_v12, %v13115_v23  ;;  %v4417_v50 = vld [vmem:[#allocation2 + $0x149] sm:$0xff] }
 0x517   : > { %v4321_v25 = vpop.f32.mrf.mxu0  ;;  %v5106_v12 = vld [vmem:[%s11759_s25 + $0x9] sm:$0xff] }
 0x518   : > { %v13311_v8 = vadd.f32 %v4321_v25, %v13140_v39  ;;  %4918 = vmatmul.bf16.gmra.mxu2 %v4805_v7  ;;  %v11307_v39 = vld [vmem:[%s15185_s7 + $0xd8] sm:$0xff] }
 0x519   : > { %5055 = vmatmul.bf16.gmra.mxu3 %v4741_v27  ;;  %5457 = vmatpush.bf16.msrb.mxu1 %v11307_v39  ;;  %v4418_v25 = vld [vmem:[#allocation2 + $0x151] sm:$0xff] }
 0x51a   : > { %v4441_v52 = vpack.c.bf16 %v4418_v25, %v4417_v50 }
 0x51b   : > { %v3890_v17 = vpop.f32.mrf.mxu2 }
 0x51c   : > { %v4125_v4 = vpop.f32.mrf.mxu3  ;;  %v3928_v23 = vadd.f32 %v3890_v17, %v3694_v51  ;;  %v4717_v51 = vld [vmem:[%s11759_s25 + $0xe7] sm:$0xff] }
 0x51d   : > { %v3661_v54 = vpop.f32.mrf.mxu1  ;;  %v4742_v15 = vpack.c.bf16 %v4718_v46, %v4717_v51 }
 0x51e   : > { %v13322_v9 = vadd.f32 %v4125_v4, %v3928_v23  ;;  %v3696_v40 = vadd.f32 %v3661_v54, %v13136_v3  ;;  %v4783_v54 = vld [vmem:[%s11759_s25 + $0x108] sm:$0xff] }
 0x51f   : > { %v4324_v19 = vpop.f32.mrf.mxu0  ;;  %v4807_v51 = vpack.c.bf16 %v4784_v24, %v4783_v54  ;;  %v4786_v54 = vld [vmem:[%s11759_s25 + $0x130] sm:$0xff]  ;;  %v4721_v24 = vld [vmem:[%s11759_s25 + $0x127] sm:$0xff] }
 0x520   : > { %v13326_v11 = vadd.f32 %v4324_v19, %v13146_v48  ;;  %4557 = vmatmul.bf16.gmra.mxu1 %v4440_v44 }
 0x522   : > { %4363 = vmatmul.bf16.gmra.mxu0 %v4214_v53  ;;  %v4719_v53 = vld [vmem:[%s11759_s25 + $0x107] sm:$0xff] }
 0x523   : > { %v3892_v21 = vpop.f32.mrf.mxu2 }
 0x524   : > { %v4127_v58 = vpop.f32.mrf.mxu3  ;;  %v3929_v43 = vadd.f32 %v3892_v21, %v3695_v36  ;;  %v5107_v36 = vld [vmem:[%s11759_s25 + $0x11] sm:$0xff] }
 0x525   : > { %v3663_v3 = vpop.f32.mrf.mxu1 }
 0x526   : > { %v13332_v26 = vadd.f32 %v4127_v58, %v3929_v43  ;;  %v3697_v10 = vadd.f32 %v3663_v3, %v13144_v47  ;;  %v11322_v3 = vld [vmem:[%s15185_s7 + $0x150] sm:$0xff] }
 0x527   : > { %v4326_v48 = vpop.f32.mrf.mxu0  ;;  %5926 = vmatpush.bf16.msrb.mxu3 %v11322_v3 }
 0x528   : > { %v13336_v61 = vadd.f32 %v4326_v48, %v13157_v1  ;;  %4923 = vmatmul.bf16.gmra.mxu2 %v4806_v63  ;;  %v5138_v1 = vpack.c.bf16 %v5107_v36, %v5106_v12  ;;  %v4419_v48 = vld [vmem:[#allocation2 + $0x169] sm:$0xff] }
 0x529   : > { %5060 = vmatmul.bf16.gmra.mxu3 %v4742_v15  ;;  %v11314_v15 = vld [vmem:[%s15185_s7 + $0x110] sm:$0xff] }
 0x52a   : > { %5692 = vmatpush.bf16.msrb.mxu2 %v11314_v15  ;;  %v11306_v36 = vld [vmem:[%s15185_s7 + $0xd0] sm:$0xff] }
 0x52b   : > { %v3895_v7 = vpop.f32.mrf.mxu2  ;;  %5458 = vmatpush.bf16.msrb.mxu1 %v11306_v36 }
 0x52c   : > { %v4130_v27 = vpop.f32.mrf.mxu3  ;;  %v3930_v20 = vadd.f32 %v3895_v7, %v3696_v40  ;;  %v4720_v40 = vld [vmem:[%s11759_s25 + $0x10f] sm:$0xff] }
 0x52d   : > { %v4523_v47 = vpop.f32.mrf.mxu1  ;;  %v5108_v7 = vld [vmem:[%s11759_s25 + $0x29] sm:$0xff] }
 0x52e   : > { %v13342_v17 = vadd.f32 %v4130_v27, %v3930_v20  ;;  %v4603_v4 = vadd.f32 %v4523_v47, %v13150_v0  ;;  %v4743_v0 = vpack.c.bf16 %v4720_v40, %v4719_v53  ;;  %v5109_v27 = vld [vmem:[%s11759_s25 + $0x31] sm:$0xff] }
 0x52f   : > { %v4329_v29 = vpop.f32.mrf.mxu0  ;;  %v13373_v20 = vpack.c.bf16 %v5109_v27, %v5108_v7  ;;  %v4722_v53 = vld [vmem:[%s11759_s25 + $0x12f] sm:$0xff] }
 0x530   : > { %v13346_v23 = vadd.f32 %v4329_v29, %v13172_v42  ;;  %v4639_v39 = vadd.f32 %v13340_v57, %v4603_v4  ;;  %4562 = vmatmul.bf16.gmra.mxu1 %v4441_v52 }
 0x532   : > { %5227 = vmatmul.bf16.vlgmr.msrb.gmra.mxu0 %v5138_v1  ;;  %v4671_v44 = vmax.f32 %v4639_v39, 0.0  ;;  %v4785_v39 = vld [vmem:[%s11759_s25 + $0x128] sm:$0xff] }
 0x533   : > { %v3897_v19 = vpop.f32.mrf.mxu2 }
 0x534   : > { %v4132_v33 = vpop.f32.mrf.mxu3  ;;  %v3931_v18 = vadd.f32 %v3897_v19, %v3697_v10  ;;  %6780 = vst [vmem:[#allocation2 + $0x28] sm:$0xff] %v4671_v44 }
 0x535   : > { %v4525_v46 = vpop.f32.mrf.mxu1 }
 0x536   : > { %v13353_v42 = vadd.f32 %v4132_v33, %v3931_v18  ;;  %v4604_v21 = vadd.f32 %v4525_v46, %v13161_v35  ;;  %v4808_v33 = vpack.c.bf16 %v4786_v54, %v4785_v39 }
 0x537   : > { %v4331_v58 = vpop.f32.mrf.mxu0 }
 0x538   : > { %v13357_v43 = vadd.f32 %v4331_v58, %v13186_v28  ;;  %4928 = vmatmul.bf16.gmra.mxu2 %v4807_v51  ;;  %v4640_v63 = vadd.f32 %v13340_v57, %v4604_v21  ;;  %v4420_v28 = vld [vmem:[#allocation2 + $0x171] sm:$0xff] }
 0x539   : > { %5065 = vmatmul.bf16.gmra.mxu3 %v4743_v0  ;;  %v4442_v1 = vpack.c.bf16 %v4420_v28, %v4419_v48  ;;  %v5111_v48 = vld [vmem:[%s11759_s25 + $0x51] sm:$0xff] }
 0x53a   : > { %v4672_v10 = vmax.f32 %v4640_v63, 0.0  ;;  %v4421_v63 = vld [vmem:[#allocation2 + $0x189] sm:$0xff] }
 0x53b   : > { %v4889_v50 = vpop.f32.mrf.mxu2 }
 0x53c   : > { %v5026_v35 = vpop.f32.mrf.mxu3  ;;  %6781 = vst [vmem:[#allocation2 + $0x30] sm:$0xff] %v4672_v10  ;;  %v5110_v10 = vld [vmem:[%s11759_s25 + $0x49] sm:$0xff] }
 0x53d   : > { %v13368_v12 = vadd.f32 %v5026_v35, %v4889_v50  ;;  %v4528_v25 = vpop.f32.mrf.mxu1  ;;  %v4422_v50 = vld [vmem:[#allocation2 + $0x191] sm:$0xff]  ;;  %v13396_v35 = vpack.c.bf16 %v5111_v48, %v5110_v10  ;;  %v11305_v10 = vld [vmem:[%s15185_s7 + $0xc8] sm:$0xff] }
 0x53e   : > { %v4605_v47 = vadd.f32 %v4528_v25, %v13179_v14  ;;  %v4443_v27 = vpack.c.bf16 %v4422_v50, %v4421_v63  ;;  %v5112_v63 = vld [vmem:[%s11759_s25 + $0x69] sm:$0xff]  ;;  %5459 = vmatpush.bf16.msrb.mxu1 %v11305_v10 }
 0x53f   : > { %v4334_v4 = vpop.f32.mrf.mxu0 }
 0x540   : > { %v13377_v52 = vadd.f32 %v4334_v4, %v13192_v38  ;;  %v4641_v29 = vadd.f32 %v13340_v57, %v4605_v47  ;;  %4567 = vmatmul.bf16.gmra.mxu1 %v4442_v1  ;;  %v4744_v38 = vpack.c.bf16 %v4722_v53, %v4721_v24  ;;  %v4787_v47 = vld [vmem:[%s11759_s25 + $0x148] sm:$0xff]  ;;  %v4788_v1 = vld [vmem:[%s11759_s25 + $0x150] sm:$0xff] }
 0x541   : > { %v4723_v4 = vld [vmem:[%s11759_s25 + $0x147] sm:$0xff] }
 0x542   : > { %5232 = vmatmul.bf16.gmra.mxu0 %v13373_v20  ;;  %v4673_v40 = vmax.f32 %v4641_v29, 0.0  ;;  %v4724_v29 = vld [vmem:[%s11759_s25 + $0x14f] sm:$0xff] }
 0x543   : > { %v4891_v44 = vpop.f32.mrf.mxu2 }
 0x544   : > { %v5028_v19 = vpop.f32.mrf.mxu3  ;;  %6782 = vst [vmem:[#allocation2 + $0x48] sm:$0xff] %v4673_v40 }
 0x545   : > { %v13385_v14 = vadd.f32 %v5028_v19, %v4891_v44  ;;  %v4530_v18 = vpop.f32.mrf.mxu1 }
 0x546   : > { %v4606_v51 = vadd.f32 %v4530_v18, %v13190_v59  ;;  %v11313_v18 = vld [vmem:[%s15185_s7 + $0x108] sm:$0xff] }
 0x547   : > { %v4336_v0 = vpop.f32.mrf.mxu0  ;;  %5693 = vmatpush.bf16.msrb.mxu2 %v11313_v18 }
 0x548   : > { %v13389_v46 = vadd.f32 %v4336_v0, %v13203_v60  ;;  %4933 = vmatmul.bf16.gmra.mxu2 %v4808_v33  ;;  %v4642_v21 = vadd.f32 %v13340_v57, %v4606_v51  ;;  %v11321_v51 = vld [vmem:[%s15185_s7 + $0x148] sm:$0xff] }
 0x549   : > { %5070 = vmatmul.bf16.gmra.mxu3 %v4744_v38 }
 0x54a   : > { %v4674_v58 = vmax.f32 %v4642_v21, 0.0  ;;  %v4423_v21 = vld [vmem:[#allocation2 + $0x1a9] sm:$0xff]  ;;  %5927 = vmatpush.bf16.msrb.mxu3 %v11321_v51 }
 0x54b   : > { %v4894_v15 = vpop.f32.mrf.mxu2  ;;  %v4425_v51 = vld [vmem:[#allocation2 + $0x1c9] sm:$0xff] }
 0x54c   : > { %v5031_v3 = vpop.f32.mrf.mxu3  ;;  %6783 = vst [vmem:[#allocation2 + $0x50] sm:$0xff] %v4674_v58 }
 0x54d   : > { %v13394_v59 = vadd.f32 %v5031_v3, %v4894_v15  ;;  %v4533_v60 = vpop.f32.mrf.mxu1  ;;  %v5113_v15 = vld [vmem:[%s11759_s25 + $0x71] sm:$0xff] }
 0x54e   : > { %v4607_v7 = vadd.f32 %v4533_v60, %v13196_v56  ;;  %v4809_v56 = vpack.c.bf16 %v4788_v1, %v4787_v47  ;;  %v13428_v50 = vpack.c.bf16 %v5113_v15, %v5112_v63  ;;  %v4789_v47 = vld [vmem:[%s11759_s25 + $0x168] sm:$0xff]  ;;  %v4790_v1 = vld [vmem:[%s11759_s25 + $0x170] sm:$0xff] }
 0x54f   : > { %v4339_v28 = vpop.f32.mrf.mxu0  ;;  %v4426_v63 = vld [vmem:[#allocation2 + $0x1d1] sm:$0xff] }
 0x550   : > { %v13400_v36 = vadd.f32 %v4339_v28, %v13218_v16  ;;  %v4643_v25 = vadd.f32 %v13340_v57, %v4607_v7  ;;  %4572 = vmatmul.bf16.gmra.mxu1 %v4443_v27  ;;  %v4745_v16 = vpack.c.bf16 %v4724_v29, %v4723_v4  ;;  %v4725_v4 = vld [vmem:[%s11759_s25 + $0x167] sm:$0xff]  ;;  %v4726_v29 = vld [vmem:[%s11759_s25 + $0x16f] sm:$0xff]  ;;  %v4445_v10 = vpack.c.bf16 %v4426_v63, %v4425_v51 }
 0x551   : > { %v4427_v51 = vld [vmem:[#allocation2 + $0x1e9] sm:$0xff]  ;;  %v11304_v63 = vld [vmem:[%s15185_s7 + $0xc0] sm:$0xff] }
 0x552   : > { %5237 = vmatmul.bf16.gmra.mxu0 %v13396_v35  ;;  %v4675_v39 = vmax.f32 %v4643_v25, 0.0  ;;  %5460 = vmatpush.bf16.msrb.mxu1 %v11304_v63 }
 0x553   : > { %v4896_v54 = vpop.f32.mrf.mxu2 }
 0x554   : > { %v5033_v24 = vpop.f32.mrf.mxu3  ;;  %6784 = vst [vmem:[#allocation2 + $0x68] sm:$0xff] %v4675_v39 }
 0x555   : > { %v13408_v53 = vadd.f32 %v5033_v24, %v4896_v54  ;;  %v4535_v40 = vpop.f32.mrf.mxu1 }
 0x556   : > { %v4608_v44 = vadd.f32 %v4535_v40, %v13207_v6 }
 0x557   : > { %v4341_v19 = vpop.f32.mrf.mxu0 }
 0x558   : > { %v13412_v33 = vadd.f32 %v4341_v19, %v13232_v34  ;;  %4938 = vmatmul.bf16.gmra.mxu2 %v4809_v56  ;;  %v4644_v38 = vadd.f32 %v13340_v57, %v4608_v44  ;;  %v4424_v34 = vld [vmem:[#allocation2 + $0x1b1] sm:$0xff]  ;;  %v4810_v56 = vpack.c.bf16 %v4790_v1, %v4789_v47  ;;  %v4727_v47 = vld [vmem:[%s11759_s25 + $0x187] sm:$0xff] }
 0x559   : > { %5075 = vmatmul.bf16.gmra.mxu3 %v4745_v16  ;;  %v4444_v7 = vpack.c.bf16 %v4424_v34, %v4423_v21  ;;  %v4728_v1 = vld [vmem:[%s11759_s25 + $0x18f] sm:$0xff] }
 0x55a   : > { %v4676_v0 = vmax.f32 %v4644_v38, 0.0 }
 0x55b   : > { %v4899_v58 = vpop.f32.mrf.mxu2 }
 0x55c   : > { %v5036_v6 = vpop.f32.mrf.mxu3  ;;  %6785 = vst [vmem:[#allocation2 + $0x70] sm:$0xff] %v4676_v0 }
 0x55d   : > { %v13423_v3 = vadd.f32 %v5036_v6, %v4899_v58  ;;  %v4538_v48 = vpop.f32.mrf.mxu1  ;;  %v5114_v58 = vld [vmem:[%s11759_s25 + $0x89] sm:$0xff]  ;;  %v5115_v6 = vld [vmem:[%s11759_s25 + $0x91] sm:$0xff] }
 0x55e   : > { %v4609_v60 = vadd.f32 %v4538_v48, %v13225_v37  ;;  %v13451_v15 = vpack.c.bf16 %v5115_v6, %v5114_v58  ;;  %v5117_v58 = vld [vmem:[%s11759_s25 + $0xb1] sm:$0xff] }
 0x55f   : > { %v4344_v27 = vpop.f32.mrf.mxu0 }
 0x560   : > { %v13432_v28 = vadd.f32 %v4344_v27, %v13238_v55  ;;  %v4645_v25 = vadd.f32 %v13340_v57, %v4609_v60  ;;  %4577 = vmatmul.bf16.gmra.mxu1 %v4444_v7  ;;  %v4746_v55 = vpack.c.bf16 %v4726_v29, %v4725_v4  ;;  %v4791_v27 = vld [vmem:[%s11759_s25 + $0x188] sm:$0xff] }
 0x562   : > { %5242 = vmatmul.bf16.gmra.mxu0 %v13428_v50  ;;  %v4677_v39 = vmax.f32 %v4645_v25, 0.0  ;;  %v4792_v25 = vld [vmem:[%s11759_s25 + $0x190] sm:$0xff] }
 0x563   : > { %v4901_v54 = vpop.f32.mrf.mxu2 }
 0x564   : > { %v5038_v24 = vpop.f32.mrf.mxu3  ;;  %6786 = vst [vmem:[#allocation2 + $0x88] sm:$0xff] %v4677_v39 }
 0x565   : > { %v13440_v37 = vadd.f32 %v5038_v24, %v4901_v54  ;;  %v4540_v16 = vpop.f32.mrf.mxu1 }
 0x566   : > { %v4610_v40 = vadd.f32 %v4540_v16, %v13236_v2 }
 0x567   : > { %v4346_v44 = vpop.f32.mrf.mxu0 }
 0x568   : > { %v13444_v19 = vadd.f32 %v4346_v44, %v13249_v45  ;;  %4943 = vmatmul.bf16.gmra.mxu2 %v4810_v56  ;;  %v4646_v38 = vadd.f32 %v13340_v57, %v4610_v40  ;;  %v11312_v44 = vld [vmem:[%s15185_s7 + $0x100] sm:$0xff] }
 0x569   : > { %5080 = vmatmul.bf16.gmra.mxu3 %v4746_v55  ;;  %5694 = vmatpush.bf16.msrb.mxu2 %v11312_v44 }
 0x56a   : > { %v4678_v18 = vmax.f32 %v4646_v38, 0.0  ;;  %v11320_v38 = vld [vmem:[%s15185_s7 + $0x140] sm:$0xff] }
 0x56b   : > { %v4904_v0 = vpop.f32.mrf.mxu2  ;;  %5928 = vmatpush.bf16.msrb.mxu3 %v11320_v38 }
 0x56c   : > { %v5041_v21 = vpop.f32.mrf.mxu3  ;;  %6787 = vst [vmem:[#allocation2 + $0x90] sm:$0xff] %v4678_v18 }
 0x56d   : > { %v13449_v2 = vadd.f32 %v5041_v21, %v4904_v0  ;;  %v4543_v45 = vpop.f32.mrf.mxu1  ;;  %v5116_v21 = vld [vmem:[%s11759_s25 + $0xa9] sm:$0xff] }
 0x56e   : > { %v4611_v34 = vadd.f32 %v4543_v45, %v13242_v49  ;;  %v4811_v49 = vpack.c.bf16 %v4792_v25, %v4791_v27 }
 0x56f   : > { %v4349_v48 = vpop.f32.mrf.mxu0 }
 0x570   : > { %v13455_v60 = vadd.f32 %v4349_v48, %v13264_v32  ;;  %v4647_v7 = vadd.f32 %v13340_v57, %v4611_v34  ;;  %4582 = vmatmul.bf16.gmra.mxu1 %v4445_v10  ;;  %v4747_v32 = vpack.c.bf16 %v4728_v1, %v4727_v47  ;;  %v13483_v34 = vpack.c.bf16 %v5117_v58, %v5116_v21  ;;  %v4793_v47 = vld [vmem:[%s11759_s25 + $0x1a8] sm:$0xff]  ;;  %v4794_v1 = vld [vmem:[%s11759_s25 + $0x1b0] sm:$0xff] }
 0x571   : > { %v5118_v21 = vld [vmem:[%s11759_s25 + $0xc9] sm:$0xff]  ;;  %v5119_v58 = vld [vmem:[%s11759_s25 + $0xd1] sm:$0xff] }
 0x572   : > { %5247 = vmatmul.bf16.gmra.mxu0 %v13451_v15  ;;  %v4679_v4 = vmax.f32 %v4647_v7, 0.0  ;;  %v13506_v63 = vpack.c.bf16 %v5119_v58, %v5118_v21 }
 0x573   : > { %v4906_v29 = vpop.f32.mrf.mxu2 }
 0x574   : > { %v5043_v39 = vpop.f32.mrf.mxu3  ;;  %6788 = vst [vmem:[#allocation2 + $0xa8] sm:$0xff] %v4679_v4  ;;  %v4729_v4 = vld [vmem:[%s11759_s25 + $0x1a7] sm:$0xff] }
 0x575   : > { %v13463_v54 = vadd.f32 %v5043_v39, %v4906_v29  ;;  %v4545_v24 = vpop.f32.mrf.mxu1  ;;  %v4730_v29 = vld [vmem:[%s11759_s25 + $0x1af] sm:$0xff] }
 0x576   : > { %v4612_v56 = vadd.f32 %v4545_v24, %v13253_v62  ;;  %v4812_v24 = vpack.c.bf16 %v4794_v1, %v4793_v47  ;;  %v4795_v47 = vld [vmem:[%s11759_s25 + $0x1c8] sm:$0xff]  ;;  %v4796_v1 = vld [vmem:[%s11759_s25 + $0x1d0] sm:$0xff] }
 0x577   : > { %v4351_v55 = vpop.f32.mrf.mxu0 }
 0x578   : > { %v13467_v16 = vadd.f32 %v4351_v55, %v13281_v30  ;;  %4948 = vmatmul.bf16.gmra.mxu2 %v4811_v49  ;;  %v4648_v40 = vadd.f32 %v13340_v57, %v4612_v56  ;;  %v4428_v30 = vld [vmem:[#allocation2 + $0x1f1] sm:$0xff] }
 0x579   : > { %5085 = vmatmul.bf16.gmra.mxu3 %v4747_v32  ;;  %v4446_v48 = vpack.c.bf16 %v4428_v30, %v4427_v51  ;;  %v4429_v51 = vld [vmem:[#allocation2 + $0x209] sm:$0xff]  ;;  %v4430_v30 = vld [vmem:[#allocation2 + $0x211] sm:$0xff] }
 0x57a   : > { %v4680_v18 = vmax.f32 %v4648_v40, 0.0 }
 0x57b   : > { %v4909_v0 = vpop.f32.mrf.mxu2 }
 0x57c   : > { %v5046_v62 = vpop.f32.mrf.mxu3  ;;  %6789 = vst [vmem:[#allocation2 + $0xb0] sm:$0xff] %v4680_v18 }
 0x57d   : > { %v13478_v6 = vadd.f32 %v5046_v62, %v4909_v0  ;;  %v4548_v45 = vpop.f32.mrf.mxu1 }
 0x57e   : > { %v4613_v10 = vadd.f32 %v4548_v45, %v13271_v22 }
 0x57f   : > { %v4354_v7 = vpop.f32.mrf.mxu0 }
 0x580   : > { %v13487_v27 = vadd.f32 %v4354_v7, %v13293_v31  ;;  %v4649_v25 = vadd.f32 %v13340_v57, %v4613_v10  ;;  %4587 = vmatmul.bf16.gmra.mxu1 %v4446_v48  ;;  %v4748_v31 = vpack.c.bf16 %v4730_v29, %v4729_v4  ;;  %v4447_v10 = vpack.c.bf16 %v4430_v30, %v4429_v51  ;;  %v4731_v4 = vld [vmem:[%s11759_s25 + $0x1c7] sm:$0xff]  ;;  %v4732_v29 = vld [vmem:[%s11759_s25 + $0x1cf] sm:$0xff]  ;;  %v11351_v51 = vld [vmem:[%s15185_s7 + $0x238] sm:$0xff] }
 0x581   : > { %6623 = vmatpush.bf16.msra.mxu2 %v11351_v51  ;;  %v5120_v30 = vld [vmem:[%s11759_s25 + $0xe9] sm:$0xff] }
 0x582   : > { %5252 = vmatmul.bf16.gmra.mxu0 %v13483_v34  ;;  %v4681_v39 = vmax.f32 %v4649_v25, 0.0 }
 0x583   : > { %v4911_v49 = vpop.f32.mrf.mxu2 }
 0x584   : > { %v5048_v32 = vpop.f32.mrf.mxu3  ;;  %6790 = vst [vmem:[#allocation2 + $0xc8] sm:$0xff] %v4681_v39 }
 0x585   : > { %v13495_v22 = vadd.f32 %v5048_v32, %v4911_v49  ;;  %v4550_v56 = vpop.f32.mrf.mxu1 }
 0x586   : > { %v4614_v55 = vadd.f32 %v4550_v56, %v13285_v13 }
 0x587   : > { %v4356_v40 = vpop.f32.mrf.mxu0 }
 0x588   : > { %v13499_v44 = vadd.f32 %v4356_v40, %v13307_v5  ;;  %4953 = vmatmul.bf16.gmra.mxu2 %v4812_v24  ;;  %v4650_v38 = vadd.f32 %v13340_v57, %v4614_v55 }
 0x589   : > { %5090 = vmatmul.bf16.gmra.mxu3 %v4748_v31  ;;  %v4749_v31 = vpack.c.bf16 %v4732_v29, %v4731_v4 }
 0x58a   : > { %v4682_v18 = vmax.f32 %v4650_v38, 0.0 }
 0x58b   : > { %v4914_v0 = vpop.f32.mrf.mxu2 }
 0x58c   : > { %v5051_v62 = vpop.f32.mrf.mxu3  ;;  %6791 = vst [vmem:[#allocation2 + $0xd0] sm:$0xff] %v4682_v18  ;;  %v4431_v18 = vld [vmem:[#allocation2 + $0x229] sm:$0xff] }
 0x58d   : > { %v13504_v13 = vadd.f32 %v5051_v62, %v4914_v0  ;;  %v4553_v5 = vpop.f32.mrf.mxu1  ;;  %v4432_v0 = vld [vmem:[#allocation2 + $0x231] sm:$0xff] }
 0x58e   : > { %v4615_v45 = vadd.f32 %v4553_v5, %v13297_v41  ;;  %v4813_v41 = vpack.c.bf16 %v4796_v1, %v4795_v47  ;;  %v11335_v62 = vld [vmem:[%s15185_s7 + $0x1b8] sm:$0xff] }
 0x58f   : > { %v4359_v48 = vpop.f32.mrf.mxu0  ;;  %v5121_v5 = vld [vmem:[%s11759_s25 + $0xf1] sm:$0xff]  ;;  %6155 = vmatpush.bf16.msra.mxu0 %v11335_v62 }
 0x590   : > { %v13510_v7 = vadd.f32 %v4359_v48, %v13322_v9  ;;  %v4651_v25 = vadd.f32 %v13340_v57, %v4615_v45  ;;  %4592 = vmatmul.bf16.gmra.mxu1 %v4447_v10  ;;  %v4448_v10 = vpack.c.bf16 %v4432_v0, %v4431_v18  ;;  %v11343_v48 = vld [vmem:[%s15185_s7 + $0x1f8] sm:$0xff]  ;;  %v13541_v47 = vpack.c.bf16 %v5121_v5, %v5120_v30 }
 0x591   : > { %6389 = vmatpush.bf16.msra.mxu1 %v11343_v48  ;;  %v5123_v48 = vld [vmem:[%s11759_s25 + $0x111] sm:$0xff] }
 0x592   : > { %5257 = vmatmul.bf16.gmra.mxu0 %v13506_v63  ;;  %v4683_v39 = vmax.f32 %v4651_v25, 0.0 }
 0x593   : > { %v4916_v49 = vpop.f32.mrf.mxu2 }
 0x594   : > { %v5053_v32 = vpop.f32.mrf.mxu3  ;;  %6792 = vst [vmem:[#allocation2 + $0xe8] sm:$0xff] %v4683_v39 }
 0x595   : > { %v13518_v24 = vadd.f32 %v5053_v32, %v4916_v49  ;;  %v4555_v56 = vpop.f32.mrf.mxu1  ;;  %v4797_v49 = vld [vmem:[%s11759_s25 + $0x1e8] sm:$0xff]  ;;  %v4798_v32 = vld [vmem:[%s11759_s25 + $0x1f0] sm:$0xff] }
 0x596   : > { %v4616_v9 = vadd.f32 %v4555_v56, %v13311_v8  ;;  %v11367_v8 = vld [vmem:[%s15183_s5 + $0x78] sm:$0xff] }
 0x597   : > { %v4361_v55 = vpop.f32.mrf.mxu0  ;;  %6989 = vmatpush.bf16.msra.mxu3 %v11367_v8 }
 0x598   : > { %v13522_v40 = vadd.f32 %v4361_v55, %v13332_v26  ;;  %4958 = vmatmul.bf16.gmra.mxu2 %v4813_v41  ;;  %v4652_v38 = vadd.f32 %v13340_v57, %v4616_v9  ;;  %v4733_v41 = vld [vmem:[%s11759_s25 + $0x1e7] sm:$0xff] }
 0x599   : > { %5095 = vmatmul.bf16.gmra.mxu3 %v4749_v31  ;;  %v4734_v31 = vld [vmem:[%s11759_s25 + $0x1ef] sm:$0xff] }
 0x59a   : > { %v4684_v26 = vmax.f32 %v4652_v38, 0.0  ;;  %v4750_v38 = vpack.c.bf16 %v4734_v31, %v4733_v41  ;;  %v10317_v41 = vld [vmem:[%s11759_s25 + $0x28] sm:$0xff]  ;;  %v10318_v31 = vld [vmem:[%s11759_s25 + $0x30] sm:$0xff] }
 0x59b   : > { %v4919_v21 = vpop.f32.mrf.mxu2 }
 0x59c   : > { %v5056_v58 = vpop.f32.mrf.mxu3  ;;  %6793 = vst [vmem:[#allocation2 + $0xf0] sm:$0xff] %v4684_v26  ;;  %v10237_v26 = vld [vmem:[%s11759_s25 + $0x27] sm:$0xff] }
 0x59d   : > { %v13536_v45 = vadd.f32 %v5056_v58, %v4919_v21  ;;  %v4558_v25 = vpop.f32.mrf.mxu1  ;;  %v10238_v21 = vld [vmem:[%s11759_s25 + $0x2f] sm:$0xff] }
 0x59e   : > { %v4617_v1 = vadd.f32 %v4558_v25, %v13326_v11 }
 0x59f   : > { %v4364_v4 = vpop.f32.mrf.mxu0 }
 0x5a0   : > { %v13545_v29 = vadd.f32 %v4364_v4, %v13342_v17  ;;  %v4653_v39 = vadd.f32 %v13340_v57, %v4617_v1  ;;  %4597 = vmatmul.bf16.gmra.mxu1 %v4448_v10  ;;  %v4814_v17 = vpack.c.bf16 %v4798_v32, %v4797_v49  ;;  %v5122_v10 = vld [vmem:[%s11759_s25 + $0x109] sm:$0xff] }
 0x5a2   : > { %5262 = vmatmul.bf16.gmra.mxu0 %v13541_v47  ;;  %v4685_v56 = vmax.f32 %v4653_v39, 0.0 }
 0x5a3   : > { %v4921_v9 = vpop.f32.mrf.mxu2 }
 0x5a4   : > { %v5058_v55 = vpop.f32.mrf.mxu3  ;;  %6794 = vst [vmem:[#allocation2 + $0x108] sm:$0xff] %v4685_v56 }
 0x5a5   : > { %v13553_v11 = vadd.f32 %v5058_v55, %v4921_v9  ;;  %v4560_v18 = vpop.f32.mrf.mxu1 }
 0x5a6   : > { %v4618_v51 = vadd.f32 %v4560_v18, %v13336_v61  ;;  %v5372_v61 = vpack.c.bf16 %v10238_v21, %v10237_v26  ;;  %v11350_v26 = vld [vmem:[%s15185_s7 + $0x230] sm:$0xff] }
 0x5a7   : > { %v4366_v0 = vpop.f32.mrf.mxu0  ;;  %v10240_v21 = vld [vmem:[%s11759_s25 + $0x4f] sm:$0xff]  ;;  %6624 = vmatpush.bf16.msra.mxu2 %v11350_v26 }
 0x5a8   : > { %v13557_v62 = vadd.f32 %v4366_v0, %v13353_v42  ;;  %4963 = vmatmul.bf16.gmra.mxu2 %v4814_v17  ;;  %v4654_v8 = vadd.f32 %v13340_v57, %v4618_v51  ;;  %v13566_v42 = vpack.c.bf16 %v5123_v48, %v5122_v10  ;;  %v5125_v10 = vld [vmem:[%s11759_s25 + $0x131] sm:$0xff] }
 0x5a9   : > { %5100 = vmatmul.bf16.gmra.mxu3 %v4750_v38 }
 0x5aa   : > { %v4686_v58 = vmax.f32 %v4654_v8, 0.0  ;;  %v10239_v8 = vld [vmem:[%s11759_s25 + $0x47] sm:$0xff] }
 0x5ab   : > { %v4924_v30 = vpop.f32.mrf.mxu2 }
 0x5ac   : > { %v5061_v5 = vpop.f32.mrf.mxu3  ;;  %6795 = vst [vmem:[#allocation2 + $0x110] sm:$0xff] %v4686_v58 }
 0x5ad   : > { %v13564_v25 = vadd.f32 %v5061_v5, %v4924_v30  ;;  %v4563_v1 = vpop.f32.mrf.mxu1  ;;  %v5124_v5 = vld [vmem:[%s11759_s25 + $0x129] sm:$0xff] }
 0x5ae   : > { %v4619_v4 = vadd.f32 %v4563_v1, %v13346_v23  ;;  %v5606_v23 = vpack.c.bf16 %v10318_v31, %v10317_v41  ;;  %v11342_v1 = vld [vmem:[%s15185_s7 + $0x1f0] sm:$0xff] }
 0x5af   : > { %v5228_v39 = vpop.f32.mrf.mxu0  ;;  %6390 = vmatpush.bf16.msra.mxu1 %v11342_v1 }
 0x5b0   : > { %v13570_v49 = vadd.f32 %v5228_v39, %v13368_v12  ;;  %v4655_v32 = vadd.f32 %v13340_v57, %v4619_v4  ;;  %5461 = vmatmul.bf16.vlgmr.msrb.gmra.mxu1 %v5372_v61  ;;  %v13599_v61 = vpack.c.bf16 %v10240_v21, %v10239_v8  ;;  %v13604_v39 = vpack.c.bf16 %v5125_v10, %v5124_v5  ;;  %v5126_v5 = vld [vmem:[%s11759_s25 + $0x149] sm:$0xff]  ;;  %v5127_v10 = vld [vmem:[%s11759_s25 + $0x151] sm:$0xff] }
 0x5b2   : > { %5267 = vmatmul.bf16.gmra.mxu0 %v13566_v42  ;;  %v4687_v56 = vmax.f32 %v4655_v32, 0.0 }
 0x5b3   : > { %v4926_v9 = vpop.f32.mrf.mxu2 }
 0x5b4   : > { %v5063_v55 = vpop.f32.mrf.mxu3  ;;  %6796 = vst [vmem:[#allocation2 + $0x128] sm:$0xff] %v4687_v56 }
 0x5b5   : > { %v13576_v17 = vadd.f32 %v5063_v55, %v4926_v9  ;;  %v4565_v38 = vpop.f32.mrf.mxu1  ;;  %v10319_v9 = vld [vmem:[%s11759_s25 + $0x48] sm:$0xff]  ;;  %v10320_v55 = vld [vmem:[%s11759_s25 + $0x50] sm:$0xff] }
 0x5b6   : > { %v4620_v12 = vadd.f32 %v4565_v38, %v13357_v43  ;;  %v11334_v43 = vld [vmem:[%s15185_s7 + $0x1b0] sm:$0xff] }
 0x5b7   : > { %v5230_v18 = vpop.f32.mrf.mxu0  ;;  %6156 = vmatpush.bf16.msra.mxu0 %v11334_v43  ;;  %v10241_v43 = vld [vmem:[%s11759_s25 + $0x67] sm:$0xff] }
 0x5b8   : > { %v13580_v51 = vadd.f32 %v5230_v18, %v13385_v14  ;;  %5695 = vmatmul.bf16.vlgmr.msrb.gmra.mxu2 %v5606_v23  ;;  %v4656_v0 = vadd.f32 %v13340_v57, %v4620_v12  ;;  %v11366_v14 = vld [vmem:[%s15183_s5 + $0x70] sm:$0xff] }
 0x5b9   : > { %5929 = vmatmul.bf16.vlgmr.msrb.gmra.mxu3 %v13373_v20 }
 0x5ba   : > { %v4688_v58 = vmax.f32 %v4656_v0, 0.0  ;;  %6990 = vmatpush.bf16.msra.mxu3 %v11366_v14  ;;  %v10242_v14 = vld [vmem:[%s11759_s25 + $0x6f] sm:$0xff] }
 0x5bb   : > { %v4929_v30 = vpop.f32.mrf.mxu2 }
 0x5bc   : > { %v5066_v20 = vpop.f32.mrf.mxu3  ;;  %6797 = vst [vmem:[#allocation2 + $0x130] sm:$0xff] %v4688_v58 }
 0x5bd   : > { %v13597_v48 = vadd.f32 %v5066_v20, %v4929_v30  ;;  %v4568_v4 = vpop.f32.mrf.mxu1 }
 0x5be   : > { %v4621_v32 = vadd.f32 %v4568_v4, %v13377_v52  ;;  %v13631_v4 = vpack.c.bf16 %v5127_v10, %v5126_v5  ;;  %v5128_v5 = vld [vmem:[%s11759_s25 + $0x169] sm:$0xff]  ;;  %v5129_v10 = vld [vmem:[%s11759_s25 + $0x171] sm:$0xff] }
 0x5bf   : > { %v5233_v41 = vpop.f32.mrf.mxu0 }
 0x5c0   : > { %v13608_v31 = vadd.f32 %v5233_v41, %v13394_v59  ;;  %v4657_v56 = vadd.f32 %v13340_v57, %v4621_v32  ;;  %5466 = vmatmul.bf16.gmra.mxu1 %v13599_v61  ;;  %v5607_v59 = vpack.c.bf16 %v10320_v55, %v10319_v9  ;;  %v10321_v9 = vld [vmem:[%s11759_s25 + $0x68] sm:$0xff]  ;;  %v10322_v55 = vld [vmem:[%s11759_s25 + $0x70] sm:$0xff] }
 0x5c2   : > { %5272 = vmatmul.bf16.gmra.mxu0 %v13604_v39  ;;  %v4689_v23 = vmax.f32 %v4657_v56, 0.0 }
 0x5c3   : > { %v4931_v38 = vpop.f32.mrf.mxu2 }
 0x5c4   : > { %v5068_v12 = vpop.f32.mrf.mxu3  ;;  %6798 = vst [vmem:[#allocation2 + $0x148] sm:$0xff] %v4689_v23 }
 0x5c5   : > { %v13615_v52 = vadd.f32 %v5068_v12, %v4931_v38  ;;  %v4570_v18 = vpop.f32.mrf.mxu1 }
 0x5c6   : > { %v4622_v0 = vadd.f32 %v4570_v18, %v13389_v46  ;;  %v13629_v46 = vpack.c.bf16 %v10242_v14, %v10241_v43  ;;  %v10243_v43 = vld [vmem:[%s11759_s25 + $0x87] sm:$0xff] }
 0x5c7   : > { %v5235_v8 = vpop.f32.mrf.mxu0  ;;  %v11349_v14 = vld [vmem:[%s15185_s7 + $0x228] sm:$0xff] }
 0x5c8   : > { %v13619_v26 = vadd.f32 %v5235_v8, %v13408_v53  ;;  %5700 = vmatmul.bf16.gmra.mxu2 %v5607_v59  ;;  %v4658_v21 = vadd.f32 %v13340_v57, %v4622_v0 }
 0x5c9   : > { %5934 = vmatmul.bf16.gmra.mxu3 %v13396_v35  ;;  %6625 = vmatpush.bf16.msra.mxu2 %v11349_v14 }
 0x5ca   : > { %v4690_v58 = vmax.f32 %v4658_v21, 0.0 }
 0x5cb   : > { %v4934_v30 = vpop.f32.mrf.mxu2 }
 0x5cc   : > { %v5071_v20 = vpop.f32.mrf.mxu3  ;;  %6799 = vst [vmem:[#allocation2 + $0x150] sm:$0xff] %v4690_v58  ;;  %v10244_v58 = vld [vmem:[%s11759_s25 + $0x8f] sm:$0xff] }
 0x5cd   : > { %v13627_v1 = vadd.f32 %v5071_v20, %v4934_v30  ;;  %v4573_v53 = vpop.f32.mrf.mxu1 }
 0x5ce   : > { %v4623_v35 = vadd.f32 %v4573_v53, %v13400_v36  ;;  %v5608_v36 = vpack.c.bf16 %v10322_v55, %v10321_v9  ;;  %v13670_v9 = vpack.c.bf16 %v5129_v10, %v5128_v5 }
 0x5cf   : > { %v5238_v32 = vpop.f32.mrf.mxu0 }
 0x5d0   : > { %v13635_v41 = vadd.f32 %v5238_v32, %v13423_v3  ;;  %v4659_v56 = vadd.f32 %v13340_v57, %v4623_v35  ;;  %5471 = vmatmul.bf16.gmra.mxu1 %v13629_v46  ;;  %v13665_v35 = vpack.c.bf16 %v10244_v58, %v10243_v43  ;;  %v11341_v32 = vld [vmem:[%s15185_s7 + $0x1e8] sm:$0xff] }
 0x5d1   : > { %6391 = vmatpush.bf16.msra.mxu1 %v11341_v32  ;;  %v5130_v32 = vld [vmem:[%s11759_s25 + $0x189] sm:$0xff] }
 0x5d2   : > { %5277 = vmatmul.bf16.gmra.mxu0 %v13631_v4  ;;  %v4691_v23 = vmax.f32 %v4659_v56, 0.0 }
 0x5d3   : > { %v4936_v38 = vpop.f32.mrf.mxu2 }
 0x5d4   : > { %v5073_v12 = vpop.f32.mrf.mxu3  ;;  %6800 = vst [vmem:[#allocation2 + $0x168] sm:$0xff] %v4691_v23 }
 0x5d5   : > { %v13642_v59 = vadd.f32 %v5073_v12, %v4936_v38  ;;  %v4575_v18 = vpop.f32.mrf.mxu1 }
 0x5d6   : > { %v4624_v3 = vadd.f32 %v4575_v18, %v13412_v33  ;;  %v11333_v33 = vld [vmem:[%s15185_s7 + $0x1a8] sm:$0xff]  ;;  %v10324_v18 = vld [vmem:[%s11759_s25 + $0x90] sm:$0xff] }
 0x5d7   : > { %v5240_v0 = vpop.f32.mrf.mxu0  ;;  %6157 = vmatpush.bf16.msra.mxu0 %v11333_v33 }
 0x5d8   : > { %v13646_v8 = vadd.f32 %v5240_v0, %v13440_v37  ;;  %5705 = vmatmul.bf16.gmra.mxu2 %v5608_v36  ;;  %v4660_v21 = vadd.f32 %v13340_v57, %v4624_v3  ;;  %v11365_v37 = vld [vmem:[%s15183_s5 + $0x68] sm:$0xff] }
 0x5d9   : > { %5939 = vmatmul.bf16.gmra.mxu3 %v13428_v50  ;;  %v10323_v36 = vld [vmem:[%s11759_s25 + $0x88] sm:$0xff] }
 0x5da   : > { %v4692_v30 = vmax.f32 %v4660_v21, 0.0  ;;  %6991 = vmatpush.bf16.msra.mxu3 %v11365_v37 }
 0x5db   : > { %v4939_v20 = vpop.f32.mrf.mxu2 }
 0x5dc   : > { %v5076_v50 = vpop.f32.mrf.mxu3  ;;  %6801 = vst [vmem:[#allocation2 + $0x170] sm:$0xff] %v4692_v30  ;;  %v10245_v30 = vld [vmem:[%s11759_s25 + $0xa7] sm:$0xff] }
 0x5dd   : > { %v13663_v53 = vadd.f32 %v5076_v50, %v4939_v20  ;;  %v4578_v56 = vpop.f32.mrf.mxu1  ;;  %v10246_v20 = vld [vmem:[%s11759_s25 + $0xaf] sm:$0xff] }
 0x5de   : > { %v4625_v55 = vadd.f32 %v4578_v56, %v13432_v28  ;;  %v5131_v56 = vld [vmem:[%s11759_s25 + $0x191] sm:$0xff] }
 0x5df   : > { %v5243_v23 = vpop.f32.mrf.mxu0 }
 0x5e0   : > { %v13674_v38 = vadd.f32 %v5243_v23, %v13449_v2  ;;  %v4661_v12 = vadd.f32 %v13340_v57, %v4625_v55  ;;  %5476 = vmatmul.bf16.gmra.mxu1 %v13665_v35  ;;  %v5609_v2 = vpack.c.bf16 %v10324_v18, %v10323_v36  ;;  %v13697_v23 = vpack.c.bf16 %v5131_v56, %v5130_v32 }
 0x5e2   : > { %5282 = vmatmul.bf16.gmra.mxu0 %v13670_v9  ;;  %v4693_v3 = vmax.f32 %v4661_v12, 0.0 }
 0x5e3   : > { %v4941_v0 = vpop.f32.mrf.mxu2 }
 0x5e4   : > { %v5078_v21 = vpop.f32.mrf.mxu3  ;;  %6802 = vst [vmem:[#allocation2 + $0x188] sm:$0xff] %v4693_v3  ;;  %v10325_v3 = vld [vmem:[%s11759_s25 + $0xa8] sm:$0xff] }
 0x5e5   : > { %v13681_v28 = vadd.f32 %v5078_v21, %v4941_v0  ;;  %v4580_v43 = vpop.f32.mrf.mxu1  ;;  %v10326_v0 = vld [vmem:[%s11759_s25 + $0xb0] sm:$0xff] }
 0x5e6   : > { %v4626_v14 = vadd.f32 %v4580_v43, %v13444_v19  ;;  %v13695_v19 = vpack.c.bf16 %v10246_v20, %v10245_v30 }
 0x5e7   : > { %v5245_v58 = vpop.f32.mrf.mxu0 }
 0x5e8   : > { %v13685_v33 = vadd.f32 %v5245_v58, %v13463_v54  ;;  %5710 = vmatmul.bf16.gmra.mxu2 %v5609_v2  ;;  %v4662_v37 = vadd.f32 %v13340_v57, %v4626_v14 }
 0x5e9   : > { %5944 = vmatmul.bf16.gmra.mxu3 %v13451_v15 }
 0x5ea   : > { %v4694_v50 = vmax.f32 %v4662_v37, 0.0 }
 0x5eb   : > { %v4944_v5 = vpop.f32.mrf.mxu2 }
 0x5ec   : > { %v5081_v10 = vpop.f32.mrf.mxu3  ;;  %6803 = vst [vmem:[#allocation2 + $0x190] sm:$0xff] %v4694_v50  ;;  %v10247_v50 = vld [vmem:[%s11759_s25 + $0xc7] sm:$0xff] }
 0x5ed   : > { %v13693_v55 = vadd.f32 %v5081_v10, %v4944_v5  ;;  %v4583_v54 = vpop.f32.mrf.mxu1  ;;  %v11348_v5 = vld [vmem:[%s15185_s7 + $0x220] sm:$0xff]  ;;  %v10248_v10 = vld [vmem:[%s11759_s25 + $0xcf] sm:$0xff] }
 0x5ee   : > { %v4627_v15 = vadd.f32 %v4583_v54, %v13455_v60  ;;  %v5610_v60 = vpack.c.bf16 %v10326_v0, %v10325_v3  ;;  %6626 = vmatpush.bf16.msra.mxu2 %v11348_v5  ;;  %v5132_v54 = vld [vmem:[%s11759_s25 + $0x1a9] sm:$0xff] }
 0x5ef   : > { %v5248_v12 = vpop.f32.mrf.mxu0 }
 0x5f0   : > { %v13701_v36 = vadd.f32 %v5248_v12, %v13478_v6  ;;  %v4663_v18 = vadd.f32 %v13340_v57, %v4627_v15  ;;  %5481 = vmatmul.bf16.gmra.mxu1 %v13695_v19  ;;  %v13731_v12 = vpack.c.bf16 %v10248_v10, %v10247_v50  ;;  %v11331_v10 = vld [vmem:[%s15185_s7 + $0x198] sm:$0xff] }
 0x5f2   : > { %5287 = vmatmul.bf16.gmra.mxu0 %v13697_v23  ;;  %v4695_v21 = vmax.f32 %v4663_v18, 0.0  ;;  %v11340_v18 = vld [vmem:[%s15185_s7 + $0x1e0] sm:$0xff] }
 0x5f3   : > { %v4946_v2 = vpop.f32.mrf.mxu2  ;;  %6392 = vmatpush.bf16.msra.mxu1 %v11340_v18  ;;  %v10250_v18 = vld [vmem:[%s11759_s25 + $0xef] sm:$0xff] }
 0x5f4   : > { %v5083_v43 = vpop.f32.mrf.mxu3  ;;  %6804 = vst [vmem:[#allocation2 + $0x1a8] sm:$0xff] %v4695_v21 }
 0x5f5   : > { %v13708_v14 = vadd.f32 %v5083_v43, %v4946_v2  ;;  %v4585_v58 = vpop.f32.mrf.mxu1 }
 0x5f6   : > { %v4628_v6 = vadd.f32 %v4585_v58, %v13467_v16  ;;  %v11332_v16 = vld [vmem:[%s15185_s7 + $0x1a0] sm:$0xff] }
 0x5f7   : > { %v5250_v37 = vpop.f32.mrf.mxu0  ;;  %6158 = vmatpush.bf16.msra.mxu0 %v11332_v16 }
 0x5f8   : > { %v13712_v30 = vadd.f32 %v5250_v37, %v13495_v22  ;;  %5715 = vmatmul.bf16.gmra.mxu2 %v5610_v60  ;;  %v4664_v20 = vadd.f32 %v13340_v57, %v4628_v6  ;;  %v11364_v22 = vld [vmem:[%s15183_s5 + $0x60] sm:$0xff]  ;;  %v5133_v57 = vld [vmem:[%s11759_s25 + $0x1b1] sm:$0xff]  ;;  %v10327_v6 = vld [vmem:[%s11759_s25 + $0xc8] sm:$0xff] }
 0x5f9   : > { %5949 = vmatmul.bf16.gmra.mxu3 %v13483_v34  ;;  %v13736_v0 = vpack.c.bf16 %v5133_v57, %v5132_v54  ;;  %v13742_v60 = vld [vmem:[#allocation3] ss:$0 sm:$0xff]  ;;  %v10328_v37 = vld [vmem:[%s11759_s25 + $0xd0] sm:$0xff]  ;;  %v10249_v57 = vld [vmem:[%s11759_s25 + $0xe7] sm:$0xff] }
 0x5fa   : > { %v4696_v32 = vmax.f32 %v4664_v20, 0.0  ;;  %6992 = vmatpush.bf16.msra.mxu3 %v11364_v22  ;;  %v11330_v54 = vld [vmem:[%s15185_s7 + $0x190] sm:$0xff] }
 0x5fb   : > { %v4949_v56 = vpop.f32.mrf.mxu2  ;;  %6159 = vmatpush.bf16.msra.mxu0 %v11331_v10 }
 0x5fc   : > { %v5086_v34 = vpop.f32.mrf.mxu3  ;;  %6805 = vst [vmem:[#allocation2 + $0x1b0] sm:$0xff] %v4696_v32 }
 0x5fd   : > { %v13729_v15 = vadd.f32 %v5086_v34, %v4949_v56  ;;  %v4588_v3 = vpop.f32.mrf.mxu1 }
 0x5fe   : > { %v4629_v21 = vadd.f32 %v4588_v3, %v13487_v27 }
 0x5ff   : > { %v5253_v2 = vpop.f32.mrf.mxu0  ;;  %6160 = vmatpush.bf16.msra.mxu0 %v11330_v54 }
 0x600   : > { %v13740_v43 = vadd.f32 %v5253_v2, %v13504_v13  ;;  %v4665_v58 = vadd.f32 %v13742_v60, %v4629_v21  ;;  %5486 = vmatmul.bf16.gmra.mxu1 %v13731_v12  ;;  %v5611_v13 = vpack.c.bf16 %v10328_v37, %v10327_v6  ;;  %v5134_v2 = vld [vmem:[%s11759_s25 + $0x1c9] sm:$0xff] }
 0x601   : > { %v11329_v6 = vld [vmem:[%s15185_s7 + $0x188] sm:$0xff] }
 0x602   : > { %5292 = vmatmul.bf16.gmra.mxu0 %v13736_v0  ;;  %v4697_v20 = vmax.f32 %v4665_v58, 0.0 }
 0x603   : > { %v4951_v50 = vpop.f32.mrf.mxu2  ;;  %6161 = vmatpush.bf16.msra.mxu0 %v11329_v6  ;;  %v10251_v6 = vld [vmem:[%s11759_s25 + $0x107] sm:$0xff] }
 0x604   : > { %v5088_v27 = vpop.f32.mrf.mxu3  ;;  %6806 = vst [vmem:[#allocation2 + $0x1c8] sm:$0xff] %v4697_v20 }
 0x605   : > { %v13749_v5 = vadd.f32 %v5088_v27, %v4951_v50  ;;  %v4590_v16 = vpop.f32.mrf.mxu1 }
 0x606   : > { %v4630_v22 = vadd.f32 %v4590_v16, %v13499_v44  ;;  %v11328_v16 = vld [vmem:[%s15185_s7 + $0x180] sm:$0xff] }
 0x607   : > { %v5255_v32 = vpop.f32.mrf.mxu0  ;;  %6162 = vmatpush.bf16.msra.mxu0 %v11328_v16 }
 0x608   : > { %v13756_v56 = vadd.f32 %v5255_v32, %v13518_v24  ;;  %5720 = vmatmul.bf16.gmra.mxu2 %v5611_v13  ;;  %v4666_v34 = vadd.f32 %v13742_v60, %v4630_v22  ;;  %v5135_v24 = vld [vmem:[%s11759_s25 + $0x1d1] sm:$0xff]  ;;  %v10329_v22 = vld [vmem:[%s11759_s25 + $0xe8] sm:$0xff] }
 0x609   : > { %5954 = vmatmul.bf16.gmra.mxu3 %v13506_v63  ;;  %v13769_v63 = vpack.c.bf16 %v10250_v18, %v10249_v57  ;;  %v13774_v20 = vpack.c.bf16 %v5135_v24, %v5134_v2  ;;  %v10330_v32 = vld [vmem:[%s11759_s25 + $0xf0] sm:$0xff]  ;;  %v11347_v24 = vld [vmem:[%s15185_s7 + $0x218] sm:$0xff] }
 0x60a   : > { %v4698_v3 = vmax.f32 %v4666_v34, 0.0  ;;  %v5612_v57 = vpack.c.bf16 %v10330_v32, %v10329_v22  ;;  %6627 = vmatpush.bf16.msra.mxu2 %v11347_v24 }
 0x60b   : > { %v4954_v21 = vpop.f32.mrf.mxu2 }
 0x60c   : > { %v5091_v44 = vpop.f32.mrf.mxu3  ;;  %6807 = vst [vmem:[#allocation2 + $0x1d0] sm:$0xff] %v4698_v3 }
 0x60d   : > { %v13767_v58 = vadd.f32 %v5091_v44, %v4954_v21  ;;  %v4593_v37 = vpop.f32.mrf.mxu1 }
 0x60e   : > { %v4631_v50 = vadd.f32 %v4593_v37, %v13510_v7  ;;  %v10252_v37 = vld [vmem:[%s11759_s25 + $0x10f] sm:$0xff] }
 0x60f   : > { %v5258_v27 = vpop.f32.mrf.mxu0  ;;  %v13808_v22 = vpack.c.bf16 %v10252_v37, %v10251_v6 }
 0x610   : > { %v13778_v13 = vadd.f32 %v5258_v27, %v13536_v45  ;;  %v4667_v10 = vadd.f32 %v13742_v60, %v4631_v50  ;;  %5491 = vmatmul.bf16.gmra.mxu1 %v13769_v63  ;;  %v11363_v50 = vld [vmem:[%s15183_s5 + $0x58] sm:$0xff] }
 0x611   : > { %6993 = vmatpush.bf16.msra.mxu3 %v11363_v50 }
 0x612   : > { %5297 = vmatmul.bf16.gmra.mxu0 %v13774_v20  ;;  %v4699_v34 = vmax.f32 %v4667_v10, 0.0  ;;  %v5136_v10 = vld [vmem:[%s11759_s25 + $0x1e9] sm:$0xff] }
 0x613   : > { %v4956_v7 = vpop.f32.mrf.mxu2 }
 0x614   : > { %v5093_v54 = vpop.f32.mrf.mxu3  ;;  %6808 = vst [vmem:[#allocation2 + $0x1e8] sm:$0xff] %v4699_v34 }
 0x615   : > { %v13788_v45 = vadd.f32 %v5093_v54, %v4956_v7  ;;  %v4595_v18 = vpop.f32.mrf.mxu1  ;;  %v11339_v54 = vld [vmem:[%s15185_s7 + $0x1d8] sm:$0xff] }
 0x616   : > { %v4632_v3 = vadd.f32 %v4595_v18, %v13522_v40  ;;  %6393 = vmatpush.bf16.msra.mxu1 %v11339_v54 }
 0x617   : > { %v5260_v21 = vpop.f32.mrf.mxu0 }
 0x618   : > { %v13792_v44 = vadd.f32 %v5260_v21, %v13553_v11  ;;  %5725 = vmatmul.bf16.gmra.mxu2 %v5612_v57  ;;  %v4668_v2 = vadd.f32 %v13742_v60, %v4632_v3  ;;  %v10331_v21 = vld [vmem:[%s11759_s25 + $0x108] sm:$0xff] }
 0x619   : > { %5959 = vmatmul.bf16.gmra.mxu3 %v13541_v47  ;;  %v5137_v47 = vld [vmem:[%s11759_s25 + $0x1f1] sm:$0xff] }
 0x61a   : > { %v4700_v40 = vmax.f32 %v4668_v2, 0.0  ;;  %v13810_v34 = vpack.c.bf16 %v5137_v47, %v5136_v10  ;;  %v10332_v2 = vld [vmem:[%s11759_s25 + $0x110] sm:$0xff]  ;;  %v10253_v47 = vld [vmem:[%s11759_s25 + $0x127] sm:$0xff] }
 0x61b   : > { %v4959_v27 = vpop.f32.mrf.mxu2  ;;  %v5613_v50 = vpack.c.bf16 %v10332_v2, %v10331_v21 }
 0x61c   : > { %v5096_v11 = vpop.f32.mrf.mxu3  ;;  %6809 = vst [vmem:[#allocation2 + $0x1f0] sm:$0xff] %v4700_v40 }
 0x61d   : > { %v13806_v16 = vadd.f32 %v5096_v11, %v4959_v27  ;;  %v4598_v32 = vpop.f32.mrf.mxu1 }
 0x61e   : > { %v4633_v7 = vadd.f32 %v4598_v32, %v13545_v29  ;;  %v10254_v32 = vld [vmem:[%s11759_s25 + $0x12f] sm:$0xff] }
 0x61f   : > { %v5263_v57 = vpop.f32.mrf.mxu0 }
 0x620   : > { %v13817_v18 = vadd.f32 %v5263_v57, %v13564_v25  ;;  %v4669_v3 = vadd.f32 %v13742_v60, %v4633_v7  ;;  %5496 = vmatmul.bf16.gmra.mxu1 %v13808_v22 }
 0x622   : > { %5302 = vmatmul.bf16.gmra.mxu0 %v13810_v34  ;;  %v4701_v29 = vmax.f32 %v4669_v3, 0.0 }
 0x623   : > { %v4961_v24 = vpop.f32.mrf.mxu2 }
 0x624   : > { %v5098_v6 = vpop.f32.mrf.mxu3  ;;  %6810 = vst [vmem:[#allocation2 + $0x208] sm:$0xff] %v4701_v29 }
 0x625   : > { %v13824_v37 = vadd.f32 %v5098_v6, %v4961_v24  ;;  %v4600_v25 = vpop.f32.mrf.mxu1 }
 0x626   : > { %v4634_v40 = vadd.f32 %v4600_v25, %v13557_v62  ;;  %v13836_v62 = vpack.c.bf16 %v10254_v32, %v10253_v47  ;;  %v10256_v47 = vld [vmem:[%s11759_s25 + $0x14f] sm:$0xff] }
 0x627   : > { %v5265_v27 = vpop.f32.mrf.mxu0  ;;  %v11362_v32 = vld [vmem:[%s15183_s5 + $0x50] sm:$0xff] }
 0x628   : > { %v13828_v11 = vadd.f32 %v5265_v27, %v13576_v17  ;;  %5730 = vmatmul.bf16.gmra.mxu2 %v5613_v50  ;;  %v4670_v10 = vadd.f32 %v13742_v60, %v4634_v40  ;;  %v10334_v60 = vld [vmem:[%s11759_s25 + $0x130] sm:$0xff]  ;;  %6994 = vmatpush.bf16.msra.mxu3 %v11362_v32  ;;  %v10257_v32 = vld [vmem:[%s11759_s25 + $0x167] sm:$0xff] }
 0x629   : > { %5964 = vmatmul.bf16.gmra.mxu3 %v13566_v42  ;;  %v10333_v42 = vld [vmem:[%s11759_s25 + $0x128] sm:$0xff] }
 0x62a   : > { %v4702_v7 = vmax.f32 %v4670_v10, 0.0  ;;  %v5614_v25 = vpack.c.bf16 %v10334_v60, %v10333_v42  ;;  %v11346_v10 = vld [vmem:[%s15185_s7 + $0x210] sm:$0xff] }
 0x62b   : > { %v4964_v54 = vpop.f32.mrf.mxu2  ;;  %6628 = vmatpush.bf16.msra.mxu2 %v11346_v10 }
 0x62c   : > { %v5101_v57 = vpop.f32.mrf.mxu3  ;;  %6811 = vst [vmem:[#allocation2 + $0x210] sm:$0xff] %v4702_v7 }
 0x62d   : > { %v13834_v3 = vadd.f32 %v5101_v57, %v4964_v54  ;;  %v5462_v21 = vpop.f32.mrf.mxu1 }
 0x62e   : > { %v5542_v17 = vadd.f32 %v5462_v21, %v13570_v49 }
 0x62f   : > { %v5268_v2 = vpop.f32.mrf.mxu0 }
 0x630   : > { %v13840_v29 = vadd.f32 %v5268_v2, %v13597_v48  ;;  %5501 = vmatmul.bf16.gmra.mxu1 %v13836_v62  ;;  %v11338_v2 = vld [vmem:[%s15185_s7 + $0x1d0] sm:$0xff] }
 0x631   : > { %6394 = vmatpush.bf16.msra.mxu1 %v11338_v2 }
 0x632   : > { %6163 = vmatmul.bf16.vlgmr.msra.gmra.mxu0 %v13599_v61  ;;  %v10255_v61 = vld [vmem:[%s11759_s25 + $0x147] sm:$0xff] }
 0x633   : > { %v4966_v24 = vpop.f32.mrf.mxu2  ;;  %v13861_v54 = vpack.c.bf16 %v10256_v47, %v10255_v61 }
 0x634   : > { %v5103_v6 = vpop.f32.mrf.mxu3 }
 0x635   : > { %v13846_v50 = vadd.f32 %v5103_v6, %v4966_v24  ;;  %v5464_v40 = vpop.f32.mrf.mxu1  ;;  %v10335_v24 = vld [vmem:[%s11759_s25 + $0x148] sm:$0xff] }
 0x636   : > { %v5543_v49 = vadd.f32 %v5464_v40, %v13580_v51 }
 0x637   : > { %v5270_v27 = vpop.f32.mrf.mxu0 }
 0x638   : > { %v13850_v48 = vadd.f32 %v5270_v27, %v13615_v52  ;;  %5735 = vmatmul.bf16.gmra.mxu2 %v5614_v25 }
 0x639   : > { %5969 = vmatmul.bf16.gmra.mxu3 %v13604_v39 }
 0x63b   : > { %v5696_v51 = vpop.f32.mrf.mxu2 }
 0x63c   : > { %v5930_v7 = vpop.f32.mrf.mxu3  ;;  %v5776_v52 = vadd.f32 %v5696_v51, %v5542_v17  ;;  %v10336_v17 = vld [vmem:[%s11759_s25 + $0x150] sm:$0xff] }
 0x63d   : > { %v5467_v39 = vpop.f32.mrf.mxu1  ;;  %v5615_v40 = vpack.c.bf16 %v10336_v17, %v10335_v24  ;;  %v10338_v24 = vld [vmem:[%s11759_s25 + $0x170] sm:$0xff] }
 0x63e   : > { %v13863_v57 = vadd.f32 %v5930_v7, %v5776_v52  ;;  %v5544_v21 = vadd.f32 %v5467_v39, %v13608_v31 }
 0x63f   : > { %v5273_v42 = vpop.f32.mrf.mxu0 }
 0x640   : > { %v13870_v60 = vadd.f32 %v5273_v42, %v13627_v1  ;;  %5506 = vmatmul.bf16.gmra.mxu1 %v13861_v54 }
 0x642   : > { %6168 = vmatmul.bf16.gmra.mxu0 %v13629_v46  ;;  %v10258_v46 = vld [vmem:[%s11759_s25 + $0x16f] sm:$0xff] }
 0x643   : > { %v5698_v6 = vpop.f32.mrf.mxu2  ;;  %v13885_v52 = vpack.c.bf16 %v10258_v46, %v10257_v32  ;;  %v11361_v32 = vld [vmem:[%s15183_s5 + $0x48] sm:$0xff] }
 0x644   : > { %v5932_v25 = vpop.f32.mrf.mxu3  ;;  %v5777_v31 = vadd.f32 %v5698_v6, %v5543_v49  ;;  %6995 = vmatpush.bf16.msra.mxu3 %v11361_v32 }
 0x645   : > { %v5469_v27 = vpop.f32.mrf.mxu1 }
 0x646   : > { %v13876_v10 = vadd.f32 %v5932_v25, %v5777_v31  ;;  %v5545_v61 = vadd.f32 %v5469_v27, %v13619_v26 }
 0x647   : > { %v5275_v1 = vpop.f32.mrf.mxu0 }
 0x648   : > { %v13880_v47 = vadd.f32 %v5275_v1, %v13642_v59  ;;  %5740 = vmatmul.bf16.gmra.mxu2 %v5615_v40  ;;  %v10259_v1 = vld [vmem:[%s11759_s25 + $0x187] sm:$0xff] }
 0x649   : > { %5974 = vmatmul.bf16.gmra.mxu3 %v13631_v4  ;;  %v10337_v4 = vld [vmem:[%s11759_s25 + $0x168] sm:$0xff] }
 0x64a   : > { %v5616_v25 = vpack.c.bf16 %v10338_v24, %v10337_v4  ;;  %v10339_v24 = vld [vmem:[%s11759_s25 + $0x188] sm:$0xff] }
 0x64b   : > { %v5701_v51 = vpop.f32.mrf.mxu2 }
 0x64c   : > { %v5935_v7 = vpop.f32.mrf.mxu3  ;;  %v5778_v49 = vadd.f32 %v5701_v51, %v5544_v21 }
 0x64d   : > { %v5472_v39 = vpop.f32.mrf.mxu1 }
 0x64e   : > { %v13887_v2 = vadd.f32 %v5935_v7, %v5778_v49  ;;  %v5546_v26 = vadd.f32 %v5472_v39, %v13635_v41  ;;  %v11337_v39 = vld [vmem:[%s15185_s7 + $0x1c8] sm:$0xff] }
 0x64f   : > { %v5278_v42 = vpop.f32.mrf.mxu0  ;;  %6395 = vmatpush.bf16.msra.mxu1 %v11337_v39  ;;  %v10342_v39 = vld [vmem:[%s11759_s25 + $0x1b0] sm:$0xff] }
 0x650   : > { %v13891_v59 = vadd.f32 %v5278_v42, %v13663_v53  ;;  %5511 = vmatmul.bf16.gmra.mxu1 %v13885_v52 }
 0x652   : > { %6173 = vmatmul.bf16.gmra.mxu0 %v13665_v35  ;;  %v11345_v35 = vld [vmem:[%s15185_s7 + $0x208] sm:$0xff] }
 0x653   : > { %v5703_v21 = vpop.f32.mrf.mxu2  ;;  %6629 = vmatpush.bf16.msra.mxu2 %v11345_v35 }
 0x654   : > { %v5937_v17 = vpop.f32.mrf.mxu3  ;;  %v5779_v6 = vadd.f32 %v5703_v21, %v5545_v61  ;;  %v10260_v61 = vld [vmem:[%s11759_s25 + $0x18f] sm:$0xff] }
 0x655   : > { %v5474_v31 = vpop.f32.mrf.mxu1  ;;  %v13912_v51 = vpack.c.bf16 %v10260_v61, %v10259_v1  ;;  %v10261_v1 = vld [vmem:[%s11759_s25 + $0x1a7] sm:$0xff] }
 0x656   : > { %v13897_v40 = vadd.f32 %v5937_v17, %v5779_v6  ;;  %v5547_v41 = vadd.f32 %v5474_v31, %v13646_v8 }
 0x657   : > { %v5280_v27 = vpop.f32.mrf.mxu0 }
 0x658   : > { %v13901_v53 = vadd.f32 %v5280_v27, %v13681_v28  ;;  %5745 = vmatmul.bf16.gmra.mxu2 %v5616_v25 }
 0x659   : > { %5979 = vmatmul.bf16.gmra.mxu3 %v13670_v9 }
 0x65b   : > { %v5706_v8 = vpop.f32.mrf.mxu2 }
 0x65c   : > { %v5940_v46 = vpop.f32.mrf.mxu3  ;;  %v5780_v28 = vadd.f32 %v5706_v8, %v5546_v26  ;;  %v10340_v26 = vld [vmem:[%s11759_s25 + $0x190] sm:$0xff] }
 0x65d   : > { %v5477_v9 = vpop.f32.mrf.mxu1  ;;  %v5617_v6 = vpack.c.bf16 %v10340_v26, %v10339_v24 }
 0x65e   : > { %v13914_v7 = vadd.f32 %v5940_v46, %v5780_v28  ;;  %v5548_v49 = vadd.f32 %v5477_v9, %v13674_v38 }
 0x65f   : > { %v5283_v42 = vpop.f32.mrf.mxu0 }
 0x660   : > { %v13921_v4 = vadd.f32 %v5283_v42, %v13693_v55  ;;  %5516 = vmatmul.bf16.gmra.mxu1 %v13912_v51 }
 0x662   : > { %6178 = vmatmul.bf16.gmra.mxu0 %v13695_v19  ;;  %v10262_v19 = vld [vmem:[%s11759_s25 + $0x1af] sm:$0xff] }
 0x663   : > { %v5708_v21 = vpop.f32.mrf.mxu2  ;;  %v13936_v8 = vpack.c.bf16 %v10262_v19, %v10261_v1 }
 0x664   : > { %v5942_v17 = vpop.f32.mrf.mxu3  ;;  %v5781_v38 = vadd.f32 %v5708_v21, %v5547_v41 }
 0x665   : > { %v5479_v25 = vpop.f32.mrf.mxu1 }
 0x666   : > { %v13927_v31 = vadd.f32 %v5942_v17, %v5781_v38  ;;  %v5549_v27 = vadd.f32 %v5479_v25, %v13685_v33  ;;  %v10264_v25 = vld [vmem:[%s11759_s25 + $0x1cf] sm:$0xff] }
 0x667   : > { %v5285_v55 = vpop.f32.mrf.mxu0 }
 0x668   : > { %v13931_v35 = vadd.f32 %v5285_v55, %v13708_v14  ;;  %5750 = vmatmul.bf16.gmra.mxu2 %v5617_v6  ;;  %v10263_v6 = vld [vmem:[%s11759_s25 + $0x1c7] sm:$0xff] }
 0x669   : > { %5984 = vmatmul.bf16.gmra.mxu3 %v13697_v23  ;;  %v10341_v23 = vld [vmem:[%s11759_s25 + $0x1a8] sm:$0xff]  ;;  %v13963_v1 = vpack.c.bf16 %v10264_v25, %v10263_v6 }
 0x66a   : > { %v5618_v26 = vpack.c.bf16 %v10342_v39, %v10341_v23 }
 0x66b   : > { %v5711_v61 = vpop.f32.mrf.mxu2 }
 0x66c   : > { %v5945_v32 = vpop.f32.mrf.mxu3  ;;  %v5782_v41 = vadd.f32 %v5711_v61, %v5548_v49 }
 0x66d   : > { %v5482_v46 = vpop.f32.mrf.mxu1 }
 0x66e   : > { %v13938_v28 = vadd.f32 %v5945_v32, %v5782_v41  ;;  %v5550_v33 = vadd.f32 %v5482_v46, %v13701_v36  ;;  %v11336_v32 = vld [vmem:[%s15185_s7 + $0x1c0] sm:$0xff] }
 0x66f   : > { %v5288_v9 = vpop.f32.mrf.mxu0  ;;  %6396 = vmatpush.bf16.msra.mxu1 %v11336_v32 }
 0x670   : > { %v13942_v14 = vadd.f32 %v5288_v9, %v13729_v15  ;;  %5521 = vmatmul.bf16.gmra.mxu1 %v13936_v8  ;;  %v10343_v9 = vld [vmem:[%s11759_s25 + $0x1c8] sm:$0xff] }
 0x672   : > { %6183 = vmatmul.bf16.gmra.mxu0 %v13731_v12  ;;  %v11344_v12 = vld [vmem:[%s15185_s7 + $0x200] sm:$0xff] }
 0x673   : > { %v5713_v49 = vpop.f32.mrf.mxu2  ;;  %6630 = vmatpush.bf16.msra.mxu2 %v11344_v12 }
 0x674   : > { %v5947_v42 = vpop.f32.mrf.mxu3  ;;  %v5783_v24 = vadd.f32 %v5713_v49, %v5549_v27  ;;  %v11360_v27 = vld [vmem:[%s15183_s5 + $0x40] sm:$0xff] }
 0x675   : > { %v5484_v21 = vpop.f32.mrf.mxu1  ;;  %6996 = vmatpush.bf16.msra.mxu3 %v11360_v27 }
 0x676   : > { %v13948_v17 = vadd.f32 %v5947_v42, %v5783_v24  ;;  %v5551_v36 = vadd.f32 %v5484_v21, %v13712_v30 }
 0x677   : > { %v5290_v38 = vpop.f32.mrf.mxu0 }
 0x678   : > { %v13952_v15 = vadd.f32 %v5290_v38, %v13749_v5  ;;  %5755 = vmatmul.bf16.gmra.mxu2 %v5618_v26  ;;  %v10265_v38 = vld [vmem:[%s11759_s25 + $0x1e7] sm:$0xff] }
 0x679   : > { %5989 = vmatmul.bf16.gmra.mxu3 %v13736_v0 }
 0x67b   : > { %v5716_v30 = vpop.f32.mrf.mxu2 }
 0x67c   : > { %v5950_v55 = vpop.f32.mrf.mxu3  ;;  %v5784_v5 = vadd.f32 %v5716_v30, %v5550_v33  ;;  %v10344_v33 = vld [vmem:[%s11759_s25 + $0x1d0] sm:$0xff] }
 0x67d   : > { %v5487_v0 = vpop.f32.mrf.mxu1  ;;  %v5619_v49 = vpack.c.bf16 %v10344_v33, %v10343_v9 }
 0x67e   : > { %v13965_v19 = vadd.f32 %v5950_v55, %v5784_v5  ;;  %v5552_v61 = vadd.f32 %v5487_v0, %v13740_v43  ;;  %v10346_v5 = vld [vmem:[%s11759_s25 + $0x1f0] sm:$0xff] }
 0x67f   : > { %v5293_v41 = vpop.f32.mrf.mxu0 }
 0x680   : > { %v13972_v46 = vadd.f32 %v5293_v41, %v13767_v58  ;;  %5526 = vmatmul.bf16.gmra.mxu1 %v13963_v1 }
 0x682   : > { %6188 = vmatmul.bf16.gmra.mxu0 %v13769_v63  ;;  %v10266_v63 = vld [vmem:[%s11759_s25 + $0x1ef] sm:$0xff] }
 0x683   : > { %v5718_v23 = vpop.f32.mrf.mxu2  ;;  %v13987_v25 = vpack.c.bf16 %v10266_v63, %v10265_v38 }
 0x684   : > { %v5952_v39 = vpop.f32.mrf.mxu3  ;;  %v5785_v43 = vadd.f32 %v5718_v23, %v5551_v36 }
 0x685   : > { %v5489_v42 = vpop.f32.mrf.mxu1 }
 0x686   : > { %v13978_v24 = vadd.f32 %v5952_v39, %v5785_v43  ;;  %v5553_v26 = vadd.f32 %v5489_v42, %v13756_v56  ;;  %v10267_v39 = vld [vmem:[%s11759_s25 + $0x207] sm:$0xff]  ;;  %v10268_v43 = vld [vmem:[%s11759_s25 + $0x20f] sm:$0xff] }
 0x687   : > { %v5295_v58 = vpop.f32.mrf.mxu0 }
 0x688   : > { %v13982_v21 = vadd.f32 %v5295_v58, %v13788_v45  ;;  %5760 = vmatmul.bf16.gmra.mxu2 %v5619_v49  ;;  %v11359_v49 = vld [vmem:[%s15183_s5 + $0x38] sm:$0xff] }
 0x689   : > { %5994 = vmatmul.bf16.gmra.mxu3 %v13774_v20  ;;  %v10345_v20 = vld [vmem:[%s11759_s25 + $0x1e8] sm:$0xff]  ;;  %7126 = vmatpush.bf16.msrb.mxu0 %v11359_v49 }
 0x68a   : > { %v5620_v41 = vpack.c.bf16 %v10346_v5, %v10345_v20  ;;  %v10428_v20 = vld [vmem:[%s11759_s25 + $0x211] sm:$0xff] }
 0x68b   : > { %v5721_v12 = vpop.f32.mrf.mxu2 }
 0x68c   : > { %v5955_v6 = vpop.f32.mrf.mxu3  ;;  %v5786_v36 = vadd.f32 %v5721_v12, %v5552_v61  ;;  %v11375_v12 = vld [vmem:[%s15183_s5 + $0xb8] sm:$0xff] }
 0x68d   : > { %v5492_v27 = vpop.f32.mrf.mxu1  ;;  %7328 = vmatpush.bf16.msrb.mxu1 %v11375_v12  ;;  %v10638_v12 = vld [vmem:[%s11759_s25 + $0x51] sm:$0xff] }
 0x68e   : > { %v13989_v30 = vadd.f32 %v5955_v6, %v5786_v36  ;;  %v5554_v56 = vadd.f32 %v5492_v27, %v13778_v13  ;;  %v10347_v27 = vld [vmem:[%s11759_s25 + $0x208] sm:$0xff] }
 0x68f   : > { %v5298_v55 = vpop.f32.mrf.mxu0 }
 0x690   : > { %v13993_v45 = vadd.f32 %v5298_v55, %v13806_v16  ;;  %5531 = vmatmul.bf16.gmra.mxu1 %v13987_v25  ;;  %v10348_v55 = vld [vmem:[%s11759_s25 + $0x210] sm:$0xff] }
 0x692   : > { %6193 = vmatmul.bf16.gmra.mxu0 %v13808_v22  ;;  %v11383_v22 = vld [vmem:[%s15183_s5 + $0xf8] sm:$0xff] }
 0x693   : > { %v5723_v0 = vpop.f32.mrf.mxu2  ;;  %7562 = vmatpush.bf16.msrb.mxu2 %v11383_v22  ;;  %v10557_v22 = vld [vmem:[%s11759_s25 + $0x48] sm:$0xff] }
 0x694   : > { %v5957_v61 = vpop.f32.mrf.mxu3  ;;  %v5787_v32 = vadd.f32 %v5723_v0, %v5553_v26  ;;  %v14017_v26 = vpack.c.bf16 %v10268_v43, %v10267_v39 }
 0x695   : > { %v5494_v9 = vpop.f32.mrf.mxu1 }
 0x696   : > { %v13999_v33 = vadd.f32 %v5957_v61, %v5787_v32  ;;  %v5555_v13 = vadd.f32 %v5494_v9, %v13792_v44  ;;  %v11391_v44 = vld [vmem:[%s15183_s5 + $0x138] sm:$0xff]  ;;  %v5621_v61 = vpack.c.bf16 %v10348_v55, %v10347_v27 }
 0x697   : > { %v5300_v23 = vpop.f32.mrf.mxu0  ;;  %7796 = vmatpush.bf16.msrb.mxu3 %v11391_v44 }
 0x698   : > { %v14003_v16 = vadd.f32 %v5300_v23, %v13824_v37  ;;  %5765 = vmatmul.bf16.gmra.mxu2 %v5620_v41 }
 0x699   : > { %5999 = vmatmul.bf16.gmra.mxu3 %v13810_v34 }
 0x69b   : > { %v5726_v37 = vpop.f32.mrf.mxu2 }
 0x69c   : > { %v5960_v34 = vpop.f32.mrf.mxu3  ;;  %v5788_v42 = vadd.f32 %v5726_v37, %v5554_v56  ;;  %v10427_v56 = vld [vmem:[%s11759_s25 + $0x209] sm:$0xff] }
 0x69d   : > { %v5497_v58 = vpop.f32.mrf.mxu1  ;;  %v5855_v32 = vpack.c.bf16 %v10428_v20, %v10427_v56  ;;  %v11472_v56 = vld [vmem:[#allocation2] sm:$0xff] }
 0x69e   : > { %v14019_v38 = vadd.f32 %v5960_v34, %v5788_v42  ;;  %v5556_v63 = vadd.f32 %v5497_v58, %v13817_v18  ;;  %v6908_v20 = vpack.c.bf16 %v11472_v56, %v11472_v56 }
 0x69f   : > { %v5303_v6 = vpop.f32.mrf.mxu0 }
 0x6a0   : > { %v14026_v36 = vadd.f32 %v5303_v6, %v13834_v3  ;;  %5536 = vmatmul.bf16.gmra.mxu1 %v14017_v26 }
 0x6a2   : > { %6198 = vmatmul.bf16.gmra.mxu0 %v13836_v62  ;;  %v10558_v62 = vld [vmem:[%s11759_s25 + $0x50] sm:$0xff] }
 0x6a3   : > { %v5728_v18 = vpop.f32.mrf.mxu2  ;;  %v6308_v44 = vpack.c.bf16 %v10558_v62, %v10557_v22 }
 0x6a4   : > { %v5962_v5 = vpop.f32.mrf.mxu3  ;;  %v5789_v0 = vadd.f32 %v5728_v18, %v5555_v13 }
 0x6a5   : > { %v5499_v41 = vpop.f32.mrf.mxu1 }
 0x6a6   : > { %v14034_v9 = vadd.f32 %v5962_v5, %v5789_v0  ;;  %v5557_v3 = vadd.f32 %v5499_v41, %v13828_v11  ;;  %v11358_v41 = vld [vmem:[%s15183_s5 + $0x30] sm:$0xff] }
 0x6a7   : > { %v5305_v23 = vpop.f32.mrf.mxu0  ;;  %7127 = vmatpush.bf16.msrb.mxu0 %v11358_v41 }
 0x6a8   : > { %v14038_v39 = vadd.f32 %v5305_v23, %v13846_v50  ;;  %5770 = vmatmul.bf16.gmra.mxu2 %v5621_v61  ;;  %v10637_v50 = vld [vmem:[%s11759_s25 + $0x49] sm:$0xff] }
 0x6a9   : > { %6004 = vmatmul.bf16.gmra.mxu3 %v5855_v32  ;;  %v6542_v55 = vpack.c.bf16 %v10638_v12, %v10637_v50  ;;  %v10559_v61 = vld [vmem:[%s11759_s25 + $0x68] sm:$0xff]  ;;  %v10560_v32 = vld [vmem:[%s11759_s25 + $0x70] sm:$0xff] }
 0x6aa   : > { %v6309_v22 = vpack.c.bf16 %v10560_v32, %v10559_v61  ;;  %v10640_v50 = vld [vmem:[%s11759_s25 + $0x71] sm:$0xff] }
 0x6ab   : > { %v5731_v43 = vpop.f32.mrf.mxu2  ;;  %v10562_v61 = vld [vmem:[%s11759_s25 + $0x90] sm:$0xff] }
 0x6ac   : > { %v5965_v49 = vpop.f32.mrf.mxu3  ;;  %v5790_v13 = vadd.f32 %v5731_v43, %v5556_v63 }
 0x6ad   : > { %v5502_v37 = vpop.f32.mrf.mxu1 }
 0x6ae   : > { %v14042_v34 = vadd.f32 %v5965_v49, %v5790_v13  ;;  %v5558_v42 = vadd.f32 %v5502_v37, %v13840_v29  ;;  %v11374_v13 = vld [vmem:[%s15183_s5 + $0xb0] sm:$0xff] }
 0x6af   : > { %v6164_v11 = vpop.f32.mrf.mxu0  ;;  %7329 = vmatpush.bf16.msrb.mxu1 %v11374_v13 }
 0x6b0   : > { %v14046_v58 = vadd.f32 %v6164_v11, %v13863_v57  ;;  %6397 = vmatmul.bf16.vlgmr.msra.gmra.mxu1 %v6308_v44  ;;  %v10639_v11 = vld [vmem:[%s11759_s25 + $0x69] sm:$0xff] }
 0x6b2   : > { %6203 = vmatmul.bf16.gmra.mxu0 %v13861_v54  ;;  %v11382_v54 = vld [vmem:[%s15183_s5 + $0xf0] sm:$0xff] }
 0x6b3   : > { %v5733_v6 = vpop.f32.mrf.mxu2  ;;  %7563 = vmatpush.bf16.msrb.mxu2 %v11382_v54 }
 0x6b4   : > { %v5967_v27 = vpop.f32.mrf.mxu3  ;;  %v5791_v63 = vadd.f32 %v5733_v6, %v5557_v3  ;;  %v6879_v6 = vld [vmem:[#allocation2 + $0x30] sm:$0xff] }
 0x6b5   : > { %v5504_v18 = vpop.f32.mrf.mxu1 }
 0x6b6   : > { %v14051_v5 = vadd.f32 %v5967_v27, %v5791_v63  ;;  %v5559_v29 = vadd.f32 %v5504_v18, %v13850_v48  ;;  %v11390_v48 = vld [vmem:[%s15183_s5 + $0x130] sm:$0xff]  ;;  %v6543_v27 = vpack.c.bf16 %v10640_v50, %v10639_v11  ;;  %v6878_v63 = vld [vmem:[#allocation2 + $0x28] sm:$0xff] }
 0x6b7   : > { %v6166_v57 = vpop.f32.mrf.mxu0  ;;  %7797 = vmatpush.bf16.msrb.mxu3 %v11390_v48  ;;  %v6880_v50 = vld [vmem:[#allocation2 + $0x48] sm:$0xff] }
 0x6b8   : > { %v14055_v0 = vadd.f32 %v6166_v57, %v13876_v10  ;;  %6631 = vmatmul.bf16.vlgmr.msra.gmra.mxu2 %v6542_v55 }
 0x6b9   : > { %6997 = vmatmul.bf16.vlgmr.msra.gmra.mxu3 %v6908_v20  ;;  %v6909_v20 = vpack.c.bf16 %v6879_v6, %v6878_v63  ;;  %v10564_v63 = vld [vmem:[%s11759_s25 + $0xb0] sm:$0xff] }
 0x6bb   : > { %v5736_v10 = vpop.f32.mrf.mxu2 }
 0x6bc   : > { %v5970_v3 = vpop.f32.mrf.mxu3  ;;  %v5792_v23 = vadd.f32 %v5736_v10, %v5558_v42 }
 0x6bd   : > { %v5507_v62 = vpop.f32.mrf.mxu1 }
 0x6be   : > { %v14068_v43 = vadd.f32 %v5970_v3, %v5792_v23  ;;  %v5560_v49 = vadd.f32 %v5507_v62, %v13870_v60 }
 0x6bf   : > { %v6169_v44 = vpop.f32.mrf.mxu0 }
 0x6c0   : > { %v14075_v37 = vadd.f32 %v6169_v44, %v13887_v2  ;;  %6402 = vmatmul.bf16.gmra.mxu1 %v6309_v22  ;;  %v10642_v22 = vld [vmem:[%s11759_s25 + $0x91] sm:$0xff] }
 0x6c2   : > { %6208 = vmatmul.bf16.gmra.mxu0 %v13885_v52  ;;  %v10561_v52 = vld [vmem:[%s11759_s25 + $0x88] sm:$0xff] }
 0x6c3   : > { %v5738_v42 = vpop.f32.mrf.mxu2  ;;  %v6310_v41 = vpack.c.bf16 %v10562_v61, %v10561_v52 }
 0x6c4   : > { %v5972_v12 = vpop.f32.mrf.mxu3  ;;  %v5793_v60 = vadd.f32 %v5738_v42, %v5559_v29 }
 0x6c5   : > { %v5509_v55 = vpop.f32.mrf.mxu1 }
 0x6c6   : > { %v14080_v56 = vadd.f32 %v5972_v12, %v5793_v60  ;;  %v5561_v2 = vadd.f32 %v5509_v55, %v13880_v47  ;;  %v11357_v55 = vld [vmem:[%s15183_s5 + $0x28] sm:$0xff] }
 0x6c7   : > { %v6171_v18 = vpop.f32.mrf.mxu0  ;;  %7128 = vmatpush.bf16.msrb.mxu0 %v11357_v55 }
 0x6c8   : > { %v14084_v57 = vadd.f32 %v6171_v18, %v13897_v40  ;;  %6636 = vmatmul.bf16.gmra.mxu2 %v6543_v27  ;;  %v10641_v40 = vld [vmem:[%s11759_s25 + $0x89] sm:$0xff] }
 0x6c9   : > { %7002 = vmatmul.bf16.gmra.mxu3 %v6909_v20  ;;  %v6544_v11 = vpack.c.bf16 %v10642_v22, %v10641_v40  ;;  %v11381_v27 = vld [vmem:[%s15183_s5 + $0xe8] sm:$0xff]  ;;  %v6883_v22 = vld [vmem:[#allocation2 + $0x70] sm:$0xff] }
 0x6ca   : > { %7564 = vmatpush.bf16.msrb.mxu2 %v11381_v27 }
 0x6cb   : > { %v5741_v54 = vpop.f32.mrf.mxu2 }
 0x6cc   : > { %v5975_v29 = vpop.f32.mrf.mxu3  ;;  %v5794_v32 = vadd.f32 %v5741_v54, %v5560_v49  ;;  %v6881_v49 = vld [vmem:[#allocation2 + $0x50] sm:$0xff] }
 0x6cd   : > { %v5512_v48 = vpop.f32.mrf.mxu1 }
 0x6ce   : > { %v14088_v10 = vadd.f32 %v5975_v29, %v5794_v32  ;;  %v5562_v3 = vadd.f32 %v5512_v48, %v13891_v59  ;;  %v6910_v59 = vpack.c.bf16 %v6881_v49, %v6880_v50  ;;  %v11373_v29 = vld [vmem:[%s15183_s5 + $0xa8] sm:$0xff] }
 0x6cf   : > { %v6174_v47 = vpop.f32.mrf.mxu0  ;;  %v10643_v48 = vld [vmem:[%s11759_s25 + $0xa9] sm:$0xff]  ;;  %7330 = vmatpush.bf16.msrb.mxu1 %v11373_v29 }
 0x6d0   : > { %v14092_v23 = vadd.f32 %v6174_v47, %v13914_v7  ;;  %6407 = vmatmul.bf16.gmra.mxu1 %v6310_v41  ;;  %v10644_v47 = vld [vmem:[%s11759_s25 + $0xb1] sm:$0xff] }
 0x6d2   : > { %6213 = vmatmul.bf16.gmra.mxu0 %v13912_v51  ;;  %v10563_v51 = vld [vmem:[%s11759_s25 + $0xa8] sm:$0xff] }
 0x6d3   : > { %v5743_v62 = vpop.f32.mrf.mxu2  ;;  %v6311_v18 = vpack.c.bf16 %v10564_v63, %v10563_v51 }
 0x6d4   : > { %v5977_v13 = vpop.f32.mrf.mxu3  ;;  %v5795_v44 = vadd.f32 %v5743_v62, %v5561_v2  ;;  %v6545_v62 = vpack.c.bf16 %v10644_v47, %v10643_v48 }
 0x6d5   : > { %v5514_v42 = vpop.f32.mrf.mxu1 }
 0x6d6   : > { %v14097_v12 = vadd.f32 %v5977_v13, %v5795_v44  ;;  %v5563_v7 = vadd.f32 %v5514_v42, %v13901_v53  ;;  %v11389_v53 = vld [vmem:[%s15183_s5 + $0x128] sm:$0xff] }
 0x6d7   : > { %v6176_v6 = vpop.f32.mrf.mxu0  ;;  %7798 = vmatpush.bf16.msrb.mxu3 %v11389_v53  ;;  %v6882_v13 = vld [vmem:[#allocation2 + $0x68] sm:$0xff] }
 0x6d8   : > { %v14101_v60 = vadd.f32 %v6176_v6, %v13927_v31  ;;  %6641 = vmatmul.bf16.gmra.mxu2 %v6544_v11  ;;  %v6911_v11 = vpack.c.bf16 %v6883_v22, %v6882_v13  ;;  %v11380_v22 = vld [vmem:[%s15183_s5 + $0xe0] sm:$0xff] }
 0x6d9   : > { %7007 = vmatmul.bf16.gmra.mxu3 %v6910_v59  ;;  %v10566_v59 = vld [vmem:[%s11759_s25 + $0xd0] sm:$0xff]  ;;  %7565 = vmatpush.bf16.msrb.mxu2 %v11380_v22 }
 0x6db   : > { %v5746_v31 = vpop.f32.mrf.mxu2 }
 0x6dc   : > { %v5980_v20 = vpop.f32.mrf.mxu3  ;;  %v5796_v2 = vadd.f32 %v5746_v31, %v5562_v3 }
 0x6dd   : > { %v5517_v52 = vpop.f32.mrf.mxu1 }
 0x6de   : > { %v14114_v61 = vadd.f32 %v5980_v20, %v5796_v2  ;;  %v5564_v54 = vadd.f32 %v5517_v52, %v13921_v4  ;;  %v10646_v20 = vld [vmem:[%s11759_s25 + $0xd1] sm:$0xff] }
 0x6df   : > { %v6179_v32 = vpop.f32.mrf.mxu0  ;;  %v6885_v52 = vld [vmem:[#allocation2 + $0x90] sm:$0xff] }
 0x6e0   : > { %v14121_v41 = vadd.f32 %v6179_v32, %v13938_v28  ;;  %6412 = vmatmul.bf16.gmra.mxu1 %v6311_v18  ;;  %v6884_v32 = vld [vmem:[#allocation2 + $0x88] sm:$0xff] }
 0x6e2   : > { %6218 = vmatmul.bf16.gmra.mxu0 %v13936_v8  ;;  %v10565_v8 = vld [vmem:[%s11759_s25 + $0xc8] sm:$0xff] }
 0x6e3   : > { %v5748_v3 = vpop.f32.mrf.mxu2  ;;  %v6312_v27 = vpack.c.bf16 %v10566_v59, %v10565_v8  ;;  %v11372_v59 = vld [vmem:[%s15183_s5 + $0xa0] sm:$0xff] }
 0x6e4   : > { %v5982_v40 = vpop.f32.mrf.mxu3  ;;  %v5797_v4 = vadd.f32 %v5748_v3, %v5563_v7  ;;  %7331 = vmatpush.bf16.msrb.mxu1 %v11372_v59  ;;  %v6889_v59 = vld [vmem:[#allocation2 + $0xd0] sm:$0xff] }
 0x6e5   : > { %v5519_v49 = vpop.f32.mrf.mxu1 }
 0x6e6   : > { %v14126_v44 = vadd.f32 %v5982_v40, %v5797_v4  ;;  %v5565_v28 = vadd.f32 %v5519_v49, %v13931_v35  ;;  %v10568_v4 = vld [vmem:[%s11759_s25 + $0xf0] sm:$0xff] }
 0x6e7   : > { %v6181_v50 = vpop.f32.mrf.mxu0 }
 0x6e8   : > { %v14130_v42 = vadd.f32 %v6181_v50, %v13948_v17  ;;  %6646 = vmatmul.bf16.gmra.mxu2 %v6545_v62  ;;  %v10645_v17 = vld [vmem:[%s11759_s25 + $0xc9] sm:$0xff]  ;;  %v11356_v62 = vld [vmem:[%s15183_s5 + $0x20] sm:$0xff] }
 0x6e9   : > { %7012 = vmatmul.bf16.gmra.mxu3 %v6911_v11  ;;  %v6546_v29 = vpack.c.bf16 %v10646_v20, %v10645_v17  ;;  %7129 = vmatpush.bf16.msrb.mxu0 %v11356_v62  ;;  %v11355_v20 = vld [vmem:[%s15183_s5 + $0x18] sm:$0xff] }
 0x6eb   : > { %v5751_v6 = vpop.f32.mrf.mxu2 }
 0x6ec   : > { %v5985_v7 = vpop.f32.mrf.mxu3  ;;  %v5798_v51 = vadd.f32 %v5751_v6, %v5564_v54 }
 0x6ed   : > { %v5522_v63 = vpop.f32.mrf.mxu1  ;;  %7130 = vmatpush.bf16.msrb.mxu0 %v11355_v20  ;;  %v10572_v20 = vld [vmem:[%s11759_s25 + $0x130] sm:$0xff] }
 0x6ee   : > { %v14134_v55 = vadd.f32 %v5985_v7, %v5798_v51  ;;  %v5566_v53 = vadd.f32 %v5522_v63, %v13942_v14  ;;  %v6912_v14 = vpack.c.bf16 %v6885_v52, %v6884_v32  ;;  %v10647_v51 = vld [vmem:[%s11759_s25 + $0xe9] sm:$0xff] }
 0x6ef   : > { %v6184_v35 = vpop.f32.mrf.mxu0  ;;  %v11354_v32 = vld [vmem:[%s15183_s5 + $0x10] sm:$0xff] }
 0x6f0   : > { %v14138_v31 = vadd.f32 %v6184_v35, %v13965_v19  ;;  %6417 = vmatmul.bf16.gmra.mxu1 %v6312_v27  ;;  %v10648_v27 = vld [vmem:[%s11759_s25 + $0xf1] sm:$0xff] }
 0x6f1   : > { %v6887_v35 = vld [vmem:[#allocation2 + $0xb0] sm:$0xff]  ;;  %v6547_v17 = vpack.c.bf16 %v10648_v27, %v10647_v51  ;;  %7131 = vmatpush.bf16.msrb.mxu0 %v11354_v32  ;;  %v6888_v51 = vld [vmem:[#allocation2 + $0xc8] sm:$0xff] }
 0x6f2   : > { %6223 = vmatmul.bf16.gmra.mxu0 %v13963_v1  ;;  %v10567_v1 = vld [vmem:[%s11759_s25 + $0xe8] sm:$0xff] }
 0x6f3   : > { %v5753_v2 = vpop.f32.mrf.mxu2  ;;  %v6313_v11 = vpack.c.bf16 %v10568_v4, %v10567_v1 }
 0x6f4   : > { %v5987_v18 = vpop.f32.mrf.mxu3  ;;  %v5799_v54 = vadd.f32 %v5753_v2, %v5565_v28  ;;  %v6886_v2 = vld [vmem:[#allocation2 + $0xa8] sm:$0xff] }
 0x6f5   : > { %v5524_v48 = vpop.f32.mrf.mxu1  ;;  %v6913_v52 = vpack.c.bf16 %v6887_v35, %v6886_v2  ;;  %v11387_v2 = vld [vmem:[%s15183_s5 + $0x118] sm:$0xff] }
 0x6f6   : > { %v14143_v47 = vadd.f32 %v5987_v18, %v5799_v54  ;;  %v5567_v19 = vadd.f32 %v5524_v48, %v13952_v15  ;;  %v11388_v15 = vld [vmem:[%s15183_s5 + $0x120] sm:$0xff]  ;;  %v10569_v48 = vld [vmem:[%s11759_s25 + $0x108] sm:$0xff] }
 0x6f7   : > { %v6186_v3 = vpop.f32.mrf.mxu0  ;;  %7799 = vmatpush.bf16.msrb.mxu3 %v11388_v15 }
 0x6f8   : > { %v14147_v40 = vadd.f32 %v6186_v3, %v13978_v24  ;;  %6651 = vmatmul.bf16.gmra.mxu2 %v6546_v29 }
 0x6f9   : > { %7017 = vmatmul.bf16.gmra.mxu3 %v6912_v14  ;;  %v10570_v14 = vld [vmem:[%s11759_s25 + $0x110] sm:$0xff] }
 0x6fb   : > { %v5756_v24 = vpop.f32.mrf.mxu2  ;;  %7800 = vmatpush.bf16.msrb.mxu3 %v11387_v2 }
 0x6fc   : > { %v5990_v13 = vpop.f32.mrf.mxu3  ;;  %v5800_v49 = vadd.f32 %v5756_v24, %v5566_v53 }
 0x6fd   : > { %v5527_v28 = vpop.f32.mrf.mxu1 }
 0x6fe   : > { %v14160_v50 = vadd.f32 %v5990_v13, %v5800_v49  ;;  %v5568_v8 = vadd.f32 %v5527_v28, %v13972_v46  ;;  %v11352_v13 = vld [vmem:[%s15183_s5] sm:$0xff]  ;;  %v10649_v49 = vld [vmem:[%s11759_s25 + $0x109] sm:$0xff] }
 0x6ff   : > { %v6189_v6 = vpop.f32.mrf.mxu0 }
 0x700   : > { %v14167_v7 = vadd.f32 %v6189_v6, %v13989_v30  ;;  %6422 = vmatmul.bf16.gmra.mxu1 %v6313_v11  ;;  %v10650_v11 = vld [vmem:[%s11759_s25 + $0x111] sm:$0xff] }
 0x701   : > { %v6548_v6 = vpack.c.bf16 %v10650_v11, %v10649_v49  ;;  %v6890_v11 = vld [vmem:[#allocation2 + $0xe8] sm:$0xff] }
 0x702   : > { %6228 = vmatmul.bf16.gmra.mxu0 %v13987_v25 }
 0x703   : > { %v5758_v63 = vpop.f32.mrf.mxu2 }
 0x704   : > { %v5992_v53 = vpop.f32.mrf.mxu3  ;;  %v5801_v46 = vadd.f32 %v5758_v63, %v5567_v19  ;;  %v6914_v63 = vpack.c.bf16 %v6889_v59, %v6888_v51  ;;  %v10573_v51 = vld [vmem:[%s11759_s25 + $0x148] sm:$0xff] }
 0x705   : > { %v5529_v30 = vpop.f32.mrf.mxu1 }
 0x706   : > { %v14175_v18 = vadd.f32 %v5992_v53, %v5801_v46  ;;  %v5569_v54 = vadd.f32 %v5529_v30, %v13982_v21  ;;  %v6314_v21 = vpack.c.bf16 %v10570_v14, %v10569_v48  ;;  %v11379_v46 = vld [vmem:[%s15183_s5 + $0xd8] sm:$0xff] }
 0x707   : > { %v6191_v25 = vpop.f32.mrf.mxu0  ;;  %7566 = vmatpush.bf16.msrb.mxu2 %v11379_v46  ;;  %v6813_v46 = vld [vmem:[#allocation2 + $0xf] sm:$0xff] }
 0x708   : > { %v14179_v29 = vadd.f32 %v6191_v25, %v13999_v33  ;;  %6656 = vmatmul.bf16.gmra.mxu2 %v6547_v17  ;;  %v11353_v33 = vld [vmem:[%s15183_s5 + $0x8] sm:$0xff] }
 0x709   : > { %7022 = vmatmul.bf16.gmra.mxu3 %v6913_v52  ;;  %7132 = vmatpush.bf16.msrb.mxu0 %v11353_v33  ;;  %v10571_v17 = vld [vmem:[%s11759_s25 + $0x128] sm:$0xff] }
 0x70a   : > { %v10507_v52 = vld [vmem:[%s11759_s25 + $0x227] sm:$0xff]  ;;  %v6315_v25 = vpack.c.bf16 %v10572_v20, %v10571_v17 }
 0x70b   : > { %v5761_v19 = vpop.f32.mrf.mxu2  ;;  %v10651_v33 = vld [vmem:[%s11759_s25 + $0x129] sm:$0xff] }
 0x70c   : > { %v5995_v3 = vpop.f32.mrf.mxu3  ;;  %v5802_v1 = vadd.f32 %v5761_v19, %v5568_v8 }
 0x70d   : > { %v5532_v22 = vpop.f32.mrf.mxu1  ;;  %7133 = vmatpush.bf16.msrb.mxu0 %v11352_v13  ;;  %v6891_v13 = vld [vmem:[#allocation2 + $0xf0] sm:$0xff] }
 0x70e   : > { %v14189_v4 = vadd.f32 %v5995_v3, %v5802_v1  ;;  %v5570_v62 = vadd.f32 %v5532_v22, %v13993_v45  ;;  %v11371_v3 = vld [vmem:[%s15183_s5 + $0x98] sm:$0xff]  ;;  %v6915_v59 = vpack.c.bf16 %v6891_v13, %v6890_v11  ;;  %v11378_v13 = vld [vmem:[%s15183_s5 + $0xd0] sm:$0xff] }
 0x70f   : > { %v6194_v15 = vpop.f32.mrf.mxu0  ;;  %v10652_v22 = vld [vmem:[%s11759_s25 + $0x131] sm:$0xff]  ;;  %7332 = vmatpush.bf16.msrb.mxu1 %v11371_v3  ;;  %7567 = vmatpush.bf16.msrb.mxu2 %v11378_v13 }
 0x710   : > { %v14193_v24 = vadd.f32 %v6194_v15, %v14019_v38  ;;  %6427 = vmatmul.bf16.gmra.mxu1 %v6314_v21  ;;  %v11386_v11 = vld [vmem:[%s15183_s5 + $0x110] sm:$0xff] }
 0x711   : > { %7801 = vmatpush.bf16.msrb.mxu3 %v11386_v11 }
 0x712   : > { %6233 = vmatmul.bf16.gmra.mxu0 %v14017_v26 }
 0x713   : > { %v5763_v28 = vpop.f32.mrf.mxu2 }
 0x714   : > { %v5997_v8 = vpop.f32.mrf.mxu3  ;;  %v5803_v45 = vadd.f32 %v5763_v28, %v5569_v54 }
 0x715   : > { %v5534_v38 = vpop.f32.mrf.mxu1 }
 0x716   : > { %v14201_v27 = vadd.f32 %v5997_v8, %v5803_v45  ;;  %v5571_v53 = vadd.f32 %v5534_v38, %v14003_v16  ;;  %v10574_v38 = vld [vmem:[%s11759_s25 + $0x150] sm:$0xff] }
 0x717   : > { %v6196_v35 = vpop.f32.mrf.mxu0  ;;  %v6316_v20 = vpack.c.bf16 %v10574_v38, %v10573_v51  ;;  %v11370_v38 = vld [vmem:[%s15183_s5 + $0x90] sm:$0xff] }
 0x718   : > { %v14205_v26 = vadd.f32 %v6196_v35, %v14034_v9  ;;  %6661 = vmatmul.bf16.gmra.mxu2 %v6548_v6  ;;  %v10508_v9 = vld [vmem:[%s11759_s25 + $0x22f] sm:$0xff]  ;;  %v6812_v35 = vld [vmem:[#allocation2 + $0x7] sm:$0xff]  ;;  %7333 = vmatpush.bf16.msrb.mxu1 %v11370_v38 }
 0x719   : > { %7027 = vmatmul.bf16.gmra.mxu3 %v6914_v63  ;;  %v6089_v14 = vpack.c.bf16 %v10508_v9, %v10507_v52  ;;  %v10653_v9 = vld [vmem:[%s11759_s25 + $0x149] sm:$0xff] }
 0x71b   : > { %v5766_v30 = vpop.f32.mrf.mxu2 }
 0x71c   : > { %v6000_v16 = vpop.f32.mrf.mxu3  ;;  %v5804_v54 = vadd.f32 %v5766_v30, %v5570_v62 }
 0x71d   : > { %v5537_v32 = vpop.f32.mrf.mxu1 }
 0x71e   : > { %v14217_v48 = vadd.f32 %v6000_v16, %v5804_v54  ;;  %v5572_v19 = vadd.f32 %v5537_v32, %v14026_v36  ;;  %v6549_v36 = vpack.c.bf16 %v10652_v22, %v10651_v33  ;;  %v10654_v54 = vld [vmem:[%s11759_s25 + $0x151] sm:$0xff] }
 0x71f   : > { %v6199_v1 = vpop.f32.mrf.mxu0  ;;  %v6550_v3 = vpack.c.bf16 %v10654_v54, %v10653_v9  ;;  %v6894_v9 = vld [vmem:[#allocation2 + $0x128] sm:$0xff] }
 0x720   : > { %v14224_v21 = vadd.f32 %v6199_v1, %v14042_v34  ;;  %6432 = vmatmul.bf16.gmra.mxu1 %v6315_v25  ;;  %v6892_v1 = vld [vmem:[#allocation2 + $0x108] sm:$0xff] }
 0x722   : > { %6238 = vmatmul.bf16.gmra.mxu0 %v6089_v14  ;;  %v6893_v14 = vld [vmem:[#allocation2 + $0x110] sm:$0xff] }
 0x723   : > { %v5768_v62 = vpop.f32.mrf.mxu2 }
 0x724   : > { %v6002_v15 = vpop.f32.mrf.mxu3  ;;  %v5805_v49 = vadd.f32 %v5768_v62, %v5571_v53 }
 0x725   : > { %v5539_v28 = vpop.f32.mrf.mxu1 }
 0x726   : > { %v14228_v8 = vadd.f32 %v6002_v15, %v5805_v49  ;;  %v5573_v34 = vadd.f32 %v5539_v28, %v14038_v39  ;;  %v6844_v39 = vpack.c.bf16 %v6813_v46, %v6812_v35  ;;  %v10575_v49 = vld [vmem:[%s11759_s25 + $0x168] sm:$0xff] }
 0x727   : > { %v6201_v45 = vpop.f32.mrf.mxu0 }
 0x728   : > { %v14232_v6 = vadd.f32 %v6201_v45, %v14051_v5  ;;  %6666 = vmatmul.bf16.gmra.mxu2 %v6549_v36  ;;  %v10576_v36 = vld [vmem:[%s11759_s25 + $0x170] sm:$0xff] }
 0x729   : > { %7032 = vmatmul.bf16.gmra.mxu3 %v6915_v59  ;;  %v6317_v59 = vpack.c.bf16 %v10576_v36, %v10575_v49  ;;  %v6816_v36 = vld [vmem:[#allocation2 + $0x47] sm:$0xff] }
 0x72b   : > { %v5771_v63 = vpop.f32.mrf.mxu2 }
 0x72c   : > { %v6005_v53 = vpop.f32.mrf.mxu3  ;;  %v5806_v17 = vadd.f32 %v5771_v63, %v5572_v19 }
 0x72d   : > { %v6398_v2 = vpop.f32.mrf.mxu1 }
 0x72e   : > { %v14236_v30 = vadd.f32 %v6005_v53, %v5806_v17  ;;  %v6478_v16 = vadd.f32 %v6398_v2, %v14046_v58  ;;  %v6916_v58 = vpack.c.bf16 %v6893_v14, %v6892_v1  ;;  %v6814_v53 = vld [vmem:[#allocation2 + $0x27] sm:$0xff] }
 0x72f   : > { %v6204_v5 = vpop.f32.mrf.mxu0  ;;  %v10655_v17 = vld [vmem:[%s11759_s25 + $0x169] sm:$0xff] }
 0x730   : > { %v14240_v52 = vadd.f32 %v6204_v5, %v14068_v43  ;;  %6437 = vmatmul.bf16.gmra.mxu1 %v6316_v20  ;;  %v10656_v20 = vld [vmem:[%s11759_s25 + $0x171] sm:$0xff] }
 0x731   : > { %v6551_v5 = vpack.c.bf16 %v10656_v20, %v10655_v17 }
 0x732   : > { %7134 = vmatmul.bf16.vlgmr.msrb.gmra.mxu0 %v6844_v39  ;;  %v6895_v39 = vld [vmem:[#allocation2 + $0x130] sm:$0xff] }
 0x733   : > { %v5773_v25 = vpop.f32.mrf.mxu2  ;;  %v6917_v54 = vpack.c.bf16 %v6895_v39, %v6894_v9  ;;  %v11377_v39 = vld [vmem:[%s15183_s5 + $0xc8] sm:$0xff]  ;;  %v10580_v9 = vld [vmem:[%s11759_s25 + $0x1b0] sm:$0xff] }
 0x734   : > { %v6007_v32 = vpop.f32.mrf.mxu3  ;;  %v5807_v19 = vadd.f32 %v5773_v25, %v5573_v34  ;;  %v6815_v34 = vld [vmem:[#allocation2 + $0x2f] sm:$0xff]  ;;  %7568 = vmatpush.bf16.msrb.mxu2 %v11377_v39 }
 0x735   : > { %v6400_v33 = vpop.f32.mrf.mxu1  ;;  %v14269_v46 = vpack.c.bf16 %v6815_v34, %v6814_v53  ;;  %v10581_v39 = vld [vmem:[%s11759_s25 + $0x1c8] sm:$0xff] }
 0x736   : > { %v14244_v22 = vadd.f32 %v6007_v32, %v5807_v19  ;;  %v6479_v62 = vadd.f32 %v6400_v33, %v14055_v0  ;;  %v10577_v19 = vld [vmem:[%s11759_s25 + $0x188] sm:$0xff] }
 0x737   : > { %v6206_v43 = vpop.f32.mrf.mxu0 }
 0x738   : > { %v14248_v15 = vadd.f32 %v6206_v43, %v14080_v56  ;;  %6671 = vmatmul.bf16.gmra.mxu2 %v6550_v3  ;;  %v10578_v3 = vld [vmem:[%s11759_s25 + $0x190] sm:$0xff] }
 0x739   : > { %7037 = vmatmul.bf16.gmra.mxu3 %v6916_v58  ;;  %v6817_v43 = vld [vmem:[#allocation2 + $0x4f] sm:$0xff] }
 0x73a   : > { %v14292_v11 = vpack.c.bf16 %v6817_v43, %v6816_v36  ;;  %v6818_v43 = vld [vmem:[#allocation2 + $0x67] sm:$0xff] }
 0x73b   : > { %v6632_v0 = vpop.f32.mrf.mxu2  ;;  %v10659_v36 = vld [vmem:[%s11759_s25 + $0x1a9] sm:$0xff] }
 0x73c   : > { %v14258_v28 = vpop.f32.mrf.mxu3  ;;  %v14260_v56 = vadd.f32 %v6632_v0, %v6478_v16  ;;  %v10657_v0 = vld [vmem:[%s11759_s25 + $0x189] sm:$0xff] }
 0x73d   : > { %v6403_v45 = vpop.f32.mrf.mxu1 }
 0x73e   : > { %15227 = vst [vmem:[#allocation10_spill] sm:$0xff] %v14260_v56  ;;  %v6480_v51 = vadd.f32 %v6403_v45, %v14075_v37 }
 0x73f   : > { %v6209_v63 = vpop.f32.mrf.mxu0 }
 0x740   : > { %v14267_v35 = vadd.f32 %v6209_v63, %v14088_v10  ;;  %6442 = vmatmul.bf16.gmra.mxu1 %v6317_v59  ;;  %v10658_v59 = vld [vmem:[%s11759_s25 + $0x191] sm:$0xff]  ;;  %v6896_v63 = vld [vmem:[#allocation2 + $0x148] sm:$0xff] }
 0x742   : > { %7139 = vmatmul.bf16.gmra.mxu0 %v14269_v46 }
 0x743   : > { %v6634_v37 = vpop.f32.mrf.mxu2 }
 0x744   : > { %v14274_v2 = vpop.f32.mrf.mxu3  ;;  %v14276_v16 = vadd.f32 %v6634_v37, %v6479_v62  ;;  %v6318_v62 = vpack.c.bf16 %v10578_v3, %v10577_v19 }
 0x745   : > { %v6405_v10 = vpop.f32.mrf.mxu1 }
 0x746   : > { %15228 = vst [vmem:[#allocation11_spill] sm:$0xff] %v14276_v16  ;;  %v6481_v25 = vadd.f32 %v6405_v10, %v14084_v57  ;;  %v11385_v10 = vld [vmem:[%s15183_s5 + $0x108] sm:$0xff]  ;;  %v7224_v16 = vld [vmem:[#allocation2 + $0x91] sm:$0xff] }
 0x747   : > { %v6211_v32 = vpop.f32.mrf.mxu0  ;;  %7802 = vmatpush.bf16.msrb.mxu3 %v11385_v10 }
 0x748   : > { %v14280_v14 = vadd.f32 %v6211_v32, %v14097_v12  ;;  %6676 = vmatmul.bf16.gmra.mxu2 %v6551_v5  ;;  %v10579_v5 = vld [vmem:[%s11759_s25 + $0x1a8] sm:$0xff] }
 0x749   : > { %7042 = vmatmul.bf16.gmra.mxu3 %v6917_v54  ;;  %v6819_v32 = vld [vmem:[#allocation2 + $0x6f] sm:$0xff] }
 0x74b   : > { %v6637_v1 = vpop.f32.mrf.mxu2 }
 0x74c   : > { %v14284_v33 = vpop.f32.mrf.mxu3  ;;  %v14286_v58 = vadd.f32 %v6637_v1, %v6480_v51  ;;  %v6897_v51 = vld [vmem:[#allocation2 + $0x150] sm:$0xff]  ;;  %v11369_v1 = vld [vmem:[%s15183_s5 + $0x88] sm:$0xff] }
 0x74d   : > { %v6408_v13 = vpop.f32.mrf.mxu1  ;;  %7334 = vmatpush.bf16.msrb.mxu1 %v11369_v1  ;;  %v6820_v1 = vld [vmem:[#allocation2 + $0x87] sm:$0xff] }
 0x74e   : > { %15229 = vst [vmem:[#allocation12_spill] sm:$0xff] %v14286_v58  ;;  %v6482_v57 = vadd.f32 %v6408_v13, %v14092_v23  ;;  %v6552_v23 = vpack.c.bf16 %v10658_v59, %v10657_v0  ;;  %v6899_v59 = vld [vmem:[#allocation2 + $0x170] sm:$0xff] }
 0x74f   : > { %v6214_v49 = vpop.f32.mrf.mxu0 }
 0x750   : > { %v14290_v12 = vadd.f32 %v6214_v49, %v14114_v61  ;;  %6447 = vmatmul.bf16.gmra.mxu1 %v6318_v62  ;;  %v6918_v61 = vpack.c.bf16 %v6897_v51, %v6896_v63  ;;  %v14324_v49 = vpack.c.bf16 %v6819_v32, %v6818_v43  ;;  %v10661_v43 = vld [vmem:[%s11759_s25 + $0x1c9] sm:$0xff] }
 0x752   : > { %7144 = vmatmul.bf16.gmra.mxu0 %v14292_v11 }
 0x753   : > { %v6639_v34 = vpop.f32.mrf.mxu2 }
 0x754   : > { %v14297_v45 = vpop.f32.mrf.mxu3  ;;  %v14299_v38 = vadd.f32 %v6639_v34, %v6481_v25  ;;  %v6319_v25 = vpack.c.bf16 %v10580_v9, %v10579_v5  ;;  %v10582_v5 = vld [vmem:[%s11759_s25 + $0x1d0] sm:$0xff] }
 0x755   : > { %v6410_v53 = vpop.f32.mrf.mxu1 }
 0x756   : > { %15230 = vst [vmem:[#allocation13_spill] sm:$0xff] %v14299_v38  ;;  %v6483_v17 = vadd.f32 %v6410_v53, %v14101_v60 }
 0x757   : > { %v6216_v20 = vpop.f32.mrf.mxu0 }
 0x758   : > { %v14303_v37 = vadd.f32 %v6216_v20, %v14126_v44  ;;  %6681 = vmatmul.bf16.gmra.mxu2 %v6552_v23  ;;  %v6898_v23 = vld [vmem:[#allocation2 + $0x168] sm:$0xff] }
 0x759   : > { %7047 = vmatmul.bf16.gmra.mxu3 %v6918_v61  ;;  %v6919_v63 = vpack.c.bf16 %v6899_v59, %v6898_v23 }
 0x75b   : > { %v6642_v60 = vpop.f32.mrf.mxu2 }
 0x75c   : > { %v14313_v54 = vpop.f32.mrf.mxu3  ;;  %v14315_v44 = vadd.f32 %v6642_v60, %v6482_v57  ;;  %v10660_v57 = vld [vmem:[%s11759_s25 + $0x1b1] sm:$0xff]  ;;  %v6320_v60 = vpack.c.bf16 %v10582_v5, %v10581_v39  ;;  %v11376_v39 = vld [vmem:[%s15183_s5 + $0xc0] sm:$0xff]  ;;  %v10583_v5 = vld [vmem:[%s11759_s25 + $0x1e8] sm:$0xff] }
 0x75d   : > { %v6413_v19 = vpop.f32.mrf.mxu1  ;;  %v6553_v51 = vpack.c.bf16 %v10660_v57, %v10659_v36  ;;  %v10662_v36 = vld [vmem:[%s11759_s25 + $0x1d1] sm:$0xff]  ;;  %7569 = vmatpush.bf16.msrb.mxu2 %v11376_v39 }
 0x75e   : > { %15231 = vst [vmem:[#allocation14_spill] sm:$0xff] %v14315_v44  ;;  %v6484_v3 = vadd.f32 %v6413_v19, %v14121_v41  ;;  %v11405_v44 = vld [vmem:[%s15183_s5 + $0x1a8] sm:$0xff] }
 0x75f   : > { %v6219_v62 = vpop.f32.mrf.mxu0 }
 0x760   : > { %v14322_v13 = vadd.f32 %v6219_v62, %v14134_v55  ;;  %6452 = vmatmul.bf16.gmra.mxu1 %v6319_v25  ;;  %v6821_v25 = vld [vmem:[#allocation2 + $0x8f] sm:$0xff] }
 0x761   : > { %v14347_v62 = vpack.c.bf16 %v6821_v25, %v6820_v1 }
 0x762   : > { %7149 = vmatmul.bf16.gmra.mxu0 %v14324_v49 }
 0x763   : > { %v6644_v41 = vpop.f32.mrf.mxu2 }
 0x764   : > { %v14329_v0 = vpop.f32.mrf.mxu3  ;;  %v14331_v34 = vadd.f32 %v6644_v41, %v6483_v17  ;;  %v6901_v41 = vld [vmem:[#allocation2 + $0x190] sm:$0xff] }
 0x765   : > { %v6415_v55 = vpop.f32.mrf.mxu1 }
 0x766   : > { %15232 = vst [vmem:[#allocation15_spill] sm:$0xff] %v14331_v34  ;;  %v6485_v53 = vadd.f32 %v6415_v55, %v14130_v42  ;;  %v6833_v34 = vld [vmem:[#allocation2 + $0x14f] sm:$0xff] }
 0x767   : > { %v6221_v61 = vpop.f32.mrf.mxu0 }
 0x768   : > { %v14335_v20 = vadd.f32 %v6221_v61, %v14143_v47  ;;  %6686 = vmatmul.bf16.gmra.mxu2 %v6553_v51  ;;  %v6900_v51 = vld [vmem:[#allocation2 + $0x188] sm:$0xff] }
 0x769   : > { %7052 = vmatmul.bf16.gmra.mxu3 %v6919_v63 }
 0x76b   : > { %v6647_v9 = vpop.f32.mrf.mxu2 }
 0x76c   : > { %v14339_v10 = vpop.f32.mrf.mxu3  ;;  %v14341_v17 = vadd.f32 %v6647_v9, %v6484_v3  ;;  %v10584_v9 = vld [vmem:[%s11759_s25 + $0x1f0] sm:$0xff] }
 0x76d   : > { %v6418_v32 = vpop.f32.mrf.mxu1  ;;  %v6321_v25 = vpack.c.bf16 %v10584_v9, %v10583_v5  ;;  %v6902_v5 = vld [vmem:[#allocation2 + $0x1a8] sm:$0xff] }
 0x76e   : > { %15233 = vst [vmem:[#allocation17_spill] sm:$0xff] %v14341_v17  ;;  %v6486_v42 = vadd.f32 %v6418_v32, %v14138_v31  ;;  %v6554_v31 = vpack.c.bf16 %v10662_v36, %v10661_v43  ;;  %v6823_v32 = vld [vmem:[#allocation2 + $0xaf] sm:$0xff]  ;;  %v11368_v43 = vld [vmem:[%s15183_s5 + $0x80] sm:$0xff] }
 0x76f   : > { %v6224_v19 = vpop.f32.mrf.mxu0  ;;  %7335 = vmatpush.bf16.msrb.mxu1 %v11368_v43 }
 0x770   : > { %v14345_v47 = vadd.f32 %v6224_v19, %v14160_v50  ;;  %6457 = vmatmul.bf16.gmra.mxu1 %v6320_v60  ;;  %v6920_v50 = vpack.c.bf16 %v6901_v41, %v6900_v51  ;;  %v10663_v51 = vld [vmem:[%s11759_s25 + $0x1e9] sm:$0xff] }
 0x772   : > { %7154 = vmatmul.bf16.gmra.mxu0 %v14347_v62 }
 0x773   : > { %v6649_v3 = vpop.f32.mrf.mxu2 }
 0x774   : > { %v14352_v57 = vpop.f32.mrf.mxu3  ;;  %v14354_v59 = vadd.f32 %v6649_v3, %v6485_v53  ;;  %v11384_v53 = vld [vmem:[%s15183_s5 + $0x100] sm:$0xff] }
 0x775   : > { %v6420_v23 = vpop.f32.mrf.mxu1  ;;  %7803 = vmatpush.bf16.msrb.mxu3 %v11384_v53  ;;  %v6822_v3 = vld [vmem:[#allocation2 + $0xa7] sm:$0xff] }
 0x776   : > { %15234 = vst [vmem:[#allocation16_spill] sm:$0xff] %v14354_v59  ;;  %v6487_v55 = vadd.f32 %v6420_v23, %v14147_v40 }
 0x777   : > { %v6226_v63 = vpop.f32.mrf.mxu0 }
 0x778   : > { %v14358_v61 = vadd.f32 %v6226_v63, %v14175_v18  ;;  %6691 = vmatmul.bf16.gmra.mxu2 %v6554_v31  ;;  %v14379_v31 = vpack.c.bf16 %v6823_v32, %v6822_v3  ;;  %v10585_v32 = vld [vmem:[%s11759_s25 + $0x208] sm:$0xff] }
 0x779   : > { %7057 = vmatmul.bf16.gmra.mxu3 %v6920_v50  ;;  %v6903_v50 = vld [vmem:[#allocation2 + $0x1b0] sm:$0xff] }
 0x77a   : > { %v6921_v9 = vpack.c.bf16 %v6903_v50, %v6902_v5  ;;  %v6824_v50 = vld [vmem:[#allocation2 + $0xc7] sm:$0xff] }
 0x77b   : > { %v6652_v40 = vpop.f32.mrf.mxu2  ;;  %v10665_v5 = vld [vmem:[%s11759_s25 + $0x209] sm:$0xff] }
 0x77c   : > { %v14368_v60 = vpop.f32.mrf.mxu3  ;;  %v14370_v18 = vadd.f32 %v6652_v40, %v6486_v42  ;;  %v10664_v42 = vld [vmem:[%s11759_s25 + $0x1f1] sm:$0xff] }
 0x77d   : > { %v6423_v19 = vpop.f32.mrf.mxu1  ;;  %v6555_v39 = vpack.c.bf16 %v10664_v42, %v10663_v51  ;;  %v6825_v51 = vld [vmem:[#allocation2 + $0xcf] sm:$0xff] }
 0x77e   : > { %15235 = vst [vmem:[#allocation18_spill] sm:$0xff] %v14370_v18  ;;  %v6488_v1 = vadd.f32 %v6423_v19, %v14167_v7  ;;  %v10586_v19 = vld [vmem:[%s11759_s25 + $0x210] sm:$0xff] }
 0x77f   : > { %v6229_v36 = vpop.f32.mrf.mxu0  ;;  %v6322_v3 = vpack.c.bf16 %v10586_v19, %v10585_v32  ;;  %v6904_v19 = vld [vmem:[#allocation2 + $0x1c8] sm:$0xff] }
 0x780   : > { %v14377_v41 = vadd.f32 %v6229_v36, %v14189_v4  ;;  %6462 = vmatmul.bf16.gmra.mxu1 %v6321_v25 }
 0x782   : > { %7159 = vmatmul.bf16.gmra.mxu0 %v14379_v31 }
 0x783   : > { %v6654_v7 = vpop.f32.mrf.mxu2 }
 0x784   : > { %v14384_v23 = vpop.f32.mrf.mxu3  ;;  %v14386_v63 = vadd.f32 %v6654_v7, %v6487_v55 }
 0x785   : > { %v6425_v4 = vpop.f32.mrf.mxu1 }
 0x786   : > { %15236 = vst [vmem:[#allocation19_spill] sm:$0xff] %v14386_v63  ;;  %v6489_v53 = vadd.f32 %v6425_v4, %v14179_v29  ;;  %v10666_v4 = vld [vmem:[%s11759_s25 + $0x211] sm:$0xff] }
 0x787   : > { %v6231_v40 = vpop.f32.mrf.mxu0 }
 0x788   : > { %v14390_v25 = vadd.f32 %v6231_v40, %v14201_v27  ;;  %6696 = vmatmul.bf16.gmra.mxu2 %v6555_v39  ;;  %v14402_v39 = vpack.c.bf16 %v6825_v51, %v6824_v50  ;;  %v6905_v40 = vld [vmem:[#allocation2 + $0x1d0] sm:$0xff]  ;;  %v11423_v50 = vld [vmem:[%s15183_s5 + $0x238] sm:$0xff] }
 0x789   : > { %7062 = vmatmul.bf16.gmra.mxu3 %v6921_v9 }
 0x78a   : > { %8732 = vmatpush.bf16.msra.mxu3 %v11423_v50  ;;  %v10667_v50 = vld [vmem:[%s11759_s25 + $0x229] sm:$0xff] }
 0x78b   : > { %v6657_v43 = vpop.f32.mrf.mxu2 }
 0x78c   : > { %v14394_v36 = vpop.f32.mrf.mxu3  ;;  %v14396_v55 = vadd.f32 %v6657_v43, %v6488_v1 }
 0x78d   : > { %v6428_v42 = vpop.f32.mrf.mxu1 }
 0x78e   : > { %15237 = vst [vmem:[#allocation20_spill] sm:$0xff] %v14396_v55  ;;  %v6490_v29 = vadd.f32 %v6428_v42, %v14193_v24  ;;  %v6556_v24 = vpack.c.bf16 %v10666_v4, %v10665_v5  ;;  %v10587_v5 = vld [vmem:[%s11759_s25 + $0x228] sm:$0xff] }
 0x78f   : > { %v6234_v7 = vpop.f32.mrf.mxu0 }
 0x790   : > { %v14400_v27 = vadd.f32 %v6234_v7, %v14217_v48  ;;  %6467 = vmatmul.bf16.gmra.mxu1 %v6322_v3  ;;  %v6922_v48 = vpack.c.bf16 %v6905_v40, %v6904_v19  ;;  %v11415_v7 = vld [vmem:[%s15183_s5 + $0x1f8] sm:$0xff] }
 0x791   : > { %8498 = vmatpush.bf16.msra.mxu2 %v11415_v7  ;;  %v6826_v7 = vld [vmem:[#allocation2 + $0xe7] sm:$0xff] }
 0x792   : > { %7164 = vmatmul.bf16.gmra.mxu0 %v14402_v39 }
 0x793   : > { %v6659_v9 = vpop.f32.mrf.mxu2 }
 0x794   : > { %v14407_v1 = vpop.f32.mrf.mxu3  ;;  %v14409_v32 = vadd.f32 %v6659_v9, %v6489_v53  ;;  %v11399_v53 = vld [vmem:[%s15183_s5 + $0x178] sm:$0xff] }
 0x795   : > { %v6430_v43 = vpop.f32.mrf.mxu1  ;;  %8030 = vmatpush.bf16.msra.mxu0 %v11399_v53 }
 0x796   : > { %15238 = vst [vmem:[#allocation21_spill] sm:$0xff] %v14409_v32  ;;  %v6491_v51 = vadd.f32 %v6430_v43, %v14205_v26  ;;  %v10588_v26 = vld [vmem:[%s11759_s25 + $0x230] sm:$0xff] }
 0x797   : > { %v6236_v42 = vpop.f32.mrf.mxu0  ;;  %v6323_v40 = vpack.c.bf16 %v10588_v26, %v10587_v5 }
 0x798   : > { %v14413_v3 = vadd.f32 %v6236_v42, %v14228_v8  ;;  %6701 = vmatmul.bf16.gmra.mxu2 %v6556_v24  ;;  %v6827_v24 = vld [vmem:[#allocation2 + $0xef] sm:$0xff] }
 0x799   : > { %7067 = vmatmul.bf16.gmra.mxu3 %v6922_v48  ;;  %v11407_v48 = vld [vmem:[%s15183_s5 + $0x1b8] sm:$0xff]  ;;  %v14437_v32 = vpack.c.bf16 %v6827_v24, %v6826_v7 }
 0x79a   : > { %8264 = vmatpush.bf16.msra.mxu1 %v11407_v48  ;;  %v7215_v48 = vld [vmem:[#allocation2 + $0x9] sm:$0xff] }
 0x79b   : > { %v6662_v8 = vpop.f32.mrf.mxu2 }
 0x79c   : > { %v14426_v4 = vpop.f32.mrf.mxu3  ;;  %v14428_v9 = vadd.f32 %v6662_v8, %v6490_v29  ;;  %v10668_v29 = vld [vmem:[%s11759_s25 + $0x231] sm:$0xff] }
 0x79d   : > { %v6433_v19 = vpop.f32.mrf.mxu1 }
 0x79e   : > { %15239 = vst [vmem:[#allocation22_spill] sm:$0xff] %v14428_v9  ;;  %v6492_v43 = vadd.f32 %v6433_v19, %v14224_v21  ;;  %v6907_v21 = vld [vmem:[#allocation2 + $0x1f0] sm:$0xff]  ;;  %v6557_v19 = vpack.c.bf16 %v10668_v29, %v10667_v50  ;;  %v6906_v9 = vld [vmem:[#allocation2 + $0x1e8] sm:$0xff] }
 0x79f   : > { %v6239_v42 = vpop.f32.mrf.mxu0  ;;  %v6923_v63 = vpack.c.bf16 %v6907_v21, %v6906_v9  ;;  %v6829_v50 = vld [vmem:[#allocation2 + $0x10f] sm:$0xff] }
 0x7a0   : > { %v14435_v53 = vadd.f32 %v6239_v42, %v14236_v30  ;;  %6472 = vmatmul.bf16.gmra.mxu1 %v6323_v40  ;;  %v7216_v42 = vld [vmem:[#allocation2 + $0x11] sm:$0xff] }
 0x7a1   : > { %v7684_v21 = vld [vmem:[#allocation2 + $0x30] sm:$0xff] }
 0x7a2   : > { %7169 = vmatmul.bf16.gmra.mxu0 %v14437_v32 }
 0x7a3   : > { %v6664_v5 = vpop.f32.mrf.mxu2 }
 0x7a4   : > { %v14442_v26 = vpop.f32.mrf.mxu3  ;;  %v14444_v8 = vadd.f32 %v6664_v5, %v6491_v51  ;;  %v7247_v51 = vpack.c.bf16 %v7216_v42, %v7215_v48 }
 0x7a5   : > { %v6435_v55 = vpop.f32.mrf.mxu1 }
 0x7a6   : > { %15240 = vst [vmem:[#allocation23_spill] sm:$0xff] %v14444_v8  ;;  %v6493_v30 = vadd.f32 %v6435_v55, %v14232_v6  ;;  %v6828_v6 = vld [vmem:[#allocation2 + $0x107] sm:$0xff]  ;;  %v7220_v8 = vld [vmem:[#allocation2 + $0x51] sm:$0xff] }
 0x7a7   : > { %v6241_v24 = vpop.f32.mrf.mxu0  ;;  %v14457_v55 = vpack.c.bf16 %v6829_v50, %v6828_v6 }
 0x7a8   : > { %v14448_v40 = vadd.f32 %v6241_v24, %v14244_v22  ;;  %6706 = vmatmul.bf16.gmra.mxu2 %v6557_v19 }
 0x7a9   : > { %7072 = vmatmul.bf16.gmra.mxu3 %v6923_v63 }
 0x7ab   : > { %v6667_v7 = vpop.f32.mrf.mxu2 }
 0x7ac   : > { %v14450_v18 = vpop.f32.mrf.mxu3  ;;  %v14452_v59 = vadd.f32 %v6667_v7, %v6492_v43  ;;  %v7683_v43 = vld [vmem:[#allocation2 + $0x28] sm:$0xff]  ;;  %v11414_v7 = vld [vmem:[%s15183_s5 + $0x1f0] sm:$0xff] }
 0x7ad   : > { %v6438_v29 = vpop.f32.mrf.mxu1  ;;  %v7715_v48 = vpack.c.bf16 %v7684_v21, %v7683_v43  ;;  %8499 = vmatpush.bf16.msra.mxu2 %v11414_v7 }
 0x7ae   : > { %15241 = vst [vmem:[#allocation24_spill] sm:$0xff] %v14452_v59  ;;  %v6494_v9 = vadd.f32 %v6438_v29, %v14240_v52  ;;  %v7217_v29 = vld [vmem:[#allocation2 + $0x29] sm:$0xff] }
 0x7af   : > { %v14455_v5 = vpop.f32.mrf.mxu0 }
 0x7b0   : > { %7336 = vmatmul.bf16.vlgmr.msrb.gmra.mxu1 %v7247_v51  ;;  %v11398_v51 = vld [vmem:[%s15183_s5 + $0x170] sm:$0xff] }
 0x7b1   : > { %8031 = vmatpush.bf16.msra.mxu0 %v11398_v51  ;;  %v6830_v51 = vld [vmem:[#allocation2 + $0x127] sm:$0xff] }
 0x7b2   : > { %7174 = vmatmul.bf16.gmra.mxu0 %v14457_v55 }
 0x7b3   : > { %v6669_v22 = vpop.f32.mrf.mxu2 }
 0x7b4   : > { %v14460_v63 = vpop.f32.mrf.mxu3  ;;  %v14462_v19 = vadd.f32 %v6669_v22, %v6493_v30  ;;  %v11422_v30 = vld [vmem:[%s15183_s5 + $0x230] sm:$0xff] }
 0x7b5   : > { %v6440_v24 = vpop.f32.mrf.mxu1  ;;  %8733 = vmatpush.bf16.msra.mxu3 %v11422_v30  ;;  %v6831_v22 = vld [vmem:[#allocation2 + $0x12f] sm:$0xff] }
 0x7b6   : > { %15242 = vst [vmem:[#allocation25_spill] sm:$0xff] %v14462_v19  ;;  %v6495_v42 = vadd.f32 %v6440_v24, %v14248_v15  ;;  %v14489_v19 = vpack.c.bf16 %v6831_v22, %v6830_v51  ;;  %v7219_v51 = vld [vmem:[#allocation2 + $0x49] sm:$0xff] }
 0x7b7   : > { %v14465_v52 = vpop.f32.mrf.mxu0 }
 0x7b8   : > { %7570 = vmatmul.bf16.vlgmr.msrb.gmra.mxu2 %v14269_v46  ;;  %v7218_v46 = vld [vmem:[#allocation2 + $0x31] sm:$0xff] }
 0x7b9   : > { %7804 = vmatmul.bf16.vlgmr.msrb.gmra.mxu3 %v7715_v48  ;;  %v14482_v24 = vpack.c.bf16 %v7218_v46, %v7217_v29  ;;  %v11406_v48 = vld [vmem:[%s15183_s5 + $0x1b0] sm:$0xff]  ;;  %v7685_v29 = vld [vmem:[#allocation2 + $0x48] sm:$0xff] }
 0x7ba   : > { %8265 = vmatpush.bf16.msra.mxu1 %v11406_v48 }
 0x7bb   : > { %v6672_v15 = vpop.f32.mrf.mxu2 }
 0x7bc   : > { %v14477_v50 = vpop.f32.mrf.mxu3  ;;  %v14479_v6 = vadd.f32 %v6672_v15, %v6494_v9 }
 0x7bd   : > { %v6443_v21 = vpop.f32.mrf.mxu1 }
 0x7be   : > { %15243 = vst [vmem:[#allocation26_spill] sm:$0xff] %v14479_v6  ;;  %v6496_v43 = vadd.f32 %v6443_v21, %v14267_v35  ;;  %v7686_v35 = vld [vmem:[#allocation2 + $0x50] sm:$0xff]  ;;  %8266 = vmatpush.bf16.msra.mxu1 %v11405_v44 }
 0x7bf   : > { %v14487_v7 = vpop.f32.mrf.mxu0  ;;  %v7716_v21 = vpack.c.bf16 %v7686_v35, %v7685_v29 }
 0x7c0   : > { %7341 = vmatmul.bf16.gmra.mxu1 %v14482_v24 }
 0x7c2   : > { %7179 = vmatmul.bf16.gmra.mxu0 %v14489_v19 }
 0x7c3   : > { %v6674_v9 = vpop.f32.mrf.mxu2 }
 0x7c4   : > { %v14493_v30 = vpop.f32.mrf.mxu3  ;;  %v14495_v15 = vadd.f32 %v6674_v9, %v6495_v42 }
 0x7c5   : > { %v6445_v46 = vpop.f32.mrf.mxu1 }
 0x7c6   : > { %15244 = vst [vmem:[#allocation27_spill] sm:$0xff] %v14495_v15  ;;  %v6497_v6 = vadd.f32 %v6445_v46, %v14280_v14  ;;  %v14506_v15 = vpack.c.bf16 %v7220_v8, %v7219_v51  ;;  %v6832_v14 = vld [vmem:[#allocation2 + $0x147] sm:$0xff] }
 0x7c7   : > { %v14498_v59 = vpop.f32.mrf.mxu0  ;;  %v14510_v29 = vpack.c.bf16 %v6833_v34, %v6832_v14  ;;  %v11413_v34 = vld [vmem:[%s15183_s5 + $0x1e8] sm:$0xff] }
 0x7c8   : > { %7575 = vmatmul.bf16.gmra.mxu2 %v14292_v11  ;;  %v7221_v14 = vld [vmem:[#allocation2 + $0x69] sm:$0xff] }
 0x7c9   : > { %7809 = vmatmul.bf16.gmra.mxu3 %v7716_v21  ;;  %8500 = vmatpush.bf16.msra.mxu2 %v11413_v34 }
 0x7cb   : > { %v6677_v22 = vpop.f32.mrf.mxu2 }
 0x7cc   : > { %v14501_v48 = vpop.f32.mrf.mxu3  ;;  %v14503_v17 = vadd.f32 %v6677_v22, %v6496_v43  ;;  %v7688_v43 = vld [vmem:[#allocation2 + $0x70] sm:$0xff]  ;;  %v7687_v22 = vld [vmem:[#allocation2 + $0x68] sm:$0xff] }
 0x7cd   : > { %15245 = vst [vmem:[#allocation28_spill] sm:$0xff] %v14501_v48  ;;  %v6448_v42 = vpop.f32.mrf.mxu1  ;;  %v7232_v48 = vld [vmem:[#allocation2 + $0x111] sm:$0xff] }
 0x7ce   : > { %15246 = vst [vmem:[#allocation29_spill] sm:$0xff] %v14503_v17  ;;  %v6498_v9 = vadd.f32 %v6448_v42, %v14290_v12  ;;  %v7717_v12 = vpack.c.bf16 %v7688_v43, %v7687_v22  ;;  %v11397_v42 = vld [vmem:[%s15183_s5 + $0x168] sm:$0xff] }
 0x7cf   : > { %v14508_v35 = vpop.f32.mrf.mxu0  ;;  %8032 = vmatpush.bf16.msra.mxu0 %v11397_v42  ;;  %v6835_v43 = vld [vmem:[#allocation2 + $0x16f] sm:$0xff]  ;;  %v6834_v42 = vld [vmem:[#allocation2 + $0x167] sm:$0xff] }
 0x7d0   : > { %7346 = vmatmul.bf16.gmra.mxu1 %v14506_v15  ;;  %v14543_v38 = vpack.c.bf16 %v6835_v43, %v6834_v42  ;;  %v7223_v42 = vld [vmem:[#allocation2 + $0x89] sm:$0xff] }
 0x7d2   : > { %7184 = vmatmul.bf16.gmra.mxu0 %v14510_v29 }
 0x7d3   : > { %v6679_v11 = vpop.f32.mrf.mxu2 }
 0x7d4   : > { %v14514_v46 = vpop.f32.mrf.mxu3  ;;  %v14516_v21 = vadd.f32 %v6679_v11, %v6497_v6  ;;  %v11421_v6 = vld [vmem:[%s15183_s5 + $0x228] sm:$0xff] }
 0x7d5   : > { %15247 = vst [vmem:[#allocation30_spill] sm:$0xff] %v14514_v46  ;;  %v6450_v17 = vpop.f32.mrf.mxu1  ;;  %8734 = vmatpush.bf16.msra.mxu3 %v11421_v6 }
 0x7d6   : > { %15248 = vst [vmem:[#allocation31_spill] sm:$0xff] %v14516_v21  ;;  %v6499_v8 = vadd.f32 %v6450_v17, %v14303_v37 }
 0x7d7   : > { %v14519_v51 = vpop.f32.mrf.mxu0 }
 0x7d8   : > { %7580 = vmatmul.bf16.gmra.mxu2 %v14324_v49  ;;  %v7222_v49 = vld [vmem:[#allocation2 + $0x71] sm:$0xff] }
 0x7d9   : > { %7814 = vmatmul.bf16.gmra.mxu3 %v7717_v12  ;;  %v14536_v21 = vpack.c.bf16 %v7222_v49, %v7221_v14  ;;  %v7689_v14 = vld [vmem:[#allocation2 + $0x88] sm:$0xff] }
 0x7db   : > { %v6682_v37 = vpop.f32.mrf.mxu2 }
 0x7dc   : > { %v14531_v17 = vpop.f32.mrf.mxu3  ;;  %v14533_v11 = vadd.f32 %v6682_v37, %v6498_v9 }
 0x7dd   : > { %15249 = vst [vmem:[#allocation32_spill] sm:$0xff] %v14531_v17  ;;  %v6453_v22 = vpop.f32.mrf.mxu1 }
 0x7de   : > { %15250 = vst [vmem:[#allocation33_spill] sm:$0xff] %v14533_v11  ;;  %v6500_v12 = vadd.f32 %v6453_v22, %v14322_v13  ;;  %v7690_v13 = vld [vmem:[#allocation2 + $0x90] sm:$0xff] }
 0x7df   : > { %v14541_v34 = vpop.f32.mrf.mxu0  ;;  %v7718_v22 = vpack.c.bf16 %v7690_v13, %v7689_v14 }
 0x7e0   : > { %7351 = vmatmul.bf16.gmra.mxu1 %v14536_v21 }
 0x7e2   : > { %7189 = vmatmul.bf16.gmra.mxu0 %v14543_v38 }
 0x7e3   : > { %v6684_v9 = vpop.f32.mrf.mxu2 }
 0x7e4   : > { %v14547_v6 = vpop.f32.mrf.mxu3  ;;  %v14549_v37 = vadd.f32 %v6684_v9, %v6499_v8 }
 0x7e5   : > { %15251 = vst [vmem:[#allocation34_spill] sm:$0xff] %v14547_v6  ;;  %v6455_v49 = vpop.f32.mrf.mxu1  ;;  %v6837_v6 = vld [vmem:[#allocation2 + $0x18f] sm:$0xff] }
 0x7e6   : > { %15252 = vst [vmem:[#allocation35_spill] sm:$0xff] %v14549_v37  ;;  %v6501_v11 = vadd.f32 %v6455_v49, %v14335_v20  ;;  %v14560_v37 = vpack.c.bf16 %v7224_v16, %v7223_v42  ;;  %v6836_v20 = vld [vmem:[#allocation2 + $0x187] sm:$0xff] }
 0x7e7   : > { %v14552_v58 = vpop.f32.mrf.mxu0  ;;  %v14564_v14 = vpack.c.bf16 %v6837_v6, %v6836_v20  ;;  %v11412_v6 = vld [vmem:[%s15183_s5 + $0x1e0] sm:$0xff]  ;;  %v7225_v20 = vld [vmem:[#allocation2 + $0xa9] sm:$0xff] }
 0x7e8   : > { %7585 = vmatmul.bf16.gmra.mxu2 %v14347_v62 }
 0x7e9   : > { %7819 = vmatmul.bf16.gmra.mxu3 %v7718_v22  ;;  %8501 = vmatpush.bf16.msra.mxu2 %v11412_v6 }
 0x7eb   : > { %v6687_v43 = vpop.f32.mrf.mxu2 }
 0x7ec   : > { %v14555_v44 = vpop.f32.mrf.mxu3  ;;  %v14557_v56 = vadd.f32 %v6687_v43, %v6500_v12  ;;  %v7692_v12 = vld [vmem:[#allocation2 + $0xb0] sm:$0xff]  ;;  %v7691_v43 = vld [vmem:[#allocation2 + $0xa8] sm:$0xff] }
 0x7ed   : > { %15253 = vst [vmem:[#allocation36_spill] sm:$0xff] %v14555_v44  ;;  %v6458_v8 = vpop.f32.mrf.mxu1 }
 0x7ee   : > { %15254 = vst [vmem:[#allocation37_spill] sm:$0xff] %v14557_v56  ;;  %v6502_v9 = vadd.f32 %v6458_v8, %v14345_v47  ;;  %v7719_v47 = vpack.c.bf16 %v7692_v12, %v7691_v43  ;;  %v11396_v8 = vld [vmem:[%s15183_s5 + $0x160] sm:$0xff]  ;;  %v6839_v12 = vld [vmem:[#allocation2 + $0x1af] sm:$0xff] }
 0x7ef   : > { %v14562_v13 = vpop.f32.mrf.mxu0  ;;  %8033 = vmatpush.bf16.msra.mxu0 %v11396_v8  ;;  %v6838_v8 = vld [vmem:[#allocation2 + $0x1a7] sm:$0xff] }
 0x7f0   : > { %7356 = vmatmul.bf16.gmra.mxu1 %v14560_v37  ;;  %v14597_v44 = vpack.c.bf16 %v6839_v12, %v6838_v8 }
 0x7f2   : > { %7194 = vmatmul.bf16.gmra.mxu0 %v14564_v14 }
 0x7f3   : > { %v6689_v62 = vpop.f32.mrf.mxu2 }
 0x7f4   : > { %v14568_v49 = vpop.f32.mrf.mxu3  ;;  %v14570_v22 = vadd.f32 %v6689_v62, %v6501_v11  ;;  %v11420_v11 = vld [vmem:[%s15183_s5 + $0x220] sm:$0xff] }
 0x7f5   : > { %15255 = vst [vmem:[#allocation38_spill] sm:$0xff] %v14568_v49  ;;  %v6460_v56 = vpop.f32.mrf.mxu1  ;;  %8735 = vmatpush.bf16.msra.mxu3 %v11420_v11  ;;  %v11404_v49 = vld [vmem:[%s15183_s5 + $0x1a0] sm:$0xff] }
 0x7f6   : > { %15256 = vst [vmem:[#allocation39_spill] sm:$0xff] %v14570_v22  ;;  %v6503_v16 = vadd.f32 %v6460_v56, %v14358_v61  ;;  %8267 = vmatpush.bf16.msra.mxu1 %v11404_v49  ;;  %v11394_v49 = vld [vmem:[%s15183_s5 + $0x150] sm:$0xff] }
 0x7f7   : > { %v14573_v42 = vpop.f32.mrf.mxu0 }
 0x7f8   : > { %7590 = vmatmul.bf16.gmra.mxu2 %v14379_v31  ;;  %v7226_v31 = vld [vmem:[#allocation2 + $0xb1] sm:$0xff] }
 0x7f9   : > { %7824 = vmatmul.bf16.gmra.mxu3 %v7719_v47  ;;  %v14590_v22 = vpack.c.bf16 %v7226_v31, %v7225_v20  ;;  %v11395_v20 = vld [vmem:[%s15183_s5 + $0x158] sm:$0xff]  ;;  %v7693_v31 = vld [vmem:[#allocation2 + $0xc8] sm:$0xff] }
 0x7fa   : > { %8034 = vmatpush.bf16.msra.mxu0 %v11395_v20 }
 0x7fb   : > { %v6692_v56 = vpop.f32.mrf.mxu2 }
 0x7fc   : > { %v14585_v61 = vpop.f32.mrf.mxu3  ;;  %v14587_v62 = vadd.f32 %v6692_v56, %v6502_v9 }
 0x7fd   : > { %15257 = vst [vmem:[#allocation40_spill] sm:$0xff] %v14585_v61  ;;  %v6463_v43 = vpop.f32.mrf.mxu1 }
 0x7fe   : > { %15258 = vst [vmem:[#allocation41_spill] sm:$0xff] %v14587_v62  ;;  %v6504_v47 = vadd.f32 %v6463_v43, %v14377_v41  ;;  %v7694_v41 = vld [vmem:[#allocation2 + $0xd0] sm:$0xff]  ;;  %8035 = vmatpush.bf16.msra.mxu0 %v11394_v49 }
 0x7ff   : > { %v14595_v6 = vpop.f32.mrf.mxu0  ;;  %v7720_v62 = vpack.c.bf16 %v7694_v41, %v7693_v31  ;;  %v6841_v41 = vld [vmem:[#allocation2 + $0x1cf] sm:$0xff] }
 0x800   : > { %7361 = vmatmul.bf16.gmra.mxu1 %v14590_v22 }
 0x802   : > { %7199 = vmatmul.bf16.gmra.mxu0 %v14597_v44 }
 0x803   : > { %v6694_v9 = vpop.f32.mrf.mxu2 }
 0x804   : > { %v14601_v11 = vpop.f32.mrf.mxu3  ;;  %v14603_v56 = vadd.f32 %v6694_v9, %v6503_v16 }
 0x805   : > { %15259 = vst [vmem:[#allocation42_spill] sm:$0xff] %v14601_v11  ;;  %v6465_v43 = vpop.f32.mrf.mxu1  ;;  %v7228_v11 = vld [vmem:[#allocation2 + $0xd1] sm:$0xff] }
 0x806   : > { %15260 = vst [vmem:[#allocation43_spill] sm:$0xff] %v14603_v56  ;;  %v6505_v12 = vadd.f32 %v6465_v43, %v14390_v25  ;;  %v7227_v56 = vld [vmem:[#allocation2 + $0xc9] sm:$0xff] }
 0x807   : > { %v14609_v8 = vpop.f32.mrf.mxu0  ;;  %v11393_v25 = vld [vmem:[%s15183_s5 + $0x148] sm:$0xff] }
 0x808   : > { %7595 = vmatmul.bf16.gmra.mxu2 %v14402_v39  ;;  %8036 = vmatpush.bf16.msra.mxu0 %v11393_v25  ;;  %v6840_v43 = vld [vmem:[#allocation2 + $0x1c7] sm:$0xff] }
 0x809   : > { %7829 = vmatmul.bf16.gmra.mxu3 %v7720_v62  ;;  %v14623_v62 = vpack.c.bf16 %v7228_v11, %v7227_v56  ;;  %v14627_v49 = vpack.c.bf16 %v6841_v41, %v6840_v43  ;;  %v7695_v56 = vld [vmem:[#allocation2 + $0xe8] sm:$0xff] }
 0x80b   : > { %v6697_v16 = vpop.f32.mrf.mxu2 }
 0x80c   : > { %v14615_v9 = vpop.f32.mrf.mxu3  ;;  %v14617_v61 = vadd.f32 %v6697_v16, %v6504_v47  ;;  %v11392_v47 = vld [vmem:[%s15183_s5 + $0x140] sm:$0xff] }
 0x80d   : > { %15261 = vst [vmem:[#allocation44_spill] sm:$0xff] %v14615_v9  ;;  %v6468_v20 = vpop.f32.mrf.mxu1  ;;  %8037 = vmatpush.bf16.msra.mxu0 %v11392_v47  ;;  %v11411_v9 = vld [vmem:[%s15183_s5 + $0x1d8] sm:$0xff] }
 0x80e   : > { %15262 = vst [vmem:[#allocation45_spill] sm:$0xff] %v14617_v61  ;;  %v6506_v39 = vadd.f32 %v6468_v20, %v14400_v27  ;;  %v7696_v27 = vld [vmem:[#allocation2 + $0xf0] sm:$0xff]  ;;  %v11419_v47 = vld [vmem:[%s15183_s5 + $0x218] sm:$0xff]  ;;  %8502 = vmatpush.bf16.msra.mxu2 %v11411_v9  ;;  %v6842_v9 = vld [vmem:[#allocation2 + $0x1e7] sm:$0xff] }
 0x80f   : > { %v14625_v31 = vpop.f32.mrf.mxu0  ;;  %v7721_v20 = vpack.c.bf16 %v7696_v27, %v7695_v56  ;;  %8736 = vmatpush.bf16.msra.mxu3 %v11419_v47  ;;  %v7229_v27 = vld [vmem:[#allocation2 + $0xe9] sm:$0xff] }
 0x810   : > { %7366 = vmatmul.bf16.gmra.mxu1 %v14623_v62 }
 0x812   : > { %7204 = vmatmul.bf16.gmra.mxu0 %v14627_v49 }
 0x813   : > { %v6699_v16 = vpop.f32.mrf.mxu2 }
 0x814   : > { %v14634_v61 = vpop.f32.mrf.mxu3  ;;  %v14636_v11 = vadd.f32 %v6699_v16, %v6505_v12 }
 0x815   : > { %15263 = vst [vmem:[#allocation46_spill] sm:$0xff] %v14634_v61  ;;  %v6470_v25 = vpop.f32.mrf.mxu1  ;;  %v11403_v61 = vld [vmem:[%s15183_s5 + $0x198] sm:$0xff] }
 0x816   : > { %15264 = vst [vmem:[#allocation47_spill] sm:$0xff] %v14636_v11  ;;  %v6507_v41 = vadd.f32 %v6470_v25, %v14413_v3  ;;  %v7230_v3 = vld [vmem:[#allocation2 + $0xf1] sm:$0xff]  ;;  %8268 = vmatpush.bf16.msra.mxu1 %v11403_v61 }
 0x817   : > { %v14639_v43 = vpop.f32.mrf.mxu0  ;;  %v6843_v25 = vld [vmem:[#allocation2 + $0x1ef] sm:$0xff]  ;;  %v14653_v11 = vpack.c.bf16 %v7230_v3, %v7229_v27 }
 0x818   : > { %7600 = vmatmul.bf16.gmra.mxu2 %v14437_v32  ;;  %v14660_v47 = vpack.c.bf16 %v6843_v25, %v6842_v9  ;;  %v7697_v3 = vld [vmem:[#allocation2 + $0x108] sm:$0xff] }
 0x819   : > { %7834 = vmatmul.bf16.gmra.mxu3 %v7721_v20  ;;  %v7231_v9 = vld [vmem:[#allocation2 + $0x109] sm:$0xff] }
 0x81b   : > { %v6702_v12 = vpop.f32.mrf.mxu2 }
 0x81c   : > { %v14648_v16 = vpop.f32.mrf.mxu3  ;;  %v14650_v56 = vadd.f32 %v6702_v12, %v6506_v39 }
 0x81d   : > { %15265 = vst [vmem:[#allocation48_spill] sm:$0xff] %v14648_v16  ;;  %v6473_v32 = vpop.f32.mrf.mxu1 }
 0x81e   : > { %15266 = vst [vmem:[#allocation49_spill] sm:$0xff] %v14650_v56  ;;  %v6508_v20 = vadd.f32 %v6473_v32, %v14435_v53  ;;  %v7698_v53 = vld [vmem:[#allocation2 + $0x110] sm:$0xff] }
 0x81f   : > { %v14658_v17 = vpop.f32.mrf.mxu0  ;;  %v7722_v56 = vpack.c.bf16 %v7698_v53, %v7697_v3  ;;  %v14678_v53 = vpack.c.bf16 %v7232_v48, %v7231_v9  ;;  %v7700_v3 = vld [vmem:[#allocation2 + $0x130] sm:$0xff] }
 0x820   : > { %7371 = vmatmul.bf16.gmra.mxu1 %v14653_v11  ;;  %v11418_v9 = vld [vmem:[%s15183_s5 + $0x210] sm:$0xff] }
 0x821   : > { %8737 = vmatpush.bf16.msra.mxu3 %v11418_v9 }
 0x822   : > { %7209 = vmatmul.bf16.gmra.mxu0 %v14660_v47 }
 0x823   : > { %v6704_v39 = vpop.f32.mrf.mxu2 }
 0x824   : > { %v14664_v12 = vpop.f32.mrf.mxu3  ;;  %v14666_v27 = vadd.f32 %v6704_v39, %v6507_v41 }
 0x825   : > { %15267 = vst [vmem:[#allocation50_spill] sm:$0xff] %v14664_v12  ;;  %v6475_v32 = vpop.f32.mrf.mxu1  ;;  %v7136_v12 = vadd.f32 %v14455_v5, %v14258_v28  ;;  %v7699_v5 = vld [vmem:[#allocation2 + $0x128] sm:$0xff] }
 0x826   : > { %15268 = vst [vmem:[#allocation51_spill] sm:$0xff] %v14666_v27  ;;  %v6509_v16 = vadd.f32 %v6475_v32, %v14448_v40  ;;  %v7138_v32 = vadd.f32 %v14465_v52, %v14274_v2 }
 0x827   : > { %v14669_v46 = vpop.f32.mrf.mxu0 }
 0x828   : > { %7605 = vmatmul.bf16.gmra.mxu2 %v14457_v55 }
 0x829   : > { %7839 = vmatmul.bf16.gmra.mxu3 %v7722_v56 }
 0x82b   : > { %v6707_v25 = vpop.f32.mrf.mxu2 }
 0x82c   : > { %v14672_v61 = vpop.f32.mrf.mxu3  ;;  %v14676_v41 = vadd.f32 %v6707_v25, %v6508_v20 }
 0x82d   : > { %v7337_v39 = vpop.f32.mrf.mxu1 }
 0x82e   : > { %15269 = vst [vmem:[#allocation52_spill] sm:$0xff] %v14676_v41  ;;  %v7417_v27 = vadd.f32 %v7337_v39, %v7136_v12  ;;  %v7723_v12 = vpack.c.bf16 %v7700_v3, %v7699_v5  ;;  %v7234_v39 = vld [vmem:[#allocation2 + $0x131] sm:$0xff] }
 0x82f   : > { %v14680_v40 = vpop.f32.mrf.mxu0  ;;  %v7236_v41 = vld [vmem:[#allocation2 + $0x151] sm:$0xff] }
 0x830   : > { %7376 = vmatmul.bf16.gmra.mxu1 %v14678_v53 }
 0x832   : > { %8038 = vmatmul.bf16.vlgmr.msra.gmra.mxu0 %v14482_v24  ;;  %v11410_v24 = vld [vmem:[%s15183_s5 + $0x1d0] sm:$0xff] }
 0x833   : > { %v6709_v55 = vpop.f32.mrf.mxu2  ;;  %8503 = vmatpush.bf16.msra.mxu2 %v11410_v24 }
 0x834   : > { %v14684_v56 = vpop.f32.mrf.mxu3  ;;  %v14688_v28 = vadd.f32 %v6709_v55, %v6509_v16  ;;  %v7233_v16 = vld [vmem:[#allocation2 + $0x129] sm:$0xff]  ;;  %v7141_v55 = vadd.f32 %v14487_v7, %v14284_v33 }
 0x835   : > { %v7339_v20 = vpop.f32.mrf.mxu1  ;;  %v7702_v7 = vld [vmem:[#allocation2 + $0x150] sm:$0xff] }
 0x836   : > { %15270 = vst [vmem:[#allocation53_spill] sm:$0xff] %v14688_v28  ;;  %v7418_v48 = vadd.f32 %v7339_v20, %v7138_v32  ;;  %v14703_v20 = vpack.c.bf16 %v7234_v39, %v7233_v16  ;;  %v7235_v28 = vld [vmem:[#allocation2 + $0x149] sm:$0xff] }
 0x837   : > { %v14690_v25 = vpop.f32.mrf.mxu0 }
 0x838   : > { %7610 = vmatmul.bf16.gmra.mxu2 %v14489_v19 }
 0x839   : > { %7844 = vmatmul.bf16.gmra.mxu3 %v7723_v12  ;;  %v11402_v12 = vld [vmem:[%s15183_s5 + $0x190] sm:$0xff] }
 0x83a   : > { %8269 = vmatpush.bf16.msra.mxu1 %v11402_v12 }
 0x83b   : > { %v7571_v2 = vpop.f32.mrf.mxu2 }
 0x83c   : > { %v7805_v52 = vpop.f32.mrf.mxu3  ;;  %v7651_v3 = vadd.f32 %v7571_v2, %v7417_v27  ;;  %v7143_v27 = vadd.f32 %v14498_v59, %v14297_v45  ;;  %v7146_v45 = vadd.f32 %v14508_v35, %v14313_v54  ;;  %v7703_v35 = vld [vmem:[#allocation2 + $0x168] sm:$0xff] }
 0x83d   : > { %v7342_v19 = vpop.f32.mrf.mxu1 }
 0x83e   : > { %v14701_v32 = vadd.f32 %v7805_v52, %v7651_v3  ;;  %v7419_v5 = vadd.f32 %v7342_v19, %v7141_v55  ;;  %v7701_v52 = vld [vmem:[#allocation2 + $0x148] sm:$0xff] }
 0x83f   : > { %v14708_v24 = vpop.f32.mrf.mxu0  ;;  %v14716_v55 = vpack.c.bf16 %v7702_v7, %v7701_v52  ;;  %v14726_v7 = vpack.c.bf16 %v7236_v41, %v7235_v28  ;;  %v7704_v52 = vld [vmem:[#allocation2 + $0x170] sm:$0xff] }
 0x840   : > { %7381 = vmatmul.bf16.gmra.mxu1 %v14703_v20 }
 0x842   : > { %8043 = vmatmul.bf16.gmra.mxu0 %v14506_v15 }
 0x843   : > { %v7573_v9 = vpop.f32.mrf.mxu2 }
 0x844   : > { %v7807_v33 = vpop.f32.mrf.mxu3  ;;  %v7652_v2 = vadd.f32 %v7573_v9, %v7418_v48 }
 0x845   : > { %v7344_v16 = vpop.f32.mrf.mxu1 }
 0x846   : > { %v14714_v39 = vadd.f32 %v7807_v33, %v7652_v2  ;;  %v7420_v3 = vadd.f32 %v7344_v16, %v7143_v27  ;;  %v7148_v16 = vadd.f32 %v14519_v51, %v14329_v0  ;;  %v11417_v0 = vld [vmem:[%s15183_s5 + $0x208] sm:$0xff] }
 0x847   : > { %v14718_v19 = vpop.f32.mrf.mxu0  ;;  %8738 = vmatpush.bf16.msra.mxu3 %v11417_v0 }
 0x848   : > { %7615 = vmatmul.bf16.gmra.mxu2 %v14510_v29 }
 0x849   : > { %7849 = vmatmul.bf16.gmra.mxu3 %v14716_v55 }
 0x84b   : > { %v7576_v15 = vpop.f32.mrf.mxu2 }
 0x84c   : > { %v7810_v12 = vpop.f32.mrf.mxu3  ;;  %v7653_v59 = vadd.f32 %v7576_v15, %v7419_v5 }
 0x84d   : > { %v7347_v48 = vpop.f32.mrf.mxu1 }
 0x84e   : > { %v14724_v9 = vadd.f32 %v7810_v12, %v7653_v59  ;;  %v7421_v33 = vadd.f32 %v7347_v48, %v7146_v45  ;;  %v7725_v12 = vpack.c.bf16 %v7704_v52, %v7703_v35  ;;  %v7237_v45 = vld [vmem:[#allocation2 + $0x169] sm:$0xff]  ;;  %v7238_v59 = vld [vmem:[#allocation2 + $0x171] sm:$0xff]  ;;  %v7151_v48 = vadd.f32 %v14541_v34, %v14339_v10 }
 0x84f   : > { %v14728_v27 = vpop.f32.mrf.mxu0  ;;  %v7706_v34 = vld [vmem:[#allocation2 + $0x190] sm:$0xff] }
 0x850   : > { %7386 = vmatmul.bf16.gmra.mxu1 %v14726_v7 }
 0x852   : > { %8048 = vmatmul.bf16.gmra.mxu0 %v14536_v21  ;;  %v11409_v21 = vld [vmem:[%s15183_s5 + $0x1c8] sm:$0xff] }
 0x853   : > { %v7578_v29 = vpop.f32.mrf.mxu2  ;;  %8504 = vmatpush.bf16.msra.mxu2 %v11409_v21  ;;  %v7705_v21 = vld [vmem:[#allocation2 + $0x188] sm:$0xff] }
 0x854   : > { %v7812_v2 = vpop.f32.mrf.mxu3  ;;  %v7654_v54 = vadd.f32 %v7578_v29, %v7420_v3 }
 0x855   : > { %v7349_v5 = vpop.f32.mrf.mxu1 }
 0x856   : > { %v14734_v15 = vadd.f32 %v7812_v2, %v7654_v54  ;;  %v7422_v41 = vadd.f32 %v7349_v5, %v7148_v16  ;;  %v14749_v16 = vpack.c.bf16 %v7238_v59, %v7237_v45  ;;  %v11401_v54 = vld [vmem:[%s15183_s5 + $0x188] sm:$0xff] }
 0x857   : > { %v14736_v28 = vpop.f32.mrf.mxu0  ;;  %8270 = vmatpush.bf16.msra.mxu1 %v11401_v54 }
 0x858   : > { %7620 = vmatmul.bf16.gmra.mxu2 %v14543_v38 }
 0x859   : > { %7854 = vmatmul.bf16.gmra.mxu3 %v7725_v12 }
 0x85b   : > { %v7581_v51 = vpop.f32.mrf.mxu2 }
 0x85c   : > { %v7815_v3 = vpop.f32.mrf.mxu3  ;;  %v7655_v29 = vadd.f32 %v7581_v51, %v7421_v33  ;;  %v7153_v33 = vadd.f32 %v14552_v58, %v14352_v57  ;;  %v7156_v58 = vadd.f32 %v14562_v13, %v14368_v60  ;;  %v7707_v13 = vld [vmem:[#allocation2 + $0x1a8] sm:$0xff] }
 0x85d   : > { %v7352_v38 = vpop.f32.mrf.mxu1 }
 0x85e   : > { %v14747_v2 = vadd.f32 %v7815_v3, %v7655_v29  ;;  %v7423_v52 = vadd.f32 %v7352_v38, %v7151_v48  ;;  %v14762_v3 = vpack.c.bf16 %v7706_v34, %v7705_v21  ;;  %v7239_v29 = vld [vmem:[#allocation2 + $0x189] sm:$0xff]  ;;  %v7240_v38 = vld [vmem:[#allocation2 + $0x191] sm:$0xff]  ;;  %v7158_v21 = vadd.f32 %v14573_v42, %v14384_v23  ;;  %v11416_v23 = vld [vmem:[%s15183_s5 + $0x200] sm:$0xff] }
 0x85f   : > { %v14754_v35 = vpop.f32.mrf.mxu0  ;;  %8739 = vmatpush.bf16.msra.mxu3 %v11416_v23 }
 0x860   : > { %7391 = vmatmul.bf16.gmra.mxu1 %v14749_v16 }
 0x862   : > { %8053 = vmatmul.bf16.gmra.mxu0 %v14560_v37 }
 0x863   : > { %v7583_v5 = vpop.f32.mrf.mxu2 }
 0x864   : > { %v7817_v10 = vpop.f32.mrf.mxu3  ;;  %v7656_v12 = vadd.f32 %v7583_v5, %v7422_v41 }
 0x865   : > { %v7354_v0 = vpop.f32.mrf.mxu1 }
 0x866   : > { %v14760_v51 = vadd.f32 %v7817_v10, %v7656_v12  ;;  %v7424_v45 = vadd.f32 %v7354_v0, %v7153_v33  ;;  %v14772_v10 = vpack.c.bf16 %v7240_v38, %v7239_v29  ;;  %v7708_v12 = vld [vmem:[#allocation2 + $0x1b0] sm:$0xff] }
 0x867   : > { %v14764_v59 = vpop.f32.mrf.mxu0  ;;  %v7241_v38 = vld [vmem:[#allocation2 + $0x1a9] sm:$0xff] }
 0x868   : > { %7625 = vmatmul.bf16.gmra.mxu2 %v14564_v14 }
 0x869   : > { %7859 = vmatmul.bf16.gmra.mxu3 %v14762_v3 }
 0x86b   : > { %v7586_v37 = vpop.f32.mrf.mxu2 }
 0x86c   : > { %v7820_v48 = vpop.f32.mrf.mxu3  ;;  %v7657_v57 = vadd.f32 %v7586_v37, %v7423_v52  ;;  %v14782_v37 = vpack.c.bf16 %v7708_v12, %v7707_v13 }
 0x86d   : > { %v7357_v41 = vpop.f32.mrf.mxu1 }
 0x86e   : > { %v14770_v54 = vadd.f32 %v7820_v48, %v7657_v57  ;;  %v7425_v5 = vadd.f32 %v7357_v41, %v7156_v58  ;;  %v7242_v58 = vld [vmem:[#allocation2 + $0x1b1] sm:$0xff]  ;;  %v7161_v57 = vadd.f32 %v14595_v6, %v14394_v36 }
 0x86f   : > { %v14774_v34 = vpop.f32.mrf.mxu0  ;;  %v14798_v12 = vpack.c.bf16 %v7242_v58, %v7241_v38  ;;  %v7710_v6 = vld [vmem:[#allocation2 + $0x1d0] sm:$0xff] }
 0x870   : > { %7396 = vmatmul.bf16.gmra.mxu1 %v14772_v10 }
 0x872   : > { %8058 = vmatmul.bf16.gmra.mxu0 %v14590_v22  ;;  %v11408_v22 = vld [vmem:[%s15183_s5 + $0x1c0] sm:$0xff] }
 0x873   : > { %v7588_v14 = vpop.f32.mrf.mxu2  ;;  %8505 = vmatpush.bf16.msra.mxu2 %v11408_v22  ;;  %v7709_v22 = vld [vmem:[#allocation2 + $0x1c8] sm:$0xff] }
 0x874   : > { %v7822_v33 = vpop.f32.mrf.mxu3  ;;  %v7658_v60 = vadd.f32 %v7588_v14, %v7424_v45 }
 0x875   : > { %v7359_v52 = vpop.f32.mrf.mxu1 }
 0x876   : > { %v14780_v0 = vadd.f32 %v7822_v33, %v7658_v60  ;;  %v7426_v48 = vadd.f32 %v7359_v52, %v7158_v21  ;;  %v11400_v21 = vld [vmem:[%s15183_s5 + $0x180] sm:$0xff] }
 0x877   : > { %v14784_v29 = vpop.f32.mrf.mxu0  ;;  %8271 = vmatpush.bf16.msra.mxu1 %v11400_v21 }
 0x878   : > { %7630 = vmatmul.bf16.gmra.mxu2 %v14597_v44 }
 0x879   : > { %7864 = vmatmul.bf16.gmra.mxu3 %v14782_v37 }
 0x87b   : > { %v7591_v42 = vpop.f32.mrf.mxu2 }
 0x87c   : > { %v7825_v45 = vpop.f32.mrf.mxu3  ;;  %v7659_v44 = vadd.f32 %v7591_v42, %v7425_v5  ;;  %v7163_v5 = vadd.f32 %v14609_v8, %v14407_v1  ;;  %v7166_v1 = vadd.f32 %v14625_v31, %v14426_v4  ;;  %v7711_v31 = vld [vmem:[#allocation2 + $0x1e8] sm:$0xff] }
 0x87d   : > { %v7362_v41 = vpop.f32.mrf.mxu1 }
 0x87e   : > { %v14796_v14 = vadd.f32 %v7825_v45, %v7659_v44  ;;  %v7427_v33 = vadd.f32 %v7362_v41, %v7161_v57  ;;  %v14811_v45 = vpack.c.bf16 %v7710_v6, %v7709_v22  ;;  %v7243_v44 = vld [vmem:[#allocation2 + $0x1c9] sm:$0xff]  ;;  %v7244_v41 = vld [vmem:[#allocation2 + $0x1d1] sm:$0xff]  ;;  %v7168_v22 = vadd.f32 %v14639_v43, %v14442_v26 }
 0x87f   : > { %v14803_v60 = vpop.f32.mrf.mxu0  ;;  %v7171_v26 = vadd.f32 %v14658_v17, %v14450_v18  ;;  %v7173_v18 = vadd.f32 %v14669_v46, %v14460_v63  ;;  %v8152_v63 = vld [vmem:[#allocation2 + $0x4f] sm:$0xff]  ;;  %v7176_v46 = vadd.f32 %v14680_v40, %v14477_v50  ;;  %v7178_v50 = vadd.f32 %v14690_v25, %v14493_v30 }
 0x880   : > { %7401 = vmatmul.bf16.gmra.mxu1 %v14798_v12 }
 0x882   : > { %8063 = vmatmul.bf16.gmra.mxu0 %v14623_v62 }
 0x883   : > { %v7593_v13 = vpop.f32.mrf.mxu2 }
 0x884   : > { %v7827_v36 = vpop.f32.mrf.mxu3  ;;  %v7660_v52 = vadd.f32 %v7593_v13, %v7426_v48 }
 0x885   : > { %v7364_v23 = vpop.f32.mrf.mxu1 }
 0x886   : > { %v14809_v42 = vadd.f32 %v7827_v36, %v7660_v52  ;;  %v7428_v38 = vadd.f32 %v7364_v23, %v7163_v5  ;;  %v14821_v36 = vpack.c.bf16 %v7244_v41, %v7243_v44  ;;  %v7712_v52 = vld [vmem:[#allocation2 + $0x1f0] sm:$0xff] }
 0x887   : > { %v14813_v58 = vpop.f32.mrf.mxu0 }
 0x888   : > { %7635 = vmatmul.bf16.gmra.mxu2 %v14627_v49 }
 0x889   : > { %7869 = vmatmul.bf16.gmra.mxu3 %v14811_v45 }
 0x88b   : > { %v7596_v62 = vpop.f32.mrf.mxu2 }
 0x88c   : > { %v7830_v57 = vpop.f32.mrf.mxu3  ;;  %v7661_v8 = vadd.f32 %v7596_v62, %v7427_v33  ;;  %v14831_v62 = vpack.c.bf16 %v7712_v52, %v7711_v31  ;;  %v7480_v31 = vld [vmem:[#allocation2 + $0x20f] sm:$0xff] }
 0x88d   : > { %v7367_v48 = vpop.f32.mrf.mxu1 }
 0x88e   : > { %v14819_v21 = vadd.f32 %v7830_v57, %v7661_v8  ;;  %v7429_v13 = vadd.f32 %v7367_v48, %v7166_v1  ;;  %v7245_v8 = vld [vmem:[#allocation2 + $0x1e9] sm:$0xff]  ;;  %v7246_v48 = vld [vmem:[#allocation2 + $0x1f1] sm:$0xff] }
 0x88f   : > { %v14823_v6 = vpop.f32.mrf.mxu0  ;;  %v14841_v52 = vpack.c.bf16 %v7246_v48, %v7245_v8 }
 0x890   : > { %7406 = vmatmul.bf16.gmra.mxu1 %v14821_v36 }
 0x892   : > { %8068 = vmatmul.bf16.gmra.mxu0 %v14653_v11 }
 0x893   : > { %v7598_v49 = vpop.f32.mrf.mxu2 }
 0x894   : > { %v7832_v5 = vpop.f32.mrf.mxu3  ;;  %v7662_v4 = vadd.f32 %v7598_v49, %v7428_v38 }
 0x895   : > { %v7369_v33 = vpop.f32.mrf.mxu1 }
 0x896   : > { %v14829_v23 = vadd.f32 %v7832_v5, %v7662_v4  ;;  %v7430_v57 = vadd.f32 %v7369_v33, %v7168_v22  ;;  %v7714_v33 = vld [vmem:[#allocation2 + $0x210] sm:$0xff] }
 0x897   : > { %v14833_v44 = vpop.f32.mrf.mxu0 }
 0x898   : > { %15271 = vst [vmem:[#allocation54_spill] sm:$0xff] %v14829_v23  ;;  %7640 = vmatmul.bf16.gmra.mxu2 %v14660_v47 }
 0x899   : > { %7874 = vmatmul.bf16.gmra.mxu3 %v14831_v62 }
 0x89b   : > { %v7601_v41 = vpop.f32.mrf.mxu2 }
 0x89c   : > { %v7835_v1 = vpop.f32.mrf.mxu3  ;;  %v7663_v43 = vadd.f32 %v7601_v41, %v7429_v13  ;;  %v7479_v13 = vld [vmem:[#allocation2 + $0x207] sm:$0xff] }
 0x89d   : > { %v7372_v38 = vpop.f32.mrf.mxu1  ;;  %v7713_v41 = vld [vmem:[#allocation2 + $0x208] sm:$0xff]  ;;  %v14851_v8 = vpack.c.bf16 %v7480_v31, %v7479_v13 }
 0x89e   : > { %v14839_v49 = vadd.f32 %v7835_v1, %v7663_v43  ;;  %v7431_v5 = vadd.f32 %v7372_v38, %v7171_v26  ;;  %v14853_v48 = vpack.c.bf16 %v7714_v33, %v7713_v41 }
 0x89f   : > { %v14843_v22 = vpop.f32.mrf.mxu0  ;;  %15274 = vst [vmem:[#allocation57_spill] sm:$0xff] %v14851_v8 }
 0x8a0   : > { %15272 = vst [vmem:[#allocation55_spill] sm:$0xff] %v14839_v49  ;;  %7411 = vmatmul.bf16.gmra.mxu1 %v14841_v52 }
 0x8a1   : > { %15275 = vst [vmem:[#allocation58_spill] sm:$0xff] %v14853_v48 }
 0x8a2   : > { %8073 = vmatmul.bf16.gmra.mxu0 %v14678_v53 }
 0x8a3   : > { %v7603_v47 = vpop.f32.mrf.mxu2 }
 0x8a4   : > { %v7837_v4 = vpop.f32.mrf.mxu3  ;;  %v7664_v17 = vadd.f32 %v7603_v47, %v7430_v57 }
 0x8a5   : > { %v7374_v1 = vpop.f32.mrf.mxu1 }
 0x8a6   : > { %v14849_v26 = vadd.f32 %v7837_v4, %v7664_v17  ;;  %v7432_v43 = vadd.f32 %v7374_v1, %v7173_v18  ;;  %v8151_v4 = vld [vmem:[#allocation2 + $0x47] sm:$0xff] }
 0x8a7   : > { %v14855_v38 = vpop.f32.mrf.mxu0  ;;  %v8183_v17 = vpack.c.bf16 %v8152_v63, %v8151_v4 }
 0x8a8   : > { %15273 = vst [vmem:[#allocation56_spill] sm:$0xff] %v14849_v26  ;;  %7645 = vmatmul.bf16.gmra.mxu2 %v14851_v8  ;;  %v8386_v26 = vld [vmem:[#allocation2 + $0x50] sm:$0xff] }
 0x8a9   : > { %7879 = vmatmul.bf16.gmra.mxu3 %v14853_v48  ;;  %v8619_v48 = vld [vmem:[#allocation2 + $0x49] sm:$0xff]  ;;  %v8620_v8 = vld [vmem:[#allocation2 + $0x51] sm:$0xff] }
 0x8ab   : > { %v7606_v49 = vpop.f32.mrf.mxu2 }
 0x8ac   : > { %v7840_v23 = vpop.f32.mrf.mxu3  ;;  %v7665_v57 = vadd.f32 %v7606_v49, %v7431_v5 }
 0x8ad   : > { %v7377_v47 = vpop.f32.mrf.mxu1 }
 0x8ae   : > { %v14861_v31 = vadd.f32 %v7840_v23, %v7665_v57  ;;  %v7433_v33 = vadd.f32 %v7377_v47, %v7176_v46  ;;  %v8385_v23 = vld [vmem:[#allocation2 + $0x48] sm:$0xff]  ;;  %v8651_v46 = vpack.c.bf16 %v8620_v8, %v8619_v48 }
 0x8af   : > { %v8039_v18 = vpop.f32.mrf.mxu0  ;;  %v8417_v63 = vpack.c.bf16 %v8386_v26, %v8385_v23  ;;  %v8388_v23 = vld [vmem:[#allocation2 + $0x70] sm:$0xff] }
 0x8b0   : > { %15276 = vst [vmem:[#allocation59_spill] sm:$0xff] %v14861_v31  ;;  %v14864_v13 = vadd.f32 %v8039_v18, %v14701_v32  ;;  %8272 = vmatmul.bf16.vlgmr.msra.gmra.mxu1 %v8183_v17  ;;  %v8154_v18 = vld [vmem:[#allocation2 + $0x6f] sm:$0xff] }
 0x8b1   : > { %v15277_v31 = vld [vmem:[#allocation28_spill] sm:$0xff] }
 0x8b2   : > { %8078 = vmatmul.bf16.gmra.mxu0 %v14703_v20  ;;  %v7181_v30 = vadd.f32 %v14708_v24, %v15277_v31  ;;  %v15278_v24 = vld [vmem:[#allocation30_spill] sm:$0xff] }
 0x8b3   : > { %v7608_v41 = vpop.f32.mrf.mxu2  ;;  %v7183_v31 = vadd.f32 %v14718_v19, %v15278_v24  ;;  %v8155_v24 = vld [vmem:[#allocation2 + $0x87] sm:$0xff] }
 0x8b4   : > { %v7842_v1 = vpop.f32.mrf.mxu3  ;;  %v7666_v40 = vadd.f32 %v7608_v41, %v7432_v43  ;;  %v8153_v41 = vld [vmem:[#allocation2 + $0x67] sm:$0xff] }
 0x8b5   : > { %v7379_v49 = vpop.f32.mrf.mxu1  ;;  %v8184_v8 = vpack.c.bf16 %v8154_v18, %v8153_v41 }
 0x8b6   : > { %v14869_v5 = vadd.f32 %v7842_v1, %v7666_v40  ;;  %v7434_v32 = vadd.f32 %v7379_v49, %v7178_v50  ;;  %v8621_v49 = vld [vmem:[#allocation2 + $0x69] sm:$0xff] }
 0x8b7   : > { %v8041_v57 = vpop.f32.mrf.mxu0 }
 0x8b8   : > { %v14872_v47 = vadd.f32 %v8041_v57, %v14714_v39  ;;  %8506 = vmatmul.bf16.vlgmr.msra.gmra.mxu2 %v8417_v63  ;;  %v8622_v63 = vld [vmem:[#allocation2 + $0x71] sm:$0xff] }
 0x8b9   : > { %8740 = vmatmul.bf16.vlgmr.msra.gmra.mxu3 %v8651_v46  ;;  %v8387_v46 = vld [vmem:[#allocation2 + $0x68] sm:$0xff]  ;;  %v8652_v18 = vpack.c.bf16 %v8622_v63, %v8621_v49 }
 0x8bb   : > { %v7611_v4 = vpop.f32.mrf.mxu2 }
 0x8bc   : > { %v7845_v17 = vpop.f32.mrf.mxu3  ;;  %v7667_v25 = vadd.f32 %v7611_v4, %v7433_v33 }
 0x8bd   : > { %v7382_v43 = vpop.f32.mrf.mxu1 }
 0x8be   : > { %v14876_v1 = vadd.f32 %v7845_v17, %v7667_v25  ;;  %v7435_v26 = vadd.f32 %v7382_v43, %v7181_v30  ;;  %v8418_v17 = vpack.c.bf16 %v8388_v23, %v8387_v46  ;;  %v8390_v46 = vld [vmem:[#allocation2 + $0x90] sm:$0xff] }
 0x8bf   : > { %v8044_v48 = vpop.f32.mrf.mxu0 }
 0x8c0   : > { %v14879_v50 = vadd.f32 %v8044_v48, %v14724_v9  ;;  %8277 = vmatmul.bf16.gmra.mxu1 %v8184_v8  ;;  %v8156_v8 = vld [vmem:[#allocation2 + $0x8f] sm:$0xff] }
 0x8c1   : > { %v15279_v48 = vld [vmem:[#allocation32_spill] sm:$0xff]  ;;  %v8185_v49 = vpack.c.bf16 %v8156_v8, %v8155_v24 }
 0x8c2   : > { %8083 = vmatmul.bf16.gmra.mxu0 %v14726_v7  ;;  %v7186_v19 = vadd.f32 %v14728_v27, %v15279_v48  ;;  %v15280_v27 = vld [vmem:[#allocation34_spill] sm:$0xff] }
 0x8c3   : > { %v7613_v39 = vpop.f32.mrf.mxu2 }
 0x8c4   : > { %v7847_v40 = vpop.f32.mrf.mxu3  ;;  %v7668_v33 = vadd.f32 %v7613_v39, %v7434_v32 }
 0x8c5   : > { %v7384_v57 = vpop.f32.mrf.mxu1 }
 0x8c6   : > { %v14884_v4 = vadd.f32 %v7847_v40, %v7668_v33  ;;  %v7436_v9 = vadd.f32 %v7384_v57, %v7183_v31  ;;  %v8623_v57 = vld [vmem:[#allocation2 + $0x89] sm:$0xff] }
 0x8c7   : > { %v8046_v30 = vpop.f32.mrf.mxu0 }
 0x8c8   : > { %v14887_v25 = vadd.f32 %v8046_v30, %v14734_v15  ;;  %8511 = vmatmul.bf16.gmra.mxu2 %v8418_v17  ;;  %v8624_v17 = vld [vmem:[#allocation2 + $0x91] sm:$0xff]  ;;  %v8389_v30 = vld [vmem:[#allocation2 + $0x88] sm:$0xff] }
 0x8c9   : > { %8745 = vmatmul.bf16.gmra.mxu3 %v8652_v18  ;;  %v8419_v8 = vpack.c.bf16 %v8390_v46, %v8389_v30  ;;  %v8653_v48 = vpack.c.bf16 %v8624_v17, %v8623_v57  ;;  %v8392_v30 = vld [vmem:[#allocation2 + $0xb0] sm:$0xff] }
 0x8cb   : > { %v7616_v43 = vpop.f32.mrf.mxu2 }
 0x8cc   : > { %v7850_v41 = vpop.f32.mrf.mxu3  ;;  %v7669_v32 = vadd.f32 %v7616_v43, %v7435_v26  ;;  %v7188_v26 = vadd.f32 %v14736_v28, %v15280_v27  ;;  %v8157_v27 = vld [vmem:[#allocation2 + $0xa7] sm:$0xff] }
 0x8cd   : > { %v7387_v39 = vpop.f32.mrf.mxu1 }
 0x8ce   : > { %v14891_v40 = vadd.f32 %v7850_v41, %v7669_v32  ;;  %v7437_v23 = vadd.f32 %v7387_v39, %v7186_v19 }
 0x8cf   : > { %v8049_v63 = vpop.f32.mrf.mxu0 }
 0x8d0   : > { %v14894_v31 = vadd.f32 %v8049_v63, %v14747_v2  ;;  %8282 = vmatmul.bf16.gmra.mxu1 %v8185_v49  ;;  %v8158_v49 = vld [vmem:[#allocation2 + $0xaf] sm:$0xff] }
 0x8d1   : > { %v15281_v63 = vld [vmem:[#allocation36_spill] sm:$0xff]  ;;  %v8186_v57 = vpack.c.bf16 %v8158_v49, %v8157_v27 }
 0x8d2   : > { %8088 = vmatmul.bf16.gmra.mxu0 %v14749_v16  ;;  %v7191_v28 = vadd.f32 %v14754_v35, %v15281_v63  ;;  %v15282_v35 = vld [vmem:[#allocation38_spill] sm:$0xff] }
 0x8d3   : > { %v7618_v15 = vpop.f32.mrf.mxu2 }
 0x8d4   : > { %v7852_v33 = vpop.f32.mrf.mxu3  ;;  %v7670_v18 = vadd.f32 %v7618_v15, %v7436_v9 }
 0x8d5   : > { %v7389_v43 = vpop.f32.mrf.mxu1 }
 0x8d6   : > { %v14899_v41 = vadd.f32 %v7852_v33, %v7670_v18  ;;  %v7438_v2 = vadd.f32 %v7389_v43, %v7188_v26  ;;  %v8625_v43 = vld [vmem:[#allocation2 + $0xa9] sm:$0xff] }
 0x8d7   : > { %v8051_v19 = vpop.f32.mrf.mxu0 }
 0x8d8   : > { %v14902_v32 = vadd.f32 %v8051_v19, %v14760_v51  ;;  %8516 = vmatmul.bf16.gmra.mxu2 %v8419_v8  ;;  %v8626_v8 = vld [vmem:[#allocation2 + $0xb1] sm:$0xff]  ;;  %v8391_v19 = vld [vmem:[#allocation2 + $0xa8] sm:$0xff] }
 0x8d9   : > { %8750 = vmatmul.bf16.gmra.mxu3 %v8653_v48  ;;  %v8420_v49 = vpack.c.bf16 %v8392_v30, %v8391_v19  ;;  %v8654_v63 = vpack.c.bf16 %v8626_v8, %v8625_v43  ;;  %v8628_v19 = vld [vmem:[#allocation2 + $0xd1] sm:$0xff] }
 0x8db   : > { %v7621_v39 = vpop.f32.mrf.mxu2 }
 0x8dc   : > { %v7855_v24 = vpop.f32.mrf.mxu3  ;;  %v7671_v9 = vadd.f32 %v7621_v39, %v7437_v23  ;;  %v7193_v23 = vadd.f32 %v14764_v59, %v15282_v35  ;;  %v8159_v35 = vld [vmem:[#allocation2 + $0xc7] sm:$0xff] }
 0x8dd   : > { %v7392_v15 = vpop.f32.mrf.mxu1 }
 0x8de   : > { %v14906_v33 = vadd.f32 %v7855_v24, %v7671_v9  ;;  %v7439_v46 = vadd.f32 %v7392_v15, %v7191_v28 }
 0x8df   : > { %v8054_v17 = vpop.f32.mrf.mxu0 }
 0x8e0   : > { %v14909_v26 = vadd.f32 %v8054_v17, %v14770_v54  ;;  %8287 = vmatmul.bf16.gmra.mxu1 %v8186_v57  ;;  %v8160_v57 = vld [vmem:[#allocation2 + $0xcf] sm:$0xff] }
 0x8e1   : > { %v15284_v17 = vld [vmem:[#allocation40_spill] sm:$0xff]  ;;  %v8187_v43 = vpack.c.bf16 %v8160_v57, %v8159_v35 }
 0x8e2   : > { %8093 = vmatmul.bf16.gmra.mxu0 %v14772_v10  ;;  %v7196_v59 = vadd.f32 %v14774_v34, %v15284_v17  ;;  %v8393_v34 = vld [vmem:[#allocation2 + $0xc8] sm:$0xff] }
 0x8e3   : > { %v7623_v51 = vpop.f32.mrf.mxu2 }
 0x8e4   : > { %v7857_v18 = vpop.f32.mrf.mxu3  ;;  %v7672_v48 = vadd.f32 %v7623_v51, %v7438_v2 }
 0x8e5   : > { %v7394_v39 = vpop.f32.mrf.mxu1 }
 0x8e6   : > { %v14914_v24 = vadd.f32 %v7857_v18, %v7672_v48  ;;  %v7440_v54 = vadd.f32 %v7394_v39, %v7193_v23  ;;  %v8394_v23 = vld [vmem:[#allocation2 + $0xd0] sm:$0xff]  ;;  %v15286_v39 = vld [vmem:[#allocation42_spill] sm:$0xff] }
 0x8e7   : > { %v8056_v28 = vpop.f32.mrf.mxu0  ;;  %v8627_v48 = vld [vmem:[#allocation2 + $0xc9] sm:$0xff] }
 0x8e8   : > { %15283 = vst [vmem:[#allocation28_spill] sm:$0xff] %v14914_v24  ;;  %v14917_v9 = vadd.f32 %v8056_v28, %v14780_v0  ;;  %8521 = vmatmul.bf16.gmra.mxu2 %v8420_v49  ;;  %v7198_v49 = vadd.f32 %v14784_v29, %v15286_v39  ;;  %v8161_v24 = vld [vmem:[#allocation2 + $0xe7] sm:$0xff] }
 0x8e9   : > { %8755 = vmatmul.bf16.gmra.mxu3 %v8654_v63 }
 0x8eb   : > { %v7626_v15 = vpop.f32.mrf.mxu2 }
 0x8ec   : > { %v7860_v27 = vpop.f32.mrf.mxu3  ;;  %v7673_v2 = vadd.f32 %v7626_v15, %v7439_v46  ;;  %v8421_v15 = vpack.c.bf16 %v8394_v23, %v8393_v34 }
 0x8ed   : > { %v7397_v51 = vpop.f32.mrf.mxu1 }
 0x8ee   : > { %v14921_v18 = vadd.f32 %v7860_v27, %v7673_v2  ;;  %v7441_v30 = vadd.f32 %v7397_v51, %v7196_v59  ;;  %v8655_v27 = vpack.c.bf16 %v8628_v19, %v8627_v48  ;;  %v8162_v2 = vld [vmem:[#allocation2 + $0xef] sm:$0xff]  ;;  %v15288_v19 = vld [vmem:[#allocation46_spill] sm:$0xff] }
 0x8ef   : > { %v15287_v51 = vld [vmem:[#allocation44_spill] sm:$0xff]  ;;  %v7203_v39 = vadd.f32 %v14813_v58, %v15288_v19  ;;  %v8397_v19 = vld [vmem:[#allocation2 + $0x108] sm:$0xff] }
 0x8f0   : > { %15285 = vst [vmem:[#allocation30_spill] sm:$0xff] %v14921_v18  ;;  %8292 = vmatmul.bf16.gmra.mxu1 %v8187_v43  ;;  %v7201_v35 = vadd.f32 %v14803_v60, %v15287_v51  ;;  %v8396_v48 = vld [vmem:[#allocation2 + $0xf0] sm:$0xff]  ;;  %v8163_v51 = vld [vmem:[#allocation2 + $0x107] sm:$0xff] }
 0x8f2   : > { %8098 = vmatmul.bf16.gmra.mxu0 %v14798_v12 }
 0x8f3   : > { %v7628_v0 = vpop.f32.mrf.mxu2 }
 0x8f4   : > { %v7862_v8 = vpop.f32.mrf.mxu3  ;;  %v7674_v63 = vadd.f32 %v7628_v0, %v7440_v54  ;;  %v8188_v0 = vpack.c.bf16 %v8162_v2, %v8161_v24 }
 0x8f5   : > { %v7399_v46 = vpop.f32.mrf.mxu1 }
 0x8f6   : > { %v14926_v28 = vadd.f32 %v7862_v8, %v7674_v63  ;;  %v7442_v17 = vadd.f32 %v7399_v46, %v7198_v49  ;;  %v8395_v63 = vld [vmem:[#allocation2 + $0xe8] sm:$0xff] }
 0x8f8   : > { %8526 = vmatmul.bf16.gmra.mxu2 %v8421_v15  ;;  %v8164_v15 = vld [vmem:[#allocation2 + $0x10f] sm:$0xff] }
 0x8f9   : > { %8760 = vmatmul.bf16.gmra.mxu3 %v8655_v27  ;;  %v15289_v27 = vld [vmem:[#allocation48_spill] sm:$0xff] }
 0x8fb   : > { %v7631_v57 = vpop.f32.mrf.mxu2 }
 0x8fc   : > { %v7865_v59 = vpop.f32.mrf.mxu3  ;;  %v7675_v43 = vadd.f32 %v7631_v57, %v7441_v30  ;;  %v8422_v30 = vpack.c.bf16 %v8396_v48, %v8395_v63  ;;  %v7206_v57 = vadd.f32 %v14823_v6, %v15289_v27  ;;  %v7948_v27 = vld [vmem:[#allocation2 + $0x211] sm:$0xff] }
 0x8fd   : > { %v7402_v18 = vpop.f32.mrf.mxu1 }
 0x8fe   : > { %v14930_v29 = vadd.f32 %v7865_v59, %v7675_v43  ;;  %v7443_v54 = vadd.f32 %v7402_v18, %v7201_v35  ;;  %v8189_v35 = vpack.c.bf16 %v8164_v15, %v8163_v51  ;;  %v7947_v15 = vld [vmem:[#allocation2 + $0x209] sm:$0xff] }
 0x8ff   : > { %v14952_v51 = vpack.c.bf16 %v7948_v27, %v7947_v15 }
 0x900   : > { %8297 = vmatmul.bf16.gmra.mxu1 %v8188_v0 }
 0x902   : > { %8103 = vmatmul.bf16.gmra.mxu0 %v14821_v36 }
 0x903   : > { %v7633_v8 = vpop.f32.mrf.mxu2 }
 0x904   : > { %v7867_v23 = vpop.f32.mrf.mxu3  ;;  %v7676_v49 = vadd.f32 %v7633_v8, %v7442_v17  ;;  %v8398_v8 = vld [vmem:[#allocation2 + $0x110] sm:$0xff] }
 0x905   : > { %v7404_v34 = vpop.f32.mrf.mxu1 }
 0x906   : > { %v14935_v60 = vadd.f32 %v7867_v23, %v7676_v49  ;;  %v7444_v46 = vadd.f32 %v7404_v34, %v7203_v39 }
 0x908   : > { %8531 = vmatmul.bf16.gmra.mxu2 %v8422_v30  ;;  %v8166_v30 = vld [vmem:[#allocation2 + $0x12f] sm:$0xff] }
 0x909   : > { %8765 = vmatmul.bf16.gmra.mxu3 %v14653_v11  ;;  %v15290_v11 = vld [vmem:[#allocation50_spill] sm:$0xff] }
 0x90a   : > { %v7208_v23 = vadd.f32 %v14833_v44, %v15290_v11 }
 0x90b   : > { %v7636_v24 = vpop.f32.mrf.mxu2 }
 0x90c   : > { %v7870_v18 = vpop.f32.mrf.mxu3  ;;  %v7677_v59 = vadd.f32 %v7636_v24, %v7443_v54  ;;  %v8423_v54 = vpack.c.bf16 %v8398_v8, %v8397_v19  ;;  %v7211_v24 = vadd.f32 %v14843_v22, %v14672_v61  ;;  %v7213_v61 = vadd.f32 %v14855_v38, %v14684_v56 }
 0x90d   : > { %v7407_v2 = vpop.f32.mrf.mxu1 }
 0x90e   : > { %v14940_v58 = vadd.f32 %v7870_v18, %v7677_v59  ;;  %v7445_v17 = vadd.f32 %v7407_v2, %v7206_v57 }
 0x910   : > { %8302 = vmatmul.bf16.gmra.mxu1 %v8189_v35 }
 0x912   : > { %8108 = vmatmul.bf16.gmra.mxu0 %v14841_v52 }
 0x913   : > { %v7638_v43 = vpop.f32.mrf.mxu2 }
 0x914   : > { %v7872_v0 = vpop.f32.mrf.mxu3  ;;  %v7678_v48 = vadd.f32 %v7638_v43, %v7444_v46  ;;  %v8165_v46 = vld [vmem:[#allocation2 + $0x127] sm:$0xff]  ;;  %v8400_v43 = vld [vmem:[#allocation2 + $0x130] sm:$0xff] }
 0x915   : > { %v7409_v39 = vpop.f32.mrf.mxu1  ;;  %v8190_v2 = vpack.c.bf16 %v8166_v30, %v8165_v46  ;;  %v8170_v46 = vld [vmem:[#allocation2 + $0x16f] sm:$0xff] }
 0x916   : > { %v14945_v6 = vadd.f32 %v7872_v0, %v7678_v48  ;;  %v7446_v49 = vadd.f32 %v7409_v39, %v7208_v23  ;;  %v8168_v39 = vld [vmem:[#allocation2 + $0x14f] sm:$0xff] }
 0x918   : > { %8536 = vmatmul.bf16.gmra.mxu2 %v8423_v54 }
 0x919   : > { %8770 = vmatmul.bf16.gmra.mxu3 %v14678_v53 }
 0x91b   : > { %v7641_v63 = vpop.f32.mrf.mxu2 }
 0x91c   : > { %v7875_v34 = vpop.f32.mrf.mxu3  ;;  %v7679_v18 = vadd.f32 %v7641_v63, %v7445_v17  ;;  %v8399_v17 = vld [vmem:[#allocation2 + $0x128] sm:$0xff] }
 0x91d   : > { %v7412_v44 = vpop.f32.mrf.mxu1  ;;  %v8424_v11 = vpack.c.bf16 %v8400_v43, %v8399_v17  ;;  %v8169_v43 = vld [vmem:[#allocation2 + $0x167] sm:$0xff] }
 0x91e   : > { %v14950_v57 = vadd.f32 %v7875_v34, %v7679_v18  ;;  %v7447_v59 = vadd.f32 %v7412_v44, %v7211_v24  ;;  %v8167_v34 = vld [vmem:[#allocation2 + $0x147] sm:$0xff] }
 0x91f   : > { %v8191_v24 = vpack.c.bf16 %v8168_v39, %v8167_v34  ;;  %v15291_v17 = vld [vmem:[#allocation10_spill] sm:$0xff]  ;;  %v14981_v34 = vpop.f32.mrf.mxu0 }
 0x920   : > { %8307 = vmatmul.bf16.gmra.mxu1 %v8190_v2 }
 0x922   : > { %8113 = vmatmul.bf16.gmra.mxu0 %v14952_v51 }
 0x923   : > { %v7643_v53 = vpop.f32.mrf.mxu2 }
 0x924   : > { %v7877_v35 = vpop.f32.mrf.mxu3  ;;  %v7680_v22 = vadd.f32 %v7643_v53, %v7446_v49  ;;  %v14969_v53 = vld [vmem:[#allocation5] ss:$0 sm:$0xff] }
 0x925   : > { %v7414_v0 = vpop.f32.mrf.mxu1 }
 0x926   : > { %v14957_v8 = vadd.f32 %v7877_v35, %v7680_v22  ;;  %v7448_v23 = vadd.f32 %v7414_v0, %v7213_v61  ;;  %v8192_v22 = vpack.c.bf16 %v8170_v46, %v8169_v43  ;;  %v8172_v46 = vld [vmem:[#allocation2 + $0x18f] sm:$0xff] }
 0x928   : > { %8541 = vmatmul.bf16.gmra.mxu2 %v8424_v11 }
 0x929   : > { %8775 = vmatmul.bf16.gmra.mxu3 %v14703_v20 }
 0x92b   : > { %v7646_v48 = vpop.f32.mrf.mxu2 }
 0x92c   : > { %v7880_v19 = vpop.f32.mrf.mxu3  ;;  %v7681_v54 = vadd.f32 %v7646_v48, %v7447_v59  ;;  %v14967_v59 = vld [vmem:[#allocation7] ss:$0 sm:$0xff]  ;;  %v8404_v48 = vld [vmem:[#allocation2 + $0x170] sm:$0xff] }
 0x92d   : > { %v8273_v63 = vpop.f32.mrf.mxu1  ;;  %v6748_v0 = vadd.f32 %v14967_v59, %v15291_v17 }
 0x92e   : > { %v14960_v30 = vadd.f32 %v7880_v19, %v7681_v54  ;;  %v8353_v20 = vadd.f32 %v8273_v63, %v14864_v13  ;;  %v8403_v54 = vld [vmem:[#allocation2 + $0x168] sm:$0xff] }
 0x930   : > { %8312 = vmatmul.bf16.gmra.mxu1 %v8191_v24 }
 0x933   : > { %v7648_v56 = vpop.f32.mrf.mxu2 }
 0x934   : > { %v7882_v38 = vpop.f32.mrf.mxu3  ;;  %v7682_v49 = vadd.f32 %v7648_v56, %v7448_v23  ;;  %v8426_v56 = vpack.c.bf16 %v8404_v48, %v8403_v54 }
 0x935   : > { %v8275_v18 = vpop.f32.mrf.mxu1 }
 0x936   : > { %v14962_v15 = vadd.f32 %v7882_v38, %v7682_v49  ;;  %v8354_v13 = vadd.f32 %v8275_v18, %v14872_v47  ;;  %v15292_v47 = vld [vmem:[#allocation11_spill] sm:$0xff] }
 0x937   : > { %v6749_v38 = vadd.f32 %v14967_v59, %v15292_v47 }
 0x938   : > { %8546 = vmatmul.bf16.gmra.mxu2 %v14716_v55 }
 0x939   : > { %8780 = vmatmul.bf16.gmra.mxu3 %v14726_v7 }
 0x93b   : > { %v8507_v27 = vpop.f32.mrf.mxu2 }
 0x93c   : > { %v8741_v44 = vpop.f32.mrf.mxu3  ;;  %v8587_v2 = vadd.f32 %v8507_v27, %v8353_v20 }
 0x93d   : > { %v8278_v35 = vpop.f32.mrf.mxu1 }
 0x93e   : > { %v8821_v61 = vadd.f32 %v8741_v44, %v8587_v2  ;;  %v8355_v20 = vadd.f32 %v8278_v35, %v14879_v50 }
 0x940   : > { %v8857_v55 = vadd.f32 %v14969_v53, %v8821_v61  ;;  %8317 = vmatmul.bf16.gmra.mxu1 %v8192_v22  ;;  %v8171_v22 = vld [vmem:[#allocation2 + $0x187] sm:$0xff] }
 0x942   : > { %v8889_v7 = vadd.f32 %v8857_v55, %v6748_v0  ;;  %v8193_v0 = vpack.c.bf16 %v8172_v46, %v8171_v22  ;;  %v15293_v55 = vld [vmem:[#allocation12_spill] sm:$0xff] }
 0x943   : > { %v8509_v11 = vpop.f32.mrf.mxu2 }
 0x944   : > { %v8743_v23 = vpop.f32.mrf.mxu3  ;;  %v8921_v19 = vmax.f32 %v8889_v7, 0.0  ;;  %v8588_v39 = vadd.f32 %v8509_v11, %v8354_v13  ;;  %v6750_v7 = vadd.f32 %v14967_v59, %v15293_v55  ;;  %v14992_v13 = vpop.f32.mrf.mxu0 }
 0x945   : > { %v8280_v63 = vpop.f32.mrf.mxu1 }
 0x946   : > { %8953 = vst [vmem:[%s14979_s11] sm:$0xff] %v8921_v19  ;;  %v8822_v24 = vadd.f32 %v8743_v23, %v8588_v39  ;;  %v8356_v35 = vadd.f32 %v8280_v63, %v14887_v25 }
 0x948   : > { %v8858_v49 = vadd.f32 %v14969_v53, %v8822_v24  ;;  %8551 = vmatmul.bf16.gmra.mxu2 %v8426_v56  ;;  %v15294_v24 = vld [vmem:[#allocation13_spill] sm:$0xff] }
 0x949   : > { %8785 = vmatmul.bf16.gmra.mxu3 %v14749_v16  ;;  %v6751_v56 = vadd.f32 %v14967_v59, %v15294_v24 }
 0x94a   : > { %v8890_v18 = vadd.f32 %v8858_v49, %v6749_v38 }
 0x94b   : > { %v8512_v27 = vpop.f32.mrf.mxu2 }
 0x94c   : > { %v8746_v44 = vpop.f32.mrf.mxu3  ;;  %v8922_v2 = vmax.f32 %v8890_v18, 0.0  ;;  %v8589_v43 = vadd.f32 %v8512_v27, %v8355_v20  ;;  %v15002_v38 = vpop.f32.mrf.mxu0  ;;  %v8174_v20 = vld [vmem:[#allocation2 + $0x1af] sm:$0xff] }
 0x94d   : > { %v8283_v61 = vpop.f32.mrf.mxu1 }
 0x94e   : > { %8954 = vst [vmem:[%s14979_s11 + $0x8] sm:$0xff] %v8922_v2  ;;  %v8823_v17 = vadd.f32 %v8746_v44, %v8589_v43  ;;  %v8357_v63 = vadd.f32 %v8283_v61, %v14894_v31  ;;  %v8173_v2 = vld [vmem:[#allocation2 + $0x1a7] sm:$0xff] }
 0x94f   : > { %v8194_v22 = vpack.c.bf16 %v8174_v20, %v8173_v2 }
 0x950   : > { %v8859_v16 = vadd.f32 %v14969_v53, %v8823_v17  ;;  %8322 = vmatmul.bf16.gmra.mxu1 %v8193_v0  ;;  %v15295_v17 = vld [vmem:[#allocation14_spill] sm:$0xff] }
 0x952   : > { %v8891_v50 = vadd.f32 %v8859_v16, %v6750_v7 }
 0x953   : > { %v8514_v11 = vpop.f32.mrf.mxu2 }
 0x954   : > { %v8748_v23 = vpop.f32.mrf.mxu3  ;;  %v8923_v48 = vmax.f32 %v8891_v50, 0.0  ;;  %v8590_v19 = vadd.f32 %v8514_v11, %v8356_v35  ;;  %v15010_v7 = vpop.f32.mrf.mxu0 }
 0x955   : > { %v8285_v39 = vpop.f32.mrf.mxu1 }
 0x956   : > { %8955 = vst [vmem:[%s14979_s11 + $0x10] sm:$0xff] %v8923_v48  ;;  %v8824_v54 = vadd.f32 %v8748_v23, %v8590_v19  ;;  %v8358_v31 = vadd.f32 %v8285_v39, %v14902_v32  ;;  %v15296_v23 = vld [vmem:[#allocation15_spill] sm:$0xff] }
 0x957   : > { %v6753_v48 = vadd.f32 %v14967_v59, %v15296_v23  ;;  %v8178_v23 = vld [vmem:[#allocation2 + $0x1ef] sm:$0xff] }
 0x958   : > { %v8860_v47 = vadd.f32 %v14969_v53, %v8824_v54  ;;  %8556 = vmatmul.bf16.gmra.mxu2 %v14762_v3  ;;  %v6752_v3 = vadd.f32 %v14967_v59, %v15295_v17 }
 0x959   : > { %8790 = vmatmul.bf16.gmra.mxu3 %v14772_v10 }
 0x95a   : > { %v8892_v25 = vadd.f32 %v8860_v47, %v6751_v56  ;;  %v8176_v56 = vld [vmem:[#allocation2 + $0x1cf] sm:$0xff] }
 0x95b   : > { %v8517_v49 = vpop.f32.mrf.mxu2 }
 0x95c   : > { %v8751_v18 = vpop.f32.mrf.mxu3  ;;  %v8924_v27 = vmax.f32 %v8892_v25, 0.0  ;;  %v8591_v44 = vadd.f32 %v8517_v49, %v8357_v63  ;;  %v8175_v49 = vld [vmem:[#allocation2 + $0x1c7] sm:$0xff] }
 0x95d   : > { %v8288_v46 = vpop.f32.mrf.mxu1 }
 0x95e   : > { %8956 = vst [vmem:[%s14979_s11 + $0x18] sm:$0xff] %v8924_v27  ;;  %v8825_v43 = vadd.f32 %v8751_v18, %v8591_v44  ;;  %v8359_v39 = vadd.f32 %v8288_v46, %v14909_v26  ;;  %v15019_v18 = vpop.f32.mrf.mxu0  ;;  %v8195_v27 = vpack.c.bf16 %v8176_v56, %v8175_v49  ;;  %v15297_v44 = vld [vmem:[#allocation17_spill] sm:$0xff] }
 0x960   : > { %v8861_v10 = vadd.f32 %v14969_v53, %v8825_v43  ;;  %8327 = vmatmul.bf16.gmra.mxu1 %v8194_v22 }
 0x962   : > { %v8893_v0 = vadd.f32 %v8861_v10, %v6752_v3 }
 0x963   : > { %v8519_v61 = vpop.f32.mrf.mxu2 }
 0x964   : > { %v8753_v55 = vpop.f32.mrf.mxu3  ;;  %v8925_v16 = vmax.f32 %v8893_v0, 0.0  ;;  %v8592_v50 = vadd.f32 %v8519_v61, %v8358_v31  ;;  %v15298_v0 = vld [vmem:[#allocation16_spill] sm:$0xff]  ;;  %v8127_v61 = vadd.f32 %v14981_v34, %v14796_v14 }
 0x965   : > { %v8290_v35 = vpop.f32.mrf.mxu1  ;;  %v6755_v31 = vadd.f32 %v14967_v59, %v15298_v0 }
 0x966   : > { %8957 = vst [vmem:[%s14979_s11 + $0x20] sm:$0xff] %v8925_v16  ;;  %v8826_v11 = vadd.f32 %v8753_v55, %v8592_v50  ;;  %v8360_v46 = vadd.f32 %v8290_v35, %v14917_v9  ;;  %v15031_v55 = vpop.f32.mrf.mxu0 }
 0x968   : > { %v8862_v19 = vadd.f32 %v14969_v53, %v8826_v11  ;;  %8561 = vmatmul.bf16.gmra.mxu2 %v14782_v37  ;;  %v6754_v37 = vadd.f32 %v14967_v59, %v15297_v44 }
 0x969   : > { %8795 = vmatmul.bf16.gmra.mxu3 %v14798_v12 }
 0x96a   : > { %v8894_v32 = vadd.f32 %v8862_v19, %v6753_v48 }
 0x96b   : > { %v8522_v54 = vpop.f32.mrf.mxu2 }
 0x96c   : > { %v8756_v24 = vpop.f32.mrf.mxu3  ;;  %v8926_v47 = vmax.f32 %v8894_v32, 0.0  ;;  %v8593_v25 = vadd.f32 %v8522_v54, %v8359_v39  ;;  %v8177_v39 = vld [vmem:[#allocation2 + $0x1e7] sm:$0xff] }
 0x96d   : > { %v8293_v63 = vpop.f32.mrf.mxu1  ;;  %v8196_v34 = vpack.c.bf16 %v8178_v23, %v8177_v39  ;;  %v15299_v54 = vld [vmem:[#allocation18_spill] sm:$0xff] }
 0x96e   : > { %8958 = vst [vmem:[%s14979_s11 + $0x28] sm:$0xff] %v8926_v47  ;;  %v8827_v20 = vadd.f32 %v8756_v24, %v8593_v25  ;;  %v8361_v50 = vadd.f32 %v8293_v63, %v8127_v61  ;;  %v6756_v24 = vadd.f32 %v14967_v59, %v15299_v54  ;;  %v15042_v56 = vpop.f32.mrf.mxu0  ;;  %v15301_v61 = vld [vmem:[#allocation20_spill] sm:$0xff] }
 0x970   : > { %v8863_v12 = vadd.f32 %v14969_v53, %v8827_v20  ;;  %8332 = vmatmul.bf16.gmra.mxu1 %v8195_v27 }
 0x972   : > { %v8895_v26 = vadd.f32 %v8863_v12, %v6754_v37  ;;  %v15300_v12 = vld [vmem:[#allocation19_spill] sm:$0xff] }
 0x973   : > { %v8524_v2 = vpop.f32.mrf.mxu2 }
 0x974   : > { %v8758_v43 = vpop.f32.mrf.mxu3  ;;  %v8927_v22 = vmax.f32 %v8895_v26, 0.0  ;;  %v8594_v17 = vadd.f32 %v8524_v2, %v8360_v46  ;;  %v6757_v26 = vadd.f32 %v14967_v59, %v15300_v12 }
 0x975   : > { %v8295_v3 = vpop.f32.mrf.mxu1 }
 0x976   : > { %8959 = vst [vmem:[%s14979_s11 + $0x30] sm:$0xff] %v8927_v22  ;;  %v8828_v10 = vadd.f32 %v8758_v43, %v8594_v17  ;;  %v15052_v17 = vpop.f32.mrf.mxu0 }
 0x978   : > { %v8864_v16 = vadd.f32 %v14969_v53, %v8828_v10  ;;  %8566 = vmatmul.bf16.gmra.mxu2 %v14811_v45  ;;  %v8128_v45 = vadd.f32 %v14992_v13, %v14809_v42  ;;  %v8129_v42 = vadd.f32 %v15002_v38, %v14819_v21  ;;  %v6758_v21 = vadd.f32 %v14967_v59, %v15301_v61  ;;  %v15302_v38 = vld [vmem:[#allocation54_spill] sm:$0xff] }
 0x979   : > { %8800 = vmatmul.bf16.gmra.mxu3 %v14821_v36 }
 0x97a   : > { %v8896_v9 = vadd.f32 %v8864_v16, %v6755_v31  ;;  %v8362_v25 = vadd.f32 %v8295_v3, %v8128_v45  ;;  %v15303_v16 = vld [vmem:[#allocation57_spill] sm:$0xff]  ;;  %v15306_v45 = vld [vmem:[#allocation58_spill] sm:$0xff] }
 0x97b   : > { %v8527_v35 = vpop.f32.mrf.mxu2 }
 0x97c   : > { %v8761_v11 = vpop.f32.mrf.mxu3  ;;  %v8928_v48 = vmax.f32 %v8896_v9, 0.0  ;;  %v8595_v19 = vadd.f32 %v8527_v35, %v8361_v50 }
 0x97d   : > { %v8298_v32 = vpop.f32.mrf.mxu1 }
 0x97e   : > { %8960 = vst [vmem:[%s14979_s11 + $0x38] sm:$0xff] %v8928_v48  ;;  %v8829_v14 = vadd.f32 %v8761_v11, %v8595_v19  ;;  %v8363_v2 = vadd.f32 %v8298_v32, %v8129_v42  ;;  %v15061_v32 = vpop.f32.mrf.mxu0  ;;  %v15307_v42 = vld [vmem:[#allocation22_spill] sm:$0xff] }
 0x980   : > { %v8865_v36 = vadd.f32 %v14969_v53, %v8829_v14  ;;  %8337 = vmatmul.bf16.gmra.mxu1 %v8196_v34  ;;  %v15304_v14 = vld [vmem:[#allocation21_spill] sm:$0xff] }
 0x981   : > { %v6759_v34 = vadd.f32 %v14967_v59, %v15304_v14 }
 0x982   : > { %v8897_v47 = vadd.f32 %v8865_v36, %v6756_v24  ;;  %v8181_v36 = vld [vmem:[#allocation2 + $0x227] sm:$0xff] }
 0x983   : > { %v8529_v63 = vpop.f32.mrf.mxu2 }
 0x984   : > { %v8763_v49 = vpop.f32.mrf.mxu3  ;;  %v8929_v20 = vmax.f32 %v8897_v47, 0.0  ;;  %v8596_v27 = vadd.f32 %v8529_v63, %v8362_v25  ;;  %v8182_v47 = vld [vmem:[#allocation2 + $0x22f] sm:$0xff] }
 0x985   : > { %v8300_v44 = vpop.f32.mrf.mxu1 }
 0x986   : > { %8961 = vst [vmem:[%s14979_s11 + $0x40] sm:$0xff] %v8929_v20  ;;  %v8830_v37 = vadd.f32 %v8763_v49, %v8596_v27 }
 0x988   : > { %v8866_v13 = vadd.f32 %v14969_v53, %v8830_v37  ;;  %8571 = vmatmul.bf16.gmra.mxu2 %v14831_v62  ;;  %v8130_v62 = vadd.f32 %v15010_v7, %v15302_v38  ;;  %v15305_v7 = vld [vmem:[#allocation55_spill] sm:$0xff]  ;;  %v8198_v37 = vpack.c.bf16 %v8182_v47, %v8181_v36  ;;  %v11473_v38 = vld [vmem:[#allocation2] sm:$0xff]  ;;  %v15311_v36 = vld [vmem:[#allocation24_spill] sm:$0xff] }
 0x989   : > { %8805 = vmatmul.bf16.gmra.mxu3 %v14841_v52  ;;  %v8131_v54 = vadd.f32 %v15019_v18, %v15305_v7  ;;  %v6760_v18 = vadd.f32 %v14967_v59, %v15307_v42  ;;  %v6762_v47 = vadd.f32 %v14967_v59, %v15311_v36 }
 0x98a   : > { %v8898_v46 = vadd.f32 %v8866_v13, %v6757_v26  ;;  %v8364_v50 = vadd.f32 %v8300_v44, %v8130_v62  ;;  %v15308_v13 = vld [vmem:[#allocation56_spill] sm:$0xff]  ;;  %v8432_v62 = vpack.c.bf16 %v11473_v38, %v11473_v38 }
 0x98b   : > { %v8532_v43 = vpop.f32.mrf.mxu2 }
 0x98c   : > { %v8766_v22 = vpop.f32.mrf.mxu3  ;;  %v8930_v3 = vmax.f32 %v8898_v46, 0.0  ;;  %v8597_v10 = vadd.f32 %v8532_v43, %v8363_v2  ;;  %v8132_v46 = vadd.f32 %v15031_v55, %v15308_v13  ;;  %v8649_v43 = vld [vmem:[#allocation2 + $0x229] sm:$0xff] }
 0x98d   : > { %v8303_v0 = vpop.f32.mrf.mxu1 }
 0x98e   : > { %8962 = vst [vmem:[%s14979_s11 + $0x48] sm:$0xff] %v8930_v3  ;;  %v8831_v31 = vadd.f32 %v8766_v22, %v8597_v10  ;;  %v8365_v63 = vadd.f32 %v8303_v0, %v8131_v54  ;;  %v8650_v22 = vld [vmem:[#allocation2 + $0x231] sm:$0xff] }
 0x990   : > { %v8867_v52 = vadd.f32 %v14969_v53, %v8831_v31  ;;  %8342 = vmatmul.bf16.gmra.mxu1 %v15303_v16 }
 0x992   : > { %v8899_v9 = vadd.f32 %v8867_v52, %v6758_v21  ;;  %v8666_v52 = vpack.c.bf16 %v8650_v22, %v8649_v43 }
 0x993   : > { %v8534_v35 = vpop.f32.mrf.mxu2 }
 0x994   : > { %v8768_v11 = vpop.f32.mrf.mxu3  ;;  %v8931_v23 = vmax.f32 %v8899_v9, 0.0  ;;  %v8598_v48 = vadd.f32 %v8534_v35, %v8364_v50  ;;  %v15309_v9 = vld [vmem:[#allocation23_spill] sm:$0xff] }
 0x995   : > { %v8305_v19 = vpop.f32.mrf.mxu1  ;;  %v6761_v50 = vadd.f32 %v14967_v59, %v15309_v9  ;;  %v15310_v35 = vld [vmem:[#allocation59_spill] sm:$0xff] }
 0x996   : > { %8963 = vst [vmem:[%s14979_s11 + $0x50] sm:$0xff] %v8931_v23  ;;  %v8832_v39 = vadd.f32 %v8768_v11, %v8598_v48  ;;  %v8366_v10 = vadd.f32 %v8305_v19, %v8132_v46  ;;  %v8133_v11 = vadd.f32 %v15042_v56, %v15310_v35  ;;  %v8134_v56 = vadd.f32 %v15052_v17, %v14869_v5 }
 0x997   : > { %v8135_v46 = vadd.f32 %v15061_v32, %v14876_v1 }
 0x998   : > { %v8868_v24 = vadd.f32 %v14969_v53, %v8832_v39  ;;  %8576 = vmatmul.bf16.gmra.mxu2 %v15306_v45 }
 0x999   : > { %8810 = vmatmul.bf16.gmra.mxu3 %v14952_v51  ;;  %v8081_v51 = vpop.f32.mrf.mxu0 }
 0x99a   : > { %v8900_v25 = vadd.f32 %v8868_v24, %v6759_v34 }
 0x99b   : > { %v8537_v49 = vpop.f32.mrf.mxu2 }
 0x99c   : > { %v8771_v20 = vpop.f32.mrf.mxu3  ;;  %v8932_v27 = vmax.f32 %v8900_v25, 0.0  ;;  %v8599_v44 = vadd.f32 %v8537_v49, %v8365_v63 }
 0x99d   : > { %v8308_v12 = vpop.f32.mrf.mxu1 }
 0x99e   : > { %8964 = vst [vmem:[%s14979_s11 + $0x58] sm:$0xff] %v8932_v27  ;;  %v8833_v26 = vadd.f32 %v8771_v20, %v8599_v44  ;;  %v8367_v39 = vadd.f32 %v8308_v12, %v8133_v11 }
 0x9a0   : > { %v8869_v2 = vadd.f32 %v14969_v53, %v8833_v26  ;;  %8347 = vmatmul.bf16.gmra.mxu1 %v8198_v37 }
 0x9a1   : > { %v8084_v48 = vpop.f32.mrf.mxu0 }
 0x9a2   : > { %v8901_v3 = vadd.f32 %v8869_v2, %v6760_v18  ;;  %v15312_v18 = vld [vmem:[#allocation25_spill] sm:$0xff] }
 0x9a3   : > { %v8539_v0 = vpop.f32.mrf.mxu2  ;;  %v6763_v13 = vadd.f32 %v14967_v59, %v15312_v18 }
 0x9a4   : > { %v8773_v31 = vpop.f32.mrf.mxu3  ;;  %v8933_v61 = vmax.f32 %v8901_v3, 0.0  ;;  %v8600_v21 = vadd.f32 %v8539_v0, %v8366_v10 }
 0x9a5   : > { %v8310_v16 = vpop.f32.mrf.mxu1 }
 0x9a6   : > { %8965 = vst [vmem:[%s14979_s11 + $0x60] sm:$0xff] %v8933_v61  ;;  %v8834_v55 = vadd.f32 %v8773_v31, %v8600_v21  ;;  %v8368_v49 = vadd.f32 %v8310_v16, %v8134_v56  ;;  %v15313_v21 = vld [vmem:[#allocation26_spill] sm:$0xff]  ;;  %v15315_v56 = vld [vmem:[#allocation29_spill] sm:$0xff] }
 0x9a7   : > { %v6764_v38 = vadd.f32 %v14967_v59, %v15313_v21  ;;  %v15317_v21 = vld [vmem:[#allocation33_spill] sm:$0xff] }
 0x9a8   : > { %v8870_v23 = vadd.f32 %v14969_v53, %v8834_v55  ;;  %8581 = vmatmul.bf16.gmra.mxu2 %v8432_v62  ;;  %v8136_v62 = vadd.f32 %v8081_v51, %v14884_v4 }
 0x9a9   : > { %8815 = vmatmul.bf16.gmra.mxu3 %v8666_v52  ;;  %v8086_v44 = vpop.f32.mrf.mxu0 }
 0x9aa   : > { %v8902_v19 = vadd.f32 %v8870_v23, %v6761_v50  ;;  %v15314_v23 = vld [vmem:[#allocation27_spill] sm:$0xff] }
 0x9ab   : > { %v8542_v14 = vpop.f32.mrf.mxu2 }
 0x9ac   : > { %v8776_v34 = vpop.f32.mrf.mxu3  ;;  %v8934_v7 = vmax.f32 %v8902_v19, 0.0  ;;  %v8601_v54 = vadd.f32 %v8542_v14, %v8367_v39  ;;  %v6765_v19 = vadd.f32 %v14967_v59, %v15314_v23  ;;  %v8137_v39 = vadd.f32 %v8084_v48, %v14891_v40  ;;  %v15319_v23 = vld [vmem:[#allocation35_spill] sm:$0xff] }
 0x9ad   : > { %v8313_v24 = vpop.f32.mrf.mxu1 }
 0x9ae   : > { %8966 = vst [vmem:[%s14979_s11 + $0x68] sm:$0xff] %v8934_v7  ;;  %v8835_v45 = vadd.f32 %v8776_v34, %v8601_v54  ;;  %v8369_v2 = vadd.f32 %v8313_v24, %v8135_v46 }
 0x9b0   : > { %v8871_v25 = vadd.f32 %v14969_v53, %v8835_v45 }
 0x9b1   : > { %v8089_v31 = vpop.f32.mrf.mxu0 }
 0x9b2   : > { %v8903_v63 = vadd.f32 %v8871_v25, %v6762_v47  ;;  %v6766_v25 = vadd.f32 %v14967_v59, %v15315_v56  ;;  %v15321_v56 = vld [vmem:[#allocation37_spill] sm:$0xff] }
 0x9b3   : > { %v8544_v20 = vpop.f32.mrf.mxu2 }
 0x9b4   : > { %v8778_v27 = vpop.f32.mrf.mxu3  ;;  %v8935_v37 = vmax.f32 %v8903_v63, 0.0  ;;  %v8602_v12 = vadd.f32 %v8544_v20, %v8368_v49  ;;  %v8138_v63 = vadd.f32 %v8086_v44, %v14899_v41 }
 0x9b5   : > { %v8315_v26 = vpop.f32.mrf.mxu1 }
 0x9b6   : > { %8967 = vst [vmem:[%s14979_s11 + $0x70] sm:$0xff] %v8935_v37  ;;  %v8836_v42 = vadd.f32 %v8778_v27, %v8602_v12  ;;  %v8370_v52 = vadd.f32 %v8315_v26, %v8136_v62  ;;  %v15318_v62 = vld [vmem:[#allocation28_spill] sm:$0xff] }
 0x9b8   : > { %v8872_v5 = vadd.f32 %v14969_v53, %v8836_v42 }
 0x9b9   : > { %v8091_v14 = vpop.f32.mrf.mxu0 }
 0x9ba   : > { %v8904_v17 = vadd.f32 %v8872_v5, %v6763_v13  ;;  %v15316_v13 = vld [vmem:[#allocation31_spill] sm:$0xff]  ;;  %v8139_v5 = vadd.f32 %v8089_v31, %v14906_v33 }
 0x9bb   : > { %v8547_v43 = vpop.f32.mrf.mxu2  ;;  %v6767_v46 = vadd.f32 %v14967_v59, %v15316_v13  ;;  %v15322_v13 = vld [vmem:[#allocation39_spill] sm:$0xff] }
 0x9bc   : > { %v8781_v22 = vpop.f32.mrf.mxu3  ;;  %v8936_v3 = vmax.f32 %v8904_v17, 0.0  ;;  %v8603_v10 = vadd.f32 %v8547_v43, %v8369_v2 }
 0x9bd   : > { %v8318_v0 = vpop.f32.mrf.mxu1 }
 0x9be   : > { %8968 = vst [vmem:[%s14979_s11 + $0x78] sm:$0xff] %v8936_v3  ;;  %v8837_v61 = vadd.f32 %v8781_v22, %v8603_v10  ;;  %v8371_v34 = vadd.f32 %v8318_v0, %v8137_v39  ;;  %v15320_v39 = vld [vmem:[#allocation30_spill] sm:$0xff] }
 0x9c0   : > { %v8873_v1 = vadd.f32 %v14969_v53, %v8837_v61 }
 0x9c1   : > { %v8094_v48 = vpop.f32.mrf.mxu0 }
 0x9c2   : > { %v8905_v32 = vadd.f32 %v8873_v1, %v6764_v38  ;;  %v6768_v38 = vadd.f32 %v14967_v59, %v15317_v21  ;;  %v8140_v1 = vadd.f32 %v8091_v14, %v15318_v62 }
 0x9c3   : > { %v8549_v16 = vpop.f32.mrf.mxu2 }
 0x9c4   : > { %v8783_v55 = vpop.f32.mrf.mxu3  ;;  %v8937_v9 = vmax.f32 %v8905_v32, 0.0  ;;  %v8604_v50 = vadd.f32 %v8549_v16, %v8370_v52 }
 0x9c5   : > { %v8320_v35 = vpop.f32.mrf.mxu1 }
 0x9c6   : > { %8969 = vst [vmem:[%s14979_s11 + $0x80] sm:$0xff] %v8937_v9  ;;  %v8838_v11 = vadd.f32 %v8783_v55, %v8604_v50  ;;  %v8372_v20 = vadd.f32 %v8320_v35, %v8138_v63 }
 0x9c8   : > { %v8874_v4 = vadd.f32 %v14969_v53, %v8838_v11 }
 0x9c9   : > { %v8096_v22 = vpop.f32.mrf.mxu0 }
 0x9ca   : > { %v8906_v51 = vadd.f32 %v8874_v4, %v6765_v19  ;;  %v6769_v19 = vadd.f32 %v14967_v59, %v15319_v23  ;;  %v8141_v4 = vadd.f32 %v8094_v48, %v15320_v39  ;;  %v8142_v63 = vadd.f32 %v8096_v22, %v14926_v28 }
 0x9cb   : > { %v8552_v7 = vpop.f32.mrf.mxu2 }
 0x9cc   : > { %v8786_v54 = vpop.f32.mrf.mxu3  ;;  %v8938_v24 = vmax.f32 %v8906_v51, 0.0  ;;  %v8605_v45 = vadd.f32 %v8552_v7, %v8371_v34 }
 0x9cd   : > { %v8323_v36 = vpop.f32.mrf.mxu1 }
 0x9ce   : > { %8970 = vst [vmem:[%s14979_s11 + $0x88] sm:$0xff] %v8938_v24  ;;  %v8839_v47 = vadd.f32 %v8786_v54, %v8605_v45  ;;  %v8373_v17 = vadd.f32 %v8323_v36, %v8139_v5 }
 0x9d0   : > { %v8875_v40 = vadd.f32 %v14969_v53, %v8839_v47 }
 0x9d1   : > { %v8099_v35 = vpop.f32.mrf.mxu0 }
 0x9d2   : > { %v8907_v49 = vadd.f32 %v8875_v40, %v6766_v25  ;;  %v6770_v25 = vadd.f32 %v14967_v59, %v15321_v56  ;;  %v8143_v5 = vadd.f32 %v8099_v35, %v14930_v29 }
 0x9d3   : > { %v8554_v27 = vpop.f32.mrf.mxu2 }
 0x9d4   : > { %v8788_v37 = vpop.f32.mrf.mxu3  ;;  %v8939_v12 = vmax.f32 %v8907_v49, 0.0  ;;  %v8606_v26 = vadd.f32 %v8554_v27, %v8372_v20 }
 0x9d5   : > { %v8325_v42 = vpop.f32.mrf.mxu1 }
 0x9d6   : > { %8971 = vst [vmem:[%s14979_s11 + $0x90] sm:$0xff] %v8939_v12  ;;  %v8840_v18 = vadd.f32 %v8788_v37, %v8606_v26  ;;  %v8374_v32 = vadd.f32 %v8325_v42, %v8140_v1 }
 0x9d8   : > { %v8876_v41 = vadd.f32 %v14969_v53, %v8840_v18 }
 0x9d9   : > { %v8101_v40 = vpop.f32.mrf.mxu0 }
 0x9da   : > { %v8908_v44 = vadd.f32 %v8876_v41, %v6767_v46  ;;  %v6771_v46 = vadd.f32 %v14967_v59, %v15322_v13 }
 0x9db   : > { %v8557_v2 = vpop.f32.mrf.mxu2 }
 0x9dc   : > { %v8791_v43 = vpop.f32.mrf.mxu3  ;;  %v8940_v3 = vmax.f32 %v8908_v44, 0.0  ;;  %v8607_v10 = vadd.f32 %v8557_v2, %v8373_v17 }
 0x9dd   : > { %v8328_v0 = vpop.f32.mrf.mxu1 }
 0x9de   : > { %8972 = vst [vmem:[%s14979_s11 + $0x98] sm:$0xff] %v8940_v3  ;;  %v8841_v61 = vadd.f32 %v8791_v43, %v8607_v10  ;;  %v8375_v34 = vadd.f32 %v8328_v0, %v8141_v4 }
 0x9e0   : > { %v8877_v33 = vadd.f32 %v14969_v53, %v8841_v61  ;;  %v15323_v61 = vld [vmem:[#allocation41_spill] sm:$0xff] }
 0x9e1   : > { %v8104_v41 = vpop.f32.mrf.mxu0  ;;  %v6772_v21 = vadd.f32 %v14967_v59, %v15323_v61 }
 0x9e2   : > { %v8909_v31 = vadd.f32 %v8877_v33, %v6768_v38  ;;  %v8144_v38 = vadd.f32 %v8101_v40, %v14935_v60 }
 0x9e3   : > { %v8559_v52 = vpop.f32.mrf.mxu2 }
 0x9e4   : > { %v8793_v16 = vpop.f32.mrf.mxu3  ;;  %v8941_v55 = vmax.f32 %v8909_v31, 0.0  ;;  %v8608_v9 = vadd.f32 %v8559_v52, %v8374_v32 }
 0x9e5   : > { %v8330_v50 = vpop.f32.mrf.mxu1 }
 0x9e6   : > { %8973 = vst [vmem:[%s14979_s11 + $0xa0] sm:$0xff] %v8941_v55  ;;  %v8842_v11 = vadd.f32 %v8793_v16, %v8608_v9  ;;  %v8376_v20 = vadd.f32 %v8330_v50, %v8142_v63  ;;  %v15324_v50 = vld [vmem:[#allocation43_spill] sm:$0xff] }
 0x9e7   : > { %v6773_v35 = vadd.f32 %v14967_v59, %v15324_v50 }
 0x9e8   : > { %v8878_v14 = vadd.f32 %v14969_v53, %v8842_v11  ;;  %v8145_v11 = vadd.f32 %v8104_v41, %v14940_v58 }
 0x9e9   : > { %v8106_v32 = vpop.f32.mrf.mxu0 }
 0x9ea   : > { %v8910_v51 = vadd.f32 %v8878_v14, %v6769_v19 }
 0x9eb   : > { %v8562_v7 = vpop.f32.mrf.mxu2 }
 0x9ec   : > { %v8796_v54 = vpop.f32.mrf.mxu3  ;;  %v8942_v24 = vmax.f32 %v8910_v51, 0.0  ;;  %v8609_v45 = vadd.f32 %v8562_v7, %v8375_v34 }
 0x9ed   : > { %v8333_v36 = vpop.f32.mrf.mxu1 }
 0x9ee   : > { %8974 = vst [vmem:[%s14979_s11 + $0xa8] sm:$0xff] %v8942_v24  ;;  %v8843_v47 = vadd.f32 %v8796_v54, %v8609_v45  ;;  %v8377_v17 = vadd.f32 %v8333_v36, %v8143_v5  ;;  %v15325_v54 = vld [vmem:[#allocation45_spill] sm:$0xff]  ;;  %v8146_v45 = vadd.f32 %v8106_v32, %v14945_v6 }
 0x9ef   : > { %v6774_v24 = vadd.f32 %v14967_v59, %v15325_v54 }
 0x9f0   : > { %v8879_v48 = vadd.f32 %v14969_v53, %v8843_v47 }
 0x9f1   : > { %v8109_v34 = vpop.f32.mrf.mxu0 }
 0x9f2   : > { %v8911_v49 = vadd.f32 %v8879_v48, %v6770_v25 }
 0x9f3   : > { %v8564_v27 = vpop.f32.mrf.mxu2 }
 0x9f4   : > { %v8798_v37 = vpop.f32.mrf.mxu3  ;;  %v8943_v12 = vmax.f32 %v8911_v49, 0.0  ;;  %v8610_v26 = vadd.f32 %v8564_v27, %v8376_v20  ;;  %v15326_v20 = vld [vmem:[#allocation47_spill] sm:$0xff] }
 0x9f5   : > { %v8335_v42 = vpop.f32.mrf.mxu1  ;;  %v6775_v27 = vadd.f32 %v14967_v59, %v15326_v20 }
 0x9f6   : > { %8975 = vst [vmem:[%s14979_s11 + $0xb0] sm:$0xff] %v8943_v12  ;;  %v8844_v18 = vadd.f32 %v8798_v37, %v8610_v26  ;;  %v8378_v1 = vadd.f32 %v8335_v42, %v8144_v38  ;;  %v8147_v37 = vadd.f32 %v8109_v34, %v14950_v57 }
 0x9f8   : > { %v8880_v28 = vadd.f32 %v14969_v53, %v8844_v18 }
 0x9f9   : > { %v8111_v12 = vpop.f32.mrf.mxu0 }
 0x9fa   : > { %v8912_v44 = vadd.f32 %v8880_v28, %v6771_v46 }
 0x9fb   : > { %v8567_v2 = vpop.f32.mrf.mxu2 }
 0x9fc   : > { %v8801_v43 = vpop.f32.mrf.mxu3  ;;  %v8944_v22 = vmax.f32 %v8912_v44, 0.0  ;;  %v8611_v3 = vadd.f32 %v8567_v2, %v8377_v17  ;;  %v15327_v44 = vld [vmem:[#allocation49_spill] sm:$0xff]  ;;  %v8148_v2 = vadd.f32 %v8111_v12, %v14957_v8 }
 0x9fd   : > { %v8338_v10 = vpop.f32.mrf.mxu1  ;;  %v6776_v17 = vadd.f32 %v14967_v59, %v15327_v44 }
 0x9fe   : > { %8976 = vst [vmem:[%s14979_s11 + $0xb8] sm:$0xff] %v8944_v22  ;;  %v8845_v0 = vadd.f32 %v8801_v43, %v8611_v3  ;;  %v8379_v19 = vadd.f32 %v8338_v10, %v8145_v11 }
 0xa00   : > { %v8881_v29 = vadd.f32 %v14969_v53, %v8845_v0 }
 0xa01   : > { %v8114_v43 = vpop.f32.mrf.mxu0 }
 0xa02   : > { %v8913_v62 = vadd.f32 %v8881_v29, %v6772_v21 }
 0xa03   : > { %v8569_v33 = vpop.f32.mrf.mxu2 }
 0xa04   : > { %v8803_v31 = vpop.f32.mrf.mxu3  ;;  %v8945_v52 = vmax.f32 %v8913_v62, 0.0  ;;  %v8612_v16 = vadd.f32 %v8569_v33, %v8378_v1  ;;  %v15328_v62 = vld [vmem:[#allocation51_spill] sm:$0xff]  ;;  %v8149_v33 = vadd.f32 %v8114_v43, %v14960_v30 }
 0xa05   : > { %v8340_v9 = vpop.f32.mrf.mxu1  ;;  %v6777_v1 = vadd.f32 %v14967_v59, %v15328_v62 }
 0xa06   : > { %8977 = vst [vmem:[%s14979_s11 + $0xc0] sm:$0xff] %v8945_v52  ;;  %v8846_v55 = vadd.f32 %v8803_v31, %v8612_v16  ;;  %v8380_v56 = vadd.f32 %v8340_v9, %v8146_v45 }
 0xa08   : > { %v8882_v60 = vadd.f32 %v14969_v53, %v8846_v55 }
 0xa09   : > { %v8116_v50 = vpop.f32.mrf.mxu0 }
 0xa0a   : > { %v8914_v23 = vadd.f32 %v8882_v60, %v6773_v35  ;;  %v15329_v60 = vld [vmem:[#allocation52_spill] sm:$0xff] }
 0xa0b   : > { %v8572_v39 = vpop.f32.mrf.mxu2 }
 0xa0c   : > { %v8806_v4 = vpop.f32.mrf.mxu3  ;;  %v8946_v14 = vmax.f32 %v8914_v23, 0.0  ;;  %v8613_v51 = vadd.f32 %v8572_v39, %v8379_v19  ;;  %v6778_v23 = vadd.f32 %v14967_v59, %v15329_v60  ;;  %v8150_v19 = vadd.f32 %v8116_v50, %v14962_v15 }
 0xa0d   : > { %v8343_v58 = vpop.f32.mrf.mxu1 }
 0xa0e   : > { %8978 = vst [vmem:[%s14979_s11 + $0xc8] sm:$0xff] %v8946_v14  ;;  %v8847_v7 = vadd.f32 %v8806_v4, %v8613_v51  ;;  %v8381_v42 = vadd.f32 %v8343_v58, %v8147_v37 }
 0xa10   : > { %v8883_v36 = vadd.f32 %v14969_v53, %v8847_v7 }
 0xa12   : > { %v8915_v47 = vadd.f32 %v8883_v36, %v6774_v24  ;;  %v15330_v24 = vld [vmem:[#allocation53_spill] sm:$0xff] }
 0xa13   : > { %v8574_v25 = vpop.f32.mrf.mxu2  ;;  %v6779_v45 = vadd.f32 %v14967_v59, %v15330_v24 }
 0xa14   : > { %v8808_v63 = vpop.f32.mrf.mxu3  ;;  %v8947_v40 = vmax.f32 %v8915_v47, 0.0  ;;  %v8614_v48 = vadd.f32 %v8574_v25, %v8380_v56 }
 0xa15   : > { %v8345_v18 = vpop.f32.mrf.mxu1 }
 0xa16   : > { %8979 = vst [vmem:[%s14979_s11 + $0xd0] sm:$0xff] %v8947_v40  ;;  %v8848_v49 = vadd.f32 %v8808_v63, %v8614_v48  ;;  %v8382_v3 = vadd.f32 %v8345_v18, %v8148_v2 }
 0xa18   : > { %v8884_v6 = vadd.f32 %v14969_v53, %v8848_v49 }
 0xa1a   : > { %v8916_v26 = vadd.f32 %v8884_v6, %v6775_v27 }
 0xa1b   : > { %v8577_v13 = vpop.f32.mrf.mxu2 }
 0xa1c   : > { %v8811_v46 = vpop.f32.mrf.mxu3  ;;  %v8948_v5 = vmax.f32 %v8916_v26, 0.0  ;;  %v8615_v28 = vadd.f32 %v8577_v13, %v8381_v42 }
 0xa1d   : > { %v8348_v38 = vpop.f32.mrf.mxu1 }
 0xa1e   : > { %8980 = vst [vmem:[%s14979_s11 + $0xd8] sm:$0xff] %v8948_v5  ;;  %v8849_v41 = vadd.f32 %v8811_v46, %v8615_v28  ;;  %v8383_v32 = vadd.f32 %v8348_v38, %v8149_v33 }
 0xa20   : > { %v8885_v57 = vadd.f32 %v14969_v53, %v8849_v41 }
 0xa22   : > { %v8917_v22 = vadd.f32 %v8885_v57, %v6776_v17 }
 0xa23   : > { %v8579_v10 = vpop.f32.mrf.mxu2 }
 0xa24   : > { %v8813_v0 = vpop.f32.mrf.mxu3  ;;  %v8949_v61 = vmax.f32 %v8917_v22, 0.0  ;;  %v8616_v21 = vadd.f32 %v8579_v10, %v8382_v3 }
 0xa25   : > { %v8350_v11 = vpop.f32.mrf.mxu1 }
 0xa26   : > { %8981 = vst [vmem:[%s14979_s11 + $0xe0] sm:$0xff] %v8949_v61  ;;  %v8850_v29 = vadd.f32 %v8813_v0, %v8616_v21  ;;  %v8384_v4 = vadd.f32 %v8350_v11, %v8150_v19 }
 0xa28   : > { %v8886_v8 = vadd.f32 %v14969_v53, %v8850_v29 }
 0xa2a   : > { %v8918_v31 = vadd.f32 %v8886_v8, %v6777_v1 }
 0xa2b   : > { %v8582_v52 = vpop.f32.mrf.mxu2 }
 0xa2c   : > { %v8816_v16 = vpop.f32.mrf.mxu3  ;;  %v8950_v55 = vmax.f32 %v8918_v31, 0.0  ;;  %v8617_v9 = vadd.f32 %v8582_v52, %v8383_v32 }
 0xa2e   : > { %8982 = vst [vmem:[%s14979_s11 + $0xe8] sm:$0xff] %v8950_v55  ;;  %v8851_v35 = vadd.f32 %v8816_v16, %v8617_v9 }
 0xa30   : > { %v8887_v30 = vadd.f32 %v14969_v53, %v8851_v35 }
 0xa32   : > { %v8919_v39 = vadd.f32 %v8887_v30, %v6778_v23 }
 0xa33   : > { %v8584_v14 = vpop.f32.mrf.mxu2 }
 0xa34   : > { %v8951_v51 = vmax.f32 %v8919_v39, 0.0  ;;  %v8618_v34 = vadd.f32 %v8584_v14, %v8384_v4  ;;  %v8818_v7 = vpop.f32.mrf.mxu3 }
 0xa36   : > { %8983 = vst [vmem:[%s14979_s11 + $0xf0] sm:$0xff] %v8951_v51  ;;  %v8852_v54 = vadd.f32 %v8818_v7, %v8618_v34 }
 0xa38   : > { %v8888_v36 = vadd.f32 %v14969_v53, %v8852_v54 }
 0xa3a   : > { %v8920_v58 = vadd.f32 %v8888_v36, %v6779_v45 }
 0xa3c   : > { %v8952_v47 = vmax.f32 %v8920_v58, 0.0 }
 0xa3e   : > { %8984 = vst [vmem:[%s14979_s11 + $0xf8] sm:$0xff] %v8952_v47 }
 0xa3f PF: > { %s21_s30 = sadd.s32 1, %s11578_s30  }
 0xa40   : > { %p18_p7 = scmp.ge.s32.totalorder %s21_s30, 4  }
 0xa42   :  { %20 = sbr.rel (!%p18_p7) target bundleno = 2 (0x2), region = 135 }
 0xa47   :  { %9006 = vsyncpa [#allocation4], 1 }
 0xa48   :  { %9008 = vsyncpa [#allocation4 + $0x1], 1 }
 0xa49   :  { %9009 = vsyncpa [#allocation6], 1 }

</bundles_post_ra>
